<compile_context>
chip_gen: v7x
topology: tpu7x:2x2x1
jax: 0.10.0
libtpu: 0.0.40
codegen_flags: <defaults>
</compile_context>

<pallas_src>
import functools

import jax
import jax.numpy as jnp
from jax.experimental import pallas as pl
from jax.experimental.pallas import tpu as pltpu

K = 5   # conv kernel size
P = 2   # 'same' padding for a 5x5 kernel


def _conv5x5_gemm(x, w_ref, b_ref, wp, s_flat):
    """5x5 'same' conv as a single GEMM on the flat padded layout.

    x      : (Cin, S_flat) f32, zero on the halo (and on the lane tail pad)
    w_ref  : Ref (Cout, 25*Cin) flattened in [dx, dy, cin] order
    b_ref  : Ref (Cout, 1)
    returns (Cout, S_flat) f32 (valid only at interior positions)
    """
    # Stage 1: 5 row shifts (lane rolls by multiples of the padded width).
    # rows[p] of chunk dy = x[p + (dy - P) * wp]; wrap only hits halo positions.
    rows = [x if dy == P else pltpu.roll(x, (-(dy - P) * wp) % s_flat, axis=1)
            for dy in range(K)]
    rows = jnp.concatenate(rows, axis=0)                 # (5*Cin, S_flat), [dy, cin]

    # Stage 2: 5 column shifts of the whole row stack -> full im2col matrix.
    cols = [rows if dx == P else pltpu.roll(rows, (-(dx - P)) % s_flat, axis=1)
            for dx in range(K)]
    patches = jnp.concatenate(cols, axis=0)              # (25*Cin, S_flat), [dx, dy, cin]

    y = jnp.dot(w_ref[...], patches, preferred_element_type=jnp.float32)
    return y + b_ref[...]                                # (Cout, 1) broadcasts over lanes


def _primal_net_kernel(wp, s_flat,
                       x_ref, m_ref,
                       w1_ref, b1_ref, a1_ref,
                       w2_ref, b2_ref, a2_ref,
                       w3_ref, b3_ref,
                       out_ref):
    mask = m_ref[...]                                    # (1, S_flat): 1 interior / 0 halo+tail
    x = x_ref[0]                                         # (2*n_primal, S_flat)

    # conv1 + PReLU, then re-zero the halo so it acts as zero padding for conv2.
    h = _conv5x5_gemm(x, w1_ref, b1_ref, wp, s_flat)     # (32, S_flat)
    h = jnp.where(h >= 0, h, a1_ref[...] * h) * mask

    # conv2 + PReLU
    h = _conv5x5_gemm(h, w2_ref, b2_ref, wp, s_flat)
    h = jnp.where(h >= 0, h, a2_ref[...] * h) * mask

    # conv3
    h = _conv5x5_gemm(h, w3_ref, b3_ref, wp, s_flat)     # (n_primal, S_flat)

    # residual: primal occupies the first n_primal channels of the concatenated input.
    n_primal = out_ref.shape[1]
    out_ref[0] = x[:n_primal, :] + h                     # halo garbage sliced off outside


def primal_net_forward(primal, dual_projected, params):
    """primal, dual_projected: (N, n_slices, H, W) float32 (NCHW, as in PyTorch).

    params: (w1, b1, a1, w2, b2, a2, w3, b3) with torch-style shapes:
      conv weights OIHW (Cout, Cin, 5, 5), biases (Cout,), PReLU weights (1,).
    Returns (N, n_slices, H, W) float32.
    """
    N, C, H, W = primal.shape
    w1, b1, a1, w2, b2, a2, w3, b3 = params

    HP, WP = H + 2 * P, W + 2 * P
    S = HP * WP
    S_flat = ((S + 127) // 128) * 128           # lane-dense, multiple of 128

    # --- parameter repacking (tiny, one-time) ---------------------------------
    def flat_w(w):
        # OIHW -> (Cout, KW, KH, Cin) -> (Cout, 25*Cin) in [dx, dy, cin] order,
        # matching the two-stage (column-major-over-taps) im2col built in-kernel.
        return jnp.transpose(w, (0, 3, 2, 1)).reshape(w.shape[0], -1)

    w1f, w2f, w3f = flat_w(w1), flat_w(w2), flat_w(w3)
    b1c, b2c, b3c = b1.reshape(-1, 1), b2.reshape(-1, 1), b3.reshape(-1, 1)
    a1c, a2c = a1.reshape(1, 1), a2.reshape(1, 1)

    # --- input assembly: cat(dim=1) + spatial zero-pad + flatten (lane-dense) --
    x = jnp.concatenate([primal, dual_projected], axis=1)            # (N, 2C, H, W)
    x = jnp.pad(x, ((0, 0), (0, 0), (P, P), (P, P)))                 # (N, 2C, HP, WP)
    x = x.reshape(N, 2 * C, S)
    x = jnp.pad(x, ((0, 0), (0, 0), (0, S_flat - S)))                # (N, 2C, S_flat)

    mask = jnp.zeros((HP, WP), jnp.float32).at[P:P + H, P:P + W].set(1.0)
    mask = jnp.pad(mask.reshape(1, S), ((0, 0), (0, S_flat - S)))    # (1, S_flat)

    kernel = functools.partial(_primal_net_kernel, WP, S_flat)

    def full_spec(a):
        return pl.BlockSpec(a.shape, lambda n, nd=a.ndim: (0,) * nd)

    grid_spec = pltpu.PrefetchScalarGridSpec(
        num_scalar_prefetch=0,
        grid=(N,),                                                    # one batch element / step
        in_specs=[
            pl.BlockSpec((1, 2 * C, S_flat), lambda n: (n, 0, 0)),
            full_spec(mask),
            full_spec(w1f), full_spec(b1c), full_spec(a1c),
            full_spec(w2f), full_spec(b2c), full_spec(a2c),
            full_spec(w3f), full_spec(b3c),
        ],
        out_specs=pl.BlockSpec((1, C, S_flat), lambda n: (n, 0, 0)),
    )

    out = pl.pallas_call(
        kernel,
        out_shape=jax.ShapeDtypeStruct((N, C, S_flat), jnp.float32),
        grid_spec=grid_spec,
        compiler_params=pltpu.CompilerParams(
            dimension_semantics=("parallel",)),                       # 2 TCs on v7x
    )(x, mask, w1f, b1c, a1c, w2f, b2c, a2c, w3f, b3c)

    # drop lane-tail pad and halo, back to NCHW
    out = out[:, :, :S].reshape(N, C, HP, WP)[:, :, P:P + H, P:P + W]
    return out


def _ref_forward(primal, dual, params):
    """Pure-JAX reference (lax.conv, NCHW/OIHW) for correctness checking."""
    w1, b1, a1, w2, b2, a2, w3, b3 = params

    def conv(x, w, b):
        y = jax.lax.conv_general_dilated(
            x, w, (1, 1), 'SAME',
            dimension_numbers=('NCHW', 'OIHW', 'NCHW'),
            precision=jax.lax.Precision.HIGHEST)
        return y + b.reshape(1, -1, 1, 1)

    def prelu(y, a):
        return jnp.where(y >= 0, y, a.reshape(1, -1, 1, 1) * y)

    x = jnp.concatenate([primal, dual], axis=1)
    h = prelu(conv(x, w1, b1), a1)
    h = prelu(conv(h, w2, b2), a2)
    h = conv(h, w3, b3)
    return primal + h


if __name__ == "__main__":
    key = jax.random.PRNGKey(0)
    n_slices = 4                 # -> n_primal = 4, n_channels = 8
    N, H, W = 2, 16, 16
    n_channels = 2 * n_slices
    hidden = 32                  # fixed by the module

    ks = jax.random.split(key, 8)
    # Deterministic synthetic parameters (torch-style shapes: OIHW, (Cout,), PReLU (1,)).
    w1 = jax.random.normal(ks[0], (hidden, n_channels, K, K), jnp.float32) * 0.05
    b1 = jax.random.normal(ks[1], (hidden,), jnp.float32) * 0.05
    a1 = jnp.full((1,), 0.25, jnp.float32)        # nn.PReLU() default init
    w2 = jax.random.normal(ks[2], (hidden, hidden, K, K), jnp.float32) * 0.05
    b2 = jax.random.normal(ks[3], (hidden,), jnp.float32) * 0.05
    a2 = jnp.full((1,), 0.25, jnp.float32)
    w3 = jax.random.normal(ks[4], (n_slices, hidden, K, K), jnp.float32) * 0.05
    b3 = jax.random.normal(ks[5], (n_slices,), jnp.float32) * 0.05
    params = (w1, b1, a1, w2, b2, a2, w3, b3)

    primal = jax.random.normal(ks[6], (N, n_slices, H, W), jnp.float32)
    dual_projected = jax.random.normal(ks[7], (N, n_slices, H, W), jnp.float32)

    out = primal_net_forward(primal, dual_projected, params)
    out = jax.block_until_ready(out)

    ref = _ref_forward(primal, dual_projected, params)
    assert out.shape == (N, n_slices, H, W)
    max_err = float(jnp.max(jnp.abs(out - ref)))
    assert jnp.allclose(out, ref, atol=2e-4, rtol=2e-4), max_err

    print("KERNEL_OK")
</pallas_src>

<mosaic_0001>
module attributes {stable_mosaic.version = 11 : i64} {
  func.func @_primal_net_kernel(%arg0: i32, %arg1: memref<1x8x512xf32, #tpu.memory_space<vmem>>, %arg2: memref<1x512xf32, #tpu.memory_space<vmem>>, %arg3: memref<32x200xf32, #tpu.memory_space<vmem>>, %arg4: memref<32x1xf32, #tpu.memory_space<vmem>>, %arg5: memref<1x1xf32, #tpu.memory_space<vmem>>, %arg6: memref<32x800xf32, #tpu.memory_space<vmem>>, %arg7: memref<32x1xf32, #tpu.memory_space<vmem>>, %arg8: memref<1x1xf32, #tpu.memory_space<vmem>>, %arg9: memref<4x800xf32, #tpu.memory_space<vmem>>, %arg10: memref<4x1xf32, #tpu.memory_space<vmem>>, %arg11: memref<1x4x512xf32, #tpu.memory_space<vmem>>) attributes {dimension_semantics = [#tpu.dimension_semantics<parallel>], iteration_bounds = array<i64: 2>, scalar_prefetch = 0 : i64, scratch_operands = 0 : i64, tpu.core_type = #tpu.core_type<tc>, window_params = [{transform_indices = @transform_0, window_bounds = array<i64: 1, 8, 512>}, {pipeline_mode = #tpu.pipeline_mode<synchronous>, transform_indices = @transform_1, window_bounds = array<i64: 1, 512>}, {pipeline_mode = #tpu.pipeline_mode<synchronous>, transform_indices = @transform_2, window_bounds = array<i64: 32, 200>}, {pipeline_mode = #tpu.pipeline_mode<synchronous>, transform_indices = @transform_3, window_bounds = array<i64: 32, 1>}, {pipeline_mode = #tpu.pipeline_mode<synchronous>, transform_indices = @transform_4, window_bounds = array<i64: 1, 1>}, {pipeline_mode = #tpu.pipeline_mode<synchronous>, transform_indices = @transform_5, window_bounds = array<i64: 32, 800>}, {pipeline_mode = #tpu.pipeline_mode<synchronous>, transform_indices = @transform_6, window_bounds = array<i64: 32, 1>}, {pipeline_mode = #tpu.pipeline_mode<synchronous>, transform_indices = @transform_7, window_bounds = array<i64: 1, 1>}, {pipeline_mode = #tpu.pipeline_mode<synchronous>, transform_indices = @transform_8, window_bounds = array<i64: 4, 800>}, {pipeline_mode = #tpu.pipeline_mode<synchronous>, transform_indices = @transform_9, window_bounds = array<i64: 4, 1>}, {transform_indices = @transform_10, window_bounds = array<i64: 1, 4, 512>}]} {
    %c0 = arith.constant 0 : index
    %c0_0 = arith.constant 0 : index
    %0 = vector.load %arg2[%c0, %c0_0] : memref<1x512xf32, #tpu.memory_space<vmem>>, vector<1x512xf32>
    %c0_1 = arith.constant 0 : index
    %c0_2 = arith.constant 0 : index
    %c0_3 = arith.constant 0 : index
    %1 = vector.load %arg1[%c0_1, %c0_2, %c0_3] : memref<1x8x512xf32, #tpu.memory_space<vmem>>, vector<1x8x512xf32>
    %2 = vector.shape_cast %1 : vector<1x8x512xf32> to vector<8x512xf32>
    %c40_i32 = arith.constant 40 : i32
    %3 = tpu.dynamic_rotate %2 by %c40_i32 dim 1 : vector<8x512xf32>, i32 -> vector<8x512xf32>
    %c20_i32 = arith.constant 20 : i32
    %4 = tpu.dynamic_rotate %2 by %c20_i32 dim 1 : vector<8x512xf32>, i32 -> vector<8x512xf32>
    %c492_i32 = arith.constant 492 : i32
    %5 = tpu.dynamic_rotate %2 by %c492_i32 dim 1 : vector<8x512xf32>, i32 -> vector<8x512xf32>
    %c472_i32 = arith.constant 472 : i32
    %6 = tpu.dynamic_rotate %2 by %c472_i32 dim 1 : vector<8x512xf32>, i32 -> vector<8x512xf32>
    %7 = tpu.concatenate %3, %4, %2, %5, %6 in 0 : vector<8x512xf32>, vector<8x512xf32>, vector<8x512xf32>, vector<8x512xf32>, vector<8x512xf32> -> vector<40x512xf32>
    %c2_i32 = arith.constant 2 : i32
    %8 = tpu.dynamic_rotate %7 by %c2_i32 dim 1 : vector<40x512xf32>, i32 -> vector<40x512xf32>
    %c1_i32 = arith.constant 1 : i32
    %9 = tpu.dynamic_rotate %7 by %c1_i32 dim 1 : vector<40x512xf32>, i32 -> vector<40x512xf32>
    %c511_i32 = arith.constant 511 : i32
    %10 = tpu.dynamic_rotate %7 by %c511_i32 dim 1 : vector<40x512xf32>, i32 -> vector<40x512xf32>
    %c510_i32 = arith.constant 510 : i32
    %11 = tpu.dynamic_rotate %7 by %c510_i32 dim 1 : vector<40x512xf32>, i32 -> vector<40x512xf32>
    %12 = tpu.concatenate %8, %9, %7, %10, %11 in 0 : vector<40x512xf32>, vector<40x512xf32>, vector<40x512xf32>, vector<40x512xf32>, vector<40x512xf32> -> vector<200x512xf32>
    %c0_4 = arith.constant 0 : index
    %c0_5 = arith.constant 0 : index
    %13 = vector.load %arg3[%c0_4, %c0_5] : memref<32x200xf32, #tpu.memory_space<vmem>>, vector<32x200xf32>
    %cst = arith.constant dense<0.000000e+00> : vector<32x512xf32>
    %14 = tpu.matmul %13, %12, %cst {dimension_numbers = #tpu.dot_dimension_numbers<[1], [0], [0], [1], [0, 0, 1, 1], [], []>} : vector<32x200xf32>, vector<200x512xf32>, vector<32x512xf32> -> vector<32x512xf32>
    %c0_6 = arith.constant 0 : index
    %c0_7 = arith.constant 0 : index
    %15 = vector.load %arg4[%c0_6, %c0_7] : memref<32x1xf32, #tpu.memory_space<vmem>>, vector<32x1xf32>
    %16 = vector.broadcast %15 : vector<32x1xf32> to vector<32x512xf32>
    %17 = arith.addf %14, %16 : vector<32x512xf32>
    %cst_8 = arith.constant 0.000000e+00 : f32
    %18 = vector.broadcast %cst_8 : f32 to vector<32x512xf32>
    %19 = arith.cmpf oge, %17, %18 : vector<32x512xf32>
    %c0_9 = arith.constant 0 : index
    %c0_10 = arith.constant 0 : index
    %20 = vector.load %arg5[%c0_9, %c0_10] : memref<1x1xf32, #tpu.memory_space<vmem>>, vector<1x1xf32>
    %21 = vector.broadcast %20 : vector<1x1xf32> to vector<32x512xf32>
    %22 = arith.mulf %21, %17 : vector<32x512xf32>
    %23 = arith.select %19, %17, %22 : vector<32x512xi1>, vector<32x512xf32>
    %24 = vector.broadcast %0 : vector<1x512xf32> to vector<32x512xf32>
    %25 = arith.mulf %23, %24 : vector<32x512xf32>
    %c40_i32_11 = arith.constant 40 : i32
    %26 = tpu.dynamic_rotate %25 by %c40_i32_11 dim 1 : vector<32x512xf32>, i32 -> vector<32x512xf32>
    %c20_i32_12 = arith.constant 20 : i32
    %27 = tpu.dynamic_rotate %25 by %c20_i32_12 dim 1 : vector<32x512xf32>, i32 -> vector<32x512xf32>
    %c492_i32_13 = arith.constant 492 : i32
    %28 = tpu.dynamic_rotate %25 by %c492_i32_13 dim 1 : vector<32x512xf32>, i32 -> vector<32x512xf32>
    %c472_i32_14 = arith.constant 472 : i32
    %29 = tpu.dynamic_rotate %25 by %c472_i32_14 dim 1 : vector<32x512xf32>, i32 -> vector<32x512xf32>
    %30 = tpu.concatenate %26, %27, %25, %28, %29 in 0 : vector<32x512xf32>, vector<32x512xf32>, vector<32x512xf32>, vector<32x512xf32>, vector<32x512xf32> -> vector<160x512xf32>
    %c2_i32_15 = arith.constant 2 : i32
    %31 = tpu.dynamic_rotate %30 by %c2_i32_15 dim 1 : vector<160x512xf32>, i32 -> vector<160x512xf32>
    %c1_i32_16 = arith.constant 1 : i32
    %32 = tpu.dynamic_rotate %30 by %c1_i32_16 dim 1 : vector<160x512xf32>, i32 -> vector<160x512xf32>
    %c511_i32_17 = arith.constant 511 : i32
    %33 = tpu.dynamic_rotate %30 by %c511_i32_17 dim 1 : vector<160x512xf32>, i32 -> vector<160x512xf32>
    %c510_i32_18 = arith.constant 510 : i32
    %34 = tpu.dynamic_rotate %30 by %c510_i32_18 dim 1 : vector<160x512xf32>, i32 -> vector<160x512xf32>
    %35 = tpu.concatenate %31, %32, %30, %33, %34 in 0 : vector<160x512xf32>, vector<160x512xf32>, vector<160x512xf32>, vector<160x512xf32>, vector<160x512xf32> -> vector<800x512xf32>
    %c0_19 = arith.constant 0 : index
    %c0_20 = arith.constant 0 : index
    %36 = vector.load %arg6[%c0_19, %c0_20] : memref<32x800xf32, #tpu.memory_space<vmem>>, vector<32x800xf32>
    %cst_21 = arith.constant dense<0.000000e+00> : vector<32x512xf32>
    %37 = tpu.matmul %36, %35, %cst_21 {dimension_numbers = #tpu.dot_dimension_numbers<[1], [0], [0], [1], [0, 0, 1, 1], [], []>} : vector<32x800xf32>, vector<800x512xf32>, vector<32x512xf32> -> vector<32x512xf32>
    %c0_22 = arith.constant 0 : index
    %c0_23 = arith.constant 0 : index
    %38 = vector.load %arg7[%c0_22, %c0_23] : memref<32x1xf32, #tpu.memory_space<vmem>>, vector<32x1xf32>
    %39 = vector.broadcast %38 : vector<32x1xf32> to vector<32x512xf32>
    %40 = arith.addf %37, %39 : vector<32x512xf32>
    %cst_24 = arith.constant 0.000000e+00 : f32
    %41 = vector.broadcast %cst_24 : f32 to vector<32x512xf32>
    %42 = arith.cmpf oge, %40, %41 : vector<32x512xf32>
    %c0_25 = arith.constant 0 : index
    %c0_26 = arith.constant 0 : index
    %43 = vector.load %arg8[%c0_25, %c0_26] : memref<1x1xf32, #tpu.memory_space<vmem>>, vector<1x1xf32>
    %44 = vector.broadcast %43 : vector<1x1xf32> to vector<32x512xf32>
    %45 = arith.mulf %44, %40 : vector<32x512xf32>
    %46 = arith.select %42, %40, %45 : vector<32x512xi1>, vector<32x512xf32>
    %47 = vector.broadcast %0 : vector<1x512xf32> to vector<32x512xf32>
    %48 = arith.mulf %46, %47 : vector<32x512xf32>
    %c40_i32_27 = arith.constant 40 : i32
    %49 = tpu.dynamic_rotate %48 by %c40_i32_27 dim 1 : vector<32x512xf32>, i32 -> vector<32x512xf32>
    %c20_i32_28 = arith.constant 20 : i32
    %50 = tpu.dynamic_rotate %48 by %c20_i32_28 dim 1 : vector<32x512xf32>, i32 -> vector<32x512xf32>
    %c492_i32_29 = arith.constant 492 : i32
    %51 = tpu.dynamic_rotate %48 by %c492_i32_29 dim 1 : vector<32x512xf32>, i32 -> vector<32x512xf32>
    %c472_i32_30 = arith.constant 472 : i32
    %52 = tpu.dynamic_rotate %48 by %c472_i32_30 dim 1 : vector<32x512xf32>, i32 -> vector<32x512xf32>
    %53 = tpu.concatenate %49, %50, %48, %51, %52 in 0 : vector<32x512xf32>, vector<32x512xf32>, vector<32x512xf32>, vector<32x512xf32>, vector<32x512xf32> -> vector<160x512xf32>
    %c2_i32_31 = arith.constant 2 : i32
    %54 = tpu.dynamic_rotate %53 by %c2_i32_31 dim 1 : vector<160x512xf32>, i32 -> vector<160x512xf32>
    %c1_i32_32 = arith.constant 1 : i32
    %55 = tpu.dynamic_rotate %53 by %c1_i32_32 dim 1 : vector<160x512xf32>, i32 -> vector<160x512xf32>
    %c511_i32_33 = arith.constant 511 : i32
    %56 = tpu.dynamic_rotate %53 by %c511_i32_33 dim 1 : vector<160x512xf32>, i32 -> vector<160x512xf32>
    %c510_i32_34 = arith.constant 510 : i32
    %57 = tpu.dynamic_rotate %53 by %c510_i32_34 dim 1 : vector<160x512xf32>, i32 -> vector<160x512xf32>
    %58 = tpu.concatenate %54, %55, %53, %56, %57 in 0 : vector<160x512xf32>, vector<160x512xf32>, vector<160x512xf32>, vector<160x512xf32>, vector<160x512xf32> -> vector<800x512xf32>
    %c0_35 = arith.constant 0 : index
    %c0_36 = arith.constant 0 : index
    %59 = vector.load %arg9[%c0_35, %c0_36] : memref<4x800xf32, #tpu.memory_space<vmem>>, vector<4x800xf32>
    %cst_37 = arith.constant dense<0.000000e+00> : vector<4x512xf32>
    %60 = tpu.matmul %59, %58, %cst_37 {dimension_numbers = #tpu.dot_dimension_numbers<[1], [0], [0], [1], [0, 0, 1, 1], [], []>} : vector<4x800xf32>, vector<800x512xf32>, vector<4x512xf32> -> vector<4x512xf32>
    %c0_38 = arith.constant 0 : index
    %c0_39 = arith.constant 0 : index
    %61 = vector.load %arg10[%c0_38, %c0_39] : memref<4x1xf32, #tpu.memory_space<vmem>>, vector<4x1xf32>
    %62 = vector.broadcast %61 : vector<4x1xf32> to vector<4x512xf32>
    %63 = arith.addf %60, %62 : vector<4x512xf32>
    %64 = vector.extract_strided_slice %2 {offsets = [0, 0], sizes = [4, 512], strides = [1, 1]} : vector<8x512xf32> to vector<4x512xf32>
    %65 = arith.addf %64, %63 : vector<4x512xf32>
    %c0_40 = arith.constant 0 : index
    %c0_41 = arith.constant 0 : index
    %c0_42 = arith.constant 0 : index
    %66 = vector.load %arg11[%c0_40, %c0_41, %c0_42] : memref<1x4x512xf32, #tpu.memory_space<vmem>>, vector<1x4x512xf32>
    %67 = vector.shape_cast %66 : vector<1x4x512xf32> to vector<4x512xf32>
    %68 = vector.shape_cast %65 : vector<4x512xf32> to vector<1x4x512xf32>
    tpu.vector_store %arg11[%c0_40, %c0_41, %c0_42], %68 {strides = array<i32>} : memref<1x4x512xf32, #tpu.memory_space<vmem>>, vector<1x4x512xf32>,
    return
  }
  func.func @transform_0(%arg0: i32) -> (i32, i32, i32) {
    %c0_i32 = arith.constant 0 : i32
    %c0_i32_0 = arith.constant 0 : i32
    %c0_i32_1 = arith.constant 0 : i32
    return %arg0, %c0_i32, %c0_i32_0 : i32, i32, i32
  }
  func.func @transform_1(%arg0: i32) -> (i32, i32) {
    %c0_i32 = arith.constant 0 : i32
    %c0_i32_0 = arith.constant 0 : i32
    %c0_i32_1 = arith.constant 0 : i32
    return %c0_i32, %c0_i32_0 : i32, i32
  }
  func.func @transform_2(%arg0: i32) -> (i32, i32) {
    %c0_i32 = arith.constant 0 : i32
    %c0_i32_0 = arith.constant 0 : i32
    %c0_i32_1 = arith.constant 0 : i32
    return %c0_i32, %c0_i32_0 : i32, i32
  }
  func.func @transform_3(%arg0: i32) -> (i32, i32) {
    %c0_i32 = arith.constant 0 : i32
    %c0_i32_0 = arith.constant 0 : i32
    %c0_i32_1 = arith.constant 0 : i32
    return %c0_i32, %c0_i32_0 : i32, i32
  }
  func.func @transform_4(%arg0: i32) -> (i32, i32) {
    %c0_i32 = arith.constant 0 : i32
    %c0_i32_0 = arith.constant 0 : i32
    %c0_i32_1 = arith.constant 0 : i32
    return %c0_i32, %c0_i32_0 : i32, i32
  }
  func.func @transform_5(%arg0: i32) -> (i32, i32) {
    %c0_i32 = arith.constant 0 : i32
    %c0_i32_0 = arith.constant 0 : i32
    %c0_i32_1 = arith.constant 0 : i32
    return %c0_i32, %c0_i32_0 : i32, i32
  }
  func.func @transform_6(%arg0: i32) -> (i32, i32) {
    %c0_i32 = arith.constant 0 : i32
    %c0_i32_0 = arith.constant 0 : i32
    %c0_i32_1 = arith.constant 0 : i32
    return %c0_i32, %c0_i32_0 : i32, i32
  }
  func.func @transform_7(%arg0: i32) -> (i32, i32) {
    %c0_i32 = arith.constant 0 : i32
    %c0_i32_0 = arith.constant 0 : i32
    %c0_i32_1 = arith.constant 0 : i32
    return %c0_i32, %c0_i32_0 : i32, i32
  }
  func.func @transform_8(%arg0: i32) -> (i32, i32) {
    %c0_i32 = arith.constant 0 : i32
    %c0_i32_0 = arith.constant 0 : i32
    %c0_i32_1 = arith.constant 0 : i32
    return %c0_i32, %c0_i32_0 : i32, i32
  }
  func.func @transform_9(%arg0: i32) -> (i32, i32) {
    %c0_i32 = arith.constant 0 : i32
    %c0_i32_0 = arith.constant 0 : i32
    %c0_i32_1 = arith.constant 0 : i32
    return %c0_i32, %c0_i32_0 : i32, i32
  }
  func.func @transform_10(%arg0: i32) -> (i32, i32, i32) {
    %c0_i32 = arith.constant 0 : i32
    %c0_i32_0 = arith.constant 0 : i32
    %c0_i32_1 = arith.constant 0 : i32
    return %arg0, %c0_i32, %c0_i32_0 : i32, i32, i32
  }
}

</mosaic_0001>

<bundles_post_ra>
// kernel: tpu_custom_call.1
= control target key start
LH: loop header
LB: loop body
LE: loop exit
PB: predicated region body
PF: predicated region fallthrough
CT: control target
= control target key end

     0   :  { %s15415_s0 = inlined_call_operand.vmem [shape: f32[2,8,512], index: 0, kind: input, shape index: {}]   ;;  %s15416_s1 = inlined_call_operand.hbm [shape: f32[1,512], index: 1, kind: input, shape index: {}]   ;;  %s15417_s2 = inlined_call_operand.hbm [shape: f32[32,200], index: 2, kind: input, shape index: {}]   ;;  %s15418_s3 = inlined_call_operand.vmem [shape: f32[32,1], index: 3, kind: input, shape index: {}]   ;;  %s15419_s4 = inlined_call_operand.<no memory space> [shape: f32[1,1], index: 4, kind: input, shape index: {}]   ;;  %s15420_s5 = inlined_call_operand.hbm [shape: f32[32,800], index: 5, kind: input, shape index: {}]   ;;  %s15421_s6 = inlined_call_operand.vmem [shape: f32[32,1], index: 6, kind: input, shape index: {}]   ;;  %s15422_s8 = inlined_call_operand.vmem [shape: f32[4,800], index: 8, kind: input, shape index: {}]   ;;  %s15423_s9 = inlined_call_operand.vmem [shape: f32[4,1], index: 9, kind: input, shape index: {}]   ;;  %s15424_s10 = inlined_call_operand.hbm [shape: f32[2,4,512], index: 10, kind: output, shape index: {}]   ;;  %s15425_s7 = inlined_call_operand.<no memory space> [shape: f32[1,1], index: 7, kind: input, shape index: {}]  }
   0x1   :  { %v15_v0 = vstv %s15419_s4  ;;  %v17_v1 = vstv %s15425_s7 }
   0x2   :  { %16 = vst [vmem:[#allocation2] sm:$0x1] %v15_v0  ;;  %18 = vst [vmem:[#allocation3] sm:$0x1] %v17_v1 }
   0x3   :  { %19 = vsyncpa [#allocation5], 0 }
   0x4   :  { %20 = vsyncpa [#allocation8], 0 }
   0x5   :  { %21 = vsyncpa [#allocation6], 0 }
   0x6   :  { %23 = vsyncpa [#allocation6 + $0x1], 0  ;;  %s8374_s17 = smov 0   ;;  %s8376_s18 = smov 0  }
   0x7   :  { %s8378_s19 = smov 0   ;;  %s8380_s20 = smov 0  }
   0x8 LB: > { %15972 = sst [smem:[#allocation14_spill]] %s8289_s19  ;;  %s8395_s4 = sadd.s32 4294967295, %s8293_s20   ;;  %s8293_s20 = sphi %s8380_s20, %s17214_s20   ;;  %s8289_s19 = sphi %s8378_s19, %s17216_s19   ;;  %s8285_s18 = sphi %s8376_s18, %s17218_s18   ;;  %s8281_s17 = sphi %s8374_s17, %s17217_s17  }
   0x9   : > { %s4889_s7 = sadd.s32 4294967294, %s8293_s20   ;;  %s8399_s21 = sadd.s32 1, %s8293_s20  }
   0xa   : > { %15973 = sst [smem:[#allocation15_spill]] %s8399_s21  ;;  %s251_s22 = sadd.s32 1, %s8289_s19 }
   0xb   : > { %s248_s23 = ssub.s32 %s8293_s20, %s8399_s21  ;;  %p261_p0 = scmp.ne.s32.totalorder %s8289_s19, %s8285_s18 }
   0xc   : > { %p249_p1 = scmp.eq.s32.totalorder %s248_s23, 0  ;;  %p262_p2 = scmp.eq.s32.totalorder %s8395_s4, 1 }
   0xd   : > { %p267_p3 = scmp.ne.s32.totalorder %s8285_s18, %s8281_s17  ;;  %p268_p4 = scmp.eq.s32.totalorder %s4889_s7, 1 }
   0xe   : > { %s8410_s24 = scalar_select %p249_p1, %s8289_s19, %s251_s22  }
   0xf   : > { %p8412_p5 = por %p262_p2, %p261_p0  ;;  %p8416_p6 = por %p268_p4, %p267_p3 }
  0x10   : > { %15974 = sst [smem:[#allocation16_spill]] %s8410_s24  ;;  %p4890_p7 = scmp.ge.s32.totalorder %s8293_s20, 1 }
  0x11   : > { %s15975_s25 = scalar_select %p8412_p5, 1, 0 }
  0x12   : > { %s15976_s26 = scalar_select %p8416_p6, 1, 0 }
  0x13   : > { %p275_p8 = scmp.lt.s32.totalorder %s8293_s20, 3  ;;  %p15426_p9 = scmp.eq.s32.totalorder %s8395_s4, 0 }
  0x14   : > { %15977 = sst [smem:[#allocation17_spill]] %s15976_s26  ;;  %s8295_s28 = smov [#allocation7]  }
  0x15   : > { %p8423_p10 = pnand %p4890_p7, %p275_p8  ;;  %s298_s29 = sshll.u32 %s8295_s28, 4  ;;  %s8429_s29 = int_to_ptr.vmem [resolvable:$true] %s298_s29 }
  0x16   : > { %s8296_s11 = smov [#allocation4]   ;;  %s8297_s13 = smov [#allocation9]  }
  0x17   : > { %s15978_s27 = scalar_select %p8423_p10, 1, 0 }
  0x18   : > { %p5919_p11 = pneg %p8423_p10  ;;  %s288_s12 = sshll.u32 %s8296_s11, 4  ;;  %s8437_s12 = int_to_ptr.vmem [resolvable:$true] %s288_s12 }
  0x19   : > { %s8439_s14 = sshll.u32 %s8297_s13, 4  ;;  %s8139_s7 = scalar_lea.hbm %s15417_s2, 1024  ;;  %s318_s14 = int_to_ptr.vmem [resolvable:$true] %s8439_s14 }
  0x1a   : > { %p8433_p12 = pnand %p15426_p9, %p5919_p11  ;;  %p8140_p13 = scmp.ne.s32.totalorder %s15417_s2, %s8139_s7 }
  0x1b   : > { %p8146_p3 = scmp.lt.u32.totalorder %s8139_s7, %s15417_s2 }
  0x1c   : > { %p8449_p0 = pneg %p8433_p12 }
  0x1e   : > { %p8142_p1 = pnand %p8449_p0, %p8140_p13 }
  0x20   : > { %p8143_p2 = pneg %p8142_p1 }
  0x22   : > { %p8148_p4 = pnand %p8146_p3, %p8143_p2 }
  0x24   : > { %8151 = shalt.err (!%p8148_p4)
}
  0x25   : > { %s8152_s15 = scalar_lea.vmem %s8429_s29, 1024  ;;  %p8160_p9 = scmp.lt.s32.totalorder %s8429_s29, %s8429_s29 }
  0x26   : > { %p8153_p7 = scmp.ne.s32.totalorder %s8429_s29, %s8152_s15  ;;  %p8161_p6 = scmp.lt.s32.totalorder %s8152_s15, %s8152_s15 }
  0x28   : > { %p8155_p8 = pnand %p8153_p7, %p8449_p0  ;;  %p8162_p13 = por %p8161_p6, %p8160_p9 }
  0x2a   : > { %p8156_p11 = pneg %p8155_p8 }
  0x2c   : > { %p8163_p1 = pnand %p8162_p13, %p8156_p11 }
  0x2e   : > { %8166 = shalt.err (!%p8163_p1)
}
  0x2f   : > { %s8298_s16 = smov 256   ;;  %s8299_s7 = smov 16  }
  0x30   : > { %5925 = dma.hbm_to_vmem [thread:$0]  (!%p8433_p12), %s15417_s2, 1024, %s8429_s29, [#allocation8], %s8298_s16, %s8298_s16, %s8299_s7  }
  0x31   : > { %s8167_s24 = scalar_lea.hbm %s15416_s1, 64 }
  0x32   : > { %p8168_p6 = scmp.ne.s32.totalorder %s15416_s1, %s8167_s24  ;;  %p8174_p3 = scmp.lt.u32.totalorder %s8167_s24, %s15416_s1 }
  0x34   : > { %p8170_p9 = pnand %p8168_p6, %p8449_p0 }
  0x36   : > { %p8171_p2 = pneg %p8170_p9 }
  0x38   : > { %p8176_p4 = pnand %p8174_p3, %p8171_p2 }
  0x3a   : > { %8179 = shalt.err (!%p8176_p4)
}
  0x3b   : > { %s8180_s29 = scalar_lea.vmem %s8437_s12, 64  ;;  %p8188_p13 = scmp.lt.s32.totalorder %s8437_s12, %s8437_s12 }
  0x3c   : > { %p8181_p7 = scmp.ne.s32.totalorder %s8437_s12, %s8180_s29  ;;  %p8189_p1 = scmp.lt.s32.totalorder %s8180_s29, %s8180_s29 }
  0x3e   : > { %p8183_p8 = pnand %p8181_p7, %p8449_p0  ;;  %p8190_p6 = por %p8189_p1, %p8188_p13 }
  0x40   : > { %p8184_p11 = pneg %p8183_p8 }
  0x42   : > { %p8191_p9 = pnand %p8190_p6, %p8184_p11 }
  0x44   : > { %8194 = shalt.err (!%p8191_p9)
}
  0x45   : > { %5922 = dma.hbm_to_vmem [thread:$0]  (!%p8433_p12), %s15416_s1, 64, %s8437_s12, [#allocation5]  }
  0x46   : > { %s8195_s16 = scalar_lea.hbm %s15420_s5, 3584 }
  0x47   : > { %p8196_p2 = scmp.ne.s32.totalorder %s15420_s5, %s8195_s16  ;;  %p8202_p7 = scmp.lt.u32.totalorder %s8195_s16, %s15420_s5 }
  0x49   : > { %p8198_p3 = pnand %p8196_p2, %p8449_p0 }
  0x4b   : > { %p8199_p4 = pneg %p8198_p3 }
  0x4d   : > { %p8204_p8 = pnand %p8202_p7, %p8199_p4 }
  0x4f   : > { %8207 = shalt.err (!%p8204_p8)
}
  0x50   : > { %s8208_s13 = scalar_lea.vmem %s318_s14, 3584  ;;  %p8216_p6 = scmp.lt.s32.totalorder %s318_s14, %s318_s14 }
  0x51   : > { %p8209_p11 = scmp.ne.s32.totalorder %s318_s14, %s8208_s13  ;;  %p8217_p9 = scmp.lt.s32.totalorder %s8208_s13, %s8208_s13 }
  0x53   : > { %p8211_p13 = pnand %p8209_p11, %p8449_p0  ;;  %p8218_p5 = por %p8217_p9, %p8216_p6 }
  0x55   : > { %p8212_p1 = pneg %p8211_p13 }
  0x57   : > { %p8219_p10 = pnand %p8218_p5, %p8212_p1 }
  0x59   : > { %8222 = shalt.err (!%p8219_p10)
}
  0x5a   : > { %s8300_s12 = smov 896   ;;  %s8301_s15 = smov 56  }
  0x5b   : > { %5928 = dma.hbm_to_vmem [thread:$0]  (!%p8433_p12), %s15420_s5, 3584, %s318_s14, [#allocation8], %s8300_s12, %s8300_s12, %s8301_s15  }
  0x5c   : > { %p15981_p2 = scmp.ne.s32.totalorder %s15978_s27, 0 }
  0x5e   : > { %353 = sbr.rel (%p15981_p2) target bundleno = 2364 (0x93c), region = 60 }
  0x65   : > { %p15982_p3 = scmp.eq.s32.totalorder %s8395_s4, 0 }
  0x67   : > { %8268 = dma.done.wait (%p15982_p3), [#allocation5], 64   ;;  %p15983_p0 = pmov %p15982_p3 }
  0x69   : > { %8270 = vsyncadd (%p15983_p0), [#allocation5], 4294967232  ;;  %p15984_p5 = pmov %p15983_p0 }
  0x6a   : > { %p15985_p10 = pmov %p15983_p0 }
  0x6b   : > { %8272 = dma.done.wait (%p15984_p5), [#allocation8], 4608  }
  0x6c   : > { %8274 = vsyncadd (%p15985_p10), [#allocation8], 4294962688  ;;  %p399_p4 = scmp.lt.s32.totalorder %s8395_s4, 1  ;;  %s8302_s24 = smov 20   ;;  %v417_v8 = vlaneseq  ;;  %v708_v0 = vld [vmem:[#allocation7 + $0x8] sm:$0xff]  ;;  %vm739_vm4 = vcmask 588800  }
  0x6d   : > { %s8303_s26 = smov 40   ;;  %s8304_s16 = smov 108   ;;  %4902 = vmatprep.mubr.msk.f32.mxu0 %vm739_vm4, %v708_v0  ;;  %4906 = vmatprep.mubr.msk.f32.mxu1 %vm739_vm4, %v708_v0 }
  0x6e   : > { %s400_s30 = scalar_select %p399_p4, %s8395_s4, 1  ;;  %v8560_v9 = vand.u32 127, %v417_v8 }
  0x6f   : > { %s8305_s7 = smov 88   ;;  %s8306_s22 = smov 2  }
  0x70   : > { %s4927_s14 = sshll.u32 %s400_s30, 5  ;;  %vm432_vm0 = vcmp.lt.s32.totalorder %v8560_v9, 20  ;;  %vm419_vm1 = vcmp.lt.s32.totalorder %v8560_v9, 40  ;;  %vm445_vm2 = vcmp.lt.s32.totalorder %v8560_v9, 108  ;;  %vm458_vm3 = vcmp.lt.s32.totalorder %v8560_v9, 88  ;;  %s8307_s23 = smov 1  }
  0x71   : > { %s8527_s21 = scalar_lea.vmem %s15415_s0, %s4927_s14  ;;  %s8308_s11 = smov 127   ;;  %vm503_vm5 = vcmp.lt.s32.totalorder %v8560_v9, 2  ;;  %vm564_vm6 = vcmp.lt.s32.totalorder %v8560_v9, 1  ;;  %vm625_vm7 = vcmp.lt.s32.totalorder %v8560_v9, 127  ;;  %vm686_vm8 = vcmp.lt.s32.totalorder %v8560_v9, 126 }
  0x72   : > { %v8530_v2 = vld [vmem:[%s8527_s21] sm:$0xff]  ;;  %v8533_v3 = vld [vmem:[%s8527_s21 + $0x8] sm:$0xff]  ;;  %v8536_v4 = vld [vmem:[%s8527_s21 + $0x10] sm:$0xff]  ;;  %s8309_s13 = smov 126   ;;  %s396_s30 = sand.u32 1, %s8285_s18  }
  0x73   : > { %v5999_v5 = vpack.i.bf16 %v8533_v3, %v8530_v2  ;;  %v8541_v6 = vld [vmem:[%s8527_s21 + $0x18] sm:$0xff]  ;;  %s4899_s14 = sshll.u32 %s396_s30, 4  ;;  %s4928_s28 = sshll.u32 %s8395_s4, 8 }
  0x74   : > { %v6004_v7 = vpack.i.bf16 %v8541_v6, %v8536_v4  ;;  %v4183_v9 = vld [vmem:[%s15422_s8 + $0x18] sm:$0xf]  ;;  %s398_s27 = scalar_lea.vmem [#allocation10], %s4899_s14  ;;  %p17211_p7 = scmp.ne.s32.totalorder %s15975_s25, 0 }
  0x75   : > { %6000 = vrot.lane.b32.xlu1 %v5999_v5, %s8302_s24  ;;  %5990 = vrot.lane.b32.xlu0 %v5999_v5, %s8303_s26 }
  0x79   : > { %6005 = vrot.lane.b32.xlu1 %v6004_v7, %s8302_s24  ;;  %5995 = vrot.lane.b32.xlu0 %v6004_v7, %s8303_s26 }
  0x7d   : > { %6015 = vrot.lane.b32.xlu1 %v6004_v7, %s8304_s16  ;;  %6010 = vrot.lane.b32.xlu0 %v5999_v5, %s8304_s16  ;;  %v716_v7 = vld [vmem:[%s15418_s3 + $0x8] sm:$0xff] }
  0x81   : > { %452 = vrot.lane.b32.xlu1 %v8533_v3, %s8305_s7  ;;  %450 = vrot.lane.b32.xlu0 %v8530_v2, %s8305_s7 }
  0x85   : > { %456 = vrot.lane.b32.xlu1 %v8541_v6, %s8305_s7  ;;  %454 = vrot.lane.b32.xlu0 %v8536_v4, %s8305_s7 }
  0xe7   : > { %v6001_v10 = vpop.permute.xlu1 %6000  ;;  %v5991_v11 = vpop.permute.xlu0 %5990 }
  0xe8   : > { %v6003_v12 = vunpack.i.h.bf16 %v6001_v10  ;;  %v6002_v13 = vunpack.i.l.bf16 %v6001_v10  ;;  %v5993_v14 = vunpack.i.h.bf16 %v5991_v11  ;;  %v5992_v15 = vunpack.i.l.bf16 %v5991_v11  ;;  %v715_v10 = vld [vmem:[%s15418_s3] sm:$0xff] }
  0xe9   : > { %v8310_v11 = vmov 0  }
  0xea   : > { %v8566_v16 = vsel %vm432_vm0, %v6002_v13, %v6003_v12  ;;  %v8570_v17 = vsel %vm419_vm1, %v5992_v15, %v5993_v14  ;;  %6210 = vset.pattern.permute.xlu1 %v8310_v11  ;;  %6209 = vset.pattern.permute.xlu0 %v8310_v11 }
  0xeb   : > { %v6006_v18 = vpop.permute.xlu1 %6005  ;;  %v5996_v19 = vpop.permute.xlu0 %5995  ;;  %v4949_v22 = vpack.c.bf16 %v8566_v16, %v8570_v17  ;;  %v6034_v44 = vpack.i.bf16 %v8533_v3, %v8566_v16  ;;  %v6179_v62 = vpack.i.bf16 %v8566_v16, %v8570_v17 }
  0xec   : > { %v6008_v20 = vunpack.i.h.bf16 %v6006_v18  ;;  %v5998_v21 = vunpack.i.h.bf16 %v5996_v19  ;;  %v6007_v29 = vunpack.i.l.bf16 %v6006_v18  ;;  %v5997_v30 = vunpack.i.l.bf16 %v5996_v19 }
  0xee   : > { %v8576_v23 = vsel %vm432_vm0, %v6008_v20, %v6002_v13  ;;  %v8580_v24 = vsel %vm419_vm1, %v5998_v21, %v5992_v15  ;;  %v8602_v38 = vsel %vm432_vm0, %v6007_v29, %v6008_v20  ;;  %v8606_v39 = vsel %vm419_vm1, %v5997_v30, %v5998_v21  ;;  %v718_v13 = vld [vmem:[%s15418_s3 + $0x18] sm:$0xff] }
  0xef   : > { %v6016_v25 = vpop.permute.xlu1 %6015  ;;  %v6011_v26 = vpop.permute.xlu0 %6010  ;;  %v8585_v31 = vpack.i.bf16 %v8576_v23, %v8580_v24  ;;  %v8613_v41 = vsel %vm432_vm0, %v6003_v12, %v6007_v29  ;;  %v8617_v42 = vsel %vm419_vm1, %v5993_v14, %v5997_v30  ;;  %v4997_v48 = vpack.c.bf16 %v8602_v38, %v8606_v39  ;;  %v717_v12 = vld [vmem:[%s15418_s3 + $0x10] sm:$0xff]  ;;  %v4910_v14 = vld [vmem:[#allocation2] ss:$0 sm:$0xff] }
  0xf0   : > { %v6013_v27 = vunpack.i.h.bf16 %v6011_v26  ;;  %v6012_v28 = vunpack.i.l.bf16 %v6011_v26  ;;  %v6017_v36 = vunpack.i.l.bf16 %v6016_v25  ;;  %v6018_v45 = vunpack.i.h.bf16 %v6016_v25 }
  0xf1   : > { %6020 = vrot.lane.b32.xlu0 %v8585_v31, %s8306_s22  ;;  %v6044_v52 = vpack.i.bf16 %v8613_v41, %v8617_v42  ;;  %v4951_v53 = vpack.c.bf16 %v8576_v23, %v8580_v24  ;;  %v4999_v54 = vpack.c.bf16 %v8613_v41, %v8617_v42  ;;  %v6059_v59 = vpack.i.bf16 %v8541_v6, %v8602_v38 }
  0xf2   : > { %v8590_v32 = vsel %vm445_vm2, %v6012_v28, %v6013_v27  ;;  %v8624_v46 = vsel %vm445_vm2, %v6013_v27, %v6017_v36  ;;  %v8637_v51 = vsel %vm445_vm2, %v6017_v36, %v6018_v45  ;;  %v8665_v60 = vsel %vm445_vm2, %v6018_v45, %v6012_v28 }
  0xf3   : > { %v453_v33 = vpop.permute.xlu1 %452  ;;  %v451_v34 = vpop.permute.xlu0 %450  ;;  %v6024_v35 = vpack.i.bf16 %v8590_v32, %v8530_v2  ;;  %v6049_v56 = vpack.i.bf16 %v8637_v51, %v8536_v4  ;;  %v6184_v63 = vpack.i.bf16 %v8624_v46, %v8533_v3  ;;  %v6199_v1 = vpack.i.bf16 %v8602_v38, %v8606_v39 }
  0xf4   : > { %v8598_v37 = vsel %vm458_vm3, %v451_v34, %v453_v33  ;;  %v6204_v5 = vpack.i.bf16 %v8665_v60, %v8541_v6 }
  0xf5   : > { %6025 = vrot.lane.b32.xlu1 %v6024_v35, %s8306_s22  ;;  %v6029_v40 = vpack.i.bf16 %v8570_v17, %v8598_v37 }
  0xf7   : > { %v455_v43 = vpop.permute.xlu0 %454  ;;  %6030 = vrot.lane.b32.xlu0 %v6029_v40, %s8306_s22  ;;  %v457_v49 = vpop.permute.xlu1 %456 }
  0xf8   : > { %v8628_v47 = vsel %vm458_vm3, %v453_v33, %v455_v43  ;;  %v8648_v55 = vsel %vm458_vm3, %v455_v43, %v457_v49  ;;  %v8658_v58 = vsel %vm458_vm3, %v457_v49, %v451_v34 }
  0xf9   : > { %6035 = vrot.lane.b32.xlu1 %v6034_v44, %s8306_s22  ;;  %v6039_v50 = vpack.i.bf16 %v8628_v47, %v8624_v46  ;;  %v6054_v57 = vpack.i.bf16 %v8606_v39, %v8648_v55  ;;  %v6064_v61 = vpack.i.bf16 %v8658_v58, %v8665_v60  ;;  %v5003_v39 = vpack.c.bf16 %v8637_v51, %v8536_v4 }
  0xfb   : > { %6040 = vrot.lane.b32.xlu0 %v6039_v50, %s8306_s22 }
  0xfd   : > { %6045 = vrot.lane.b32.xlu1 %v6044_v52, %s8306_s22 }
  0xff   : > { %6050 = vrot.lane.b32.xlu0 %v6049_v56, %s8306_s22 }
 0x101   : > { %6055 = vrot.lane.b32.xlu1 %v6054_v57, %s8306_s22 }
 0x103   : > { %6060 = vrot.lane.b32.xlu0 %v6059_v59, %s8306_s22 }
 0x105   : > { %6065 = vrot.lane.b32.xlu1 %v6064_v61, %s8306_s22 }
 0x107   : > { %6070 = vrot.lane.b32.xlu0 %v8585_v31, %s8307_s23 }
 0x109   : > { %6075 = vrot.lane.b32.xlu1 %v6024_v35, %s8307_s23 }
 0x10b   : > { %6080 = vrot.lane.b32.xlu0 %v6029_v40, %s8307_s23 }
 0x10d   : > { %6085 = vrot.lane.b32.xlu1 %v6034_v44, %s8307_s23 }
 0x10f   : > { %6090 = vrot.lane.b32.xlu0 %v6039_v50, %s8307_s23 }
 0x111   : > { %6095 = vrot.lane.b32.xlu1 %v6044_v52, %s8307_s23 }
 0x113   : > { %6100 = vrot.lane.b32.xlu0 %v6049_v56, %s8307_s23 }
 0x115   : > { %6105 = vrot.lane.b32.xlu1 %v6054_v57, %s8307_s23 }
 0x117   : > { %6110 = vrot.lane.b32.xlu0 %v6059_v59, %s8307_s23 }
 0x119   : > { %6115 = vrot.lane.b32.xlu1 %v6064_v61, %s8307_s23 }
 0x11b   : > { %6120 = vrot.lane.b32.xlu0 %v8585_v31, %s8308_s11 }
 0x11d   : > { %6125 = vrot.lane.b32.xlu1 %v6024_v35, %s8308_s11 }
 0x11f   : > { %6130 = vrot.lane.b32.xlu0 %v6029_v40, %s8308_s11 }
 0x121   : > { %6135 = vrot.lane.b32.xlu1 %v6034_v44, %s8308_s11 }
 0x123   : > { %6140 = vrot.lane.b32.xlu0 %v6039_v50, %s8308_s11 }
 0x125   : > { %6145 = vrot.lane.b32.xlu1 %v6044_v52, %s8308_s11 }
 0x127   : > { %6150 = vrot.lane.b32.xlu0 %v6049_v56, %s8308_s11 }
 0x129   : > { %6155 = vrot.lane.b32.xlu1 %v6054_v57, %s8308_s11 }
 0x12b   : > { %6160 = vrot.lane.b32.xlu0 %v6059_v59, %s8308_s11 }
 0x12d   : > { %6165 = vrot.lane.b32.xlu1 %v6064_v61, %s8308_s11 }
 0x12f   : > { %6170 = vrot.lane.b32.xlu0 %v8585_v31, %s8309_s13 }
 0x131   : > { %6175 = vrot.lane.b32.xlu1 %v6024_v35, %s8309_s13 }
 0x133   : > { %654 = vrot.lane.b32.xlu0 %v8598_v37, %s8309_s13 }
 0x135   : > { %6180 = vrot.lane.b32.xlu1 %v6179_v62, %s8309_s13 }
 0x137   : > { %6185 = vrot.lane.b32.xlu0 %v6184_v63, %s8309_s13 }
 0x139   : > { %664 = vrot.lane.b32.xlu1 %v8628_v47, %s8309_s13 }
 0x13b   : > { %6190 = vrot.lane.b32.xlu0 %v6044_v52, %s8309_s13 }
 0x13d   : > { %6195 = vrot.lane.b32.xlu1 %v6049_v56, %s8309_s13 }
 0x13f   : > { %674 = vrot.lane.b32.xlu0 %v8648_v55, %s8309_s13 }
 0x141   : > { %6200 = vrot.lane.b32.xlu1 %v6199_v1, %s8309_s13 }
 0x143   : > { %6205 = vrot.lane.b32.xlu0 %v6204_v5, %s8309_s13 }
 0x145   : > { %684 = vrot.lane.b32.xlu1 %v8658_v58, %s8309_s13 }
 0x147   : > { %721 = vperm.xlu0 %6209, %v715_v10  }
 0x149   : > { %726 = vperm.xlu1 %6210, %v716_v7  }
 0x14b   : > { %736 = vperm.xlu0 %6209, %v718_v13  }
 0x14d   : > { %731 = vperm.xlu1 %6210, %v717_v12  }
 0x151   : > { %953 = vperm.xlu1 %6210, %v4910_v14  }
 0x163   : > { %v6021_v15 = vpop.permute.xlu0 %6020 }
 0x164   : > { %v6023_v25 = vunpack.i.h.bf16 %v6021_v15  ;;  %v6022_v26 = vunpack.i.l.bf16 %v6021_v15 }
 0x167   : > { %v6026_v18 = vpop.permute.xlu1 %6025 }
 0x168   : > { %v6027_v40 = vunpack.i.l.bf16 %v6026_v18  ;;  %v6028_v49 = vunpack.i.h.bf16 %v6026_v18 }
 0x169   : > { %v8732_v19 = vpop.permute.xlu0 %6030 }
 0x16a   : > { %v6033_v20 = vunpack.i.h.bf16 %v8732_v19 }
 0x16b   : > { %v6036_v21 = vpop.permute.xlu1 %6035 }
 0x16c   : > { %v6037_v27 = vunpack.i.l.bf16 %v6036_v21  ;;  %v514_v29 = vsel %vm503_vm5, %v6022_v26, %v6033_v20  ;;  %v6038_v34 = vunpack.i.h.bf16 %v6036_v21 }
 0x16d   : > { %v8736_v28 = vpop.permute.xlu0 %6040 }
 0x16e   : > { %v515_v30 = vsel %vm503_vm5, %v6023_v25, %v6037_v27  ;;  %v6042_v36 = vunpack.i.l.bf16 %v8736_v28  ;;  %v516_v56 = vsel %vm503_vm5, %v6027_v40, %v6038_v34 }
 0x16f   : > { %v6046_v31 = vpop.permute.xlu1 %6045  ;;  %v4929_v33 = vpack.c.bf16 %v515_v30, %v514_v29 }
 0x170   : > { %v6048_v43 = vunpack.i.h.bf16 %v6046_v31  ;;  %v6047_v44 = vunpack.i.l.bf16 %v6046_v31  ;;  %v517_v62 = vsel %vm503_vm5, %v6028_v49, %v6042_v36 }
 0x171   : > { %v6051_v35 = vpop.permute.xlu0 %6050  ;;  %4930 = vmatprep.subr.bf16.mxu0 %v4929_v33  ;;  %v4933_v21 = vpack.c.bf16 %v517_v62, %v516_v56 }
 0x172   : > { %v6053_v57 = vunpack.i.h.bf16 %v6051_v35  ;;  %v6052_v63 = vunpack.i.l.bf16 %v6051_v35  ;;  %v509_v5 = vsel %vm503_vm5, %v6033_v20, %v6047_v44  ;;  %v510_v7 = vsel %vm503_vm5, %v6037_v27, %v6048_v43 }
 0x173   : > { %v8743_v45 = vpop.permute.xlu1 %6055  ;;  %v4979_v20 = vpack.c.bf16 %v510_v7, %v509_v5  ;;  %v6043_v35 = vunpack.i.h.bf16 %v8736_v28 }
 0x174   : > { %v6058_v50 = vunpack.i.h.bf16 %v8743_v45  ;;  %v511_v31 = vsel %vm503_vm5, %v6038_v34, %v6052_v63  ;;  %v512_v33 = vsel %vm503_vm5, %v6042_v36, %v6053_v57  ;;  %v6057_v62 = vunpack.i.l.bf16 %v8743_v45 }
 0x175   : > { %v6061_v52 = vpop.permute.xlu0 %6060  ;;  %v4983_v36 = vpack.c.bf16 %v512_v33, %v511_v31 }
 0x176   : > { %v6063_v59 = vunpack.i.h.bf16 %v6061_v52  ;;  %v6062_v61 = vunpack.i.l.bf16 %v6061_v52  ;;  %v519_v1 = vsel %vm503_vm5, %v6058_v50, %v6022_v26  ;;  %v504_v12 = vsel %vm503_vm5, %v6047_v44, %v6058_v50 }
 0x177   : > { %v8750_v0 = vpop.permute.xlu1 %6065  ;;  %v6032_v50 = vunpack.i.l.bf16 %v8732_v19 }
 0x178   : > { %v6067_v10 = vunpack.i.l.bf16 %v8750_v0  ;;  %v520_v11 = vsel %vm503_vm5, %v6062_v61, %v6023_v25  ;;  %v505_v13 = vsel %vm503_vm5, %v6048_v43, %v6062_v61  ;;  %v506_v26 = vsel %vm503_vm5, %v6052_v63, %v6063_v59 }
 0x179   : > { %v8765_v14 = vpop.permute.xlu0 %6070  ;;  %v4931_v15 = vpack.c.bf16 %v520_v11, %v519_v1  ;;  %v4977_v18 = vpack.c.bf16 %v505_v13, %v504_v12  ;;  %v521_v43 = vsel %vm503_vm5, %v6063_v59, %v6027_v40  ;;  %v518_v28 = vsel %vm503_vm5, %v6032_v50, %v6043_v35 }
 0x17a   : > { %v507_v27 = vsel %vm503_vm5, %v6053_v57, %v6067_v10  ;;  %v522_v25 = vsel %vm503_vm5, %v6067_v10, %v6028_v49  ;;  %v6072_v34 = vunpack.i.l.bf16 %v8765_v14  ;;  %v6068_v63 = vunpack.i.h.bf16 %v8750_v0 }
 0x17b   : > { %v8773_v29 = vpop.permute.xlu1 %6075  ;;  %4932 = vmatpush1.bf16.msra.mxu0 %v4931_v15  ;;  %4978 = vmatprep.subr.bf16.mxu1 %v4977_v18  ;;  %v4981_v30 = vpack.c.bf16 %v507_v27, %v506_v26  ;;  %v4935_v49 = vpack.c.bf16 %v522_v25, %v521_v43  ;;  %v6073_v1 = vunpack.i.h.bf16 %v8765_v14  ;;  %v513_v0 = vsel %vm503_vm5, %v6043_v35, %v6057_v62 }
 0x17c   : > { %4934 = vmatprep.subr.bf16.mxu0 %v4933_v21  ;;  %4980 = vmatpush1.bf16.msra.mxu1 %v4979_v20  ;;  %v6077_v5 = vunpack.i.l.bf16 %v8773_v29  ;;  %v6078_v14 = vunpack.i.h.bf16 %v8773_v29  ;;  %v523_v26 = vsel %vm503_vm5, %v6068_v63, %v6032_v50  ;;  %v508_v25 = vsel %vm503_vm5, %v6057_v62, %v6068_v63 }
 0x17d   : > { %v8783_v44 = vpop.permute.xlu0 %6080  ;;  %4982 = vmatprep.subr.bf16.mxu1 %v4981_v30 }
 0x17e   : > { %v6083_v52 = vunpack.i.h.bf16 %v8783_v44  ;;  %v6082_v18 = vunpack.i.l.bf16 %v8783_v44 }
 0x17f   : > { %v8788_v56 = vpop.permute.xlu1 %6085  ;;  %4936 = vmatpush1.bf16.msra.mxu0 %v4935_v49 }
 0x180   : > { %4984 = vmatpush1.bf16.msra.mxu1 %v4983_v36  ;;  %v575_v40 = vsel %vm564_vm6, %v6072_v34, %v6083_v52  ;;  %v6088_v57 = vunpack.i.h.bf16 %v8788_v56  ;;  %v6087_v59 = vunpack.i.l.bf16 %v8788_v56 }
 0x181   : > { %v8796_v19 = vpop.permute.xlu0 %6090  ;;  %v4937_v61 = vpack.c.bf16 %v575_v40, %v518_v28 }
 0x182   : > { %v6093_v11 = vunpack.i.h.bf16 %v8796_v19  ;;  %v6092_v12 = vunpack.i.l.bf16 %v8796_v19  ;;  %v576_v15 = vsel %vm564_vm6, %v6073_v1, %v6087_v59  ;;  %v577_v45 = vsel %vm564_vm6, %v6077_v5, %v6088_v57 }
 0x183   : > { %v6096_v7 = vpop.permute.xlu1 %6095  ;;  %4938 = vmatprep.subr.bf16.mxu0 %v4937_v61  ;;  %v4941_v30 = vpack.c.bf16 %v577_v45, %v576_v15 }
 0x184   : > { %v6097_v10 = vunpack.i.l.bf16 %v6096_v7  ;;  %v6098_v33 = vunpack.i.h.bf16 %v6096_v7  ;;  %v578_v29 = vsel %vm564_vm6, %v6078_v14, %v6092_v12  ;;  %v579_v44 = vsel %vm564_vm6, %v6082_v18, %v6093_v11 }
 0x185   : > { %v6101_v13 = vpop.permute.xlu0 %6100 }
 0x186   : > { %v6102_v21 = vunpack.i.l.bf16 %v6101_v13  ;;  %v570_v31 = vsel %vm564_vm6, %v6083_v52, %v6097_v10  ;;  %v6103_v43 = vunpack.i.h.bf16 %v6101_v13 }
 0x187   : > { %v6106_v20 = vpop.permute.xlu1 %6105  ;;  %v4987_v19 = vpack.c.bf16 %v570_v31, %v513_v0 }
 0x188   : > { %v6108_v27 = vunpack.i.h.bf16 %v6106_v20  ;;  %v572_v61 = vsel %vm564_vm6, %v6088_v57, %v6102_v21  ;;  %v6107_v15 = vunpack.i.l.bf16 %v6106_v20  ;;  %v571_v20 = vsel %vm564_vm6, %v6087_v59, %v6098_v33 }
 0x189   : > { %v6111_v35 = vpop.permute.xlu0 %6110 }
 0x18a   : > { %v6113_v49 = vunpack.i.h.bf16 %v6111_v35  ;;  %v6112_v36 = vunpack.i.l.bf16 %v6111_v35  ;;  %v580_v50 = vsel %vm564_vm6, %v6108_v27, %v6072_v34  ;;  %v565_v56 = vsel %vm564_vm6, %v6097_v10, %v6108_v27 }
 0x18b   : > { %v6116_v28 = vpop.permute.xlu1 %6115  ;;  %v4939_v40 = vpack.c.bf16 %v580_v50, %v523_v26  ;;  %v4985_v52 = vpack.c.bf16 %v565_v56, %v508_v25  ;;  %v4945_v25 = vpack.c.bf16 %v579_v44, %v578_v29  ;;  %v573_v29 = vsel %vm564_vm6, %v6092_v12, %v6103_v43 }
 0x18c   : > { %v6118_v62 = vunpack.i.h.bf16 %v6116_v28  ;;  %v6117_v63 = vunpack.i.l.bf16 %v6116_v28  ;;  %v566_v7 = vsel %vm564_vm6, %v6098_v33, %v6112_v36  ;;  %v567_v13 = vsel %vm564_vm6, %v6102_v21, %v6113_v49 }
 0x18d   : > { %v8832_v34 = vpop.permute.xlu0 %6120  ;;  %4940 = vmatpush1.bf16.msra.mxu0 %v4939_v40  ;;  %4986 = vmatprep.subr.bf16.mxu1 %v4985_v52  ;;  %v4989_v10 = vpack.c.bf16 %v567_v13, %v566_v7  ;;  %v581_v45 = vsel %vm564_vm6, %v6112_v36, %v6073_v1  ;;  %v582_v57 = vsel %vm564_vm6, %v6113_v49, %v6077_v5 }
 0x18e   : > { %4942 = vmatprep.subr.bf16.mxu0 %v4941_v30  ;;  %4988 = vmatpush1.bf16.msra.mxu1 %v4987_v19  ;;  %v568_v0 = vsel %vm564_vm6, %v6103_v43, %v6117_v63  ;;  %v4943_v21 = vpack.c.bf16 %v582_v57, %v581_v45  ;;  %v569_v27 = vsel %vm564_vm6, %v6107_v15, %v6118_v62  ;;  %v6122_v36 = vunpack.i.l.bf16 %v8832_v34 }
 0x18f   : > { %v8840_v26 = vpop.permute.xlu1 %6125  ;;  %4990 = vmatprep.subr.bf16.mxu1 %v4989_v10  ;;  %v4991_v1 = vpack.c.bf16 %v572_v61, %v571_v20  ;;  %v583_v5 = vsel %vm564_vm6, %v6117_v63, %v6078_v14  ;;  %v584_v30 = vsel %vm564_vm6, %v6118_v62, %v6082_v18  ;;  %v4993_v35 = vpack.c.bf16 %v569_v27, %v568_v0 }
 0x190   : > { %v574_v49 = vsel %vm564_vm6, %v6093_v11, %v6107_v15  ;;  %v4947_v33 = vpack.c.bf16 %v584_v30, %v583_v5  ;;  %v4953_v43 = vpack.c.bf16 %v8624_v46, %v8533_v3  ;;  %v5001_v50 = vpack.c.bf16 %v8665_v60, %v8541_v6 }
 0x191   : > { %v8850_v31 = vpop.permute.xlu0 %6130  ;;  %4944 = vmatpush1.bf16.msra.mxu0 %v4943_v21  ;;  %v4995_v44 = vpack.c.bf16 %v574_v49, %v573_v29  ;;  %v6123_v3 = vunpack.i.h.bf16 %v8832_v34  ;;  %v6128_v23 = vunpack.i.h.bf16 %v8840_v26  ;;  %v6127_v24 = vunpack.i.l.bf16 %v8840_v26 }
 0x192   : > { %4946 = vmatprep.subr.bf16.mxu0 %v4945_v25  ;;  %4992 = vmatpush1.bf16.msra.mxu1 %v4991_v1  ;;  %v6133_v14 = vunpack.i.h.bf16 %v8850_v31  ;;  %v6132_v0 = vunpack.i.l.bf16 %v8850_v31 }
 0x193   : > { %v6136_v59 = vpop.permute.xlu1 %6135  ;;  %4994 = vmatprep.subr.bf16.mxu1 %v4993_v35 }
 0x194   : > { %v636_v56 = vsel %vm625_vm7, %v6122_v36, %v6133_v14  ;;  %v6138_v28 = vunpack.i.h.bf16 %v6136_v59  ;;  %v6137_v40 = vunpack.i.l.bf16 %v6136_v59 }
 0x195   : > { %v8858_v18 = vpop.permute.xlu0 %6140  ;;  %4948 = vmatpush1.bf16.msra.mxu0 %v4947_v33  ;;  %v4959_v46 = vpack.c.bf16 %v636_v56, %v8598_v37 }
 0x196   : > { %4950 = vmatprep.subr.bf16.mxu0 %v4949_v22  ;;  %4996 = vmatpush1.bf16.msra.mxu1 %v4995_v44  ;;  %v4955_v22 = vpack.c.bf16 %v8590_v32, %v8530_v2  ;;  %v6142_v41 = vunpack.i.l.bf16 %v8858_v18  ;;  %v637_v60 = vsel %vm625_vm7, %v6123_v3, %v6137_v40  ;;  %v638_v37 = vsel %vm625_vm7, %v6127_v24, %v6138_v28 }
 0x197   : > { %v6146_v11 = vpop.permute.xlu1 %6145  ;;  %4998 = vmatprep.subr.bf16.mxu1 %v4997_v48  ;;  %v6143_v48 = vunpack.i.h.bf16 %v8858_v18  ;;  %v4963_v1 = vpack.c.bf16 %v638_v37, %v637_v60 }
 0x198   : > { %v6147_v12 = vunpack.i.l.bf16 %v6146_v11  ;;  %v6148_v16 = vunpack.i.h.bf16 %v6146_v11  ;;  %v639_v49 = vsel %vm625_vm7, %v6128_v23, %v6142_v41 }
 0x199   : > { %v8873_v17 = vpop.permute.xlu0 %6150  ;;  %4952 = vmatpush1.bf16.msra.mxu0 %v4951_v53  ;;  %v640_v59 = vsel %vm625_vm7, %v6132_v0, %v6143_v48 }
 0x19a   : > { %v6152_v38 = vunpack.i.l.bf16 %v8873_v17  ;;  %4954 = vmatprep.subr.bf16.mxu0 %v4953_v43  ;;  %5000 = vmatpush1.bf16.msra.mxu1 %v4999_v54  ;;  %v631_v6 = vsel %vm625_vm7, %v6133_v14, %v6147_v12  ;;  %v632_v51 = vsel %vm625_vm7, %v6137_v40, %v6148_v16  ;;  %v6153_v62 = vunpack.i.h.bf16 %v8873_v17 }
 0x19b   : > { %v6156_v2 = vpop.permute.xlu1 %6155  ;;  %5002 = vmatprep.subr.bf16.mxu1 %v5001_v50  ;;  %v4957_v32 = vpack.c.bf16 %v631_v6, %v8628_v47 }
 0x19c   : > { %v6158_v42 = vunpack.i.h.bf16 %v6156_v2  ;;  %v633_v53 = vsel %vm625_vm7, %v6138_v28, %v6152_v38  ;;  %v6157_v54 = vunpack.i.l.bf16 %v6156_v2  ;;  %v634_v5 = vsel %vm625_vm7, %v6142_v41, %v6153_v62 }
 0x19d   : > { %v6161_v4 = vpop.permute.xlu0 %6160  ;;  %4956 = vmatpush1.bf16.msra.mxu0 %v4955_v22  ;;  %v4961_v13 = vpack.c.bf16 %v633_v53, %v632_v51 }
 0x19e   : > { %v6163_v47 = vunpack.i.h.bf16 %v6161_v4  ;;  %v6162_v52 = vunpack.i.l.bf16 %v6161_v4  ;;  %4958 = vmatprep.subr.bf16.mxu0 %v4957_v32  ;;  %5004 = vmatpush1.bf16.msra.mxu1 %v5003_v39  ;;  %v641_v19 = vsel %vm625_vm7, %v6158_v42, %v6122_v36  ;;  %v626_v61 = vsel %vm625_vm7, %v6147_v12, %v6158_v42 }
 0x19f   : > { %v6166_v63 = vpop.permute.xlu1 %6165  ;;  %v5005_v7 = vpack.c.bf16 %v641_v19, %v8658_v58  ;;  %v5007_v15 = vpack.c.bf16 %v626_v61, %v8648_v55  ;;  %v635_v58 = vsel %vm625_vm7, %v6143_v48, %v6157_v54  ;;  %v4967_v36 = vpack.c.bf16 %v640_v59, %v639_v49  ;;  %v709_v49 = vld [vmem:[#allocation7 + $0x10] sm:$0xff]  ;;  %v712_v59 = vld [vmem:[#allocation7 + $0x28] sm:$0xff] }
 0x1a0   : > { %v6168_v34 = vunpack.i.h.bf16 %v6166_v63  ;;  %v6167_v10 = vunpack.i.l.bf16 %v6166_v63  ;;  %v642_v45 = vsel %vm625_vm7, %v6162_v52, %v6123_v3  ;;  %v643_v57 = vsel %vm625_vm7, %v6163_v47, %v6127_v24 }
 0x1a1   : > { %v8915_v26 = vpop.permute.xlu0 %6170  ;;  %4960 = vmatpush1.bf16.msra.mxu0 %v4959_v46  ;;  %5006 = vmatprep.subr.bf16.mxu1 %v5005_v7  ;;  %v5009_v21 = vpack.c.bf16 %v643_v57, %v642_v45  ;;  %v627_v55 = vsel %vm625_vm7, %v6148_v16, %v6162_v52  ;;  %v628_v20 = vsel %vm625_vm7, %v6152_v38, %v6163_v47 }
 0x1a2   : > { %4962 = vmatprep.subr.bf16.mxu0 %v4961_v13  ;;  %5008 = vmatpush1.bf16.msra.mxu1 %v5007_v15  ;;  %v644_v27 = vsel %vm625_vm7, %v6167_v10, %v6128_v23  ;;  %v645_v30 = vsel %vm625_vm7, %v6168_v34, %v6132_v0  ;;  %v4965_v31 = vpack.c.bf16 %v635_v58, %v634_v5  ;;  %v6173_v28 = vunpack.i.h.bf16 %v8915_v26 }
 0x1a3   : > { %v8925_v25 = vpop.permute.xlu1 %6175  ;;  %5010 = vmatprep.subr.bf16.mxu1 %v5009_v21  ;;  %v5011_v35 = vpack.c.bf16 %v628_v20, %v627_v55  ;;  %v5013_v29 = vpack.c.bf16 %v645_v30, %v644_v27  ;;  %v629_v14 = vsel %vm625_vm7, %v6153_v62, %v6167_v10  ;;  %v630_v44 = vsel %vm625_vm7, %v6157_v54, %v6168_v34  ;;  %v710_v30 = vld [vmem:[#allocation7 + $0x18] sm:$0xff] }
 0x1a4   : > { %v5015_v11 = vpack.c.bf16 %v630_v44, %v629_v14  ;;  %v6172_v40 = vunpack.i.l.bf16 %v8915_v26  ;;  %v6178_v23 = vunpack.i.h.bf16 %v8925_v25  ;;  %v6177_v24 = vunpack.i.l.bf16 %v8925_v25  ;;  %v707_v25 = vld [vmem:[#allocation7] sm:$0xff]  ;;  %v714_v44 = vld [vmem:[#allocation7 + $0x38] sm:$0xff] }
 0x1a5   : > { %v8935_v33 = vpop.permute.xlu0 %654  ;;  %4964 = vmatpush1.bf16.msra.mxu0 %v4963_v1  ;;  %v711_v14 = vld [vmem:[#allocation7 + $0x20] sm:$0xff] }
 0x1a6   : > { %4966 = vmatprep.subr.bf16.mxu0 %v4965_v31  ;;  %5012 = vmatpush1.bf16.msra.mxu1 %v5011_v35 }
 0x1a7   : > { %v6181_v18 = vpop.permute.xlu1 %6180  ;;  %5014 = vmatprep.subr.bf16.mxu1 %v5013_v29 }
 0x1a8   : > { %v6183_v43 = vunpack.i.h.bf16 %v6181_v18  ;;  %v6182_v50 = vunpack.i.l.bf16 %v6181_v18 }
 0x1a9   : > { %v6186_v12 = vpop.permute.xlu0 %6185  ;;  %4968 = vmatpush1.bf16.msra.mxu0 %v4967_v36 }
 0x1aa   : > { %5016 = vmatpush1.bf16.msra.mxu1 %v5015_v11  ;;  %v6188_v16 = vunpack.i.h.bf16 %v6186_v12  ;;  %v6187_v17 = vunpack.i.l.bf16 %v6186_v12  ;;  %v697_v6 = vsel %vm686_vm8, %v6172_v40, %v6182_v50  ;;  %v698_v39 = vsel %vm686_vm8, %v6173_v28, %v6183_v43 }
 0x1ab   : > { %v665_v56 = vpop.permute.xlu1 %664  ;;  %v4971_v54 = vpack.c.bf16 %v698_v39, %v697_v6  ;;  %v990_v11 = vshrl.u32 %v417_v8, 7 }
 0x1ac   : > { %v699_v60 = vsel %vm686_vm8, %v6177_v24, %v6187_v17  ;;  %v700_v37 = vsel %vm686_vm8, %v6178_v23, %v6188_v16  ;;  %v701_v5 = vsel %vm686_vm8, %v8935_v33, %v665_v56 }
 0x1ad   : > { %v6191_v22 = vpop.permute.xlu0 %6190  ;;  %v4975_v63 = vpack.c.bf16 %v700_v37, %v699_v60 }
 0x1ae   : > { %v6193_v3 = vunpack.i.h.bf16 %v6191_v22  ;;  %v6192_v38 = vunpack.i.l.bf16 %v6191_v22 }
 0x1af   : > { %v6196_v2 = vpop.permute.xlu1 %6195 }
 0x1b0   : > { %v6198_v32 = vunpack.i.h.bf16 %v6196_v2  ;;  %v6197_v46 = vunpack.i.l.bf16 %v6196_v2  ;;  %v692_v48 = vsel %vm686_vm8, %v6182_v50, %v6192_v38  ;;  %v693_v41 = vsel %vm686_vm8, %v6183_v43, %v6193_v3 }
 0x1b1   : > { %v675_v42 = vpop.permute.xlu0 %674  ;;  %v4969_v53 = vpack.c.bf16 %v693_v41, %v692_v48  ;;  %v991_v43 = vsub.s32 0, %v990_v11 }
 0x1b2   : > { %v694_v4 = vsel %vm686_vm8, %v6187_v17, %v6197_v46  ;;  %v695_v51 = vsel %vm686_vm8, %v6188_v16, %v6198_v32  ;;  %v696_v0 = vsel %vm686_vm8, %v665_v56, %v675_v42 }
 0x1b3   : > { %v6201_v47 = vpop.permute.xlu1 %6200  ;;  %4970 = vmatprep.subr.bf16.mxu0 %v4969_v53  ;;  %v4973_v52 = vpack.c.bf16 %v695_v51, %v694_v4 }
 0x1b4   : > { %v6203_v19 = vunpack.i.h.bf16 %v6201_v47  ;;  %v6202_v61 = vunpack.i.l.bf16 %v6201_v47  ;;  %4972 = vmatpush1.bf16.msra.mxu0 %v4971_v54 }
 0x1b5   : > { %v6206_v62 = vpop.permute.xlu0 %6205  ;;  %4974 = vmatprep.subr.bf16.mxu0 %v4973_v52 }
 0x1b6   : > { %v6208_v7 = vunpack.i.h.bf16 %v6206_v62  ;;  %v6207_v13 = vunpack.i.l.bf16 %v6206_v62  ;;  %v702_v15 = vsel %vm686_vm8, %v6202_v61, %v6172_v40  ;;  %v703_v34 = vsel %vm686_vm8, %v6203_v19, %v6173_v28  ;;  %v404_v28 = vld [vmem:[#allocation4] sm:$0xf] }
 0x1b7   : > { %v5017_v10 = vpack.c.bf16 %v703_v34, %v702_v15  ;;  %v687_v45 = vsel %vm686_vm8, %v6192_v38, %v6202_v61  ;;  %v688_v57 = vsel %vm686_vm8, %v6193_v3, %v6203_v19  ;;  %v685_v1 = vpop.permute.xlu1 %684  ;;  %v995_v40 = vsub.s32 1, %v990_v11 }
 0x1b8   : > { %4976 = vmatpush1.bf16.msra.mxu0 %v4975_v63  ;;  %v5019_v26 = vpack.c.bf16 %v688_v57, %v687_v45  ;;  %v704_v21 = vsel %vm686_vm8, %v6207_v13, %v6177_v24  ;;  %v705_v58 = vsel %vm686_vm8, %v6208_v7, %v6178_v23  ;;  %v689_v20 = vsel %vm686_vm8, %v6197_v46, %v6207_v13 }
 0x1b9   : > { %800 = vmatprep.subr.mxu0 %v696_v0  ;;  %5018 = vmatprep.subr.bf16.mxu1 %v5017_v10  ;;  %v5021_v55 = vpack.c.bf16 %v705_v58, %v704_v21  ;;  %v690_v27 = vsel %vm686_vm8, %v6198_v32, %v6208_v7  ;;  %v706_v35 = vsel %vm686_vm8, %v685_v1, %v8935_v33  ;;  %v713_v33 = vld [vmem:[#allocation7 + $0x30] sm:$0xff]  ;;  %v999_v3 = vsub.s32 2, %v990_v11 }
 0x1ba   : > { %5020 = vmatpush1.bf16.msra.mxu1 %v5019_v26  ;;  %v5023_v31 = vpack.c.bf16 %v690_v27, %v689_v20  ;;  %v691_v29 = vsel %vm686_vm8, %v675_v42, %v685_v1  ;;  %v1003_v38 = vsub.s32 3, %v990_v11  ;;  %v9001_v6 = vrot.slane %v404_v28, %v991_v43 }
 0x1bb   : > { %5022 = vmatprep.subr.bf16.mxu1 %v5021_v55  ;;  %v9004_v8 = vrot.slane %v404_v28, %v995_v40  ;;  %v9009_v42 = vrot.slane %v404_v28, %v999_v3 }
 0x1bc   : > { %801 = vmatpush1.msra.mxu0 %v701_v5  ;;  %15986 = vst [vmem:[#allocation18_spill] sm:$0xff] %v9001_v6  ;;  %v9011_v53 = vrot.slane %v404_v28, %v1003_v38 }
 0x1bd   : > { %817 = vmatmul.mubr.f32.vlgmr.msra.gmra.mrb[0].mxu0 %v707_v25  ;;  %15987 = vst [vmem:[#allocation19_spill] sm:$0xff] %v9004_v8  ;;  %15988 = vst [vmem:[#allocation20_spill] sm:$0xff] %v9009_v42 }
 0x1be   : > { %5024 = vmatpush1.bf16.msra.mxu1 %v5023_v31  ;;  %4903 = vmatprep.mubr.msk.f32.mxu0 %vm739_vm4, %v710_v30  ;;  %15989 = vst [vmem:[#allocation21_spill] sm:$0xff] %v9011_v53 }
 0x1bf   : > { %889 = vmatprep.subr.mxu1 %v706_v35 }
 0x1c1   : > { %823 = vmatmul.mubr.f32.gmra.mrb[2].mxu0 %v709_v49 }
 0x1c2   : > { %890 = vmatpush1.msra.mxu1 %v691_v29  ;;  %4904 = vmatprep.mubr.msk.f32.mxu0 %vm739_vm4, %v712_v59 }
 0x1c3   : > { %906 = vmatmul.mubr.f32.vlgmr.msra.gmra.mrb[0].mxu1 %v707_v25 }
 0x1c4   : > { %4907 = vmatprep.mubr.msk.f32.mxu1 %vm739_vm4, %v710_v30 }
 0x1c5   : > { %829 = vmatmul.mubr.f32.gmra.mrb[4].mxu0 %v711_v14 }
 0x1c6   : > { %4905 = vmatprep.mubr.msk.f32.mxu0 %vm739_vm4, %v714_v44  ;;  %v722_v12 = vpop.permute.xlu0 %721 }
 0x1c7   : > { %912 = vmatmul.mubr.f32.gmra.mrb[2].mxu1 %v709_v49 }
 0x1c8   : > { %4908 = vmatprep.mubr.msk.f32.mxu1 %vm739_vm4, %v712_v59  ;;  %v8994_v18 = vpop.permute.xlu1 %726 }
 0x1c9   : > { %835 = vmatmul.mubr.f32.gmra.mrb[6].mxu0 %v713_v33 }
 0x1ca   : > { %v737_v27 = vpop.permute.xlu0 %736 }
 0x1cb   : > { %918 = vmatmul.mubr.f32.gmra.mrb[4].mxu1 %v711_v14 }
 0x1cc   : > { %4909 = vmatprep.mubr.msk.f32.mxu1 %vm739_vm4, %v714_v44  ;;  %v8996_v36 = vpop.permute.xlu1 %731 }
 0x1cf   : > { %924 = vmatmul.mubr.f32.gmra.mrb[6].mxu1 %v713_v33 }
 0x1d0   : > { %v8999_v56 = vpop.permute.xlu1 %953 }
 0x290   : > { %v818_v50 = vpop.f32.mrb[0].mxu0 }
 0x291   : > { %v819_v16 = vadd.f32 %v818_v50, %v722_v12  ;;  %v820_v17 = vpop.f32.mrb[1].mxu0 }
 0x292   : > { %v821_v22 = vadd.f32 %v820_v17, %v722_v12 }
 0x293   : > { %vm930_vm9 = vcmp.ge.f32.partialorder %v819_v16, 0.0  ;;  %v956_v39 = vmul.f32 %v8999_v56, %v819_v16 }
 0x294   : > { %vm931_vm10 = vcmp.ge.f32.partialorder %v821_v22, 0.0  ;;  %v824_v23 = vpop.f32.mrb[2].mxu0  ;;  %v957_v24 = vmul.f32 %v8999_v56, %v821_v22 }
 0x295   : > { %v825_v2 = vadd.f32 %v824_v23, %v8994_v18  ;;  %v826_v32 = vpop.f32.mrb[3].mxu0  ;;  %v972_v46 = vsel %vm930_vm9, %v819_v16, %v956_v39 }
 0x296   : > { %v827_v48 = vadd.f32 %v826_v32, %v8994_v18  ;;  %v907_v41 = vpop.f32.mrb[0].mxu1  ;;  %v973_v54 = vsel %vm931_vm10, %v821_v22, %v957_v24  ;;  %v9015_v37 = vmul.f32 %v9001_v6, %v972_v46 }
 0x297   : > { %vm934_vm11 = vcmp.ge.f32.partialorder %v825_v2, 0.0  ;;  %v960_v4 = vmul.f32 %v8999_v56, %v825_v2  ;;  %v908_v51 = vadd.f32 %v907_v41, %v722_v12  ;;  %v909_v60 = vpop.f32.mrb[1].mxu1  ;;  %v9019_v61 = vmul.f32 %v9004_v8, %v973_v54 }
 0x298   : > { %15990 = vst [vmem:[#allocation22_spill] sm:$0xff] %v9015_v37  ;;  %vm935_vm12 = vcmp.ge.f32.partialorder %v827_v48, 0.0  ;;  %v961_v47 = vmul.f32 %v8999_v56, %v827_v48  ;;  %v910_v52 = vadd.f32 %v909_v60, %v722_v12  ;;  %v830_v19 = vpop.f32.mrb[4].mxu0 }
 0x299   : > { %15991 = vst [vmem:[#allocation23_spill] sm:$0xff] %v9019_v61  ;;  %v976_v62 = vsel %vm934_vm11, %v825_v2, %v960_v4  ;;  %vm932_vm13 = vcmp.ge.f32.partialorder %v908_v51, 0.0  ;;  %v958_v63 = vmul.f32 %v8999_v56, %v908_v51  ;;  %v831_v7 = vadd.f32 %v830_v19, %v8996_v36  ;;  %v832_v13 = vpop.f32.mrb[5].mxu0 }
 0x29a   : > { %v9024_v15 = vmul.f32 %v9001_v6, %v976_v62  ;;  %v977_v34 = vsel %vm935_vm12, %v827_v48, %v961_v47  ;;  %vm933_vm14 = vcmp.ge.f32.partialorder %v910_v52, 0.0  ;;  %v959_v10 = vmul.f32 %v8999_v56, %v910_v52  ;;  %v913_v45 = vpop.f32.mrb[2].mxu1 }
 0x29b   : > { %v9028_v57 = vmul.f32 %v9004_v8, %v977_v34  ;;  %v974_v0 = vsel %vm932_vm13, %v908_v51, %v958_v63  ;;  %vm938_vm15 = vcmp.ge.f32.partialorder %v831_v7, 0.0  ;;  %v964_v26 = vmul.f32 %v8999_v56, %v831_v7  ;;  %v915_v21 = vpop.f32.mrb[3].mxu1 }
 0x29c   : > { %15992 = vst [vmem:[#allocation24_spill] sm:$0xff] %v9024_v15  ;;  %v9032_v58 = vmul.f32 %v9009_v42, %v974_v0  ;;  %v975_v55 = vsel %vm933_vm14, %v910_v52, %v959_v10  ;;  %v833_v20 = vadd.f32 %v832_v13, %v8996_v36  ;;  %v914_v25 = vadd.f32 %v913_v45, %v8994_v18  ;;  %v836_v1 = vpop.f32.mrb[6].mxu0 }
 0x29d   : > { %15993 = vst [vmem:[#allocation25_spill] sm:$0xff] %v9028_v57  ;;  %v9037_v5 = vmul.f32 %v9011_v53, %v975_v55  ;;  %v980_v30 = vsel %vm938_vm15, %v831_v7, %v964_v26  ;;  %v916_v31 = vadd.f32 %v915_v21, %v8994_v18  ;;  %v837_v35 = vadd.f32 %v836_v1, %v737_v27  ;;  %v838_v49 = vpop.f32.mrb[7].mxu0 }
 0x29e   : > { %15994 = vst [vmem:[#allocation26_spill] sm:$0xff] %v9032_v58  ;;  %v9041_v59 = vmul.f32 %v9001_v6, %v980_v30  ;;  %vm939_vm4 = vcmp.ge.f32.partialorder %v833_v20, 0.0  ;;  %v965_v29 = vmul.f32 %v8999_v56, %v833_v20  ;;  %vm936_vm9 = vcmp.ge.f32.partialorder %v914_v25, 0.0  ;;  %v919_v14 = vpop.f32.mrb[4].mxu1 }
 0x29f   : > { %15995 = vst [vmem:[#allocation27_spill] sm:$0xff] %v9037_v5  ;;  %v962_v44 = vmul.f32 %v8999_v56, %v914_v25  ;;  %vm937_vm10 = vcmp.ge.f32.partialorder %v916_v31, 0.0  ;;  %v963_v33 = vmul.f32 %v8999_v56, %v916_v31  ;;  %vm942_vm11 = vcmp.ge.f32.partialorder %v837_v35, 0.0  ;;  %v921_v11 = vpop.f32.mrb[5].mxu1 }
 0x2a0   : > { %15996 = vst [vmem:[#allocation28_spill] sm:$0xff] %v9041_v59  ;;  %v981_v12 = vsel %vm939_vm4, %v833_v20, %v965_v29  ;;  %v968_v18 = vmul.f32 %v8999_v56, %v837_v35  ;;  %v839_v43 = vadd.f32 %v838_v49, %v737_v27  ;;  %v920_v50 = vadd.f32 %v919_v14, %v8996_v36 }
 0x2a1   : > { %v9049_v28 = vmul.f32 %v9004_v8, %v981_v12  ;;  %v978_v40 = vsel %vm936_vm9, %v914_v25, %v962_v44  ;;  %v979_v16 = vsel %vm937_vm10, %v916_v31, %v963_v33  ;;  %v9053_v17 = vpack.i.bf16 %v9024_v15, %v9015_v37 }
 0x2a2   : > { %v9056_v22 = vmul.f32 %v9009_v42, %v978_v40  ;;  %v9059_v3 = vmul.f32 %v9011_v53, %v979_v16  ;;  %v984_v38 = vsel %vm942_vm11, %v837_v35, %v968_v18  ;;  %vm943_vm12 = vcmp.ge.f32.partialorder %v839_v43, 0.0  ;;  %v925_v39 = vpop.f32.mrb[6].mxu1 }
 0x2a3   : > { %15997 = vst [vmem:[#allocation29_spill] sm:$0xff] %v9049_v28  ;;  %15998 = vst [vmem:[#allocation30_spill] sm:$0xff] %v9053_v17  ;;  %v9062_v23 = vmul.f32 %v9001_v6, %v984_v38  ;;  %v969_v24 = vmul.f32 %v8999_v56, %v839_v43  ;;  %vm940_vm13 = vcmp.ge.f32.partialorder %v920_v50, 0.0  ;;  %v966_v2 = vmul.f32 %v8999_v56, %v920_v50  ;;  %v927_v32 = vpop.f32.mrb[7].mxu1 }
 0x2a4   : > { %15999 = vst [vmem:[#allocation31_spill] sm:$0xff] %v9056_v22  ;;  %16000 = vst [vmem:[#allocation32_spill] sm:$0xff] %v9059_v3  ;;  %6212 = vrot.lane.b32.xlu0 %v9053_v17, %s8303_s26  ;;  %v922_v46 = vadd.f32 %v921_v11, %v8996_v36  ;;  %v926_v48 = vadd.f32 %v925_v39, %v737_v27  ;;  %v928_v41 = vadd.f32 %v927_v32, %v737_v27  ;;  %vm2229_vm9 = vcmask 261120  }
 0x2a5   : > { %16001 = vst [vmem:[#allocation33_spill] sm:$0xff] %v9062_v23  ;;  %v9071_v54 = vpack.i.bf16 %v9056_v22, %v9032_v58  ;;  %v985_v4 = vsel %vm943_vm12, %v839_v43, %v969_v24  ;;  %v982_v51 = vsel %vm940_vm13, %v920_v50, %v966_v2  ;;  %v9075_v60 = vpack.i.bf16 %v9062_v23, %v9041_v59 }
 0x2a6   : > { %v9078_v47 = vmul.f32 %v9004_v8, %v985_v4  ;;  %v9081_v52 = vmul.f32 %v9009_v42, %v982_v51  ;;  %vm941_vm14 = vcmp.ge.f32.partialorder %v922_v46, 0.0  ;;  %v967_v36 = vmul.f32 %v8999_v56, %v922_v46 }
 0x2a7   : > { %16002 = vst [vmem:[#allocation34_spill] sm:$0xff] %v9071_v54  ;;  %16003 = vst [vmem:[#allocation35_spill] sm:$0xff] %v9075_v60  ;;  %vm944_vm15 = vcmp.ge.f32.partialorder %v926_v48, 0.0  ;;  %v970_v19 = vmul.f32 %v8999_v56, %v926_v48  ;;  %vm945_vm4 = vcmp.ge.f32.partialorder %v928_v41, 0.0  ;;  %v971_v62 = vmul.f32 %v8999_v56, %v928_v41  ;;  %6352 = vrot.lane.b32.xlu1 %v9075_v60, %s8303_s26 }
 0x2a8   : > { %16004 = vst [vmem:[#allocation36_spill] sm:$0xff] %v9078_v47  ;;  %16005 = vst [vmem:[#allocation37_spill] sm:$0xff] %v9081_v52  ;;  %6217 = vrot.lane.b32.xlu0 %v9071_v54, %s8303_s26  ;;  %v983_v63 = vsel %vm941_vm14, %v922_v46, %v967_v36  ;;  %v9111_v0 = vpack.i.bf16 %v9028_v57, %v9019_v61  ;;  %v9115_v26 = vpack.i.bf16 %v9059_v3, %v9037_v5 }
 0x2a9   : > { %v9091_v7 = vmul.f32 %v9011_v53, %v983_v63  ;;  %v986_v13 = vsel %vm944_vm15, %v926_v48, %v970_v19  ;;  %v987_v34 = vsel %vm945_vm4, %v928_v41, %v971_v62  ;;  %v9119_v21 = vpack.i.bf16 %v9078_v47, %v9049_v28 }
 0x2aa   : > { %v9094_v10 = vmul.f32 %v9009_v42, %v986_v13  ;;  %v9097_v45 = vmul.f32 %v9011_v53, %v987_v34  ;;  %16010 = vst [vmem:[#allocation42_spill] sm:$0xff] %v9111_v0  ;;  %16011 = vst [vmem:[#allocation43_spill] sm:$0xff] %v9115_v26 }
 0x2ab   : > { %16006 = vst [vmem:[#allocation38_spill] sm:$0xff] %v9091_v7  ;;  %16012 = vst [vmem:[#allocation44_spill] sm:$0xff] %v9119_v21 }
 0x2ac   : > { %16007 = vst [vmem:[#allocation39_spill] sm:$0xff] %v9094_v10  ;;  %16008 = vst [vmem:[#allocation40_spill] sm:$0xff] %v9097_v45  ;;  %6222 = vrot.lane.b32.xlu0 %v9053_v17, %s8302_s24  ;;  %v9103_v56 = vpack.i.bf16 %v9094_v10, %v9081_v52  ;;  %v9123_v55 = vpack.i.bf16 %v9097_v45, %v9091_v7 }
 0x2ae   : > { %16009 = vst [vmem:[#allocation41_spill] sm:$0xff] %v9103_v56  ;;  %6357 = vrot.lane.b32.xlu1 %v9103_v56, %s8303_s26  ;;  %16013 = vst [vmem:[#allocation45_spill] sm:$0xff] %v9123_v55 }
 0x2b0   : > { %6227 = vrot.lane.b32.xlu0 %v9071_v54, %s8302_s24 }
 0x2b2   : > { %6362 = vrot.lane.b32.xlu1 %v9075_v60, %s8302_s24 }
 0x2b4   : > { %6232 = vrot.lane.b32.xlu0 %v9053_v17, %s8304_s16 }
 0x2b6   : > { %6367 = vrot.lane.b32.xlu1 %v9103_v56, %s8302_s24 }
 0x2b8   : > { %6237 = vrot.lane.b32.xlu0 %v9071_v54, %s8304_s16 }
 0x2ba   : > { %6372 = vrot.lane.b32.xlu1 %v9075_v60, %s8304_s16 }
 0x2bc   : > { %6242 = vrot.lane.b32.xlu0 %v9053_v17, %s8305_s7 }
 0x2be   : > { %6377 = vrot.lane.b32.xlu1 %v9103_v56, %s8304_s16 }
 0x2c0   : > { %6247 = vrot.lane.b32.xlu0 %v9071_v54, %s8305_s7 }
 0x2c2   : > { %6382 = vrot.lane.b32.xlu1 %v9075_v60, %s8305_s7 }
 0x2c4   : > { %6252 = vrot.lane.b32.xlu0 %v9053_v17, %s8306_s22 }
 0x2c6   : > { %6387 = vrot.lane.b32.xlu1 %v9103_v56, %s8305_s7 }
 0x2c8   : > { %6257 = vrot.lane.b32.xlu0 %v9071_v54, %s8306_s22 }
 0x2ca   : > { %6392 = vrot.lane.b32.xlu1 %v9075_v60, %s8306_s22 }
 0x2cc   : > { %6262 = vrot.lane.b32.xlu0 %v9053_v17, %s8307_s23 }
 0x2ce   : > { %6397 = vrot.lane.b32.xlu1 %v9103_v56, %s8306_s22 }
 0x2d0   : > { %6267 = vrot.lane.b32.xlu0 %v9071_v54, %s8307_s23 }
 0x2d2   : > { %6402 = vrot.lane.b32.xlu1 %v9075_v60, %s8307_s23 }
 0x2d4   : > { %6272 = vrot.lane.b32.xlu0 %v9053_v17, %s8308_s11 }
 0x2d6   : > { %6407 = vrot.lane.b32.xlu1 %v9103_v56, %s8307_s23 }
 0x2d8   : > { %6277 = vrot.lane.b32.xlu0 %v9071_v54, %s8308_s11 }
 0x2da   : > { %6412 = vrot.lane.b32.xlu1 %v9075_v60, %s8308_s11 }
 0x2dc   : > { %6282 = vrot.lane.b32.xlu0 %v9111_v0, %s8303_s26 }
 0x2de   : > { %6417 = vrot.lane.b32.xlu1 %v9103_v56, %s8308_s11 }
 0x2e0   : > { %6287 = vrot.lane.b32.xlu0 %v9115_v26, %s8303_s26 }
 0x2e2   : > { %6422 = vrot.lane.b32.xlu1 %v9119_v21, %s8303_s26 }
 0x2e4   : > { %6292 = vrot.lane.b32.xlu0 %v9111_v0, %s8302_s24 }
 0x2e6   : > { %6427 = vrot.lane.b32.xlu1 %v9123_v55, %s8303_s26 }
 0x2e8   : > { %6297 = vrot.lane.b32.xlu0 %v9115_v26, %s8302_s24 }
 0x2ea   : > { %6432 = vrot.lane.b32.xlu1 %v9119_v21, %s8302_s24 }
 0x2ec   : > { %6302 = vrot.lane.b32.xlu0 %v9111_v0, %s8304_s16 }
 0x2ee   : > { %6437 = vrot.lane.b32.xlu1 %v9123_v55, %s8302_s24 }
 0x2f0   : > { %6307 = vrot.lane.b32.xlu0 %v9115_v26, %s8304_s16 }
 0x2f2   : > { %6442 = vrot.lane.b32.xlu1 %v9119_v21, %s8304_s16 }
 0x2f4   : > { %6312 = vrot.lane.b32.xlu0 %v9111_v0, %s8305_s7 }
 0x2f6   : > { %6447 = vrot.lane.b32.xlu1 %v9123_v55, %s8304_s16 }
 0x2f8   : > { %6317 = vrot.lane.b32.xlu0 %v9115_v26, %s8305_s7 }
 0x2fa   : > { %6452 = vrot.lane.b32.xlu1 %v9119_v21, %s8305_s7 }
 0x2fc   : > { %6322 = vrot.lane.b32.xlu0 %v9111_v0, %s8306_s22 }
 0x2fe   : > { %6457 = vrot.lane.b32.xlu1 %v9123_v55, %s8305_s7 }
 0x300   : > { %6327 = vrot.lane.b32.xlu0 %v9115_v26, %s8306_s22 }
 0x302   : > { %6462 = vrot.lane.b32.xlu1 %v9119_v21, %s8306_s22 }
 0x304   : > { %6332 = vrot.lane.b32.xlu0 %v9111_v0, %s8307_s23 }
 0x306   : > { %6467 = vrot.lane.b32.xlu1 %v9123_v55, %s8306_s22 }
 0x308   : > { %6337 = vrot.lane.b32.xlu0 %v9115_v26, %s8307_s23 }
 0x30a   : > { %6472 = vrot.lane.b32.xlu1 %v9119_v21, %s8307_s23 }
 0x30c   : > { %6342 = vrot.lane.b32.xlu0 %v9111_v0, %s8308_s11 }
 0x30e   : > { %6477 = vrot.lane.b32.xlu1 %v9123_v55, %s8307_s23 }
 0x310   : > { %6347 = vrot.lane.b32.xlu0 %v9115_v26, %s8308_s11 }
 0x312   : > { %6482 = vrot.lane.b32.xlu1 %v9119_v21, %s8308_s11 }
 0x316   : > { %v9239_v29 = vpop.permute.xlu0 %6212  ;;  %6487 = vrot.lane.b32.xlu1 %v9123_v55, %s8308_s11 }
 0x317   : > { %v15445_v30 = vunpack.i.h.bf16 %v9239_v29  ;;  %v15442_v1 = vunpack.i.l.bf16 %v9239_v29 }
 0x319   : > { %v9245_v44 = vpop.permute.xlu1 %6352 }
 0x31a   : > { %v9243_v14 = vpop.permute.xlu0 %6217  ;;  %v15454_v52 = vunpack.i.l.bf16 %v9245_v44 }
 0x31e   : > { %v9247_v33 = vpop.permute.xlu0 %6222 }
 0x31f   : > { %v15457_v23 = vunpack.i.l.bf16 %v9247_v33 }
 0x320   : > { %v9249_v11 = vpop.permute.xlu1 %6357 }
 0x321   : > { %v16087_v17 = vunpack.i.l.bf16 %v9249_v11 }
 0x322   : > { %v9251_v12 = vpop.permute.xlu0 %6227 }
 0x324   : > { %v9253_v18 = vpop.permute.xlu1 %6362 }
 0x326   : > { %v9255_v43 = vpop.permute.xlu0 %6232 }
 0x328   : > { %v9257_v50 = vpop.permute.xlu1 %6367 }
 0x32a   : > { %v9259_v40 = vpop.permute.xlu0 %6237 }
 0x32c   : > { %v9261_v16 = vpop.permute.xlu1 %6372 }
 0x32d   : > { %v16051_v56 = vunpack.i.l.bf16 %v9261_v16 }
 0x32e   : > { %v9263_v38 = vpop.permute.xlu0 %6242 }
 0x32f   : > { %v16060_v26 = vunpack.i.l.bf16 %v9263_v38 }
 0x330   : > { %v9265_v39 = vpop.permute.xlu1 %6377 }
 0x332   : > { %v9267_v24 = vpop.permute.xlu0 %6247 }
 0x334   : > { %v9269_v2 = vpop.permute.xlu1 %6382 }
 0x336   : > { %v9271_v32 = vpop.permute.xlu0 %6252 }
 0x337   : > { %16014 = vst [vmem:[#allocation46_spill] sm:$0xff] %v9271_v32 }
 0x338   : > { %v9273_v46 = vpop.permute.xlu1 %6387 }
 0x33a   : > { %v9275_v48 = vpop.permute.xlu0 %6257 }
 0x33b   : > { %16015 = vst [vmem:[#allocation47_spill] sm:$0xff] %v9275_v48 }
 0x33c   : > { %v9277_v41 = vpop.permute.xlu1 %6392 }
 0x33d   : > { %16016 = vst [vmem:[#allocation48_spill] sm:$0xff] %v9277_v41  ;;  %v16077_v41 = vunpack.i.l.bf16 %v9247_v33 }
 0x33e   : > { %v9279_v4 = vpop.permute.xlu0 %6262 }
 0x33f   : > { %16017 = vst [vmem:[#allocation49_spill] sm:$0xff] %v9279_v4  ;;  %v16066_v4 = vunpack.i.h.bf16 %v9239_v29 }
 0x340   : > { %v9281_v51 = vpop.permute.xlu1 %6397 }
 0x341   : > { %16018 = vst [vmem:[#allocation50_spill] sm:$0xff] %v9281_v51  ;;  %v16071_v51 = vunpack.i.l.bf16 %v9245_v44 }
 0x342   : > { %v9283_v36 = vpop.permute.xlu0 %6267 }
 0x343   : > { %16019 = vst [vmem:[#allocation51_spill] sm:$0xff] %v9283_v36 }
 0x344   : > { %v9285_v19 = vpop.permute.xlu1 %6402 }
 0x345   : > { %16020 = vst [vmem:[#allocation52_spill] sm:$0xff] %v9285_v19 }
 0x346   : > { %v9287_v62 = vpop.permute.xlu0 %6272 }
 0x347   : > { %16021 = vst [vmem:[#allocation53_spill] sm:$0xff] %v9287_v62 }
 0x348   : > { %v9289_v63 = vpop.permute.xlu1 %6407 }
 0x349   : > { %16022 = vst [vmem:[#allocation54_spill] sm:$0xff] %v9289_v63  ;;  %v16064_v63 = vunpack.i.l.bf16 %v9239_v29 }
 0x34a   : > { %v9291_v13 = vpop.permute.xlu0 %6277 }
 0x34b   : > { %16023 = vst [vmem:[#allocation55_spill] sm:$0xff] %v9291_v13 }
 0x34c   : > { %v9293_v34 = vpop.permute.xlu1 %6412 }
 0x34d   : > { %16024 = vst [vmem:[#allocation56_spill] sm:$0xff] %v9293_v34  ;;  %v16041_v34 = vunpack.i.h.bf16 %v9255_v43 }
 0x34e   : > { %v9295_v49 = vpop.permute.xlu0 %6282 }
 0x34f   : > { %v6285_v15 = vunpack.i.h.bf16 %v9295_v49 }
 0x350   : > { %v9297_v35 = vpop.permute.xlu1 %6417 }
 0x351   : > { %16025 = vst [vmem:[#allocation57_spill] sm:$0xff] %v9297_v35  ;;  %v6284_v35 = vunpack.i.l.bf16 %v9295_v49  ;;  %v16054_v49 = vunpack.i.h.bf16 %v9261_v16 }
 0x352   : > { %v9299_v31 = vpop.permute.xlu0 %6287 }
 0x353   : > { %v15444_v25 = vunpack.i.h.bf16 %v9299_v31  ;;  %v15441_v27 = vunpack.i.l.bf16 %v9299_v31 }
 0x354   : > { %v9321_v42 = vpop.permute.xlu1 %6422 }
 0x355   : > { %v9311_v20 = vsel %vm419_vm1, %v15441_v27, %v15442_v1  ;;  %v9319_v53 = vsel %vm419_vm1, %v15444_v25, %v15445_v30  ;;  %v16030_v25 = vunpack.i.h.bf16 %v9245_v44  ;;  %v16070_v36 = vunpack.i.l.bf16 %v9321_v42 }
 0x356   : > { %16026 = vst [vmem:[#allocation58_spill] sm:$0xff] %v9311_v20  ;;  %16027 = vst [vmem:[#allocation59_spill] sm:$0xff] %v9319_v53  ;;  %v9323_v8 = vpop.permute.xlu0 %6292  ;;  %v9327_v6 = vpack.i.bf16 %v9319_v53, %v9311_v20  ;;  %v16073_v29 = vunpack.i.h.bf16 %v9321_v42 }
 0x357   : > { %v16079_v32 = vunpack.i.h.bf16 %v9323_v8 }
 0x358   : > { %16028 = vst [vmem:[#allocation60_spill] sm:$0xff] %v9327_v6  ;;  %6492 = vrot.lane.b32.xlu0 %v9327_v6, %s8306_s22  ;;  %v9331_v27 = vpop.permute.xlu1 %6427 }
 0x359   : > { %v15453_v30 = vunpack.i.l.bf16 %v9331_v27  ;;  %v16031_v58 = vunpack.i.h.bf16 %v9331_v27  ;;  %v16086_v60 = vunpack.i.l.bf16 %v9331_v27 }
 0x35a   : > { %v9337_v10 = vpop.permute.xlu0 %6297 }
 0x35b   : > { %v9349_v1 = vsel %vm419_vm1, %v15453_v30, %v15454_v52  ;;  %v9357_v59 = vsel %vm419_vm1, %v16031_v58, %v16030_v25  ;;  %v16033_v22 = vunpack.i.l.bf16 %v9337_v10  ;;  %v16035_v52 = vunpack.i.h.bf16 %v9247_v33 }
 0x35c   : > { %16029 = vst [vmem:[#allocation61_spill] sm:$0xff] %v9349_v1  ;;  %16032 = vst [vmem:[#allocation62_spill] sm:$0xff] %v9357_v59  ;;  %v16036_v28 = vunpack.i.h.bf16 %v9337_v10  ;;  %v9377_v25 = vpop.permute.xlu1 %6432 }
 0x35d   : > { %v9367_v30 = vsel %vm432_vm0, %v16033_v22, %v15457_v23  ;;  %v9385_v22 = vpack.i.bf16 %v9357_v59, %v9349_v1  ;;  %v6434_v21 = vunpack.i.l.bf16 %v9377_v25 }
 0x35e   : > { %16034 = vst [vmem:[#allocation63_spill] sm:$0xff] %v9367_v30  ;;  %v9375_v58 = vsel %vm432_vm0, %v16036_v28, %v16035_v52  ;;  %v9381_v47 = vpop.permute.xlu0 %6302  ;;  %v15463_v28 = vunpack.i.l.bf16 %v9255_v43 }
 0x35f   : > { %16037 = vst [vmem:[#allocation64_spill] sm:$0xff] %v9375_v58  ;;  %16038 = vst [vmem:[#allocation65_spill] sm:$0xff] %v9385_v22  ;;  %v9389_v23 = vpack.i.bf16 %v9375_v58, %v9367_v30  ;;  %v15466_v52 = vunpack.i.h.bf16 %v9381_v47  ;;  %v15464_v7 = vunpack.i.l.bf16 %v9381_v47  ;;  %6747 = vrot.lane.b32.xlu1 %v9385_v22, %s8306_s22 }
 0x360   : > { %v9421_v13 = vpop.permute.xlu1 %6437 }
 0x361   : > { %16039 = vst [vmem:[#allocation66_spill] sm:$0xff] %v9389_v23  ;;  %v9409_v45 = vsel %vm445_vm2, %v15463_v28, %v15464_v7  ;;  %v9417_v37 = vsel %vm445_vm2, %v16041_v34, %v15466_v52  ;;  %6497 = vrot.lane.b32.xlu0 %v9389_v23, %s8306_s22  ;;  %v16044_v28 = vunpack.i.l.bf16 %v9253_v18  ;;  %v16045_v61 = vunpack.i.l.bf16 %v9421_v13 }
 0x362   : > { %16040 = vst [vmem:[#allocation67_spill] sm:$0xff] %v9409_v45  ;;  %16042 = vst [vmem:[#allocation68_spill] sm:$0xff] %v9417_v37  ;;  %v9426_v7 = vpop.permute.xlu0 %6307  ;;  %v9430_v5 = vpack.i.bf16 %v9417_v37, %v9409_v45  ;;  %v16047_v34 = vunpack.i.h.bf16 %v9253_v18  ;;  %v16048_v52 = vunpack.i.h.bf16 %v9421_v13 }
 0x363   : > { %v9444_v57 = vsel %vm432_vm0, %v16045_v61, %v16044_v28 }
 0x364   : > { %16043 = vst [vmem:[#allocation69_spill] sm:$0xff] %v9430_v5  ;;  %16046 = vst [vmem:[#allocation70_spill] sm:$0xff] %v9444_v57  ;;  %v9452_v3 = vsel %vm432_vm0, %v16048_v52, %v16047_v34  ;;  %v9460_v61 = vpop.permute.xlu1 %6442 }
 0x365   : > { %16049 = vst [vmem:[#allocation71_spill] sm:$0xff] %v9452_v3  ;;  %6502 = vrot.lane.b32.xlu0 %v9430_v5, %s8306_s22  ;;  %v6444_v52 = vunpack.i.l.bf16 %v9460_v61  ;;  %v9469_v62 = vpack.i.bf16 %v9452_v3, %v9444_v57  ;;  %v16053_v54 = vunpack.i.h.bf16 %v9460_v61  ;;  %v16122_v5 = vunpack.i.l.bf16 %v9265_v39  ;;  %v16231_v3 = vld [vmem:[#allocation44_spill] sm:$0xff] }
 0x366   : > { %v9465_v34 = vpop.permute.xlu0 %6312  ;;  %v16125_v22 = vunpack.i.h.bf16 %v9460_v61 }
 0x367   : > { %16050 = vst [vmem:[#allocation72_spill] sm:$0xff] %v9469_v62  ;;  %v6315_v53 = vunpack.i.h.bf16 %v9465_v34  ;;  %v6314_v20 = vunpack.i.l.bf16 %v9465_v34  ;;  %v9481_v55 = vsel %vm445_vm2, %v16051_v56, %v6444_v52  ;;  %v9489_v58 = vsel %vm445_vm2, %v16054_v49, %v16053_v54  ;;  %6752 = vrot.lane.b32.xlu1 %v9469_v62, %s8306_s22 }
 0x368   : > { %16052 = vst [vmem:[#allocation73_spill] sm:$0xff] %v9481_v55  ;;  %16055 = vst [vmem:[#allocation74_spill] sm:$0xff] %v9489_v58  ;;  %v16056_v34 = vunpack.i.l.bf16 %v9243_v14  ;;  %v16058_v56 = vunpack.i.h.bf16 %v9243_v14  ;;  %v16062_v49 = vunpack.i.h.bf16 %v9263_v38  ;;  %v9533_v0 = vpack.i.bf16 %v9489_v58, %v9481_v55 }
 0x369   : > { %v9509_v54 = vsel %vm458_vm3, %v16060_v26, %v6314_v20  ;;  %v9529_v26 = vsel %vm419_vm1, %v16066_v4, %v6285_v15  ;;  %v16119_v62 = vunpack.i.l.bf16 %v9421_v13 }
 0x36a   : > { %v9497_v28 = vsel %vm419_vm1, %v6284_v35, %v16056_v34  ;;  %v9503_v30 = vsel %vm419_vm1, %v6285_v15, %v16058_v56  ;;  %16061 = vst [vmem:[#allocation77_spill] sm:$0xff] %v9509_v54  ;;  %v9515_v19 = vsel %vm458_vm3, %v16062_v49, %v6315_v53  ;;  %v9517_v34 = vpop.permute.xlu1 %6447  ;;  %v9523_v56 = vsel %vm419_vm1, %v16064_v63, %v6284_v35 }
 0x36b   : > { %16057 = vst [vmem:[#allocation75_spill] sm:$0xff] %v9497_v28  ;;  %16059 = vst [vmem:[#allocation76_spill] sm:$0xff] %v9503_v30  ;;  %v9537_v49 = vpack.i.bf16 %v9515_v19, %v9509_v54  ;;  %v9545_v35 = vsel %vm419_vm1, %v16071_v51, %v16070_v36  ;;  %v16074_v15 = vunpack.i.h.bf16 %v9245_v44  ;;  %v16076_v63 = vunpack.i.l.bf16 %v9323_v8  ;;  %6757 = vrot.lane.b32.xlu1 %v9533_v0, %s8306_s22 }
 0x36c   : > { %16063 = vst [vmem:[#allocation78_spill] sm:$0xff] %v9515_v19  ;;  %16065 = vst [vmem:[#allocation79_spill] sm:$0xff] %v9523_v56  ;;  %v16080_v51 = vunpack.i.h.bf16 %v9247_v33  ;;  %v6449_v61 = vunpack.i.l.bf16 %v9517_v34  ;;  %v16172_v54 = vunpack.i.l.bf16 %v9261_v16 }
 0x36d   : > { %16067 = vst [vmem:[#allocation80_spill] sm:$0xff] %v9529_v26  ;;  %16068 = vst [vmem:[#allocation81_spill] sm:$0xff] %v9533_v0  ;;  %v9553_v4 = vsel %vm419_vm1, %v16074_v15, %v16073_v29  ;;  %v9561_v48 = vsel %vm432_vm0, %v16077_v41, %v16076_v63  ;;  %v6435_v15 = vunpack.i.h.bf16 %v9377_v25  ;;  %v6390_v41 = vunpack.i.h.bf16 %v9273_v46  ;;  %6507 = vrot.lane.b32.xlu0 %v9537_v49, %s8306_s22 }
 0x36e   : > { %16069 = vst [vmem:[#allocation82_spill] sm:$0xff] %v9537_v49  ;;  %16072 = vst [vmem:[#allocation83_spill] sm:$0xff] %v9545_v35  ;;  %v9569_v36 = vsel %vm432_vm0, %v16080_v51, %v16079_v32  ;;  %v6389_v63 = vunpack.i.l.bf16 %v9273_v46  ;;  %v6453_v33 = vpop.permute.xlu1 %6452  ;;  %v9583_v32 = vpack.i.bf16 %v9529_v26, %v9523_v56  ;;  %v9587_v51 = vpack.i.bf16 %v9503_v30, %v9497_v28  ;;  %v16209_v55 = vld [vmem:[#allocation72_spill] sm:$0xff] }
 0x36f   : > { %16075 = vst [vmem:[#allocation84_spill] sm:$0xff] %v9553_v4  ;;  %16078 = vst [vmem:[#allocation85_spill] sm:$0xff] %v9561_v48  ;;  %v6455_v25 = vunpack.i.h.bf16 %v6453_v33  ;;  %v6454_v44 = vunpack.i.l.bf16 %v6453_v33  ;;  %v9591_v29 = vpack.i.bf16 %v9569_v36, %v9561_v48  ;;  %v9595_v46 = vpack.i.bf16 %v9553_v4, %v9545_v35 }
 0x370   : > { %16081 = vst [vmem:[#allocation86_spill] sm:$0xff] %v9569_v36  ;;  %16082 = vst [vmem:[#allocation87_spill] sm:$0xff] %v9583_v32  ;;  %v9603_v26 = vsel %vm419_vm1, %v16087_v17, %v16086_v60  ;;  %v16089_v30 = vunpack.i.h.bf16 %v9331_v27  ;;  %v16090_v33 = vunpack.i.h.bf16 %v9249_v11  ;;  %v16092_v48 = vunpack.i.l.bf16 %v9259_v40 }
 0x371   : > { %16083 = vst [vmem:[#allocation88_spill] sm:$0xff] %v9587_v51  ;;  %16084 = vst [vmem:[#allocation89_spill] sm:$0xff] %v9591_v29  ;;  %v16093_v28 = vunpack.i.l.bf16 %v9381_v47  ;;  %v16095_v35 = vunpack.i.h.bf16 %v9259_v40  ;;  %v16096_v17 = vunpack.i.h.bf16 %v9381_v47  ;;  %v16098_v27 = vunpack.i.l.bf16 %v9253_v18  ;;  %6512 = vrot.lane.b32.xlu0 %v9583_v32, %s8306_s22 }
 0x372   : > { %16085 = vst [vmem:[#allocation90_spill] sm:$0xff] %v9595_v46  ;;  %16088 = vst [vmem:[#allocation91_spill] sm:$0xff] %v9603_v26  ;;  %v9611_v36 = vsel %vm419_vm1, %v16090_v33, %v16089_v30  ;;  %v16100_v33 = vunpack.i.h.bf16 %v9253_v18  ;;  %v16107_v18 = vunpack.i.l.bf16 %v9251_v12  ;;  %v16109_v56 = vunpack.i.h.bf16 %v9337_v10 }
 0x373   : > { %16091 = vst [vmem:[#allocation92_spill] sm:$0xff] %v9611_v36  ;;  %v9619_v4 = vsel %vm445_vm2, %v16093_v28, %v16092_v48  ;;  %v9627_v60 = vsel %vm445_vm2, %v16096_v17, %v16095_v35  ;;  %v9633_v30 = vsel %vm432_vm0, %v16098_v27, %v6434_v21  ;;  %v16102_v28 = vunpack.i.l.bf16 %v9269_v2 }
 0x374   : > { %16094 = vst [vmem:[#allocation93_spill] sm:$0xff] %v9619_v4  ;;  %16097 = vst [vmem:[#allocation94_spill] sm:$0xff] %v9627_v60  ;;  %v9639_v48 = vsel %vm432_vm0, %v16100_v33, %v6435_v15  ;;  %v16104_v35 = vunpack.i.h.bf16 %v9269_v2  ;;  %v16106_v27 = vunpack.i.l.bf16 %v9337_v10  ;;  %v16110_v0 = vunpack.i.h.bf16 %v9251_v12  ;;  %v16211_v58 = vld [vmem:[#allocation81_spill] sm:$0xff] }
 0x375   : > { %16099 = vst [vmem:[#allocation95_spill] sm:$0xff] %v9633_v30  ;;  %16101 = vst [vmem:[#allocation96_spill] sm:$0xff] %v9639_v48  ;;  %v9645_v47 = vsel %vm458_vm3, %v16102_v28, %v6454_v44  ;;  %v16112_v49 = vunpack.i.l.bf16 %v9257_v50  ;;  %v16115_v10 = vunpack.i.h.bf16 %v9257_v50  ;;  %v9697_v32 = vpack.i.bf16 %v9639_v48, %v9633_v30  ;;  %6517 = vrot.lane.b32.xlu0 %v9591_v29, %s8306_s22  ;;  %v2178_v48 = vld [vmem:[#allocation9 + $0x8] sm:$0xff] }
 0x376   : > { %16103 = vst [vmem:[#allocation97_spill] sm:$0xff] %v9645_v47  ;;  %v9651_v17 = vsel %vm458_vm3, %v16104_v35, %v6455_v25  ;;  %v9659_v33 = vsel %vm432_vm0, %v16107_v18, %v16106_v27  ;;  %v9667_v28 = vsel %vm432_vm0, %v16110_v0, %v16109_v56  ;;  %v6310_v0 = vunpack.i.h.bf16 %v9426_v7  ;;  %v6318_v56 = vpop.permute.xlu0 %6317  ;;  %2306 = vmatprep.mubr.f32.mxu0 %v2178_v48 }
 0x377   : > { %16105 = vst [vmem:[#allocation98_spill] sm:$0xff] %v9651_v17  ;;  %16108 = vst [vmem:[#allocation99_spill] sm:$0xff] %v9659_v33  ;;  %v9673_v35 = vsel %vm432_vm0, %v6434_v21, %v16112_v49  ;;  %v9679_v27 = vpack.i.bf16 %v9651_v17, %v9645_v47  ;;  %v9685_v18 = vsel %vm432_vm0, %v6435_v15, %v16115_v10  ;;  %v6309_v49 = vunpack.i.l.bf16 %v9426_v7 }
 0x378   : > { %16111 = vst [vmem:[#allocation100_spill] sm:$0xff] %v9667_v28  ;;  %16113 = vst [vmem:[#allocation101_spill] sm:$0xff] %v9673_v35  ;;  %v9690_v21 = vpack.i.bf16 %v9627_v60, %v9619_v4  ;;  %v16120_v15 = vunpack.i.l.bf16 %v9257_v50  ;;  %v9711_v7 = vsel %vm445_vm2, %v6444_v52, %v16122_v5  ;;  %v16127_v17 = vunpack.i.l.bf16 %v9267_v24  ;;  %v16229_v60 = vld [vmem:[#allocation30_spill] sm:$0xff]  ;;  %2662 = vmatprep.mubr.f32.mxu1 %v2178_v48 }
 0x379   : > { %16114 = vst [vmem:[#allocation102_spill] sm:$0xff] %v9679_v27  ;;  %16116 = vst [vmem:[#allocation103_spill] sm:$0xff] %v9685_v18  ;;  %6762 = vrot.lane.b32.xlu1 %v9679_v27, %s8306_s22  ;;  %v16124_v27 = vunpack.i.h.bf16 %v9265_v39  ;;  %v16129_v47 = vunpack.i.h.bf16 %v9267_v24  ;;  %v6450_v52 = vunpack.i.h.bf16 %v9517_v34  ;;  %v6320_v19 = vunpack.i.h.bf16 %v6318_v56 }
 0x37a   : > { %16117 = vst [vmem:[#allocation104_spill] sm:$0xff] %v9690_v21  ;;  %16118 = vst [vmem:[#allocation105_spill] sm:$0xff] %v9697_v32  ;;  %v9705_v10 = vsel %vm432_vm0, %v16120_v15, %v16119_v62  ;;  %v9725_v62 = vsel %vm458_vm3, %v6314_v20, %v16127_v17  ;;  %v6458_v15 = vpop.permute.xlu1 %6457  ;;  %v9739_v20 = vsel %vm458_vm3, %v6454_v44, %v6389_v63  ;;  %v16133_v34 = vunpack.i.h.bf16 %v9421_v13 }
 0x37b   : > { %16121 = vst [vmem:[#allocation106_spill] sm:$0xff] %v9705_v10  ;;  %16123 = vst [vmem:[#allocation107_spill] sm:$0xff] %v9711_v7  ;;  %v9719_v23 = vsel %vm445_vm2, %v16125_v22, %v16124_v27  ;;  %v9731_v5 = vsel %vm458_vm3, %v6315_v53, %v16129_v47  ;;  %v6319_v22 = vunpack.i.l.bf16 %v6318_v56  ;;  %v9743_v17 = vsel %vm458_vm3, %v6455_v25, %v6390_v41 }
 0x37c   : > { %16126 = vst [vmem:[#allocation108_spill] sm:$0xff] %v9719_v23  ;;  %16128 = vst [vmem:[#allocation109_spill] sm:$0xff] %v9725_v62  ;;  %v6460_v27 = vunpack.i.h.bf16 %v6458_v15  ;;  %v6459_v53 = vunpack.i.l.bf16 %v6458_v15  ;;  %v16134_v47 = vunpack.i.h.bf16 %v9257_v50  ;;  %v16136_v44 = vunpack.i.l.bf16 %v9259_v40  ;;  %6522 = vrot.lane.b32.xlu0 %v9690_v21, %s8306_s22 }
 0x37d   : > { %16130 = vst [vmem:[#allocation110_spill] sm:$0xff] %v9731_v5  ;;  %16131 = vst [vmem:[#allocation111_spill] sm:$0xff] %v9739_v20  ;;  %6767 = vrot.lane.b32.xlu1 %v9595_v46, %s8306_s22  ;;  %v16138_v25 = vunpack.i.h.bf16 %v9259_v40  ;;  %v16140_v13 = vunpack.i.l.bf16 %v9265_v39  ;;  %v9783_v40 = vpack.i.bf16 %v9731_v5, %v9725_v62  ;;  %v9803_v21 = vpack.i.bf16 %v9743_v17, %v9739_v20  ;;  %v16214_v5 = vld [vmem:[#allocation89_spill] sm:$0xff] }
 0x37e   : > { %16132 = vst [vmem:[#allocation112_spill] sm:$0xff] %v9743_v17  ;;  %v9753_v56 = vsel %vm432_vm0, %v16134_v47, %v16133_v34  ;;  %v9759_v29 = vsel %vm445_vm2, %v16136_v44, %v6309_v49  ;;  %v16142_v34 = vunpack.i.h.bf16 %v9265_v39  ;;  %v16145_v44 = vunpack.i.l.bf16 %v9267_v24  ;;  %v10077_v62 = vpop.permute.xlu1 %6462 }
 0x37f   : > { %16135 = vst [vmem:[#allocation113_spill] sm:$0xff] %v9753_v56  ;;  %16137 = vst [vmem:[#allocation114_spill] sm:$0xff] %v9759_v29  ;;  %v9765_v15 = vsel %vm445_vm2, %v16138_v25, %v6310_v0  ;;  %v9771_v50 = vsel %vm445_vm2, %v16140_v13, %v6449_v61  ;;  %v16147_v13 = vunpack.i.h.bf16 %v9267_v24  ;;  %v16151_v46 = vunpack.i.l.bf16 %v9255_v43 }
 0x380   : > { %16139 = vst [vmem:[#allocation115_spill] sm:$0xff] %v9765_v15  ;;  %16141 = vst [vmem:[#allocation116_spill] sm:$0xff] %v9771_v50  ;;  %v9777_v47 = vsel %vm445_vm2, %v16142_v34, %v6450_v52  ;;  %v9789_v25 = vsel %vm458_vm3, %v16145_v44, %v6319_v22  ;;  %v9799_v34 = vpack.i.bf16 %v9719_v23, %v9711_v7  ;;  %v16155_v17 = vunpack.i.h.bf16 %v9255_v43 }
 0x381   : > { %16143 = vst [vmem:[#allocation117_spill] sm:$0xff] %v9777_v47  ;;  %16144 = vst [vmem:[#allocation118_spill] sm:$0xff] %v9783_v40  ;;  %v9795_v39 = vsel %vm458_vm3, %v16147_v13, %v6320_v19  ;;  %v9809_v44 = vsel %vm445_vm2, %v6309_v49, %v16151_v46  ;;  %v9813_v24 = vsel %vm458_vm3, %v6389_v63, %v6459_v53  ;;  %6772 = vrot.lane.b32.xlu1 %v9697_v32, %s8306_s22 }
 0x382   : > { %16146 = vst [vmem:[#allocation119_spill] sm:$0xff] %v9789_v25  ;;  %16148 = vst [vmem:[#allocation120_spill] sm:$0xff] %v9795_v39  ;;  %v9817_v13 = vsel %vm458_vm3, %v6390_v41, %v6460_v27  ;;  %v9825_v20 = vsel %vm445_vm2, %v6310_v0, %v16155_v17  ;;  %v9829_v46 = vpack.i.bf16 %v9765_v15, %v9759_v29  ;;  %v16158_v41 = vunpack.i.l.bf16 %v9263_v38  ;;  %v16207_v29 = vld [vmem:[#allocation65_spill] sm:$0xff]  ;;  %v10087_v15 = vpop.permute.xlu1 %6467 }
 0x383   : > { %16149 = vst [vmem:[#allocation121_spill] sm:$0xff] %v9799_v34  ;;  %16150 = vst [vmem:[#allocation122_spill] sm:$0xff] %v9803_v21  ;;  %v9833_v63 = vpack.i.bf16 %v9685_v18, %v9673_v35  ;;  %v16160_v43 = vunpack.i.h.bf16 %v9263_v38  ;;  %6527 = vrot.lane.b32.xlu0 %v9783_v40, %s8306_s22  ;;  %v9851_v17 = vpack.i.bf16 %v9795_v39, %v9789_v25 }
 0x384   : > { %16152 = vst [vmem:[#allocation123_spill] sm:$0xff] %v9809_v44  ;;  %16153 = vst [vmem:[#allocation124_spill] sm:$0xff] %v9813_v24  ;;  %v9839_v49 = vsel %vm458_vm3, %v6319_v22, %v16158_v41  ;;  %v9855_v32 = vpack.i.bf16 %v9777_v47, %v9771_v50  ;;  %v16164_v22 = vunpack.i.l.bf16 %v9251_v12  ;;  %v16165_v41 = vunpack.i.l.bf16 %v9323_v8  ;;  %v16212_v50 = vld [vmem:[#allocation87_spill] sm:$0xff]  ;;  %v16223_v47 = vld [vmem:[#allocation88_spill] sm:$0xff] }
 0x385   : > { %16154 = vst [vmem:[#allocation125_spill] sm:$0xff] %v9817_v13  ;;  %16156 = vst [vmem:[#allocation126_spill] sm:$0xff] %v9825_v20  ;;  %v9845_v0 = vsel %vm458_vm3, %v6320_v19, %v16160_v43  ;;  %v16167_v19 = vunpack.i.h.bf16 %v9251_v12  ;;  %v16168_v43 = vunpack.i.h.bf16 %v9323_v8  ;;  %v9875_v39 = vpack.i.bf16 %v9817_v13, %v9813_v24  ;;  %6777 = vrot.lane.b32.xlu1 %v9799_v34, %s8306_s22  ;;  %v16213_v24 = vld [vmem:[#allocation102_spill] sm:$0xff] }
 0x386   : > { %16157 = vst [vmem:[#allocation127_spill] sm:$0xff] %v9829_v46  ;;  %16159 = vst [vmem:[#allocation128_spill] sm:$0xff] %v9839_v49  ;;  %v9863_v38 = vsel %vm432_vm0, %v16165_v41, %v16164_v22  ;;  %v9879_v25 = vpack.i.bf16 %v9611_v36, %v9603_v26  ;;  %v9885_v22 = vsel %vm445_vm2, %v6449_v61, %v16172_v54  ;;  %v16174_v8 = vunpack.i.h.bf16 %v9261_v16 }
 0x387   : > { %16161 = vst [vmem:[#allocation129_spill] sm:$0xff] %v9845_v0  ;;  %16162 = vst [vmem:[#allocation130_spill] sm:$0xff] %v9851_v17  ;;  %v9871_v40 = vsel %vm432_vm0, %v16168_v43, %v16167_v19  ;;  %v9897_v41 = vpack.i.bf16 %v9667_v28, %v9659_v33  ;;  %v9901_v19 = vpack.i.bf16 %v9825_v20, %v9809_v44  ;;  %v16177_v54 = vunpack.i.l.bf16 %v9269_v2 }
 0x388   : > { %16163 = vst [vmem:[#allocation131_spill] sm:$0xff] %v9855_v32  ;;  %16166 = vst [vmem:[#allocation132_spill] sm:$0xff] %v9863_v38  ;;  %v9891_v12 = vsel %vm445_vm2, %v6450_v52, %v16174_v8  ;;  %v16179_v52 = vunpack.i.h.bf16 %v9269_v2  ;;  %v9917_v43 = vpack.i.bf16 %v9753_v56, %v9705_v10  ;;  %v9921_v8 = vpack.i.bf16 %v9845_v0, %v9839_v49  ;;  %v10097_v0 = vpop.permute.xlu1 %6472 }
 0x389   : > { %16169 = vst [vmem:[#allocation133_spill] sm:$0xff] %v9871_v40  ;;  %16170 = vst [vmem:[#allocation134_spill] sm:$0xff] %v9875_v39  ;;  %v9907_v16 = vsel %vm458_vm3, %v6459_v53, %v16177_v54  ;;  %6532 = vrot.lane.b32.xlu0 %v9587_v51, %s8306_s22  ;;  %v16183_v53 = vunpack.i.l.bf16 %v9249_v11  ;;  %v16184_v54 = vunpack.i.l.bf16 %v9321_v42  ;;  %v9943_v13 = vpack.i.bf16 %v9891_v12, %v9885_v22 }
 0x38a   : > { %16171 = vst [vmem:[#allocation135_spill] sm:$0xff] %v9879_v25  ;;  %16173 = vst [vmem:[#allocation136_spill] sm:$0xff] %v9885_v22  ;;  %v9913_v61 = vsel %vm458_vm3, %v6460_v27, %v16179_v52  ;;  %v16186_v27 = vunpack.i.h.bf16 %v9249_v11  ;;  %v16187_v52 = vunpack.i.h.bf16 %v9321_v42  ;;  %6782 = vrot.lane.b32.xlu1 %v9803_v21, %s8306_s22  ;;  %v9949_v51 = vpack.i.bf16 %v9871_v40, %v9863_v38  ;;  %v16208_v22 = vld [vmem:[#allocation69_spill] sm:$0xff] }
 0x38b   : > { %16175 = vst [vmem:[#allocation137_spill] sm:$0xff] %v9891_v12  ;;  %16176 = vst [vmem:[#allocation138_spill] sm:$0xff] %v9901_v19  ;;  %v9931_v2 = vsel %vm419_vm1, %v16184_v54, %v16183_v53  ;;  %v9953_v11 = vpack.i.bf16 %v9913_v61, %v9907_v16  ;;  %v16191_v53 = vunpack.i.l.bf16 %v9299_v31  ;;  %v16192_v54 = vunpack.i.l.bf16 %v9243_v14  ;;  %v16216_v12 = vld [vmem:[#allocation104_spill] sm:$0xff] }
 0x38c   : > { %16178 = vst [vmem:[#allocation139_spill] sm:$0xff] %v9907_v16  ;;  %16180 = vst [vmem:[#allocation140_spill] sm:$0xff] %v9913_v61  ;;  %v9939_v34 = vsel %vm419_vm1, %v16187_v52, %v16186_v27  ;;  %v16194_v52 = vunpack.i.h.bf16 %v9299_v31  ;;  %v16195_v40 = vunpack.i.h.bf16 %v9243_v14  ;;  %v16210_v14 = vld [vmem:[#allocation82_spill] sm:$0xff]  ;;  %v10067_v16 = vpop.permute.xlu0 %6322  ;;  %v16218_v31 = vld [vmem:[#allocation105_spill] sm:$0xff]  ;;  %v10107_v23 = vpop.permute.xlu1 %6477 }
 0x38d   : > { %16181 = vst [vmem:[#allocation141_spill] sm:$0xff] %v9917_v43  ;;  %16182 = vst [vmem:[#allocation142_spill] sm:$0xff] %v9921_v8  ;;  %6537 = vrot.lane.b32.xlu0 %v9949_v51, %s8306_s22  ;;  %v9959_v42 = vpack.i.bf16 %v9939_v34, %v9931_v2  ;;  %v9973_v27 = vsel %vm419_vm1, %v16192_v54, %v16191_v53  ;;  %v16206_v54 = vld [vmem:[#allocation66_spill] sm:$0xff]  ;;  %v6325_v36 = vunpack.i.h.bf16 %v10067_v16 }
 0x38e   : > { %16185 = vst [vmem:[#allocation143_spill] sm:$0xff] %v9931_v2  ;;  %16188 = vst [vmem:[#allocation144_spill] sm:$0xff] %v9939_v34  ;;  %v9981_v38 = vsel %vm419_vm1, %v16195_v40, %v16194_v52  ;;  %v16215_v61 = vld [vmem:[#allocation90_spill] sm:$0xff]  ;;  %v16220_v52 = vld [vmem:[#allocation121_spill] sm:$0xff] }
 0x38f   : > { %16189 = vst [vmem:[#allocation145_spill] sm:$0xff] %v9943_v13  ;;  %16190 = vst [vmem:[#allocation146_spill] sm:$0xff] %v9953_v11  ;;  %6787 = vrot.lane.b32.xlu1 %v9959_v42, %s8306_s22  ;;  %v9989_v34 = vpack.i.bf16 %v9981_v38, %v9973_v27  ;;  %v16219_v40 = vld [vmem:[#allocation118_spill] sm:$0xff] }
 0x390   : > { %16193 = vst [vmem:[#allocation147_spill] sm:$0xff] %v9973_v27  ;;  %16196 = vst [vmem:[#allocation148_spill] sm:$0xff] %v9981_v38  ;;  %v10075_v53 = vpop.permute.xlu0 %6327  ;;  %v10117_v37 = vpop.permute.xlu1 %6482  ;;  %v6324_v38 = vunpack.i.l.bf16 %v10067_v16 }
 0x391   : > { %6542 = vrot.lane.b32.xlu0 %v9829_v46, %s8306_s22  ;;  %16222 = vst [vmem:[#allocation150_spill] sm:$0xff] %v10097_v0  ;;  %16225 = vst [vmem:[#allocation151_spill] sm:$0xff] %v10107_v23  ;;  %v6329_v27 = vunpack.i.l.bf16 %v10075_v53 }
 0x392   : > { %16227 = vst [vmem:[#allocation153_spill] sm:$0xff] %v10117_v37 }
 0x393   : > { %6792 = vrot.lane.b32.xlu1 %v9833_v63, %s8306_s22 }
 0x394   : > { %v10085_v35 = vpop.permute.xlu0 %6332  ;;  %v10127_v20 = vpop.permute.xlu1 %6487 }
 0x395   : > { %6547 = vrot.lane.b32.xlu0 %v9851_v17, %s8306_s22  ;;  %16217 = vst [vmem:[#allocation149_spill] sm:$0xff] %v10085_v35  ;;  %16228 = vst [vmem:[#allocation154_spill] sm:$0xff] %v10127_v20  ;;  %v16230_v20 = vld [vmem:[#allocation35_spill] sm:$0xff] }
 0x397   : > { %6797 = vrot.lane.b32.xlu1 %v9855_v32, %s8306_s22 }
 0x398   : > { %v10095_v49 = vpop.permute.xlu0 %6337 }
 0x399   : > { %6552 = vrot.lane.b32.xlu0 %v9989_v34, %s8306_s22  ;;  %16221 = vst [vmem:[#allocation121_spill] sm:$0xff] %v10095_v49  ;;  %v16235_v49 = vld [vmem:[#allocation47_spill] sm:$0xff] }
 0x39a   : > { %v6260_v35 = vunpack.i.h.bf16 %v16235_v49 }
 0x39b   : > { %6802 = vrot.lane.b32.xlu1 %v9875_v39, %s8306_s22 }
 0x39c   : > { %v10105_v7 = vpop.permute.xlu0 %6342 }
 0x39d   : > { %6557 = vrot.lane.b32.xlu0 %v9897_v41, %s8306_s22  ;;  %16224 = vst [vmem:[#allocation88_spill] sm:$0xff] %v10105_v7 }
 0x39f   : > { %6807 = vrot.lane.b32.xlu1 %v9879_v25, %s8306_s22 }
 0x3a0   : > { %v10115_v45 = vpop.permute.xlu0 %6347 }
 0x3a1   : > { %6562 = vrot.lane.b32.xlu0 %v9901_v19, %s8306_s22  ;;  %16226 = vst [vmem:[#allocation152_spill] sm:$0xff] %v10115_v45 }
 0x3a3   : > { %6812 = vrot.lane.b32.xlu1 %v9917_v43, %s8306_s22 }
 0x3a5   : > { %6567 = vrot.lane.b32.xlu0 %v9921_v8, %s8306_s22 }
 0x3a7   : > { %6817 = vrot.lane.b32.xlu1 %v9943_v13, %s8306_s22 }
 0x3a9   : > { %6572 = vrot.lane.b32.xlu0 %v9327_v6, %s8307_s23 }
 0x3ab   : > { %6822 = vrot.lane.b32.xlu1 %v9953_v11, %s8306_s22 }
 0x3ad   : > { %6577 = vrot.lane.b32.xlu0 %v16206_v54, %s8307_s23 }
 0x3af   : > { %6827 = vrot.lane.b32.xlu1 %v16207_v29, %s8307_s23 }
 0x3b1   : > { %6582 = vrot.lane.b32.xlu0 %v16208_v22, %s8307_s23 }
 0x3b3   : > { %6832 = vrot.lane.b32.xlu1 %v16209_v55, %s8307_s23 }
 0x3b5   : > { %6587 = vrot.lane.b32.xlu0 %v16210_v14, %s8307_s23 }
 0x3b7   : > { %6837 = vrot.lane.b32.xlu1 %v16211_v58, %s8307_s23 }
 0x3b9   : > { %6592 = vrot.lane.b32.xlu0 %v16212_v50, %s8307_s23 }
 0x3bb   : > { %6842 = vrot.lane.b32.xlu1 %v16213_v24, %s8307_s23 }
 0x3bd   : > { %6597 = vrot.lane.b32.xlu0 %v16214_v5, %s8307_s23 }
 0x3bf   : > { %6847 = vrot.lane.b32.xlu1 %v16215_v61, %s8307_s23 }
 0x3c1   : > { %6602 = vrot.lane.b32.xlu0 %v16216_v12, %s8307_s23 }
 0x3c3   : > { %6852 = vrot.lane.b32.xlu1 %v16218_v31, %s8307_s23 }
 0x3c5   : > { %6607 = vrot.lane.b32.xlu0 %v16219_v40, %s8307_s23 }
 0x3c7   : > { %6857 = vrot.lane.b32.xlu1 %v16220_v52, %s8307_s23 }
 0x3c9   : > { %6612 = vrot.lane.b32.xlu0 %v16223_v47, %s8307_s23 }
 0x3ca   : > { %v10123_v44 = vpop.permute.xlu0 %6492 }
 0x3cb   : > { %6862 = vrot.lane.b32.xlu1 %v9803_v21, %s8307_s23  ;;  %v15590_v10 = vunpack.i.l.bf16 %v10123_v44 }
 0x3cd   : > { %6617 = vrot.lane.b32.xlu0 %v9949_v51, %s8307_s23 }
 0x3cf   : > { %6867 = vrot.lane.b32.xlu1 %v9959_v42, %s8307_s23 }
 0x3d1   : > { %6622 = vrot.lane.b32.xlu0 %v9829_v46, %s8307_s23  ;;  %v10135_v37 = vpop.permute.xlu1 %6747 }
 0x3d3   : > { %6872 = vrot.lane.b32.xlu1 %v9833_v63, %s8307_s23  ;;  %v10131_v4 = vpop.permute.xlu0 %6497 }
 0x3d5   : > { %6627 = vrot.lane.b32.xlu0 %v9851_v17, %s8307_s23 }
 0x3d7   : > { %6877 = vrot.lane.b32.xlu1 %v9855_v32, %s8307_s23  ;;  %v10141_v18 = vpop.permute.xlu0 %6502  ;;  %v16257_v32 = vunpack.i.h.bf16 %v10131_v4 }
 0x3d9   : > { %6632 = vrot.lane.b32.xlu0 %v9989_v34, %s8307_s23  ;;  %v10143_v45 = vpop.permute.xlu1 %6752 }
 0x3db   : > { %6882 = vrot.lane.b32.xlu1 %v9875_v39, %s8307_s23  ;;  %v16243_v39 = vunpack.i.l.bf16 %v10087_v15 }
 0x3dd   : > { %6637 = vrot.lane.b32.xlu0 %v16229_v60, %s8309_s13  ;;  %v10153_v60 = vpop.permute.xlu1 %6757 }
 0x3df   : > { %6887 = vrot.lane.b32.xlu1 %v9879_v25, %s8307_s23  ;;  %v10149_v7 = vpop.permute.xlu0 %6507  ;;  %v16242_v25 = vunpack.i.h.bf16 %v10077_v62 }
 0x3e1   : > { %6642 = vrot.lane.b32.xlu0 %v9897_v41, %s8307_s23 }
 0x3e3   : > { %6892 = vrot.lane.b32.xlu1 %v16230_v20, %s8309_s13  ;;  %v10157_v57 = vpop.permute.xlu0 %6512  ;;  %v15591_v20 = vunpack.i.h.bf16 %v10123_v44 }
 0x3e4   : > { %v15592_v56 = vunpack.i.h.bf16 %v10157_v57  ;;  %v15593_v30 = vunpack.i.l.bf16 %v10157_v57 }
 0x3e5   : > { %6647 = vrot.lane.b32.xlu0 %v9901_v19, %s8307_s23  ;;  %v6499_v19 = vunpack.i.l.bf16 %v10131_v4 }
 0x3e6   : > { %v1418_v28 = vsel %vm503_vm5, %v15591_v20, %v15592_v56 }
 0x3e7   : > { %6922 = vrot.lane.b32.xlu1 %v9917_v43, %s8307_s23  ;;  %v10181_v2 = vpop.permute.xlu0 %6517 }
 0x3e9   : > { %6652 = vrot.lane.b32.xlu0 %v9921_v8, %s8307_s23 }
 0x3eb   : > { %6927 = vrot.lane.b32.xlu1 %v16231_v3, %s8309_s13  ;;  %v10167_v33 = vpop.permute.xlu1 %6762  ;;  %v1417_v3 = vsel %vm503_vm5, %v15590_v10, %v15593_v30  ;;  %v16234_v30 = vld [vmem:[#allocation46_spill] sm:$0xff] }
 0x3ec   : > { %16232 = vst [vmem:[#allocation30_spill] sm:$0xff] %v10167_v33  ;;  %v5025_v1 = vpack.c.bf16 %v1418_v28, %v1417_v3  ;;  %v6255_v26 = vunpack.i.h.bf16 %v16234_v30  ;;  %v6254_v0 = vunpack.i.l.bf16 %v16234_v30  ;;  %v16254_v33 = vunpack.i.l.bf16 %v10123_v44 }
 0x3ed   : > { %6657 = vrot.lane.b32.xlu0 %v9327_v6, %s8308_s11 }
 0x3ee   : > { %5026 = vmatprep.subr.bf16.mxu0 %v5025_v1  ;;  %v10189_v10 = vpop.permute.xlu0 %6522  ;;  %v10273_v6 = vsel %vm503_vm5, %v6255_v26, %v6325_v36 }
 0x3ef   : > { %6942 = vrot.lane.b32.xlu1 %v16223_v47, %s8309_s13  ;;  %v10187_v59 = vpop.permute.xlu1 %6767 }
 0x3f1   : > { %6662 = vrot.lane.b32.xlu0 %v16206_v54, %s8308_s11 }
 0x3f3   : > { %6952 = vrot.lane.b32.xlu1 %v9943_v13, %s8307_s23  ;;  %v10195_v48 = vpop.permute.xlu1 %6772 }
 0x3f5   : > { %6667 = vrot.lane.b32.xlu0 %v16208_v22, %s8308_s11  ;;  %v10197_v20 = vpop.permute.xlu0 %6527  ;;  %v10251_v22 = vsel %vm503_vm5, %v6329_v27, %v6254_v0 }
 0x3f6   : > { %16239 = vst [vmem:[#allocation46_spill] sm:$0xff] %v10251_v22  ;;  %v16256_v22 = vunpack.i.h.bf16 %v10181_v2 }
 0x3f7   : > { %6957 = vrot.lane.b32.xlu1 %v9953_v11, %s8307_s23  ;;  %v10203_v1 = vpop.permute.xlu1 %6777  ;;  %v10247_v11 = vsel %vm503_vm5, %v6325_v36, %v6260_v35 }
 0x3f9   : > { %6672 = vrot.lane.b32.xlu0 %v16210_v14, %s8308_s11  ;;  %v16236_v14 = vld [vmem:[#allocation48_spill] sm:$0xff] }
 0x3fa   : > { %v6394_v30 = vunpack.i.l.bf16 %v16236_v14 }
 0x3fb   : > { %v10205_v28 = vpop.permute.xlu0 %6532  ;;  %6962 = vrot.lane.b32.xlu1 %v16207_v29, %s8308_s11  ;;  %v6259_v29 = vunpack.i.l.bf16 %v16235_v49 }
 0x3fc   : > { %v10211_v3 = vpop.permute.xlu1 %6782 }
 0x3fd   : > { %6677 = vrot.lane.b32.xlu0 %v16212_v50, %s8308_s11  ;;  %16233 = vst [vmem:[#allocation35_spill] sm:$0xff] %v10211_v3  ;;  %v6330_v50 = vunpack.i.h.bf16 %v10075_v53  ;;  %v10243_v49 = vsel %vm503_vm5, %v6324_v38, %v6259_v29 }
 0x3ff   : > { %v10213_v56 = vpop.permute.xlu0 %6537  ;;  %6967 = vrot.lane.b32.xlu1 %v16209_v55, %s8308_s11  ;;  %v6464_v55 = vunpack.i.l.bf16 %v10077_v62  ;;  %v10259_v43 = vsel %vm503_vm5, %v6330_v50, %v6255_v26  ;;  %v10295_v26 = vsel %vm503_vm5, %v6259_v29, %v6329_v27  ;;  %v10299_v36 = vsel %vm503_vm5, %v6260_v35, %v6330_v50 }
 0x400   : > { %16240 = vst [vmem:[#allocation47_spill] sm:$0xff] %v10259_v43  ;;  %v6535_v50 = vunpack.i.h.bf16 %v10205_v28  ;;  %v6534_v27 = vunpack.i.l.bf16 %v10205_v28  ;;  %v16251_v28 = vunpack.i.l.bf16 %v10157_v57 }
 0x401   : > { %6682 = vrot.lane.b32.xlu0 %v16214_v5, %s8308_s11  ;;  %v10223_v23 = vpop.permute.xlu1 %6787  ;;  %v16238_v5 = vld [vmem:[#allocation50_spill] sm:$0xff]  ;;  %v10330_v35 = vsel %vm503_vm5, %v6394_v30, %v6464_v55 }
 0x402   : > { %v15624_v53 = vunpack.i.l.bf16 %v16238_v5  ;;  %16245 = vst [vmem:[#allocation50_spill] sm:$0xff] %v10295_v26  ;;  %v6775_v26 = vunpack.i.h.bf16 %v10195_v48 }
 0x403   : > { %v10233_v13 = vpop.permute.xlu0 %6542  ;;  %6972 = vrot.lane.b32.xlu1 %v16211_v58, %s8308_s11  ;;  %v10269_v58 = vsel %vm503_vm5, %v6254_v0, %v6324_v38  ;;  %v16247_v38 = vunpack.i.h.bf16 %v10087_v15 }
 0x404   : > { %16237 = vst [vmem:[#allocation44_spill] sm:$0xff] %v10233_v13  ;;  %v10265_v54 = vsel %vm503_vm5, %v6464_v55, %v15624_v53  ;;  %v10287_v53 = vsel %vm503_vm5, %v16243_v39, %v6394_v30  ;;  %v16250_v55 = vunpack.i.h.bf16 %v10187_v59 }
 0x405   : > { %6687 = vrot.lane.b32.xlu0 %v16216_v12, %s8308_s11  ;;  %v10255_v16 = vpop.permute.xlu1 %6792  ;;  %v16241_v12 = vunpack.i.h.bf16 %v16238_v5 }
 0x407   : > { %v10281_v8 = vsel %vm503_vm5, %v16242_v25, %v16241_v12  ;;  %v10289_v0 = vpop.permute.xlu0 %6547  ;;  %6977 = vrot.lane.b32.xlu1 %v16213_v24, %s8308_s11  ;;  %v16246_v25 = vunpack.i.h.bf16 %v16236_v14  ;;  %v6769_v24 = vunpack.i.l.bf16 %v10187_v59  ;;  %v6750_v12 = vunpack.i.h.bf16 %v10135_v37 }
 0x408   : > { %16244 = vst [vmem:[#allocation48_spill] sm:$0xff] %v10289_v0  ;;  %v6749_v0 = vunpack.i.l.bf16 %v10135_v37  ;;  %v16252_v37 = vunpack.i.h.bf16 %v10157_v57 }
 0x409   : > { %v10307_v39 = vsel %vm503_vm5, %v16247_v38, %v16246_v25  ;;  %6692 = vrot.lane.b32.xlu0 %v16219_v40, %s8308_s11  ;;  %v10313_v29 = vpop.permute.xlu1 %6797  ;;  %v1420_v30 = vsel %vm503_vm5, %v6750_v12, %v16250_v55  ;;  %v16253_v25 = vunpack.i.h.bf16 %v10123_v44  ;;  %v16255_v44 = vunpack.i.l.bf16 %v10181_v2 }
 0x40a   : > { %16248 = vst [vmem:[#allocation155_spill] sm:$0xff] %v10313_v29 }
 0x40b   : > { %v6553_v29 = vpop.permute.xlu0 %6552  ;;  %6982 = vrot.lane.b32.xlu1 %v16215_v61, %s8308_s11  ;;  %v1419_v61 = vsel %vm503_vm5, %v6749_v0, %v6769_v24 }
 0x40c   : > { %v6555_v3 = vunpack.i.h.bf16 %v6553_v29  ;;  %v6554_v38 = vunpack.i.l.bf16 %v6553_v29  ;;  %v1397_v29 = vsel %vm503_vm5, %v16251_v28, %v6534_v27  ;;  %v5029_v13 = vpack.c.bf16 %v1420_v30, %v1419_v61 }
 0x40d   : > { %6697 = vrot.lane.b32.xlu0 %v16223_v47, %s8308_s11  ;;  %v10338_v40 = vpop.permute.xlu1 %6802  ;;  %v1398_v47 = vsel %vm503_vm5, %v16252_v37, %v6535_v50 }
 0x40e   : > { %16249 = vst [vmem:[#allocation156_spill] sm:$0xff] %v10338_v40  ;;  %v1438_v40 = vsel %vm503_vm5, %v6555_v3, %v16253_v25  ;;  %v1437_v55 = vsel %vm503_vm5, %v6554_v38, %v16254_v33  ;;  %v1377_v28 = vsel %vm503_vm5, %v6534_v27, %v6554_v38  ;;  %v1378_v37 = vsel %vm503_vm5, %v6535_v50, %v6555_v3 }
 0x40f   : > { %v6558_v43 = vpop.permute.xlu0 %6557  ;;  %6987 = vrot.lane.b32.xlu1 %v16218_v31, %s8308_s11  ;;  %v5027_v57 = vpack.c.bf16 %v1438_v40, %v1437_v55  ;;  %v6789_v25 = vunpack.i.l.bf16 %v10223_v23  ;;  %v1421_v33 = vsel %vm503_vm5, %v6499_v19, %v16255_v44  ;;  %v1422_v40 = vsel %vm503_vm5, %v16257_v32, %v16256_v22 }
 0x410   : > { %v6754_v27 = vunpack.i.l.bf16 %v10143_v45  ;;  %v6790_v38 = vunpack.i.h.bf16 %v10223_v23  ;;  %v5225_v61 = vpack.c.bf16 %v1378_v37, %v1377_v28  ;;  %v5227_v3 = vpack.c.bf16 %v1398_v47, %v1397_v29 }
 0x411   : > { %6702 = vrot.lane.b32.xlu0 %v9949_v51, %s8308_s11  ;;  %5028 = vmatpush1.bf16.msra.mxu0 %v5027_v57  ;;  %v6808_v50 = vpop.permute.xlu1 %6807  ;;  %v6560_v30 = vunpack.i.h.bf16 %v6558_v43  ;;  %v6559_v55 = vunpack.i.l.bf16 %v6558_v43  ;;  %v6540_v32 = vunpack.i.h.bf16 %v10213_v56  ;;  %v5033_v23 = vpack.c.bf16 %v1422_v40, %v1421_v33 }
 0x412   : > { %5030 = vmatprep.subr.bf16.mxu0 %v5029_v13  ;;  %v6810_v44 = vunpack.i.h.bf16 %v6808_v50  ;;  %v6809_v31 = vunpack.i.l.bf16 %v6808_v50  ;;  %5226 = vmatprep.subr.bf16.mxu1 %v5225_v61  ;;  %v16258_v57 = vunpack.i.l.bf16 %v10195_v48  ;;  %v6539_v13 = vunpack.i.l.bf16 %v10213_v56 }
 0x413   : > { %v10386_v22 = vpop.permute.xlu0 %6562  ;;  %6992 = vrot.lane.b32.xlu1 %v16220_v52, %s8308_s11  ;;  %v1399_v43 = vsel %vm503_vm5, %v6769_v24, %v6789_v25  ;;  %5228 = vmatpush1.bf16.msra.mxu1 %v5227_v3  ;;  %v16259_v37 = vunpack.i.h.bf16 %v10187_v59  ;;  %v1382_v59 = vsel %vm503_vm5, %v6540_v32, %v6560_v30  ;;  %v16260_v50 = vunpack.i.h.bf16 %v10131_v4 }
 0x414   : > { %v1423_v29 = vsel %vm503_vm5, %v6754_v27, %v16258_v57  ;;  %v1440_v47 = vsel %vm503_vm5, %v6810_v44, %v6750_v12  ;;  %v1439_v28 = vsel %vm503_vm5, %v6809_v31, %v6749_v0  ;;  %v1379_v24 = vsel %vm503_vm5, %v6789_v25, %v6809_v31 }
 0x415   : > { %v1400_v33 = vsel %vm503_vm5, %v16259_v37, %v6790_v38  ;;  %6707 = vrot.lane.b32.xlu0 %v9829_v46, %s8308_s11  ;;  %v6813_v40 = vpop.permute.xlu1 %6812  ;;  %v5031_v56 = vpack.c.bf16 %v1440_v47, %v1439_v28  ;;  %v1380_v61 = vsel %vm503_vm5, %v6790_v38, %v6810_v44  ;;  %v1381_v0 = vsel %vm503_vm5, %v6539_v13, %v6559_v55 }
 0x416   : > { %v6815_v12 = vunpack.i.h.bf16 %v6813_v40  ;;  %v6814_v3 = vunpack.i.l.bf16 %v6813_v40  ;;  %v1442_v57 = vsel %vm503_vm5, %v6560_v30, %v16260_v50  ;;  %v1441_v47 = vsel %vm503_vm5, %v6559_v55, %v6499_v19 }
 0x417   : > { %v10421_v31 = vpop.permute.xlu0 %6567  ;;  %6997 = vrot.lane.b32.xlu1 %v9803_v21, %s8308_s11  ;;  %5032 = vmatpush1.bf16.msra.mxu0 %v5031_v56  ;;  %v5229_v25 = vpack.c.bf16 %v1380_v61, %v1379_v24  ;;  %v6795_v38 = vunpack.i.h.bf16 %v10255_v16  ;;  %v6794_v44 = vunpack.i.l.bf16 %v10255_v16  ;;  %v5231_v28 = vpack.c.bf16 %v1400_v33, %v1399_v43  ;;  %v16317_v21 = vld [vmem:[#allocation90_spill] sm:$0xff] }
 0x418   : > { %5034 = vmatprep.subr.bf16.mxu0 %v5033_v23  ;;  %v16261_v4 = vunpack.i.h.bf16 %v10143_v45  ;;  %v16262_v19 = vunpack.i.l.bf16 %v10181_v2  ;;  %v16263_v37 = vunpack.i.h.bf16 %v10181_v2  ;;  %v5233_v23 = vpack.c.bf16 %v1382_v59, %v1381_v0 }
 0x419   : > { %6712 = vrot.lane.b32.xlu0 %v9851_v17, %s8308_s11  ;;  %5230 = vmatprep.subr.bf16.mxu1 %v5229_v25  ;;  %v10441_v16 = vpop.permute.xlu1 %6817  ;;  %v5035_v43 = vpack.c.bf16 %v1442_v57, %v1441_v47  ;;  %v1383_v33 = vsel %vm503_vm5, %v6794_v44, %v6814_v3  ;;  %v16264_v2 = vunpack.i.h.bf16 %v10077_v62  ;;  %v16265_v56 = vunpack.i.h.bf16 %v16236_v14 }
 0x41a   : > { %v1424_v30 = vsel %vm503_vm5, %v16261_v4, %v6775_v26  ;;  %v1401_v55 = vsel %vm503_vm5, %v16262_v19, %v6539_v13  ;;  %v1402_v40 = vsel %vm503_vm5, %v16263_v37, %v6540_v32  ;;  %5232 = vmatpush1.bf16.msra.mxu1 %v5231_v28  ;;  %v1384_v13 = vsel %vm503_vm5, %v6795_v38, %v6815_v12 }
 0x41b   : > { %v1428_v32 = vsel %vm503_vm5, %v16265_v56, %v16264_v2  ;;  %v16266_v24 = vmov %v16261_v4  ;;  %v1443_v0 = vsel %vm503_vm5, %v6814_v3, %v6754_v27  ;;  %v10459_v59 = vpop.permute.xlu0 %6572  ;;  %5234 = vmatprep.subr.bf16.mxu1 %v5233_v23  ;;  %7002 = vrot.lane.b32.xlu1 %v9959_v42, %s8308_s11  ;;  %v5037_v62 = vpack.c.bf16 %v1424_v30, %v1423_v29 }
 0x41c   : > { %v1444_v61 = vsel %vm503_vm5, %v6815_v12, %v16266_v24  ;;  %v6525_v14 = vunpack.i.h.bf16 %v10189_v10  ;;  %5036 = vmatpush1.bf16.msra.mxu0 %v5035_v43  ;;  %v5235_v50 = vpack.c.bf16 %v1402_v40, %v1401_v55  ;;  %v16267_v57 = vunpack.i.l.bf16 %v10087_v15 }
 0x41d   : > { %v16268_v45 = vunpack.i.l.bf16 %v16238_v5  ;;  %v16269_v27 = vunpack.i.h.bf16 %v10087_v15  ;;  %v16270_v3 = vunpack.i.h.bf16 %v16238_v5  ;;  %v6524_v29 = vunpack.i.l.bf16 %v10189_v10  ;;  %6717 = vrot.lane.b32.xlu0 %v9989_v34, %s8308_s11  ;;  %5038 = vmatprep.subr.bf16.mxu0 %v5037_v62  ;;  %v10487_v15 = vpop.permute.xlu1 %6822  ;;  %v16276_v62 = vld [vmem:[#allocation44_spill] sm:$0xff] }
 0x41e   : > { %v16271_v25 = vunpack.i.l.bf16 %v10195_v48  ;;  %v1404_v4 = vsel %vm503_vm5, %v6775_v26, %v6795_v38  ;;  %v5237_v5 = vpack.c.bf16 %v1384_v13, %v1383_v33  ;;  %v6530_v30 = vunpack.i.h.bf16 %v10197_v20  ;;  %5236 = vmatpush1.bf16.msra.mxu1 %v5235_v50 }
 0x41f   : > { %v10470_v12 = vsel %vm503_vm5, %v16268_v45, %v16267_v57  ;;  %v1388_v47 = vsel %vm503_vm5, %v16270_v3, %v16269_v27  ;;  %v6529_v19 = vunpack.i.l.bf16 %v10197_v20  ;;  %v5039_v55 = vpack.c.bf16 %v1444_v61, %v1443_v0  ;;  %v10495_v38 = vpop.permute.xlu0 %6577  ;;  %7007 = vrot.lane.b32.xlu1 %v9833_v63, %s8308_s11  ;;  %v16275_v61 = vld [vmem:[#allocation131_spill] sm:$0xff]  ;;  %v16280_v3 = vld [vmem:[#allocation30_spill] sm:$0xff] }
 0x420   : > { %v1403_v28 = vsel %vm503_vm5, %v16271_v25, %v6794_v44  ;;  %v5243_v48 = vpack.c.bf16 %v10247_v11, %v10243_v49  ;;  %v6505_v44 = vunpack.i.h.bf16 %v10141_v18  ;;  %v6504_v26 = vunpack.i.l.bf16 %v10141_v18  ;;  %5238 = vmatprep.subr.bf16.mxu1 %v5237_v5  ;;  %v16277_v45 = vld [vmem:[#allocation47_spill] sm:$0xff] }
 0x421   : > { %v5045_v37 = vpack.c.bf16 %v1428_v32, %v10330_v35  ;;  %v5245_v40 = vpack.c.bf16 %v1388_v47, %v10470_v12  ;;  %v6510_v23 = vunpack.i.h.bf16 %v10149_v7  ;;  %v6509_v43 = vunpack.i.l.bf16 %v10149_v7  ;;  %5040 = vmatpush1.bf16.msra.mxu0 %v5039_v55  ;;  %6722 = vrot.lane.b32.xlu0 %v9897_v41, %s8308_s11  ;;  %v10512_v13 = vpop.permute.xlu1 %6827  ;;  %v16273_v32 = vld [vmem:[#allocation50_spill] sm:$0xff] }
 0x422   : > { %v5239_v11 = vpack.c.bf16 %v1404_v4, %v1403_v28  ;;  %v5047_v49 = vpack.c.bf16 %v10307_v39, %v10287_v53  ;;  %v6565_v18 = vunpack.i.h.bf16 %v10386_v22  ;;  %v6564_v33 = vunpack.i.l.bf16 %v10386_v22  ;;  %v16278_v12 = vld [vmem:[#allocation46_spill] sm:$0xff] }
 0x423   : > { %v16272_v35 = vpack.c.bf16 %v10273_v6, %v10269_v58  ;;  %v1429_v2 = vsel %vm503_vm5, %v6504_v26, %v6524_v29  ;;  %v1430_v53 = vsel %vm503_vm5, %v6505_v44, %v6525_v14  ;;  %v5247_v39 = vpack.c.bf16 %v10281_v8, %v10265_v54  ;;  %v10543_v56 = vpop.permute.xlu0 %6582  ;;  %7012 = vrot.lane.b32.xlu1 %v16275_v61, %s8308_s11  ;;  %v16281_v28 = vld [vmem:[#allocation138_spill] sm:$0xff] }
 0x424   : > { %5240 = vmatpush1.bf16.msra.mxu1 %v5239_v11  ;;  %v10530_v6 = vsel %vm503_vm5, %v6509_v43, %v6529_v19  ;;  %v10538_v58 = vsel %vm503_vm5, %v6510_v23, %v6530_v30  ;;  %v6760_v22 = vunpack.i.h.bf16 %v10153_v60  ;;  %v6780_v8 = vunpack.i.h.bf16 %v10203_v1  ;;  %v16282_v11 = vld [vmem:[#allocation35_spill] sm:$0xff]  ;;  %v16318_v61 = vld [vmem:[#allocation118_spill] sm:$0xff] }
 0x425   : > { %5042 = vmatprep.subr.bf16.mxu0 %v16272_v35  ;;  %v6779_v54 = vunpack.i.l.bf16 %v10203_v1  ;;  %v16274_v24 = vpack.c.bf16 %v10299_v36, %v16273_v32  ;;  %v6759_v0 = vunpack.i.l.bf16 %v10153_v60  ;;  %v6545_v50 = vunpack.i.h.bf16 %v16276_v62  ;;  %6727 = vrot.lane.b32.xlu0 %v16281_v28, %s8308_s11  ;;  %v10563_v60 = vpop.permute.xlu1 %6832 }
 0x426   : > { %v6544_v57 = vunpack.i.l.bf16 %v16276_v62  ;;  %v16279_v27 = vpack.c.bf16 %v16277_v45, %v16278_v12  ;;  %v5049_v1 = vpack.c.bf16 %v1430_v53, %v1429_v2  ;;  %v6764_v47 = vunpack.i.l.bf16 %v16280_v3  ;;  %v16283_v53 = vld [vmem:[#allocation134_spill] sm:$0xff] }
 0x427   : > { %5242 = vmatprep.subr.bf16.mxu1 %v16274_v24  ;;  %v1450_v36 = vsel %vm503_vm5, %v6565_v18, %v6505_v44  ;;  %v1449_v25 = vsel %vm503_vm5, %v6564_v33, %v6504_v26  ;;  %v5057_v4 = vpack.c.bf16 %v10538_v58, %v10530_v6  ;;  %v6820_v5 = vunpack.i.h.bf16 %v10441_v16  ;;  %v10575_v2 = vpop.permute.xlu0 %6587  ;;  %7017 = vrot.lane.b32.xlu1 %v16283_v53, %s8308_s11  ;;  %v16285_v12 = vld [vmem:[#allocation142_spill] sm:$0xff] }
 0x428   : > { %5044 = vmatpush1.bf16.msra.mxu0 %v16279_v27  ;;  %v6819_v55 = vunpack.i.l.bf16 %v10441_v16  ;;  %5244 = vmatpush1.bf16.msra.mxu1 %v5243_v48  ;;  %v1389_v44 = vsel %vm503_vm5, %v6544_v57, %v6564_v33  ;;  %v1390_v26 = vsel %vm503_vm5, %v6545_v50, %v6565_v18  ;;  %v6785_v35 = vunpack.i.h.bf16 %v16282_v11 }
 0x429   : > { %5046 = vmatprep.subr.bf16.mxu0 %v5045_v37  ;;  %v6784_v37 = vunpack.i.l.bf16 %v16282_v11  ;;  %5246 = vmatprep.subr.bf16.mxu1 %v5245_v40  ;;  %v1431_v16 = vsel %vm503_vm5, %v6759_v0, %v6779_v54  ;;  %v1432_v48 = vsel %vm503_vm5, %v6760_v22, %v6780_v8  ;;  %v1409_v18 = vsel %vm503_vm5, %v6524_v29, %v6544_v57  ;;  %v16284_v40 = vld [vmem:[#allocation155_spill] sm:$0xff]  ;;  %v10597_v27 = vpop.permute.xlu1 %6837 }
 0x42a   : > { %v1410_v33 = vsel %vm503_vm5, %v6525_v14, %v6545_v50  ;;  %v6800_v32 = vunpack.i.h.bf16 %v16284_v40  ;;  %v6799_v24 = vunpack.i.l.bf16 %v16284_v40  ;;  %v6570_v62 = vunpack.i.h.bf16 %v10421_v31  ;;  %6732 = vrot.lane.b32.xlu0 %v16285_v12, %s8308_s11 }
 0x42b   : > { %v6569_v45 = vunpack.i.l.bf16 %v10421_v31  ;;  %v5249_v29 = vpack.c.bf16 %v1390_v26, %v1389_v44  ;;  %v5051_v10 = vpack.c.bf16 %v1450_v36, %v1449_v25  ;;  %v1452_v14 = vsel %vm503_vm5, %v6820_v5, %v6760_v22  ;;  %v16286_v36 = vld [vmem:[#allocation135_spill] sm:$0xff] }
 0x42c   : > { %5048 = vmatpush1.bf16.msra.mxu0 %v5047_v49  ;;  %v1451_v50 = vsel %vm503_vm5, %v6819_v55, %v6759_v0  ;;  %5248 = vmatpush1.bf16.msra.mxu1 %v5247_v39  ;;  %v1391_v49 = vsel %vm503_vm5, %v6799_v24, %v6819_v55  ;;  %v1392_v31 = vsel %vm503_vm5, %v6800_v32, %v6820_v5  ;;  %v6765_v57 = vunpack.i.h.bf16 %v16280_v3  ;;  %v16287_v0 = vld [vmem:[#allocation48_spill] sm:$0xff] }
 0x42d   : > { %5050 = vmatprep.subr.bf16.mxu0 %v5049_v1  ;;  %v10608_v1 = vpop.permute.xlu0 %6592  ;;  %5250 = vmatprep.subr.bf16.mxu1 %v5249_v29  ;;  %v5053_v25 = vpack.c.bf16 %v1432_v48, %v1431_v16  ;;  %v5251_v22 = vpack.c.bf16 %v1410_v33, %v1409_v18  ;;  %v1435_v39 = vsel %vm503_vm5, %v6764_v47, %v6784_v37  ;;  %v6550_v55 = vunpack.i.h.bf16 %v16287_v0  ;;  %v16288_v16 = vld [vmem:[#allocation60_spill] sm:$0xff]  ;;  %v10626_v48 = vpop.permute.xlu1 %6842 }
 0x42e   : > { %7022 = vrot.lane.b32.xlu1 %v16286_v36, %s8308_s11  ;;  %v6549_v5 = vunpack.i.l.bf16 %v16287_v0  ;;  %v1411_v44 = vsel %vm503_vm5, %v6779_v54, %v6799_v24  ;;  %v1412_v26 = vsel %vm503_vm5, %v6780_v8, %v6800_v32  ;;  %6737 = vrot.lane.b32.xlu0 %v16288_v16, %s8309_s13  ;;  %v5253_v18 = vpack.c.bf16 %v1392_v31, %v1391_v49  ;;  %v16290_v49 = vld [vmem:[#allocation156_spill] sm:$0xff] }
 0x42f   : > { %v5055_v33 = vpack.c.bf16 %v1452_v14, %v1451_v50  ;;  %v1436_v40 = vsel %vm503_vm5, %v6765_v57, %v6785_v35  ;;  %v6825_v29 = vunpack.i.h.bf16 %v10487_v15  ;;  %v6824_v54 = vunpack.i.l.bf16 %v10487_v15  ;;  %v16289_v15 = vld [vmem:[#allocation141_spill] sm:$0xff] }
 0x430   : > { %5052 = vmatpush1.bf16.msra.mxu0 %v5051_v10  ;;  %5252 = vmatpush1.bf16.msra.mxu1 %v5251_v22  ;;  %v1393_v8 = vsel %vm503_vm5, %v6549_v5, %v6569_v45  ;;  %v1394_v32 = vsel %vm503_vm5, %v6550_v55, %v6570_v62  ;;  %v1454_v24 = vsel %vm503_vm5, %v6570_v62, %v6510_v23  ;;  %v6805_v31 = vunpack.i.h.bf16 %v16290_v49 }
 0x431   : > { %5054 = vmatprep.subr.bf16.mxu0 %v5053_v25  ;;  %v1453_v10 = vsel %vm503_vm5, %v6569_v45, %v6509_v43  ;;  %v10646_v14 = vpop.permute.xlu0 %6597  ;;  %5254 = vmatprep.subr.bf16.mxu1 %v5253_v18  ;;  %v5255_v50 = vpack.c.bf16 %v1412_v26, %v1411_v44  ;;  %v6804_v25 = vunpack.i.l.bf16 %v16290_v49  ;;  %v15644_v22 = vunpack.i.h.bf16 %v10608_v1  ;;  %v16291_v45 = vld [vmem:[#allocation66_spill] sm:$0xff]  ;;  %v10668_v0 = vpop.permute.xlu1 %6847  ;;  %v16293_v18 = vld [vmem:[#allocation69_spill] sm:$0xff] }
 0x432   : > { %7027 = vrot.lane.b32.xlu1 %v16289_v15, %s8308_s11  ;;  %v15645_v23 = vunpack.i.l.bf16 %v10608_v1  ;;  %v1413_v7 = vsel %vm503_vm5, %v6529_v19, %v6549_v5  ;;  %v1414_v43 = vsel %vm503_vm5, %v6530_v30, %v6550_v55  ;;  %v15642_v62 = vunpack.i.h.bf16 %v10459_v59  ;;  %6742 = vrot.lane.b32.xlu0 %v16291_v45, %s8309_s13  ;;  %v16301_v45 = vld [vmem:[#allocation149_spill] sm:$0xff] }
 0x433   : > { %v5257_v44 = vpack.c.bf16 %v1394_v32, %v1393_v8  ;;  %v15643_v26 = vunpack.i.l.bf16 %v10459_v59  ;;  %v5059_v19 = vpack.c.bf16 %v1454_v24, %v1453_v10  ;;  %v1395_v20 = vsel %vm503_vm5, %v6804_v25, %v6824_v54  ;;  %v16294_v8 = vld [vmem:[#allocation146_spill] sm:$0xff]  ;;  %v16296_v10 = vld [vmem:[#allocation65_spill] sm:$0xff] }
 0x434   : > { %5056 = vmatpush1.bf16.msra.mxu0 %v5055_v33  ;;  %5256 = vmatpush1.bf16.msra.mxu1 %v5255_v50  ;;  %v1396_v30 = vsel %vm503_vm5, %v6805_v31, %v6825_v29  ;;  %v1456_v55 = vsel %vm503_vm5, %v6825_v29, %v6765_v57  ;;  %v1455_v6 = vsel %vm503_vm5, %v6824_v54, %v6764_v47  ;;  %v16297_v50 = vld [vmem:[#allocation87_spill] sm:$0xff]  ;;  %v6579_v12 = vunpack.i.l.bf16 %v10495_v38 }
 0x435   : > { %5058 = vmatprep.subr.bf16.mxu0 %v5057_v4  ;;  %v10681_v58 = vpop.permute.xlu0 %6602  ;;  %5258 = vmatprep.subr.bf16.mxu1 %v5257_v44  ;;  %v16292_v4 = vld [vmem:[#allocation145_spill] sm:$0xff]  ;;  %v5061_v5 = vpack.c.bf16 %v1436_v40, %v1435_v39  ;;  %v5259_v16 = vpack.c.bf16 %v1414_v43, %v1413_v7  ;;  %v1657_v57 = vsel %vm564_vm6, %v15643_v26, %v15645_v23  ;;  %v10707_v33 = vpop.permute.xlu1 %6852  ;;  %v15651_v44 = vunpack.i.h.bf16 %v16301_v45 }
 0x436   : > { %7032 = vrot.lane.b32.xlu1 %v16292_v4, %s8308_s11  ;;  %v1658_v3 = vsel %vm564_vm6, %v15642_v62, %v15644_v22  ;;  %v1415_v47 = vsel %vm503_vm5, %v6784_v37, %v6804_v25  ;;  %v1416_v39 = vsel %vm503_vm5, %v6785_v35, %v6805_v31  ;;  %6897 = vrot.lane.b32.xlu0 %v16293_v18, %s8309_s13  ;;  %v16295_v35 = vld [vmem:[#allocation82_spill] sm:$0xff]  ;;  %v16299_v25 = vld [vmem:[#allocation72_spill] sm:$0xff]  ;;  %v16300_v7 = vld [vmem:[#allocation89_spill] sm:$0xff] }
 0x437   : > { %v5261_v40 = vpack.c.bf16 %v1396_v30, %v1395_v20  ;;  %v5063_v29 = vpack.c.bf16 %v1456_v55, %v1455_v6  ;;  %v5065_v37 = vpack.c.bf16 %v1658_v3, %v1657_v57  ;;  %v5263_v11 = vpack.c.bf16 %v1416_v39, %v1415_v47  ;;  %v16302_v30 = vld [vmem:[#allocation81_spill] sm:$0xff]  ;;  %v16305_v47 = vld [vmem:[#allocation51_spill] sm:$0xff]  ;;  %v16310_v62 = vld [vmem:[#allocation52_spill] sm:$0xff] }
 0x438   : > { %5060 = vmatpush1.bf16.msra.mxu0 %v5059_v19  ;;  %5260 = vmatpush1.bf16.msra.mxu1 %v5259_v16  ;;  %v15657_v19 = vunpack.i.l.bf16 %v16301_v45  ;;  %v16303_v55 = vld [vmem:[#allocation121_spill] sm:$0xff]  ;;  %v16304_v16 = vld [vmem:[#allocation150_spill] sm:$0xff]  ;;  %v15647_v39 = vunpack.i.h.bf16 %v16305_v47  ;;  %v15646_v18 = vunpack.i.l.bf16 %v16305_v47  ;;  %v15658_v26 = vunpack.i.l.bf16 %v16310_v62 }
 0x439   : > { %5062 = vmatprep.subr.bf16.mxu0 %v5061_v5  ;;  %v10709_v54 = vpop.permute.xlu0 %6607  ;;  %5262 = vmatprep.subr.bf16.mxu1 %v5261_v40  ;;  %v10715_v32 = vpop.permute.xlu1 %6857  ;;  %v15649_v6 = vunpack.i.h.bf16 %v16303_v55  ;;  %v15648_v5 = vunpack.i.l.bf16 %v16303_v55  ;;  %v15656_v57 = vunpack.i.h.bf16 %v16304_v16  ;;  %v15653_v3 = vunpack.i.l.bf16 %v16304_v16  ;;  %v16306_v40 = vld [vmem:[#allocation151_spill] sm:$0xff] }
 0x43a   : > { %7037 = vrot.lane.b32.xlu1 %v16294_v8, %s8308_s11  ;;  %6902 = vrot.lane.b32.xlu0 %v16295_v35, %s8309_s13  ;;  %v16308_v35 = vld [vmem:[#allocation49_spill] sm:$0xff]  ;;  %v10761_v22 = vsel %vm564_vm6, %v15657_v19, %v15646_v18  ;;  %v6580_v19 = vunpack.i.h.bf16 %v10495_v38  ;;  %v6830_v8 = vunpack.i.h.bf16 %v10512_v13  ;;  %v16321_v38 = vunpack.i.h.bf16 %v10608_v1 }
 0x43c   : > { %5064 = vmatpush1.bf16.msra.mxu0 %v5063_v29  ;;  %5264 = vmatpush1.bf16.msra.mxu1 %v5263_v11  ;;  %v16312_v29 = vld [vmem:[#allocation102_spill] sm:$0xff] }
 0x43d   : > { %5066 = vmatprep.subr.bf16.mxu0 %v5065_v37  ;;  %v10717_v24 = vpop.permute.xlu0 %6612  ;;  %v10723_v49 = vpop.permute.xlu1 %6862  ;;  %v16307_v37 = vld [vmem:[#allocation42_spill] sm:$0xff] }
 0x43e   : > { %7042 = vrot.lane.b32.xlu1 %v16296_v10, %s8309_s13  ;;  %6907 = vrot.lane.b32.xlu0 %v16297_v50, %s8309_s13  ;;  %16298 = vst [vmem:[#allocation50_spill] sm:$0xff] %v10723_v49  ;;  %v15650_v10 = vunpack.i.h.bf16 %v16308_v35  ;;  %v15654_v50 = vunpack.i.l.bf16 %v16308_v35 }
 0x440   : > { %v10781_v18 = vsel %vm564_vm6, %v15648_v5, %v15654_v50 }
 0x441   : > { %v10725_v31 = vpop.permute.xlu0 %6617  ;;  %v10731_v43 = vpop.permute.xlu1 %6867 }
 0x442   : > { %7047 = vrot.lane.b32.xlu1 %v16299_v25, %s8309_s13  ;;  %6912 = vrot.lane.b32.xlu0 %v16300_v7, %s8309_s13  ;;  %v16309_v25 = vld [vmem:[#allocation54_spill] sm:$0xff]  ;;  %v6869_v46 = vunpack.i.l.bf16 %v10731_v43 }
 0x443   : > { %v15655_v7 = vunpack.i.h.bf16 %v16309_v25 }
 0x445   : > { %v10735_v20 = vpop.permute.xlu0 %6622  ;;  %v10748_v11 = vpop.permute.xlu1 %6872  ;;  %v10805_v5 = vsel %vm564_vm6, %v15656_v57, %v15655_v7  ;;  %v6615_v7 = vunpack.i.h.bf16 %v10717_v24  ;;  %v6614_v57 = vunpack.i.l.bf16 %v10717_v24 }
 0x446   : > { %7052 = vrot.lane.b32.xlu1 %v16302_v30, %s8309_s13  ;;  %6917 = vrot.lane.b32.xlu0 %v16307_v37, %s8309_s13  ;;  %v15652_v30 = vunpack.i.l.bf16 %v16309_v25  ;;  %v10769_v37 = vsel %vm564_vm6, %v15651_v44, %v15647_v39  ;;  %v10789_v39 = vsel %vm564_vm6, %v15649_v6, %v15650_v10  ;;  %16313 = vst [vmem:[#allocation47_spill] sm:$0xff] %v10805_v5  ;;  %v16314_v6 = vunpack.i.l.bf16 %v16306_v40 }
 0x447   : > { %v6850_v44 = vunpack.i.h.bf16 %v10668_v0  ;;  %v1638_v24 = vsel %vm564_vm6, %v16321_v38, %v6615_v7  ;;  %v16326_v5 = vunpack.i.h.bf16 %v10646_v14 }
 0x448   : > { %v10813_v10 = vsel %vm564_vm6, %v16314_v6, %v15658_v26  ;;  %v6829_v6 = vunpack.i.l.bf16 %v10512_v13 }
 0x449   : > { %v10771_v23 = vpop.permute.xlu0 %6627  ;;  %v10819_v50 = vpop.permute.xlu1 %6877 }
 0x44a   : > { %16311 = vst [vmem:[#allocation44_spill] sm:$0xff] %v10771_v23  ;;  %7057 = vrot.lane.b32.xlu1 %v16312_v29, %s8309_s13  ;;  %v10797_v29 = vsel %vm564_vm6, %v15653_v3, %v15652_v30  ;;  %v6849_v30 = vunpack.i.l.bf16 %v10668_v0  ;;  %v16315_v3 = vld [vmem:[#allocation104_spill] sm:$0xff]  ;;  %16316 = vst [vmem:[#allocation46_spill] sm:$0xff] %v10819_v50  ;;  %v16320_v0 = vunpack.i.l.bf16 %v10608_v1  ;;  %v16323_v23 = vunpack.i.h.bf16 %v10459_v59 }
 0x44b   : > { %6932 = vrot.lane.b32.xlu0 %v16315_v3, %s8309_s13  ;;  %v6599_v3 = vunpack.i.l.bf16 %v10646_v14 }
 0x44c   : > { %v1659_v13 = vsel %vm564_vm6, %v6829_v6, %v6849_v30 }
 0x44d   : > { %v6633_v26 = vpop.permute.xlu0 %6632  ;;  %v10834_v4 = vpop.permute.xlu1 %6882 }
 0x44e   : > { %7062 = vrot.lane.b32.xlu1 %v16317_v21, %s8309_s13  ;;  %v6635_v53 = vunpack.i.h.bf16 %v6633_v26  ;;  %v6634_v17 = vunpack.i.l.bf16 %v6633_v26  ;;  %16319 = vst [vmem:[#allocation30_spill] sm:$0xff] %v10834_v4  ;;  %v1660_v21 = vsel %vm564_vm6, %v6830_v8, %v6850_v44  ;;  %v1637_v26 = vsel %vm564_vm6, %v16320_v0, %v6614_v57  ;;  %v16325_v0 = vld [vmem:[#allocation105_spill] sm:$0xff] }
 0x44f   : > { %6937 = vrot.lane.b32.xlu0 %v16318_v61, %s8309_s13  ;;  %v16322_v61 = vunpack.i.l.bf16 %v10459_v59  ;;  %v5069_v59 = vpack.c.bf16 %v1660_v21, %v1659_v13 }
 0x450   : > { %v1678_v49 = vsel %vm564_vm6, %v6635_v53, %v16323_v23  ;;  %v1617_v38 = vsel %vm564_vm6, %v6614_v57, %v6634_v17  ;;  %v1618_v50 = vsel %vm564_vm6, %v6615_v7, %v6635_v53  ;;  %v1661_v23 = vsel %vm564_vm6, %v6579_v12, %v6599_v3 }
 0x451   : > { %v1677_v4 = vsel %vm564_vm6, %v6634_v17, %v16322_v61  ;;  %v10857_v28 = vpop.permute.xlu0 %6637  ;;  %v6870_v17 = vunpack.i.h.bf16 %v10731_v43  ;;  %v5265_v53 = vpack.c.bf16 %v1618_v50, %v1617_v38  ;;  %v6619_v57 = vunpack.i.l.bf16 %v10725_v31 }
 0x452   : > { %16324 = vst [vmem:[#allocation35_spill] sm:$0xff] %v10857_v28  ;;  %7067 = vrot.lane.b32.xlu1 %v16325_v0, %s8309_s13  ;;  %v5067_v1 = vpack.c.bf16 %v1678_v49, %v1677_v4  ;;  %v1662_v28 = vsel %vm564_vm6, %v6580_v19, %v16326_v5  ;;  %v6834_v0 = vunpack.i.l.bf16 %v10563_v60  ;;  %v6888_v49 = vpop.permute.xlu1 %6887  ;;  %v5267_v7 = vpack.c.bf16 %v1638_v24, %v1637_v26 }
 0x453   : > { %6947 = vrot.lane.b32.xlu0 %v9989_v34, %s8309_s13  ;;  %v6890_v13 = vunpack.i.h.bf16 %v6888_v49  ;;  %v6889_v21 = vunpack.i.l.bf16 %v6888_v49  ;;  %v6620_v5 = vunpack.i.h.bf16 %v10725_v31  ;;  %v1639_v61 = vsel %vm564_vm6, %v6849_v30, %v6869_v46  ;;  %5266 = vmatprep.subr.bf16.mxu1 %v5265_v53 }
 0x454   : > { %5068 = vmatpush1.bf16.msra.mxu0 %v5067_v1  ;;  %v5073_v34 = vpack.c.bf16 %v1662_v28, %v1661_v23  ;;  %v16327_v43 = vunpack.i.l.bf16 %v10707_v33  ;;  %5268 = vmatpush1.bf16.msra.mxu1 %v5267_v7  ;;  %v16330_v23 = vunpack.i.h.bf16 %v10563_v60  ;;  %v6875_v7 = vunpack.i.h.bf16 %v10748_v11 }
 0x455   : > { %5070 = vmatprep.subr.bf16.mxu0 %v5069_v59  ;;  %v6643_v4 = vpop.permute.xlu0 %6642  ;;  %v1679_v31 = vsel %vm564_vm6, %v6889_v21, %v6829_v6  ;;  %v1680_v30 = vsel %vm564_vm6, %v6890_v13, %v6830_v8  ;;  %v1619_v38 = vsel %vm564_vm6, %v6869_v46, %v6889_v21  ;;  %v1620_v6 = vsel %vm564_vm6, %v6870_v17, %v6890_v13 }
 0x456   : > { %7072 = vrot.lane.b32.xlu1 %v16220_v52, %s8309_s13  ;;  %v1663_v50 = vsel %vm564_vm6, %v6834_v0, %v16327_v43  ;;  %v6645_v24 = vunpack.i.h.bf16 %v6643_v4  ;;  %v6644_v26 = vunpack.i.l.bf16 %v6643_v4  ;;  %v1640_v52 = vsel %vm564_vm6, %v6850_v44, %v6870_v17  ;;  %v10897_v28 = vpop.permute.xlu1 %6892 }
 0x457   : > { %7087 = vrot.lane.b32.xlu0 %v16286_v36, %s8309_s13  ;;  %16328 = vst [vmem:[#allocation155_spill] sm:$0xff] %v10897_v28  ;;  %v5071_v1 = vpack.c.bf16 %v1680_v30, %v1679_v31  ;;  %v1641_v8 = vsel %vm564_vm6, %v6599_v3, %v6619_v57  ;;  %v16329_v36 = vunpack.i.h.bf16 %v10707_v33  ;;  %v6405_v46 = vunpack.i.h.bf16 %v16310_v62 }
 0x458   : > { %v1681_v59 = vsel %vm564_vm6, %v6644_v26, %v6579_v12  ;;  %v1682_v44 = vsel %vm564_vm6, %v6645_v24, %v6580_v19  ;;  %v5269_v3 = vpack.c.bf16 %v1620_v6, %v1619_v38  ;;  %v1621_v12 = vsel %vm564_vm6, %v6619_v57, %v6644_v26 }
 0x459   : > { %v1664_v4 = vsel %vm564_vm6, %v16330_v23, %v16329_v36  ;;  %v10916_v53 = vpop.permute.xlu0 %6647  ;;  %5072 = vmatpush1.bf16.msra.mxu0 %v5071_v1  ;;  %v1622_v19 = vsel %vm564_vm6, %v6620_v5, %v6645_v24  ;;  %v16331_v17 = vunpack.i.h.bf16 %v10646_v14  ;;  %v6874_v13 = vunpack.i.l.bf16 %v10748_v11 }
 0x45a   : > { %7077 = vrot.lane.b32.xlu1 %v9959_v42, %s8309_s13  ;;  %5074 = vmatprep.subr.bf16.mxu0 %v5073_v34  ;;  %v5271_v21 = vpack.c.bf16 %v1640_v52, %v1639_v61  ;;  %v6480_v42 = vunpack.i.h.bf16 %v16306_v40  ;;  %v6923_v57 = vpop.permute.xlu1 %6922  ;;  %v5273_v43 = vpack.c.bf16 %v1622_v19, %v1621_v12  ;;  %v16332_v31 = vunpack.i.l.bf16 %v16301_v45 }
 0x45b   : > { %v1642_v49 = vsel %vm564_vm6, %v16331_v17, %v6620_v5  ;;  %7092 = vrot.lane.b32.xlu0 %v9897_v41, %s8309_s13  ;;  %5270 = vmatprep.subr.bf16.mxu1 %v5269_v3  ;;  %v16333_v14 = vunpack.i.l.bf16 %v16308_v35  ;;  %v16334_v30 = vunpack.i.h.bf16 %v16301_v45  ;;  %v16335_v11 = vunpack.i.h.bf16 %v16308_v35 }
 0x45c   : > { %5272 = vmatpush1.bf16.msra.mxu1 %v5271_v21  ;;  %v6925_v34 = vunpack.i.h.bf16 %v6923_v57  ;;  %v6924_v41 = vunpack.i.l.bf16 %v6923_v57  ;;  %v5075_v24 = vpack.c.bf16 %v1682_v44, %v1681_v59  ;;  %v16336_v26 = vunpack.i.l.bf16 %v16303_v55 }
 0x45d   : > { %v1665_v5 = vsel %vm564_vm6, %v16333_v14, %v16332_v31  ;;  %v1666_v61 = vsel %vm564_vm6, %v16335_v11, %v16334_v30  ;;  %v16337_v52 = vunpack.i.l.bf16 %v16305_v47  ;;  %v6605_v38 = vunpack.i.h.bf16 %v10681_v58  ;;  %v10952_v6 = vpop.permute.xlu0 %6652  ;;  %5274 = vmatprep.subr.bf16.mxu1 %v5273_v43 }
 0x45e   : > { %7082 = vrot.lane.b32.xlu1 %v9949_v51, %s8309_s13  ;;  %v5077_v45 = vpack.c.bf16 %v1664_v4, %v1663_v50  ;;  %v5275_v35 = vpack.c.bf16 %v1642_v49, %v1641_v8  ;;  %v16338_v36 = vunpack.i.h.bf16 %v16303_v55  ;;  %v16339_v59 = vunpack.i.h.bf16 %v16305_v47  ;;  %5076 = vmatpush1.bf16.msra.mxu0 %v5075_v24 }
 0x45f   : > { %v1625_v1 = vsel %vm564_vm6, %v16337_v52, %v16336_v26  ;;  %v16340_v23 = vunpack.i.l.bf16 %v10707_v33  ;;  %v16341_v12 = vunpack.i.h.bf16 %v10707_v33  ;;  %v1683_v51 = vsel %vm564_vm6, %v6924_v41, %v6834_v0  ;;  %7107 = vrot.lane.b32.xlu0 %v16289_v15, %s8309_s13  ;;  %v10981_v33 = vpop.permute.xlu1 %6927 }
 0x460   : > { %v1626_v44 = vsel %vm564_vm6, %v16339_v59, %v16338_v36  ;;  %v16342_v55 = vunpack.i.h.bf16 %v10563_v60  ;;  %v6604_v50 = vunpack.i.l.bf16 %v10681_v58  ;;  %5078 = vmatprep.subr.bf16.mxu0 %v5077_v45  ;;  %16343 = vst [vmem:[#allocation135_spill] sm:$0xff] %v10981_v33  ;;  %v1623_v4 = vsel %vm564_vm6, %v6874_v13, %v6924_v41  ;;  %5276 = vmatpush1.bf16.msra.mxu1 %v5275_v35  ;;  %v16352_v45 = vld [vmem:[#allocation34_spill] sm:$0xff] }
 0x461   : > { %v1643_v3 = vsel %vm564_vm6, %v16340_v23, %v6874_v13  ;;  %v1644_v19 = vsel %vm564_vm6, %v16341_v12, %v6875_v7  ;;  %v1624_v0 = vsel %vm564_vm6, %v6875_v7, %v6925_v34  ;;  %v10989_v60 = vsel %vm564_vm6, %v6480_v42, %v6405_v46  ;;  %v11005_v31 = vpop.permute.xlu0 %6657 }
 0x462   : > { %v1684_v47 = vsel %vm564_vm6, %v6925_v34, %v16342_v55  ;;  %v5083_v17 = vpack.c.bf16 %v10789_v39, %v10781_v18  ;;  %v16344_v15 = vunpack.i.l.bf16 %v16304_v16  ;;  %v16345_v49 = vunpack.i.l.bf16 %v16310_v62  ;;  %7097 = vrot.lane.b32.xlu1 %v9833_v63, %s8309_s13  ;;  %v16350_v34 = vld [vmem:[#allocation43_spill] sm:$0xff] }
 0x463   : > { %v5079_v8 = vpack.c.bf16 %v1684_v47, %v1683_v51  ;;  %v16346_v13 = vunpack.i.h.bf16 %v16304_v16  ;;  %v6585_v57 = vunpack.i.h.bf16 %v10543_v56  ;;  %v6584_v43 = vunpack.i.l.bf16 %v10543_v56  ;;  %7112 = vrot.lane.b32.xlu0 %v16350_v34, %s8309_s13  ;;  %v11021_v63 = vpop.permute.xlu1 %6942 }
 0x464   : > { %v1667_v21 = vsel %vm564_vm6, %v16345_v49, %v16344_v15  ;;  %v5277_v39 = vpack.c.bf16 %v1624_v0, %v1623_v4  ;;  %v5081_v18 = vpack.c.bf16 %v1666_v61, %v1665_v5  ;;  %v5279_v62 = vpack.c.bf16 %v1644_v19, %v1643_v3  ;;  %16351 = vst [vmem:[#allocation48_spill] sm:$0xff] %v11021_v63  ;;  %v16353_v19 = vld [vmem:[#allocation45_spill] sm:$0xff] }
 0x465   : > { %v1668_v7 = vsel %vm564_vm6, %v6405_v46, %v16346_v13  ;;  %5080 = vmatpush1.bf16.msra.mxu0 %v5079_v8  ;;  %v5281_v14 = vpack.c.bf16 %v1626_v44, %v1625_v1  ;;  %v16347_v30 = vunpack.i.l.bf16 %v16306_v40  ;;  %v16348_v16 = vunpack.i.l.bf16 %v16309_v25  ;;  %v11037_v1 = vpop.permute.xlu0 %6662  ;;  %v16354_v0 = vld [vmem:[#allocation41_spill] sm:$0xff]  ;;  %v16355_v13 = vld [vmem:[#allocation47_spill] sm:$0xff] }
 0x466   : > { %v16349_v11 = vunpack.i.h.bf16 %v16309_v25  ;;  %5278 = vmatprep.subr.bf16.mxu1 %v5277_v39  ;;  %v5085_v5 = vpack.c.bf16 %v1668_v7, %v1667_v21  ;;  %v1669_v40 = vsel %vm564_vm6, %v6584_v43, %v6604_v50  ;;  %v1670_v25 = vsel %vm564_vm6, %v6585_v57, %v6605_v38  ;;  %5082 = vmatprep.subr.bf16.mxu0 %v5081_v18  ;;  %v16356_v39 = vld [vmem:[#allocation46_spill] sm:$0xff] }
 0x467   : > { %v1627_v46 = vsel %vm564_vm6, %v16348_v16, %v16347_v30  ;;  %v6610_v61 = vunpack.i.h.bf16 %v10709_v54  ;;  %v6650_v41 = vunpack.i.h.bf16 %v10916_v53  ;;  %v6649_v24 = vunpack.i.l.bf16 %v10916_v53  ;;  %5280 = vmatpush1.bf16.msra.mxu1 %v5279_v62  ;;  %7102 = vrot.lane.b32.xlu1 %v16352_v45, %s8309_s13  ;;  %v6953_v51 = vpop.permute.xlu1 %6952 }
 0x468   : > { %v1628_v56 = vsel %vm564_vm6, %v16349_v11, %v6480_v42  ;;  %v6609_v42 = vunpack.i.l.bf16 %v10709_v54  ;;  %v6860_v26 = vunpack.i.h.bf16 %v10715_v32  ;;  %v6859_v52 = vunpack.i.l.bf16 %v10715_v32  ;;  %5282 = vmatprep.subr.bf16.mxu1 %v5281_v14  ;;  %7122 = vrot.lane.b32.xlu0 %v16353_v19, %s8309_s13  ;;  %v16357_v14 = vld [vmem:[#allocation138_spill] sm:$0xff]  ;;  %v16361_v19 = vld [vmem:[#allocation145_spill] sm:$0xff] }
 0x469   : > { %v5283_v35 = vpack.c.bf16 %v10769_v37, %v10761_v22  ;;  %v5285_v36 = vpack.c.bf16 %v1628_v56, %v1627_v46  ;;  %v6590_v59 = vunpack.i.h.bf16 %v10575_v2  ;;  %v6589_v53 = vunpack.i.l.bf16 %v10575_v2  ;;  %5084 = vmatpush1.bf16.msra.mxu0 %v5083_v17  ;;  %v11073_v4 = vpop.permute.xlu0 %6667  ;;  %v2177_v46 = vld [vmem:[#allocation9] sm:$0xff] }
 0x46a   : > { %v6625_v44 = vunpack.i.h.bf16 %v10735_v20  ;;  %v6624_v23 = vunpack.i.l.bf16 %v10735_v20  ;;  %v6840_v3 = vunpack.i.h.bf16 %v10597_v27  ;;  %v6839_v12 = vunpack.i.l.bf16 %v10597_v27  ;;  %5086 = vmatprep.subr.bf16.mxu0 %v5085_v5 }
 0x46b   : > { %v5087_v22 = vpack.c.bf16 %v10989_v60, %v10813_v10  ;;  %v5089_v37 = vpack.c.bf16 %v1670_v25, %v1669_v40  ;;  %5284 = vmatpush1.bf16.msra.mxu1 %v5283_v35  ;;  %v11063_v27 = vsel %vm564_vm6, %v6589_v53, %v6609_v42  ;;  %v11071_v10 = vsel %vm564_vm6, %v6590_v59, %v6610_v61  ;;  %v11096_v30 = vpop.permute.xlu1 %6957  ;;  %v16358_v40 = vld [vmem:[#allocation127_spill] sm:$0xff] }
 0x46c   : > { %v1629_v55 = vsel %vm564_vm6, %v6624_v23, %v6649_v24  ;;  %v1630_v20 = vsel %vm564_vm6, %v6625_v44, %v6650_v41  ;;  %v6955_v47 = vunpack.i.h.bf16 %v6953_v51  ;;  %v6954_v8 = vunpack.i.l.bf16 %v6953_v51  ;;  %5286 = vmatprep.subr.bf16.mxu1 %v5285_v36  ;;  %7117 = vrot.lane.b32.xlu1 %v16354_v0, %s8309_s13 }
 0x46d   : > { %v1671_v60 = vsel %vm564_vm6, %v6839_v12, %v6859_v52  ;;  %v1672_v17 = vsel %vm564_vm6, %v6840_v3, %v6860_v26  ;;  %v6845_v15 = vunpack.i.h.bf16 %v10626_v48  ;;  %v1689_v49 = vsel %vm564_vm6, %v6649_v24, %v6584_v43  ;;  %5088 = vmatpush1.bf16.msra.mxu0 %v5087_v22  ;;  %7132 = vrot.lane.b32.xlu0 %v16357_v14, %s8309_s13  ;;  %v11110_v5 = vpop.permute.xlu0 %6672  ;;  %v16360_v24 = vld [vmem:[#allocation44_spill] sm:$0xff] }
 0x46e   : > { %v1690_v21 = vsel %vm564_vm6, %v6650_v41, %v6585_v57  ;;  %v5287_v7 = vpack.c.bf16 %v16355_v13, %v10797_v29  ;;  %v6880_v18 = vunpack.i.h.bf16 %v16356_v39  ;;  %v6879_v62 = vunpack.i.l.bf16 %v16356_v39  ;;  %5090 = vmatprep.subr.bf16.mxu0 %v5089_v37 }
 0x46f   : > { %v5289_v16 = vpack.c.bf16 %v1630_v20, %v1629_v55  ;;  %v5097_v43 = vpack.c.bf16 %v11071_v10, %v11063_v27  ;;  %v1649_v29 = vsel %vm564_vm6, %v6604_v50, %v6624_v23  ;;  %v1650_v57 = vsel %vm564_vm6, %v6605_v38, %v6625_v44  ;;  %v16359_v38 = vld [vmem:[#allocation50_spill] sm:$0xff]  ;;  %v11132_v22 = vpop.permute.xlu1 %6962 }
 0x470   : > { %v6654_v11 = vunpack.i.l.bf16 %v10952_v6  ;;  %5288 = vmatpush1.bf16.msra.mxu1 %v5287_v7  ;;  %v5093_v56 = vpack.c.bf16 %v1672_v17, %v1671_v60  ;;  %v6655_v34 = vunpack.i.h.bf16 %v10952_v6  ;;  %7127 = vrot.lane.b32.xlu1 %v16358_v40, %s8309_s13  ;;  %v5091_v25 = vpack.c.bf16 %v1690_v21, %v1689_v49  ;;  %v16363_v49 = vld [vmem:[#allocation30_spill] sm:$0xff] }
 0x471   : > { %5290 = vmatprep.subr.bf16.mxu1 %v5289_v16  ;;  %v1631_v50 = vsel %vm564_vm6, %v6879_v62, %v6954_v8  ;;  %v1632_v58 = vsel %vm564_vm6, %v6880_v18, %v6955_v47  ;;  %v6864_v41 = vunpack.i.l.bf16 %v16359_v38  ;;  %v6629_v45 = vunpack.i.l.bf16 %v16360_v24  ;;  %2307 = vmatmul.mubr.f32.vlgmr.msra.gmra.mrb[8].mxu0 %v2177_v46  ;;  %v11143_v10 = vpop.permute.xlu0 %6677  ;;  %v16364_v7 = vld [vmem:[#allocation142_spill] sm:$0xff] }
 0x472   : > { %v1692_v6 = vsel %vm564_vm6, %v6955_v47, %v6840_v3  ;;  %v1691_v35 = vsel %vm564_vm6, %v6954_v8, %v6839_v12  ;;  %v6865_v36 = vunpack.i.h.bf16 %v16359_v38  ;;  %v6630_v44 = vunpack.i.h.bf16 %v16360_v24  ;;  %7142 = vrot.lane.b32.xlu0 %v16361_v19, %s8309_s13  ;;  %5092 = vmatpush1.bf16.msra.mxu0 %v5091_v25  ;;  %v2185_v3 = vld [vmem:[#allocation9 + $0x40] sm:$0xff]  ;;  %v16362_v47 = vld [vmem:[#allocation131_spill] sm:$0xff]  ;;  %v2184_v8 = vld [vmem:[#allocation9 + $0x38] sm:$0xff] }
 0x473   : > { %v1651_v23 = vsel %vm564_vm6, %v6859_v52, %v6879_v62  ;;  %v5291_v51 = vpack.c.bf16 %v1650_v57, %v1649_v29  ;;  %v6844_v12 = vunpack.i.l.bf16 %v10626_v48  ;;  %v1652_v37 = vsel %vm564_vm6, %v6860_v26, %v6880_v18  ;;  %5094 = vmatprep.subr.bf16.mxu0 %v5093_v56  ;;  %2663 = vmatmul.mubr.f32.vlgmr.msra.gmra.mrb[8].mxu1 %v2177_v46  ;;  %v16366_v29 = vld [vmem:[#allocation134_spill] sm:$0xff]  ;;  %v2192_v56 = vld [vmem:[#allocation9 + $0x78] sm:$0xff]  ;;  %v2191_v38 = vld [vmem:[#allocation9 + $0x70] sm:$0xff] }
 0x474   : > { %v5293_v55 = vpack.c.bf16 %v1632_v58, %v1631_v50  ;;  %v1633_v52 = vsel %vm564_vm6, %v6629_v45, %v6654_v11  ;;  %v6960_v20 = vunpack.i.h.bf16 %v11096_v30  ;;  %v6959_v27 = vunpack.i.l.bf16 %v11096_v30  ;;  %7137 = vrot.lane.b32.xlu1 %v16362_v47, %s8309_s13  ;;  %2312 = vmatprep.mubr.f32.mxu0 %v2185_v3  ;;  %v16365_v30 = vld [vmem:[#allocation130_spill] sm:$0xff]  ;;  %v16369_v24 = vld [vmem:[#allocation80_spill] sm:$0xff] }
 0x475   : > { %5292 = vmatpush1.bf16.msra.mxu1 %v5291_v51  ;;  %v5095_v32 = vpack.c.bf16 %v1692_v6, %v1691_v35  ;;  %v1634_v26 = vsel %vm564_vm6, %v6630_v44, %v6655_v34  ;;  %v1693_v0 = vsel %vm564_vm6, %v6654_v11, %v6589_v53  ;;  %v1694_v60 = vsel %vm564_vm6, %v6655_v34, %v6590_v59  ;;  %v11163_v53 = vpop.permute.xlu1 %6967  ;;  %v11177_v14 = vpop.permute.xlu0 %6682  ;;  %v2205_v40 = vld [vmem:[%s15421_s6] sm:$0xff]  ;;  %v2207_v19 = vld [vmem:[%s15421_s6 + $0x10] sm:$0xff]  ;;  %v2206_v47 = vld [vmem:[%s15421_s6 + $0x8] sm:$0xff] }
 0x476   : > { %5294 = vmatprep.subr.bf16.mxu1 %v5293_v55  ;;  %v1675_v17 = vsel %vm564_vm6, %v6844_v12, %v6864_v41  ;;  %v6885_v21 = vunpack.i.h.bf16 %v16363_v49  ;;  %v6884_v13 = vunpack.i.l.bf16 %v16363_v49  ;;  %7152 = vrot.lane.b32.xlu0 %v16364_v7, %s8309_s13  ;;  %v5295_v39 = vpack.c.bf16 %v1652_v37, %v1651_v23  ;;  %v16367_v50 = vld [vmem:[#allocation122_spill] sm:$0xff]  ;;  %v16374_v37 = vld [vmem:[#allocation59_spill] sm:$0xff] }
 0x477   : > { %5096 = vmatpush1.bf16.msra.mxu0 %v5095_v32  ;;  %v1676_v2 = vsel %vm564_vm6, %v6845_v15, %v6865_v36  ;;  %v1653_v59 = vsel %vm564_vm6, %v6609_v42, %v6629_v45  ;;  %v1654_v18 = vsel %vm564_vm6, %v6610_v61, %v6630_v44  ;;  %v5297_v62 = vpack.c.bf16 %v1634_v26, %v1633_v52  ;;  %v16371_v44 = vld [vmem:[#allocation148_spill] sm:$0xff]  ;;  %v16375_v52 = vld [vmem:[#allocation83_spill] sm:$0xff] }
 0x478   : > { %5098 = vmatprep.subr.bf16.mxu0 %v5097_v43  ;;  %2313 = vmatmul.mubr.f32.gmra.mrb[10].mxu0 %v2184_v8  ;;  %v5099_v16 = vpack.c.bf16 %v1694_v60, %v1693_v0  ;;  %v1635_v46 = vsel %vm564_vm6, %v6884_v13, %v6959_v27  ;;  %v1636_v42 = vsel %vm564_vm6, %v6885_v21, %v6960_v20  ;;  %v16377_v32 = vld [vmem:[#allocation75_spill] sm:$0xff]  ;;  %v16378_v26 = vld [vmem:[#allocation76_spill] sm:$0xff] }
 0x479   : > { %5296 = vmatpush1.bf16.msra.mxu1 %v5295_v39  ;;  %7147 = vrot.lane.b32.xlu1 %v16365_v30, %s8309_s13  ;;  %v1696_v54 = vsel %vm564_vm6, %v6960_v20, %v6845_v15  ;;  %v1695_v61 = vsel %vm564_vm6, %v6959_v27, %v6844_v12  ;;  %v5101_v43 = vpack.c.bf16 %v1676_v2, %v1675_v17  ;;  %v11193_v11 = vpop.permute.xlu1 %6972  ;;  %v11202_v25 = vpop.permute.xlu0 %6687  ;;  %v16373_v12 = vld [vmem:[#allocation58_spill] sm:$0xff]  ;;  %v16376_v20 = vld [vmem:[#allocation84_spill] sm:$0xff]  ;;  %v4919_v17 = vld [vmem:[#allocation3] ss:$0 sm:$0xff] }
 0x47a   : > { %5298 = vmatprep.subr.bf16.mxu1 %v5297_v62  ;;  %2668 = vmatprep.mubr.f32.mxu1 %v2185_v3  ;;  %v5299_v57 = vpack.c.bf16 %v1654_v18, %v1653_v59  ;;  %v1655_v48 = vsel %vm564_vm6, %v6864_v41, %v6884_v13  ;;  %v1656_v15 = vsel %vm564_vm6, %v6865_v36, %v6885_v21  ;;  %v16368_v41 = vld [vmem:[#allocation79_spill] sm:$0xff]  ;;  %v16372_v3 = vld [vmem:[#allocation146_spill] sm:$0xff]  ;;  %v2199_v60 = vld [vmem:[#allocation9 + $0xb0] sm:$0xff] }
 0x47b   : > { %7162 = vrot.lane.b32.xlu0 %v16366_v29, %s8309_s13  ;;  %5100 = vmatpush1.bf16.msra.mxu0 %v5099_v16  ;;  %v5301_v34 = vpack.c.bf16 %v1636_v42, %v1635_v46  ;;  %v5103_v58 = vpack.c.bf16 %v1696_v54, %v1695_v61  ;;  %v5105_v45 = vpack.c.bf16 %v16369_v24, %v16368_v41  ;;  %v16370_v36 = vld [vmem:[#allocation147_spill] sm:$0xff]  ;;  %v16379_v13 = vld [vmem:[#allocation92_spill] sm:$0xff]  ;;  %v16382_v2 = vld [vmem:[#allocation85_spill] sm:$0xff] }
 0x47c   : > { %5102 = vmatprep.subr.bf16.mxu0 %v5101_v43  ;;  %2669 = vmatmul.mubr.f32.gmra.mrb[10].mxu1 %v2184_v8  ;;  %v5303_v6 = vpack.c.bf16 %v1656_v15, %v1655_v48  ;;  %v5305_v23 = vpack.c.bf16 %v16371_v44, %v16370_v36  ;;  %v5107_v55 = vpack.c.bf16 %v16374_v37, %v16373_v12  ;;  %v2198_v21 = vld [vmem:[#allocation9 + $0xa8] sm:$0xff]  ;;  %v16383_v59 = vld [vmem:[#allocation86_spill] sm:$0xff]  ;;  %v2208_v62 = vld [vmem:[%s15421_s6 + $0x18] sm:$0xff] }
 0x47d   : > { %5300 = vmatpush1.bf16.msra.mxu1 %v5299_v57  ;;  %7157 = vrot.lane.b32.xlu1 %v16367_v50, %s8309_s13  ;;  %v11208_v35 = vpop.permute.xlu1 %6977  ;;  %v11215_v51 = vpop.permute.xlu0 %6692  ;;  %v5109_v27 = vpack.c.bf16 %v16376_v20, %v16375_v52  ;;  %v5307_v8 = vpack.c.bf16 %v16378_v26, %v16377_v32  ;;  %v16380_v7 = vld [vmem:[#allocation91_spill] sm:$0xff]  ;;  %v5113_v18 = vpack.c.bf16 %v16383_v59, %v16382_v2  ;;  %v16384_v30 = vld [vmem:[#allocation62_spill] sm:$0xff]  ;;  %v16385_v16 = vld [vmem:[#allocation61_spill] sm:$0xff] }
 0x47e   : > { %5302 = vmatprep.subr.bf16.mxu1 %v5301_v34  ;;  %2318 = vmatprep.mubr.f32.mxu0 %v2192_v56  ;;  %v16381_v39 = vpack.c.bf16 %v16379_v13, %v16380_v7  ;;  %v16386_v46 = vpack.c.bf16 %v16384_v30, %v16385_v16  ;;  %v16387_v42 = vld [vmem:[#allocation143_spill] sm:$0xff]  ;;  %v16388_v54 = vld [vmem:[#allocation144_spill] sm:$0xff]  ;;  %v2180_v15 = vld [vmem:[#allocation9 + $0x18] sm:$0xff] }
 0x47f   : > { %2211 = vperm.xlu0 %6209, %v2205_v40   ;;  %5104 = vmatpush1.bf16.msra.mxu0 %v5103_v58  ;;  %v5311_v61 = vpack.c.bf16 %v16388_v54, %v16387_v42  ;;  %v16389_v57 = vld [vmem:[#allocation63_spill] sm:$0xff]  ;;  %v16391_v34 = vld [vmem:[#allocation100_spill] sm:$0xff]  ;;  %v16403_v37 = vld [vmem:[#allocation70_spill] sm:$0xff] }
 0x480   : > { %5106 = vmatprep.subr.bf16.mxu0 %v5105_v45  ;;  %2319 = vmatmul.mubr.f32.gmra.mrb[12].mxu0 %v2191_v38  ;;  %v16392_v40 = vld [vmem:[#allocation99_spill] sm:$0xff]  ;;  %v16394_v58 = vld [vmem:[#allocation132_spill] sm:$0xff]  ;;  %v16405_v20 = vld [vmem:[#allocation25_spill] sm:$0xff] }
 0x481   : > { %5304 = vmatpush1.bf16.msra.mxu1 %v5303_v6  ;;  %7167 = vrot.lane.b32.xlu1 %v16372_v3, %s8309_s13  ;;  %v11228_v0 = vpop.permute.xlu1 %6982  ;;  %v11230_v49 = vpop.permute.xlu0 %6697  ;;  %v16393_v50 = vpack.c.bf16 %v16391_v34, %v16392_v40  ;;  %v16396_v45 = vld [vmem:[#allocation96_spill] sm:$0xff]  ;;  %v16397_v6 = vld [vmem:[#allocation95_spill] sm:$0xff]  ;;  %v16411_v13 = vld [vmem:[#allocation101_spill] sm:$0xff] }
 0x482   : > { %5306 = vmatprep.subr.bf16.mxu1 %v5305_v23  ;;  %2674 = vmatprep.mubr.f32.mxu1 %v2192_v56  ;;  %v16390_v56 = vld [vmem:[#allocation64_spill] sm:$0xff]  ;;  %v16398_v36 = vpack.c.bf16 %v16396_v45, %v16397_v6  ;;  %v16399_v23 = vld [vmem:[#allocation113_spill] sm:$0xff]  ;;  %v16402_v12 = vld [vmem:[#allocation71_spill] sm:$0xff] }
 0x483   : > { %2221 = vperm.xlu0 %6209, %v2207_v19   ;;  %5108 = vmatpush1.bf16.msra.mxu0 %v5107_v55  ;;  %v5115_v48 = vpack.c.bf16 %v16390_v56, %v16389_v57  ;;  %v16400_v19 = vld [vmem:[#allocation106_spill] sm:$0xff]  ;;  %v16404_v55 = vpack.c.bf16 %v16402_v12, %v16403_v37  ;;  %v16408_v32 = vld [vmem:[#allocation88_spill] sm:$0xff]  ;;  %v16413_v2 = vld [vmem:[#allocation53_spill] sm:$0xff] }
 0x484   : > { %5110 = vmatprep.subr.bf16.mxu0 %v5109_v27  ;;  %2675 = vmatmul.mubr.f32.gmra.mrb[12].mxu1 %v2191_v38  ;;  %v16395_v38 = vld [vmem:[#allocation133_spill] sm:$0xff]  ;;  %v16401_v3 = vpack.c.bf16 %v16399_v23, %v16400_v19  ;;  %v16406_v27 = vld [vmem:[#allocation23_spill] sm:$0xff]  ;;  %v6345_v26 = vunpack.i.h.bf16 %v16408_v32  ;;  %v6275_v59 = vunpack.i.h.bf16 %v16413_v2  ;;  %v16420_v40 = vld [vmem:[#allocation24_spill] sm:$0xff] }
 0x485   : > { %5308 = vmatpush1.bf16.msra.mxu1 %v5307_v8  ;;  %2216 = vperm.xlu1 %6210, %v2206_v47   ;;  %v11245_v43 = vpop.permute.xlu1 %6987  ;;  %v11247_v29 = vpop.permute.xlu0 %6702  ;;  %v5315_v41 = vpack.c.bf16 %v16395_v38, %v16394_v58  ;;  %v16407_v47 = vpack.c.bf16 %v16405_v20, %v16406_v27  ;;  %v6344_v8 = vunpack.i.l.bf16 %v16408_v32  ;;  %v16414_v30 = vld [vmem:[#allocation153_spill] sm:$0xff]  ;;  %v16416_v42 = vld [vmem:[#allocation27_spill] sm:$0xff] }
 0x486   : > { %5310 = vmatprep.subr.bf16.mxu1 %v16381_v39  ;;  %2324 = vmatprep.mubr.f32.mxu0 %v2199_v60  ;;  %v6484_v16 = vunpack.i.l.bf16 %v16414_v30  ;;  %v16426_v12 = vld [vmem:[#allocation29_spill] sm:$0xff]  ;;  %v11312_v27 = vsel %vm625_vm7, %v6275_v59, %v6345_v26  ;;  %v16429_v32 = vld [vmem:[#allocation31_spill] sm:$0xff] }
 0x487   : > { %2977 = vperm.xlu0 %6209, %v4919_v17   ;;  %5112 = vmatpush1.bf16.msra.mxu0 %v16386_v46  ;;  %v16415_v46 = vld [vmem:[#allocation32_spill] sm:$0xff] }
 0x488   : > { %5114 = vmatprep.subr.bf16.mxu0 %v5113_v18  ;;  %2325 = vmatmul.mubr.f32.gmra.mrb[14].mxu0 %v2198_v21  ;;  %v6274_v18 = vunpack.i.l.bf16 %v16413_v2  ;;  %v16417_v54 = vpack.c.bf16 %v16415_v46, %v16416_v42  ;;  %v16435_v46 = vld [vmem:[#allocation38_spill] sm:$0xff] }
 0x489   : > { %5312 = vmatpush1.bf16.msra.mxu1 %v5311_v61  ;;  %2226 = vperm.xlu1 %6210, %v2208_v62   ;;  %v11256_v24 = vpop.permute.xlu1 %6992  ;;  %v11261_v44 = vpop.permute.xlu0 %6707  ;;  %v16418_v61 = vld [vmem:[#allocation55_spill] sm:$0xff] }
 0x48a   : > { %5314 = vmatprep.subr.bf16.mxu1 %v16393_v50  ;;  %2680 = vmatprep.mubr.f32.mxu1 %v2199_v60  ;;  %v16409_v60 = vld [vmem:[#allocation152_spill] sm:$0xff]  ;;  %v6280_v57 = vunpack.i.h.bf16 %v16418_v61  ;;  %v6279_v56 = vunpack.i.l.bf16 %v16418_v61  ;;  %v16421_v50 = vld [vmem:[#allocation22_spill] sm:$0xff]  ;;  %v11308_v20 = vsel %vm625_vm7, %v6274_v18, %v6344_v8 }
 0x48b   : > { %5116 = vmatpush1.bf16.msra.mxu0 %v5115_v48  ;;  %2681 = vmatmul.mubr.f32.gmra.mrb[14].mxu1 %v2198_v21  ;;  %v6349_v17 = vunpack.i.l.bf16 %v16409_v60  ;;  %v16410_v21 = vld [vmem:[#allocation103_spill] sm:$0xff]  ;;  %v6350_v62 = vunpack.i.h.bf16 %v16409_v60  ;;  %v6485_v48 = vunpack.i.h.bf16 %v16414_v30  ;;  %v16422_v58 = vpack.c.bf16 %v16420_v40, %v16421_v50  ;;  %v16430_v60 = vld [vmem:[#allocation26_spill] sm:$0xff]  ;;  %v16434_v30 = vld [vmem:[#allocation40_spill] sm:$0xff] }
 0x48c   : > { %5118 = vmatprep.subr.bf16.mxu0 %v16398_v36  ;;  %2395 = vmatprep.mubr.f32.mxu0 %v2180_v15  ;;  %v16412_v7 = vpack.c.bf16 %v16410_v21, %v16411_v13  ;;  %v16424_v36 = vld [vmem:[#allocation57_spill] sm:$0xff]  ;;  %v16431_v21 = vpack.c.bf16 %v16429_v32, %v16430_v60  ;;  %v16436_v42 = vpack.c.bf16 %v16434_v30, %v16435_v46 }
 0x48d   : > { %5316 = vmatpush1.bf16.msra.mxu1 %v5315_v41  ;;  %2751 = vmatprep.mubr.f32.mxu1 %v2180_v15  ;;  %v11269_v52 = vpop.permute.xlu1 %6997  ;;  %v11280_v39 = vpop.permute.xlu0 %6712  ;;  %v16419_v15 = vld [vmem:[#allocation154_spill] sm:$0xff]  ;;  %v16423_v41 = vld [vmem:[#allocation56_spill] sm:$0xff]  ;;  %v6420_v23 = vunpack.i.h.bf16 %v16424_v36  ;;  %v11340_v61 = vsel %vm625_vm7, %v6345_v26, %v6280_v57  ;;  %v16439_v50 = vld [vmem:[#allocation33_spill] sm:$0xff]  ;;  %v11361_v26 = vsel %vm625_vm7, %v6350_v62, %v6275_v59  ;;  %v15669_v59 = vunpack.i.h.bf16 %v10981_v33 }
 0x48e   : > { %5318 = vmatprep.subr.bf16.mxu1 %v16401_v3  ;;  %v6489_v34 = vunpack.i.l.bf16 %v16419_v15  ;;  %v6415_v45 = vunpack.i.h.bf16 %v16423_v41  ;;  %v6414_v6 = vunpack.i.l.bf16 %v16423_v41  ;;  %v6490_v19 = vunpack.i.h.bf16 %v16419_v15  ;;  %v16425_v3 = vld [vmem:[#allocation36_spill] sm:$0xff]  ;;  %v16469_v30 = vld [vmem:[#allocation73_spill] sm:$0xff] }
 0x48f   : > { %5120 = vmatpush1.bf16.msra.mxu0 %v16404_v55  ;;  %v16427_v37 = vpack.c.bf16 %v16425_v3, %v16426_v12  ;;  %v6419_v55 = vunpack.i.l.bf16 %v16424_v36  ;;  %v16443_v3 = vld [vmem:[#allocation94_spill] sm:$0xff]  ;;  %v16444_v12 = vld [vmem:[#allocation93_spill] sm:$0xff] }
 0x490   : > { %5122 = vmatprep.subr.bf16.mxu0 %v16407_v47  ;;  %v11316_v47 = vsel %vm625_vm7, %v6279_v56, %v6349_v17  ;;  %v11329_v2 = vsel %vm625_vm7, %v6414_v6, %v6484_v16  ;;  %v11344_v15 = vsel %vm625_vm7, %v6415_v45, %v6485_v48  ;;  %v11389_v46 = vsel %vm625_vm7, %v6489_v34, %v6414_v6 }
 0x491   : > { %5320 = vmatpush1.bf16.msra.mxu1 %v16412_v7  ;;  %v11296_v38 = vpop.permute.xlu1 %7002  ;;  %16428 = vst [vmem:[#allocation60_spill] sm:$0xff] %v11316_v47  ;;  %v11321_v13 = vpop.permute.xlu0 %6717  ;;  %v11325_v7 = vsel %vm625_vm7, %v6280_v57, %v6350_v62  ;;  %16433 = vst [vmem:[#allocation156_spill] sm:$0xff] %v11329_v2  ;;  %v11348_v40 = vsel %vm625_vm7, %v6419_v55, %v6489_v34  ;;  %v11365_v57 = vsel %vm625_vm7, %v6420_v23, %v6490_v19  ;;  %v16449_v62 = vld [vmem:[#allocation37_spill] sm:$0xff] }
 0x492   : > { %5322 = vmatprep.subr.bf16.mxu1 %v16417_v54  ;;  %16432 = vst [vmem:[#allocation141_spill] sm:$0xff] %v11325_v7  ;;  %v11336_v54 = vsel %vm625_vm7, %v6344_v8, %v6279_v56  ;;  %16437 = vst [vmem:[#allocation66_spill] sm:$0xff] %v11344_v15  ;;  %v11357_v8 = vsel %vm625_vm7, %v6349_v17, %v6274_v18  ;;  %v15667_v56 = vunpack.i.l.bf16 %v10981_v33  ;;  %v16448_v18 = vld [vmem:[#allocation39_spill] sm:$0xff]  ;;  %v15670_v6 = vunpack.i.h.bf16 %v10897_v28 }
 0x493   : > { %5124 = vmatpush1.bf16.msra.mxu0 %v16422_v58  ;;  %16438 = vst [vmem:[#allocation69_spill] sm:$0xff] %v11348_v40  ;;  %v16440_v58 = vld [vmem:[#allocation28_spill] sm:$0xff]  ;;  %16442 = vst [vmem:[#allocation82_spill] sm:$0xff] %v11365_v57  ;;  %v11373_v32 = vsel %vm625_vm7, %v6484_v16, %v6419_v55  ;;  %v11377_v17 = vsel %vm625_vm7, %v6485_v48, %v6420_v23  ;;  %v16450_v60 = vpack.c.bf16 %v16448_v18, %v16449_v62  ;;  %v16453_v23 = vld [vmem:[#allocation126_spill] sm:$0xff] }
 0x494   : > { %5126 = vmatprep.subr.bf16.mxu0 %v16427_v37  ;;  %v16441_v41 = vpack.c.bf16 %v16439_v50, %v16440_v58  ;;  %v16445_v37 = vpack.c.bf16 %v16443_v3, %v16444_v12  ;;  %16446 = vst [vmem:[#allocation65_spill] sm:$0xff] %v11373_v32  ;;  %16447 = vst [vmem:[#allocation87_spill] sm:$0xff] %v11377_v17  ;;  %v11393_v16 = vsel %vm625_vm7, %v6490_v19, %v6415_v45  ;;  %v16454_v55 = vld [vmem:[#allocation123_spill] sm:$0xff]  ;;  %v16466_v18 = vld [vmem:[#allocation136_spill] sm:$0xff] }
 0x495   : > { %5324 = vmatpush1.bf16.msra.mxu1 %v16431_v21  ;;  %v11353_v36 = vpop.permute.xlu1 %7007  ;;  %v11383_v21 = vpop.permute.xlu0 %6722  ;;  %16451 = vst [vmem:[#allocation72_spill] sm:$0xff] %v11389_v46  ;;  %16452 = vst [vmem:[#allocation89_spill] sm:$0xff] %v11393_v16  ;;  %v15668_v48 = vunpack.i.l.bf16 %v10897_v28  ;;  %v6680_v45 = vunpack.i.h.bf16 %v11143_v10  ;;  %v6679_v19 = vunpack.i.l.bf16 %v11143_v10  ;;  %v16457_v3 = vld [vmem:[#allocation67_spill] sm:$0xff]  ;;  %v16468_v50 = vld [vmem:[#allocation74_spill] sm:$0xff]  ;;  %v6684_v34 = vunpack.i.l.bf16 %v11177_v14 }
 0x496   : > { %5326 = vmatprep.subr.bf16.mxu1 %v16436_v42  ;;  %v16455_v42 = vpack.c.bf16 %v16453_v23, %v16454_v55  ;;  %v16460_v23 = vld [vmem:[#allocation107_spill] sm:$0xff]  ;;  %v16470_v55 = vpack.c.bf16 %v16468_v50, %v16469_v30  ;;  %v6720_v30 = vunpack.i.h.bf16 %v11321_v13  ;;  %v6719_v50 = vunpack.i.l.bf16 %v11321_v13 }
 0x497   : > { %5128 = vmatpush1.bf16.msra.mxu0 %v16441_v41  ;;  %v16456_v41 = vld [vmem:[#allocation68_spill] sm:$0xff]  ;;  %v11421_v62 = vsel %vm686_vm8, %v15668_v48, %v15667_v56  ;;  %v16463_v56 = vld [vmem:[#allocation114_spill] sm:$0xff]  ;;  %v6985_v2 = vunpack.i.h.bf16 %v11228_v0  ;;  %v7005_v13 = vunpack.i.h.bf16 %v11296_v38  ;;  %v16490_v46 = vld [vmem:[#allocation119_spill] sm:$0xff] }
 0x498   : > { %5130 = vmatprep.subr.bf16.mxu0 %v16445_v37  ;;  %v16458_v12 = vpack.c.bf16 %v16456_v41, %v16457_v3  ;;  %v11438_v3 = vsel %vm686_vm8, %v15670_v6, %v15669_v59  ;;  %v16465_v6 = vld [vmem:[#allocation137_spill] sm:$0xff] }
 0x499   : > { %5328 = vmatpush1.bf16.msra.mxu1 %v16450_v60  ;;  %v11411_v37 = vpop.permute.xlu1 %7012  ;;  %v16459_v60 = vld [vmem:[#allocation108_spill] sm:$0xff]  ;;  %v16467_v58 = vpack.c.bf16 %v16465_v6, %v16466_v18  ;;  %v6965_v6 = vunpack.i.h.bf16 %v11132_v22  ;;  %v16472_v41 = vld [vmem:[#allocation109_spill] sm:$0xff]  ;;  %v1880_v17 = vsel %vm625_vm7, %v6985_v2, %v7005_v13 }
 0x49a   : > { %5330 = vmatprep.subr.bf16.mxu1 %v16455_v42  ;;  %v16461_v10 = vpack.c.bf16 %v16459_v60, %v16460_v23  ;;  %v6659_v60 = vunpack.i.l.bf16 %v11005_v31  ;;  %v11446_v42 = vpop.permute.xlu0 %6727  ;;  %v16471_v23 = vld [vmem:[#allocation110_spill] sm:$0xff] }
 0x49b   : > { %5132 = vmatpush1.bf16.msra.mxu0 %v16458_v12  ;;  %v6660_v12 = vunpack.i.h.bf16 %v11005_v31  ;;  %v16473_v33 = vpack.c.bf16 %v16471_v23, %v16472_v41  ;;  %v16477_v41 = vld [vmem:[#allocation129_spill] sm:$0xff] }
 0x49c   : > { %5134 = vmatprep.subr.bf16.mxu0 %v16461_v10  ;;  %v16462_v10 = vld [vmem:[#allocation115_spill] sm:$0xff]  ;;  %v11457_v31 = vsel %vm625_vm7, %v6659_v60, %v6679_v19 }
 0x49d   : > { %v16464_v48 = vpack.c.bf16 %v16462_v10, %v16463_v56  ;;  %v11461_v56 = vsel %vm625_vm7, %v6660_v12, %v6680_v45  ;;  %v6699_v10 = vunpack.i.l.bf16 %v11230_v49  ;;  %v11468_v59 = vpop.permute.xlu1 %7017 }
 0x49e   : > { %v11484_v57 = vpop.permute.xlu0 %6732  ;;  %v5147_v28 = vpack.c.bf16 %v11461_v56, %v11457_v31  ;;  %v16484_v56 = vunpack.i.h.bf16 %v11177_v14 }
 0x49f   : > { %5332 = vmatpush1.bf16.msra.mxu1 %v16464_v48  ;;  %v6700_v48 = vunpack.i.h.bf16 %v11230_v49  ;;  %5136 = vmatpush1.bf16.msra.mxu0 %v16470_v55  ;;  %v6964_v49 = vunpack.i.l.bf16 %v11132_v22  ;;  %v16474_v55 = vld [vmem:[#allocation117_spill] sm:$0xff]  ;;  %v16478_v22 = vld [vmem:[#allocation128_spill] sm:$0xff]  ;;  %v1877_v63 = vsel %vm625_vm7, %v6679_v19, %v6699_v10  ;;  %v16496_v19 = vld [vmem:[#allocation98_spill] sm:$0xff] }
 0x4a0   : > { %5334 = vmatprep.subr.bf16.mxu1 %v16467_v58  ;;  %5138 = vmatprep.subr.bf16.mxu0 %v16473_v33  ;;  %v16475_v58 = vld [vmem:[#allocation116_spill] sm:$0xff]  ;;  %v6984_v33 = vunpack.i.l.bf16 %v11228_v0  ;;  %v16479_v23 = vpack.c.bf16 %v16477_v41, %v16478_v22  ;;  %v16483_v41 = vunpack.i.l.bf16 %v11037_v1 }
 0x4a1   : > { %v16476_v40 = vpack.c.bf16 %v16474_v55, %v16475_v58  ;;  %v7004_v58 = vunpack.i.l.bf16 %v11296_v38  ;;  %v16481_v55 = vld [vmem:[#allocation77_spill] sm:$0xff]  ;;  %v7023_v18 = vpop.permute.xlu1 %7022  ;;  %v1878_v0 = vsel %vm625_vm7, %v6680_v45, %v6700_v48  ;;  %v16485_v38 = vunpack.i.h.bf16 %v11037_v1  ;;  %v16487_v45 = vld [vmem:[#allocation111_spill] sm:$0xff] }
 0x4a2   : > { %v11507_v31 = vsel %vm625_vm7, %v16483_v41, %v6684_v34  ;;  %v7025_v16 = vunpack.i.h.bf16 %v7023_v18  ;;  %v7024_v47 = vunpack.i.l.bf16 %v7023_v18  ;;  %v11525_v7 = vpop.permute.xlu0 %6737  ;;  %v5145_v18 = vpack.c.bf16 %v1878_v0, %v1877_v63 }
 0x4a3   : > { %5336 = vmatpush1.bf16.msra.mxu1 %v16476_v40  ;;  %v16480_v40 = vld [vmem:[#allocation78_spill] sm:$0xff]  ;;  %16492 = vst [vmem:[#allocation149_spill] sm:$0xff] %v11525_v7  ;;  %v16497_v7 = vld [vmem:[#allocation97_spill] sm:$0xff]  ;;  %v1879_v32 = vsel %vm625_vm7, %v6984_v33, %v7004_v58  ;;  %v1857_v63 = vsel %vm625_vm7, %v6699_v10, %v6719_v50 }
 0x4a4   : > { %5338 = vmatprep.subr.bf16.mxu1 %v16479_v23  ;;  %v16482_v15 = vpack.c.bf16 %v16480_v40, %v16481_v55  ;;  %v16486_v23 = vld [vmem:[#allocation112_spill] sm:$0xff]  ;;  %v1920_v10 = vsel %vm625_vm7, %v7025_v16, %v6965_v6 }
 0x4a5   : > { %v16488_v40 = vpack.c.bf16 %v16486_v23, %v16487_v45  ;;  %v16489_v55 = vld [vmem:[#allocation120_spill] sm:$0xff]  ;;  %v1899_v23 = vsel %vm625_vm7, %v6964_v49, %v6984_v33  ;;  %v6704_v45 = vunpack.i.l.bf16 %v11247_v29  ;;  %v11544_v22 = vpop.permute.xlu1 %7027 }
 0x4a6   : > { %5140 = vmatpush1.bf16.msra.mxu0 %v16482_v15  ;;  %v11515_v15 = vsel %vm625_vm7, %v16485_v38, %v16484_v56  ;;  %v16491_v41 = vpack.c.bf16 %v16489_v55, %v16490_v46  ;;  %v1917_v56 = vsel %vm625_vm7, %v6719_v50, %v6659_v60  ;;  %v1918_v38 = vsel %vm625_vm7, %v6720_v30, %v6660_v12  ;;  %v16494_v46 = vld [vmem:[#allocation139_spill] sm:$0xff] }
 0x4a7   : > { %5142 = vmatprep.subr.bf16.mxu0 %v16488_v40  ;;  %v16493_v40 = vld [vmem:[#allocation140_spill] sm:$0xff]  ;;  %v6705_v60 = vunpack.i.h.bf16 %v11247_v29  ;;  %v16498_v12 = vpack.c.bf16 %v16496_v19, %v16497_v7  ;;  %v1858_v29 = vsel %vm625_vm7, %v6700_v48, %v6720_v30  ;;  %v5345_v0 = vpack.c.bf16 %v1918_v38, %v1917_v56 }
 0x4a8   : > { %5340 = vmatpush1.bf16.msra.mxu1 %v16491_v41  ;;  %v16495_v55 = vpack.c.bf16 %v16493_v40, %v16494_v46  ;;  %v1900_v41 = vsel %vm625_vm7, %v6965_v6, %v6985_v2  ;;  %v6689_v40 = vunpack.i.l.bf16 %v11202_v25  ;;  %v6725_v7 = vunpack.i.h.bf16 %v11383_v21  ;;  %v16499_v46 = vld [vmem:[#allocation125_spill] sm:$0xff] }
 0x4a9   : > { %v6724_v19 = vunpack.i.l.bf16 %v11383_v21  ;;  %v1919_v2 = vsel %vm625_vm7, %v7024_v47, %v6964_v49  ;;  %v6990_v48 = vunpack.i.h.bf16 %v11245_v43  ;;  %v5149_v30 = vpack.c.bf16 %v1880_v17, %v1879_v32 }
 0x4aa   : > { %5342 = vmatprep.subr.bf16.mxu1 %v16495_v55  ;;  %5144 = vmatpush1.bf16.msra.mxu0 %v16498_v12  ;;  %v16500_v55 = vld [vmem:[#allocation124_spill] sm:$0xff]  ;;  %v11560_v12 = vpop.permute.xlu0 %6742  ;;  %v5151_v50 = vpack.c.bf16 %v1900_v41, %v1899_v23  ;;  %v1881_v21 = vsel %vm625_vm7, %v6684_v34, %v6704_v45  ;;  %v7010_v56 = vunpack.i.h.bf16 %v11353_v36  ;;  %v7009_v38 = vunpack.i.l.bf16 %v11353_v36 }
 0x4ab   : > { %5146 = vmatprep.subr.bf16.mxu0 %v5145_v18  ;;  %v16501_v33 = vpack.c.bf16 %v16499_v46, %v16500_v55  ;;  %v5347_v18 = vpack.c.bf16 %v1858_v29, %v1857_v63  ;;  %v11571_v46 = vpop.permute.xlu1 %7032  ;;  %v16502_v49 = vunpack.i.h.bf16 %v11177_v14  ;;  %v1859_v32 = vsel %vm625_vm7, %v7004_v58, %v7024_v47 }
 0x4ac   : > { %v1860_v17 = vsel %vm625_vm7, %v7005_v13, %v7025_v16  ;;  %v5349_v34 = vpack.c.bf16 %v1920_v10, %v1919_v2  ;;  %v7029_v36 = vunpack.i.l.bf16 %v11544_v22  ;;  %v16503_v14 = vunpack.i.l.bf16 %v11037_v1  ;;  %v2179_v10 = vld [vmem:[#allocation9 + $0x10] sm:$0xff] }
 0x4ad   : > { %5344 = vmatpush1.bf16.msra.mxu1 %v16501_v33  ;;  %v1882_v6 = vsel %vm625_vm7, %v16502_v49, %v6705_v60  ;;  %v16504_v41 = vunpack.i.h.bf16 %v11037_v1  ;;  %v16505_v16 = vunpack.i.l.bf16 %v11073_v4  ;;  %v16506_v58 = vunpack.i.h.bf16 %v11202_v25 }
 0x4ae   : > { %5346 = vmatprep.subr.bf16.mxu1 %v5345_v0  ;;  %5148 = vmatpush1.bf16.msra.mxu0 %v5147_v28  ;;  %v6989_v0 = vunpack.i.l.bf16 %v11245_v43  ;;  %v7030_v28 = vunpack.i.h.bf16 %v11544_v22  ;;  %v11584_v23 = vpop.permute.xlu0 %6897  ;;  %v1921_v43 = vsel %vm625_vm7, %v6724_v19, %v16503_v14  ;;  %v16507_v22 = vunpack.i.h.bf16 %v11073_v4 }
 0x4af   : > { %5150 = vmatprep.subr.bf16.mxu0 %v5149_v30  ;;  %v1922_v47 = vsel %vm625_vm7, %v6725_v7, %v16504_v41  ;;  %v11600_v13 = vsel %vm625_vm7, %v16505_v16, %v6689_v40  ;;  %v5153_v1 = vpack.c.bf16 %v1882_v6, %v1881_v21  ;;  %v5155_v29 = vpack.c.bf16 %v11515_v15, %v11507_v31  ;;  %v11613_v2 = vpop.permute.xlu1 %7037 }
 0x4b0   : > { %v11608_v63 = vsel %vm625_vm7, %v16507_v22, %v16506_v58  ;;  %v15687_v55 = vunpack.i.h.bf16 %v11208_v35  ;;  %v5351_v33 = vpack.c.bf16 %v1860_v17, %v1859_v32  ;;  %v1883_v30 = vsel %vm625_vm7, %v6989_v0, %v7009_v38 }
 0x4b1   : > { %5348 = vmatpush1.bf16.msra.mxu1 %v5347_v18  ;;  %v1884_v18 = vsel %vm625_vm7, %v6990_v48, %v7010_v56  ;;  %v6695_v49 = vunpack.i.h.bf16 %v11215_v51  ;;  %v1861_v21 = vsel %vm625_vm7, %v6704_v45, %v6724_v19  ;;  %v1862_v31 = vsel %vm625_vm7, %v6705_v60, %v6725_v7 }
 0x4b2   : > { %5350 = vmatprep.subr.bf16.mxu1 %v5349_v34  ;;  %5152 = vmatpush1.bf16.msra.mxu0 %v5151_v50  ;;  %v5353_v15 = vpack.c.bf16 %v1922_v47, %v1921_v43  ;;  %v2187_v50 = vld [vmem:[#allocation9 + $0x50] sm:$0xff]  ;;  %v6694_v6 = vunpack.i.l.bf16 %v11215_v51  ;;  %v16508_v32 = vunpack.i.l.bf16 %v11163_v53  ;;  %v11629_v34 = vpop.permute.xlu0 %6902  ;;  %v16510_v60 = vunpack.i.h.bf16 %v11163_v53  ;;  %v2186_v53 = vld [vmem:[#allocation9 + $0x48] sm:$0xff] }
 0x4b3   : > { %5154 = vmatprep.subr.bf16.mxu0 %v5153_v1  ;;  %v6994_v41 = vunpack.i.l.bf16 %v11256_v24  ;;  %v5157_v47 = vpack.c.bf16 %v1884_v18, %v1883_v30  ;;  %v6710_v16 = vunpack.i.h.bf16 %v11261_v44  ;;  %v6709_v58 = vunpack.i.l.bf16 %v11261_v44 }
 0x4b4   : > { %v1903_v17 = vsel %vm625_vm7, %v16508_v32, %v6989_v0  ;;  %v16509_v14 = vmov %v16508_v32  ;;  %v1924_v7 = vsel %vm625_vm7, %v7030_v28, %v16510_v60  ;;  %v16511_v19 = vmov %v16510_v60 }
 0x4b5   : > { %5352 = vmatpush1.bf16.msra.mxu1 %v5351_v33  ;;  %v1923_v45 = vsel %vm625_vm7, %v7029_v36, %v16509_v14  ;;  %v1904_v43 = vsel %vm625_vm7, %v16511_v19, %v6990_v48  ;;  %v6995_v0 = vunpack.i.h.bf16 %v11256_v24  ;;  %2396 = vmatmul.mubr.f32.vlgmr.msra.gmra.mrb[8].mxu0 %v2179_v10  ;;  %v7000_v22 = vunpack.i.h.bf16 %v11269_v52  ;;  %v11648_v33 = vpop.permute.xlu1 %7042  ;;  %v16526_v19 = vld [vmem:[#allocation141_spill] sm:$0xff] }
 0x4b6   : > { %5354 = vmatprep.subr.bf16.mxu1 %v5353_v15  ;;  %5156 = vmatpush1.bf16.msra.mxu0 %v5155_v29  ;;  %v5355_v1 = vpack.c.bf16 %v1862_v31, %v1861_v21  ;;  %v6999_v48 = vunpack.i.l.bf16 %v11269_v52  ;;  %v1863_v32 = vsel %vm625_vm7, %v7009_v38, %v7029_v36  ;;  %v1864_v30 = vsel %vm625_vm7, %v7010_v56, %v7030_v28  ;;  %v2194_v15 = vld [vmem:[#allocation9 + $0x88] sm:$0xff]  ;;  %v11672_v28 = vpop.permute.xlu0 %6907 }
 0x4b7   : > { %2401 = vmatprep.mubr.f32.mxu0 %v2187_v50  ;;  %5158 = vmatprep.subr.bf16.mxu0 %v5157_v47  ;;  %v5357_v18 = vpack.c.bf16 %v1924_v7, %v1923_v45  ;;  %v15688_v14 = vunpack.i.l.bf16 %v11208_v35  ;;  %v16512_v29 = vunpack.i.l.bf16 %v11110_v5  ;;  %v16513_v38 = vunpack.i.h.bf16 %v11110_v5 }
 0x4b8   : > { %2752 = vmatmul.mubr.f32.vlgmr.msra.gmra.mrb[8].mxu1 %v2179_v10  ;;  %v5159_v36 = vpack.c.bf16 %v1904_v43, %v1903_v17  ;;  %v16514_v10 = vunpack.i.l.bf16 %v11193_v11  ;;  %v16515_v45 = vunpack.i.h.bf16 %v11193_v11  ;;  %v15689_v7 = vunpack.i.h.bf16 %v11280_v39  ;;  %v16516_v17 = vld [vmem:[#allocation35_spill] sm:$0xff] }
 0x4b9   : > { %v11662_v21 = vsel %vm625_vm7, %v16512_v29, %v6694_v6  ;;  %v11670_v56 = vsel %vm625_vm7, %v16513_v38, %v6695_v49  ;;  %5356 = vmatpush1.bf16.msra.mxu1 %v5355_v1  ;;  %2757 = vmatprep.mubr.f32.mxu1 %v2187_v50  ;;  %v6714_v50 = vunpack.i.l.bf16 %v11280_v39  ;;  %v5359_v43 = vpack.c.bf16 %v1864_v30, %v1863_v32  ;;  %v11693_v47 = vpop.permute.xlu1 %7047  ;;  %v2193_v38 = vld [vmem:[#allocation9 + $0x80] sm:$0xff] }
 0x4ba   : > { %v11680_v31 = vsel %vm625_vm7, %v16514_v10, %v6994_v41  ;;  %v11688_v60 = vsel %vm625_vm7, %v16515_v45, %v6995_v0  ;;  %5358 = vmatprep.subr.bf16.mxu1 %v5357_v18  ;;  %2402 = vmatmul.mubr.f32.gmra.mrb[10].mxu0 %v2186_v53  ;;  %v11701_v1 = vsel %vm625_vm7, %v6689_v40, %v6709_v58  ;;  %v16517_v29 = vunpack.i.h.bf16 %v11202_v25  ;;  %v2201_v10 = vld [vmem:[#allocation9 + $0xc0] sm:$0xff] }
 0x4bb   : > { %5160 = vmatpush1.bf16.msra.mxu0 %v5159_v36  ;;  %2407 = vmatprep.mubr.f32.mxu0 %v2194_v15  ;;  %v11715_v32 = vsel %vm625_vm7, %v15688_v14, %v6999_v48  ;;  %v11723_v25 = vsel %vm625_vm7, %v15687_v55, %v7000_v22  ;;  %v6730_v40 = vunpack.i.h.bf16 %v11446_v42  ;;  %v6729_v30 = vunpack.i.l.bf16 %v11446_v42  ;;  %v2200_v42 = vld [vmem:[#allocation9 + $0xb8] sm:$0xff]  ;;  %v16521_v14 = vld [vmem:[#allocation87_spill] sm:$0xff] }
 0x4bc   : > { %v1890_v18 = vsel %vm625_vm7, %v16517_v29, %v6710_v16  ;;  %v16518_v36 = vpack.c.bf16 %v11340_v61, %v11336_v54  ;;  %2758 = vmatmul.mubr.f32.gmra.mrb[10].mxu1 %v2186_v53  ;;  %v7014_v45 = vunpack.i.l.bf16 %v11411_v37  ;;  %v11731_v29 = vpop.permute.xlu0 %6912  ;;  %v7015_v54 = vunpack.i.h.bf16 %v11411_v37  ;;  %v16522_v53 = vld [vmem:[#allocation65_spill] sm:$0xff] }
 0x4bd   : > { %5360 = vmatpush1.bf16.msra.mxu1 %v5359_v43  ;;  %2763 = vmatprep.mubr.f32.mxu1 %v2194_v15  ;;  %v16519_v61 = vpack.c.bf16 %v11361_v26, %v11357_v8  ;;  %v11751_v43 = vsel %vm625_vm7, %v6694_v6, %v6714_v50  ;;  %v11759_v15 = vsel %vm625_vm7, %v6695_v49, %v15689_v7  ;;  %v7020_v8 = vunpack.i.h.bf16 %v11468_v59  ;;  %v16527_v7 = vld [vmem:[#allocation60_spill] sm:$0xff] }
 0x4be   : > { %5162 = vmatprep.subr.bf16.mxu0 %v16518_v36  ;;  %2408 = vmatmul.mubr.f32.gmra.mrb[12].mxu0 %v2193_v38  ;;  %v7019_v26 = vunpack.i.l.bf16 %v11468_v59  ;;  %v16520_v36 = vpack.c.bf16 %v11312_v27, %v11308_v20  ;;  %v5169_v6 = vpack.c.bf16 %v1890_v18, %v11701_v1  ;;  %v6735_v49 = vunpack.i.h.bf16 %v11484_v57 }
 0x4bf   : > { %5362 = vmatprep.subr.bf16.mxu1 %v16519_v61  ;;  %v11766_v61 = vpop.permute.xlu1 %7052  ;;  %2413 = vmatprep.mubr.f32.mxu0 %v2201_v10  ;;  %v6734_v55 = vunpack.i.l.bf16 %v11484_v57  ;;  %v16523_v59 = vpack.c.bf16 %v16521_v14, %v16522_v53  ;;  %v16524_v20 = vunpack.i.l.bf16 %v11073_v4  ;;  %v16525_v1 = vunpack.i.h.bf16 %v11073_v4 }
 0x4c0   : > { %5164 = vmatpush1.bf16.msra.mxu0 %v16520_v36  ;;  %2764 = vmatmul.mubr.f32.gmra.mrb[12].mxu1 %v2193_v38  ;;  %v2182_v36 = vld [vmem:[#allocation9 + $0x28] sm:$0xff]  ;;  %v7035_v51 = vunpack.i.h.bf16 %v11571_v46  ;;  %v7034_v57 = vunpack.i.l.bf16 %v11571_v46  ;;  %v16528_v14 = vpack.c.bf16 %v16526_v19, %v16527_v7  ;;  %v11789_v53 = vpop.permute.xlu0 %6917  ;;  %v1891_v4 = vsel %vm625_vm7, %v6994_v41, %v7014_v45  ;;  %v16529_v19 = vld [vmem:[#allocation89_spill] sm:$0xff]  ;;  %v16534_v38 = vld [vmem:[#allocation156_spill] sm:$0xff] }
 0x4c1   : > { %5166 = vmatprep.subr.bf16.mxu0 %v16523_v59  ;;  %v1929_v27 = vsel %vm625_vm7, %v6729_v30, %v16524_v20  ;;  %v1930_v18 = vsel %vm625_vm7, %v6730_v40, %v16525_v1  ;;  %2769 = vmatprep.mubr.f32.mxu1 %v2201_v10  ;;  %v1869_v46 = vsel %vm625_vm7, %v6709_v58, %v6729_v30  ;;  %v16530_v20 = vld [vmem:[#allocation72_spill] sm:$0xff]  ;;  %v16533_v59 = vld [vmem:[#allocation66_spill] sm:$0xff]  ;;  %v7039_v52 = vunpack.i.l.bf16 %v11613_v2 }
 0x4c2   : > { %5364 = vmatpush1.bf16.msra.mxu1 %v16528_v14  ;;  %v1870_v7 = vsel %vm625_vm7, %v6710_v16, %v6730_v40  ;;  %v16531_v1 = vpack.c.bf16 %v16529_v19, %v16530_v20  ;;  %v1892_v41 = vsel %vm625_vm7, %v6995_v0, %v7015_v54  ;;  %2414 = vmatmul.mubr.f32.gmra.mrb[14].mxu0 %v2200_v42  ;;  %v16532_v10 = vld [vmem:[#allocation48_spill] sm:$0xff]  ;;  %v16536_v40 = vunpack.i.h.bf16 %v11280_v39 }
 0x4c3   : > { %v6945_v14 = vunpack.i.h.bf16 %v16532_v10  ;;  %v16535_v58 = vpack.c.bf16 %v16533_v59, %v16534_v38  ;;  %v11819_v44 = vpop.permute.xlu1 %7057  ;;  %v5369_v30 = vpack.c.bf16 %v1930_v18, %v1929_v27  ;;  %v11825_v16 = vsel %vm625_vm7, %v6999_v48, %v7019_v26  ;;  %2484 = vmatprep.mubr.f32.mxu0 %v2182_v36  ;;  %v16537_v18 = vld [vmem:[#allocation82_spill] sm:$0xff]  ;;  %v16538_v38 = vld [vmem:[#allocation69_spill] sm:$0xff] }
 0x4c4   : > { %5366 = vmatprep.subr.bf16.mxu1 %v16531_v1  ;;  %v11831_v24 = vsel %vm625_vm7, %v7000_v22, %v7020_v8  ;;  %v11837_v0 = vsel %vm625_vm7, %v6714_v50, %v6734_v55  ;;  %v11843_v27 = vsel %vm625_vm7, %v16536_v40, %v6735_v49  ;;  %v7040_v48 = vunpack.i.h.bf16 %v11613_v2  ;;  %2770 = vmatmul.mubr.f32.gmra.mrb[14].mxu1 %v2200_v42  ;;  %v11851_v50 = vpop.permute.xlu0 %6932 }
 0x4c5   : > { %5168 = vmatpush1.bf16.msra.mxu0 %v16535_v58  ;;  %v6944_v22 = vunpack.i.l.bf16 %v16532_v10  ;;  %v16539_v59 = vpack.c.bf16 %v16537_v18, %v16538_v38  ;;  %v5173_v19 = vpack.c.bf16 %v1892_v41, %v1891_v4  ;;  %v16540_v39 = vunpack.i.l.bf16 %v11193_v11  ;;  %2840 = vmatprep.mubr.f32.mxu1 %v2182_v36 }
 0x4c6   : > { %5170 = vmatprep.subr.bf16.mxu0 %v5169_v6  ;;  %v16541_v1 = vunpack.i.h.bf16 %v11193_v11  ;;  %v5371_v42 = vpack.c.bf16 %v1870_v7, %v1869_v46  ;;  %v16542_v6 = vunpack.i.l.bf16 %v11110_v5  ;;  %v16543_v4 = vunpack.i.h.bf16 %v11110_v5  ;;  %v16544_v11 = vld [vmem:[#allocation149_spill] sm:$0xff] }
 0x4c7   : > { %5368 = vmatpush1.bf16.msra.mxu1 %v16539_v59  ;;  %v1931_v20 = vsel %vm625_vm7, %v7034_v57, %v16540_v39  ;;  %v5181_v40 = vpack.c.bf16 %v11831_v24, %v11825_v16  ;;  %v6740_v18 = vunpack.i.h.bf16 %v16544_v11  ;;  %v1871_v36 = vsel %vm625_vm7, %v7014_v45, %v7034_v57  ;;  %v11881_v5 = vpop.permute.xlu1 %7062 }
 0x4c8   : > { %v1932_v2 = vsel %vm625_vm7, %v7035_v51, %v16541_v1  ;;  %5370 = vmatprep.subr.bf16.mxu1 %v5369_v30  ;;  %v1933_v58 = vsel %vm625_vm7, %v6734_v55, %v16542_v6  ;;  %v1934_v41 = vsel %vm625_vm7, %v6735_v49, %v16543_v4  ;;  %v1872_v46 = vsel %vm625_vm7, %v7015_v54, %v7035_v51  ;;  %v11897_v57 = vpop.permute.xlu0 %6937 }
 0x4c9   : > { %v16545_v55 = vpack.c.bf16 %v11608_v63, %v11600_v13  ;;  %v5379_v49 = vpack.c.bf16 %v11843_v27, %v11837_v0  ;;  %v6739_v7 = vunpack.i.l.bf16 %v16544_v11  ;;  %v11888_v37 = vsel %vm625_vm7, %v7019_v26, %v7039_v52 }
 0x4ca   : > { %v11892_v45 = vsel %vm625_vm7, %v7020_v8, %v7040_v48  ;;  %v5373_v54 = vpack.c.bf16 %v1932_v2, %v1931_v20  ;;  %v6745_v13 = vunpack.i.h.bf16 %v11560_v12  ;;  %v6910_v63 = vunpack.i.h.bf16 %v11672_v28 }
 0x4cb   : > { %5172 = vmatpush1.bf16.msra.mxu0 %v16545_v55  ;;  %v6909_v51 = vunpack.i.l.bf16 %v11672_v28  ;;  %5372 = vmatpush1.bf16.msra.mxu1 %v5371_v42  ;;  %v5377_v30 = vpack.c.bf16 %v1934_v41, %v1933_v58  ;;  %v6744_v16 = vunpack.i.l.bf16 %v11560_v12  ;;  %v6900_v26 = vunpack.i.h.bf16 %v11584_v23  ;;  %v11906_v38 = vpop.permute.xlu1 %7067 }
 0x4cc   : > { %5174 = vmatprep.subr.bf16.mxu0 %v5173_v19  ;;  %v6899_v24 = vunpack.i.l.bf16 %v11584_v23  ;;  %5374 = vmatprep.subr.bf16.mxu1 %v5373_v54  ;;  %v5375_v8 = vpack.c.bf16 %v1872_v46, %v1871_v36  ;;  %v6904_v0 = vunpack.i.l.bf16 %v11629_v34  ;;  %v16546_v27 = vpack.c.bf16 %v11688_v60, %v11680_v31 }
 0x4cd   : > { %v16547_v28 = vunpack.i.l.bf16 %v11208_v35  ;;  %v16548_v19 = vunpack.i.h.bf16 %v11208_v35  ;;  %v5383_v20 = vpack.c.bf16 %v11892_v45, %v11888_v37  ;;  %v7045_v1 = vunpack.i.h.bf16 %v11648_v33 }
 0x4ce   : > { %v7044_v31 = vunpack.i.l.bf16 %v11648_v33  ;;  %v6915_v60 = vunpack.i.h.bf16 %v11731_v29  ;;  %v6914_v2 = vunpack.i.l.bf16 %v11731_v29  ;;  %v16549_v42 = vpack.c.bf16 %v11759_v15, %v11751_v43 }
 0x4cf   : > { %5176 = vmatpush1.bf16.msra.mxu0 %v16546_v27  ;;  %v1935_v59 = vsel %vm625_vm7, %v7039_v52, %v16547_v28  ;;  %v1936_v39 = vsel %vm625_vm7, %v7040_v48, %v16548_v19  ;;  %v2137_v35 = vsel %vm686_vm8, %v6739_v7, %v6909_v51  ;;  %v2138_v48 = vsel %vm686_vm8, %v6740_v18, %v6910_v63  ;;  %v6948_v52 = vpop.permute.xlu0 %6947  ;;  %v11945_v55 = vpop.permute.xlu1 %7072 }
 0x4d0   : > { %5178 = vmatprep.subr.bf16.mxu0 %v16549_v42  ;;  %5376 = vmatpush1.bf16.msra.mxu1 %v5375_v8  ;;  %v2117_v33 = vsel %vm686_vm8, %v6909_v51, %v6944_v22  ;;  %v2118_v6 = vsel %vm686_vm8, %v6910_v63, %v6945_v14  ;;  %v7065_v43 = vunpack.i.h.bf16 %v11881_v5  ;;  %v7064_v15 = vunpack.i.l.bf16 %v11881_v5 }
 0x4d1   : > { %v6950_v58 = vunpack.i.h.bf16 %v6948_v52  ;;  %v6949_v4 = vunpack.i.l.bf16 %v6948_v52  ;;  %5378 = vmatprep.subr.bf16.mxu1 %v5377_v30  ;;  %v7050_v41 = vunpack.i.h.bf16 %v11693_v47  ;;  %v6920_v11 = vunpack.i.h.bf16 %v11789_v53 }
 0x4d2   : > { %v6919_v36 = vunpack.i.l.bf16 %v11789_v53  ;;  %v16550_v46 = vpack.c.bf16 %v11670_v56, %v11662_v21  ;;  %v5381_v37 = vpack.c.bf16 %v1936_v39, %v1935_v59  ;;  %v7049_v45 = vunpack.i.l.bf16 %v11693_v47 }
 0x4d3   : > { %v11954_v5 = vsel %vm686_vm8, %v6744_v16, %v6914_v2  ;;  %v11962_v21 = vsel %vm686_vm8, %v6745_v13, %v6915_v60  ;;  %v5187_v56 = vpack.c.bf16 %v2138_v48, %v2137_v35  ;;  %v7055_v54 = vunpack.i.h.bf16 %v11766_v61  ;;  %v7088_v63 = vpop.permute.xlu0 %7087  ;;  %v7078_v35 = vpop.permute.xlu1 %7077 }
 0x4d4   : > { %5180 = vmatpush1.bf16.msra.mxu0 %v16550_v46  ;;  %5380 = vmatpush1.bf16.msra.mxu1 %v5379_v49  ;;  %v5185_v51 = vpack.c.bf16 %v2118_v6, %v2117_v33  ;;  %v2157_v30 = vsel %vm686_vm8, %v6949_v4, %v6739_v7  ;;  %v2158_v8 = vsel %vm686_vm8, %v6950_v58, %v6740_v18  ;;  %v7090_v59 = vunpack.i.h.bf16 %v7088_v63 }
 0x4d5   : > { %5182 = vmatprep.subr.bf16.mxu0 %v5181_v40  ;;  %v2139_v27 = vsel %vm686_vm8, %v7044_v31, %v7064_v15  ;;  %v2140_v28 = vsel %vm686_vm8, %v7045_v1, %v7065_v43  ;;  %v7089_v40 = vunpack.i.l.bf16 %v7088_v63  ;;  %5382 = vmatprep.subr.bf16.mxu1 %v5381_v37  ;;  %v16551_v49 = vunpack.i.l.bf16 %v16516_v17 }
 0x4d6   : > { %v16552_v18 = vunpack.i.h.bf16 %v16516_v17  ;;  %v2098_v39 = vsel %vm686_vm8, %v6945_v14, %v6950_v58  ;;  %v16553_v42 = vpack.c.bf16 %v11723_v25, %v11715_v32  ;;  %v5195_v48 = vpack.c.bf16 %v11962_v21, %v11954_v5 }
 0x4d7   : > { %v11979_v19 = vsel %vm686_vm8, %v16551_v49, %v6919_v36  ;;  %v2097_v52 = vsel %vm686_vm8, %v6944_v22, %v6949_v4  ;;  %v7080_v33 = vunpack.i.h.bf16 %v7078_v35  ;;  %v7079_v6 = vunpack.i.l.bf16 %v7078_v35  ;;  %v7093_v14 = vpop.permute.xlu0 %7092 }
 0x4d8   : > { %v11987_v7 = vsel %vm686_vm8, %v16552_v18, %v6920_v11  ;;  %5184 = vmatpush1.bf16.msra.mxu0 %v16553_v42  ;;  %v5385_v46 = vpack.c.bf16 %v2158_v8, %v2157_v30  ;;  %v6935_v37 = vunpack.i.h.bf16 %v11851_v50  ;;  %5384 = vmatpush1.bf16.msra.mxu1 %v5383_v20  ;;  %v2159_v32 = vsel %vm686_vm8, %v7089_v40, %v7044_v31  ;;  %v7083_v30 = vpop.permute.xlu1 %7082 }
 0x4d9   : > { %5186 = vmatprep.subr.bf16.mxu0 %v5185_v51  ;;  %v2160_v25 = vsel %vm686_vm8, %v7090_v59, %v7045_v1  ;;  %v5191_v58 = vpack.c.bf16 %v2140_v28, %v2139_v27  ;;  %v2099_v10 = vsel %vm686_vm8, %v7079_v6, %v7089_v40  ;;  %v2100_v22 = vsel %vm686_vm8, %v7080_v33, %v7090_v59 }
 0x4da   : > { %v7095_v4 = vunpack.i.h.bf16 %v7093_v14  ;;  %v7094_v63 = vunpack.i.l.bf16 %v7093_v14  ;;  %5386 = vmatprep.subr.bf16.mxu1 %v5385_v46  ;;  %v7069_v51 = vunpack.i.l.bf16 %v11906_v38  ;;  %v5387_v20 = vpack.c.bf16 %v2098_v39, %v2097_v52 }
 0x4db   : > { %v2119_v31 = vsel %vm686_vm8, %v7064_v15, %v7079_v6  ;;  %v2120_v1 = vsel %vm686_vm8, %v7065_v43, %v7080_v33  ;;  %v7085_v8 = vunpack.i.h.bf16 %v7083_v30  ;;  %v7084_v27 = vunpack.i.l.bf16 %v7083_v30  ;;  %v7108_v49 = vpop.permute.xlu0 %7107 }
 0x4dc   : > { %5188 = vmatpush1.bf16.msra.mxu0 %v5187_v56  ;;  %v5389_v28 = vpack.c.bf16 %v2160_v25, %v2159_v32  ;;  %v5189_v40 = vpack.c.bf16 %v2120_v1, %v2119_v31  ;;  %v7070_v59 = vunpack.i.h.bf16 %v11906_v38  ;;  %5388 = vmatpush1.bf16.msra.mxu1 %v5387_v20  ;;  %v5391_v18 = vpack.c.bf16 %v2100_v22, %v2099_v10 }
 0x4dd   : > { %v2161_v56 = vsel %vm686_vm8, %v7094_v63, %v6744_v16  ;;  %v2162_v15 = vsel %vm686_vm8, %v7095_v4, %v6745_v13  ;;  %v2101_v43 = vsel %vm686_vm8, %v7084_v27, %v7094_v63  ;;  %v2102_v39 = vsel %vm686_vm8, %v7085_v8, %v7095_v4  ;;  %v7098_v16 = vpop.permute.xlu1 %7097 }
 0x4de   : > { %v7110_v38 = vunpack.i.h.bf16 %v7108_v49  ;;  %v7109_v42 = vunpack.i.l.bf16 %v7108_v49  ;;  %5390 = vmatprep.subr.bf16.mxu1 %v5389_v28  ;;  %5190 = vmatprep.subr.bf16.mxu0 %v5189_v40  ;;  %v6934_v35 = vunpack.i.l.bf16 %v11851_v50  ;;  %v2143_v12 = vsel %vm686_vm8, %v7049_v45, %v7069_v51 }
 0x4df   : > { %v2121_v13 = vsel %vm686_vm8, %v6914_v2, %v7084_v27  ;;  %v2122_v52 = vsel %vm686_vm8, %v6915_v60, %v7085_v8  ;;  %v7100_v33 = vunpack.i.h.bf16 %v7098_v16  ;;  %v7099_v6 = vunpack.i.l.bf16 %v7098_v16  ;;  %v7113_v25 = vpop.permute.xlu0 %7112 }
 0x4e0   : > { %5192 = vmatpush1.bf16.msra.mxu0 %v5191_v58  ;;  %v5393_v46 = vpack.c.bf16 %v2162_v15, %v2161_v56  ;;  %v5193_v14 = vpack.c.bf16 %v2122_v52, %v2121_v13  ;;  %v2144_v32 = vsel %vm686_vm8, %v7050_v41, %v7070_v59  ;;  %5392 = vmatpush1.bf16.msra.mxu1 %v5391_v18  ;;  %v7115_v22 = vunpack.i.h.bf16 %v7113_v25 }
 0x4e1   : > { %v5395_v58 = vpack.c.bf16 %v2102_v39, %v2101_v43  ;;  %v2163_v29 = vsel %vm686_vm8, %v7109_v42, %v7049_v45  ;;  %v2164_v60 = vsel %vm686_vm8, %v7110_v38, %v7050_v41  ;;  %v2103_v2 = vsel %vm686_vm8, %v7099_v6, %v7109_v42  ;;  %v7103_v45 = vpop.permute.xlu1 %7102 }
 0x4e2   : > { %v2104_v10 = vsel %vm686_vm8, %v7100_v33, %v7110_v38  ;;  %v7114_v4 = vunpack.i.l.bf16 %v7113_v25  ;;  %5394 = vmatprep.subr.bf16.mxu1 %v5393_v46  ;;  %5194 = vmatprep.subr.bf16.mxu0 %v5193_v14  ;;  %v12064_v47 = vsel %vm686_vm8, %v6899_v24, %v6934_v35  ;;  %v12072_v41 = vsel %vm686_vm8, %v6900_v26, %v6935_v37 }
 0x4e3   : > { %v2123_v63 = vsel %vm686_vm8, %v7069_v51, %v7099_v6  ;;  %v2124_v20 = vsel %vm686_vm8, %v7070_v59, %v7100_v33  ;;  %v7105_v30 = vunpack.i.h.bf16 %v7103_v45  ;;  %v7104_v31 = vunpack.i.l.bf16 %v7103_v45  ;;  %v7123_v27 = vpop.permute.xlu0 %7122  ;;  %v16556_v6 = vld [vmem:[#allocation155_spill] sm:$0xff] }
 0x4e4   : > { %5196 = vmatpush1.bf16.msra.mxu0 %v5195_v48  ;;  %v5397_v1 = vpack.c.bf16 %v2164_v60, %v2163_v29  ;;  %v5197_v8 = vpack.c.bf16 %v2124_v20, %v2123_v63  ;;  %5396 = vmatpush1.bf16.msra.mxu1 %v5395_v58  ;;  %v5199_v28 = vpack.c.bf16 %v2144_v32, %v2143_v12  ;;  %v16554_v49 = vunpack.i.l.bf16 %v16516_v17 }
 0x4e5   : > { %v5399_v40 = vpack.c.bf16 %v2104_v10, %v2103_v2  ;;  %v16555_v21 = vunpack.i.h.bf16 %v16516_v17  ;;  %v2105_v51 = vsel %vm686_vm8, %v7104_v31, %v7114_v4  ;;  %v2106_v59 = vsel %vm686_vm8, %v7105_v30, %v7115_v22  ;;  %v7118_v43 = vpop.permute.xlu1 %7117  ;;  %v16559_v2 = vld [vmem:[#allocation135_spill] sm:$0xff] }
 0x4e6   : > { %v2165_v5 = vsel %vm686_vm8, %v7114_v4, %v16554_v49  ;;  %v7125_v18 = vunpack.i.h.bf16 %v7123_v27  ;;  %v7124_v56 = vunpack.i.l.bf16 %v7123_v27  ;;  %5398 = vmatprep.subr.bf16.mxu1 %v5397_v1  ;;  %5198 = vmatprep.subr.bf16.mxu0 %v5197_v8  ;;  %v7054_v15 = vunpack.i.l.bf16 %v11766_v61 }
 0x4e7   : > { %v2166_v48 = vsel %vm686_vm8, %v7115_v22, %v16555_v21  ;;  %v2125_v17 = vsel %vm686_vm8, %v6919_v36, %v7104_v31  ;;  %v2126_v39 = vsel %vm686_vm8, %v6920_v11, %v7105_v30  ;;  %v5203_v38 = vpack.c.bf16 %v11987_v7, %v11979_v19  ;;  %v7133_v52 = vpop.permute.xlu0 %7132 }
 0x4e8   : > { %5200 = vmatpush1.bf16.msra.mxu0 %v5199_v28  ;;  %v7120_v42 = vunpack.i.h.bf16 %v7118_v43  ;;  %v7119_v12 = vunpack.i.l.bf16 %v7118_v43  ;;  %v5401_v16 = vpack.c.bf16 %v2166_v48, %v2165_v5  ;;  %v5201_v13 = vpack.c.bf16 %v2126_v39, %v2125_v17  ;;  %5400 = vmatpush1.bf16.msra.mxu1 %v5399_v40 }
 0x4e9   : > { %v5403_v33 = vpack.c.bf16 %v2106_v59, %v2105_v51  ;;  %v16557_v46 = vunpack.i.l.bf16 %v16556_v6  ;;  %v16558_v53 = vunpack.i.h.bf16 %v16556_v6  ;;  %v5211_v19 = vpack.c.bf16 %v12072_v41, %v12064_v47  ;;  %v7128_v60 = vpop.permute.xlu1 %7127 }
 0x4ea   : > { %v2107_v7 = vsel %vm686_vm8, %v7119_v12, %v7124_v56  ;;  %v2108_v14 = vsel %vm686_vm8, %v7120_v42, %v7125_v18  ;;  %v7135_v32 = vunpack.i.h.bf16 %v7133_v52  ;;  %v7134_v25 = vunpack.i.l.bf16 %v7133_v52  ;;  %5402 = vmatprep.subr.bf16.mxu1 %v5401_v16  ;;  %5202 = vmatprep.subr.bf16.mxu0 %v5201_v13 }
 0x4eb   : > { %v2167_v36 = vsel %vm686_vm8, %v7124_v56, %v16557_v46  ;;  %v2168_v11 = vsel %vm686_vm8, %v7125_v18, %v16558_v53  ;;  %v6940_v58 = vunpack.i.h.bf16 %v11897_v57  ;;  %v7074_v29 = vunpack.i.l.bf16 %v11945_v55  ;;  %v7143_v31 = vpop.permute.xlu0 %7142 }
 0x4ec   : > { %5204 = vmatpush1.bf16.msra.mxu0 %v5203_v38  ;;  %v16560_v10 = vunpack.i.l.bf16 %v16559_v2  ;;  %v16561_v4 = vunpack.i.h.bf16 %v16559_v2  ;;  %v7130_v41 = vunpack.i.h.bf16 %v7128_v60  ;;  %v7129_v45 = vunpack.i.l.bf16 %v7128_v60  ;;  %5404 = vmatpush1.bf16.msra.mxu1 %v5403_v33 }
 0x4ed   : > { %v5405_v63 = vpack.c.bf16 %v2168_v11, %v2167_v36  ;;  %v7075_v30 = vunpack.i.h.bf16 %v11945_v55  ;;  %v5407_v1 = vpack.c.bf16 %v2108_v14, %v2107_v7  ;;  %v2169_v8 = vsel %vm686_vm8, %v7134_v25, %v6899_v24 }
 0x4ee   : > { %v2127_v22 = vsel %vm686_vm8, %v16560_v10, %v7119_v12  ;;  %v2128_v47 = vsel %vm686_vm8, %v16561_v4, %v7120_v42  ;;  %v2170_v27 = vsel %vm686_vm8, %v7135_v32, %v6900_v26  ;;  %v2109_v28 = vsel %vm686_vm8, %v7129_v45, %v7134_v25  ;;  %v7138_v26 = vpop.permute.xlu1 %7137 }
 0x4ef   : > { %v5205_v20 = vpack.c.bf16 %v2128_v47, %v2127_v22  ;;  %v2110_v40 = vsel %vm686_vm8, %v7130_v41, %v7135_v32  ;;  %v7145_v55 = vunpack.i.h.bf16 %v7143_v31  ;;  %v7144_v49 = vunpack.i.l.bf16 %v7143_v31  ;;  %5406 = vmatprep.subr.bf16.mxu1 %v5405_v63  ;;  %v2188_v31 = vld [vmem:[#allocation9 + $0x58] sm:$0xff] }
 0x4f0   : > { %v6939_v5 = vunpack.i.l.bf16 %v11897_v57  ;;  %v2151_v24 = vsel %vm686_vm8, %v7054_v15, %v7074_v29  ;;  %v16562_v23 = vpack.c.bf16 %v11438_v3, %v11421_v62  ;;  %v2129_v21 = vsel %vm686_vm8, %v6934_v35, %v7129_v45  ;;  %5408 = vmatpush1.bf16.msra.mxu1 %v5407_v1  ;;  %v7153_v3 = vpop.permute.xlu0 %7152 }
 0x4f1   : > { %5206 = vmatprep.subr.bf16.mxu0 %v5205_v20  ;;  %v2130_v48 = vsel %vm686_vm8, %v6935_v37, %v7130_v41  ;;  %v7140_v51 = vunpack.i.h.bf16 %v7138_v26  ;;  %v7139_v59 = vunpack.i.l.bf16 %v7138_v26  ;;  %v5409_v18 = vpack.c.bf16 %v2170_v27, %v2169_v8  ;;  %v2189_v41 = vld [vmem:[#allocation9 + $0x60] sm:$0xff] }
 0x4f2   : > { %5208 = vmatpush1.bf16.msra.mxu0 %v16562_v23  ;;  %v5209_v56 = vpack.c.bf16 %v2130_v48, %v2129_v21  ;;  %v2152_v62 = vsel %vm686_vm8, %v7055_v54, %v7075_v30  ;;  %v5411_v43 = vpack.c.bf16 %v2110_v40, %v2109_v28  ;;  %v2171_v35 = vsel %vm686_vm8, %v7144_v49, %v7054_v15  ;;  %v7148_v15 = vpop.permute.xlu1 %7147  ;;  %v2195_v23 = vld [vmem:[#allocation9 + $0x90] sm:$0xff] }
 0x4f3   : > { %v2172_v50 = vsel %vm686_vm8, %v7145_v55, %v7055_v54  ;;  %v2111_v37 = vsel %vm686_vm8, %v7139_v59, %v7144_v49  ;;  %v2112_v17 = vsel %vm686_vm8, %v7140_v51, %v7145_v55  ;;  %v7155_v39 = vunpack.i.h.bf16 %v7153_v3  ;;  %5410 = vmatprep.subr.bf16.mxu1 %v5409_v18  ;;  %v2196_v55 = vld [vmem:[#allocation9 + $0x98] sm:$0xff] }
 0x4f4   : > { %v7154_v38 = vunpack.i.l.bf16 %v7153_v3  ;;  %5210 = vmatprep.subr.bf16.mxu0 %v5209_v56  ;;  %v6905_v42 = vunpack.i.h.bf16 %v11629_v34  ;;  %v2153_v61 = vsel %vm686_vm8, %v6904_v0, %v6939_v5  ;;  %v2131_v54 = vsel %vm686_vm8, %v7074_v29, %v7139_v59  ;;  %5412 = vmatpush1.bf16.msra.mxu1 %v5411_v43  ;;  %v7163_v6 = vpop.permute.xlu0 %7162  ;;  %v2181_v29 = vld [vmem:[#allocation9 + $0x20] sm:$0xff]  ;;  %v2202_v59 = vld [vmem:[#allocation9 + $0xc8] sm:$0xff]  ;;  %v2183_v56 = vld [vmem:[#allocation9 + $0x30] sm:$0xff] }
 0x4f5   : > { %v2132_v12 = vsel %vm686_vm8, %v7075_v30, %v7140_v51  ;;  %v7150_v16 = vunpack.i.h.bf16 %v7148_v15  ;;  %v7149_v13 = vunpack.i.l.bf16 %v7148_v15  ;;  %v5413_v52 = vpack.c.bf16 %v2172_v50, %v2171_v35  ;;  %v2203_v51 = vld [vmem:[#allocation9 + $0xd0] sm:$0xff]  ;;  %v2197_v3 = vld [vmem:[#allocation9 + $0xa0] sm:$0xff]  ;;  %v2204_v43 = vld [vmem:[#allocation9 + $0xd8] sm:$0xff] }
 0x4f6   : > { %5212 = vmatpush1.bf16.msra.mxu0 %v5211_v19  ;;  %v5213_v33 = vpack.c.bf16 %v2132_v12, %v2131_v54  ;;  %v5215_v46 = vpack.c.bf16 %v2152_v62, %v2151_v24  ;;  %v5415_v36 = vpack.c.bf16 %v2112_v17, %v2111_v37  ;;  %v2173_v53 = vsel %vm686_vm8, %v7154_v38, %v6904_v0  ;;  %v7158_v25 = vpop.permute.xlu1 %7157  ;;  %v2190_v62 = vld [vmem:[#allocation9 + $0x68] sm:$0xff] }
 0x4f7   : > { %v2174_v11 = vsel %vm686_vm8, %v7155_v39, %v6905_v42  ;;  %v7060_v19 = vunpack.i.h.bf16 %v11819_v44  ;;  %v2154_v7 = vsel %vm686_vm8, %v6905_v42, %v6940_v58  ;;  %v2113_v14 = vsel %vm686_vm8, %v7149_v13, %v7154_v38  ;;  %5414 = vmatprep.subr.bf16.mxu1 %v5413_v52 }
 0x4f8   : > { %v2114_v32 = vsel %vm686_vm8, %v7150_v16, %v7155_v39  ;;  %5214 = vmatprep.subr.bf16.mxu0 %v5213_v33  ;;  %v7059_v34 = vunpack.i.l.bf16 %v11819_v44  ;;  %v7164_v0 = vunpack.i.l.bf16 %v7163_v6  ;;  %v2133_v60 = vsel %vm686_vm8, %v6939_v5, %v7149_v13  ;;  %5416 = vmatpush1.bf16.msra.mxu1 %v5415_v36 }
 0x4f9   : > { %v2134_v2 = vsel %vm686_vm8, %v6940_v58, %v7150_v16  ;;  %v7160_v10 = vunpack.i.h.bf16 %v7158_v25  ;;  %v7159_v22 = vunpack.i.l.bf16 %v7158_v25  ;;  %v5417_v4 = vpack.c.bf16 %v2174_v11, %v2173_v53  ;;  %v16563_v11 = vld [vmem:[#allocation18_spill] sm:$0xff] }
 0x4fa   : > { %5216 = vmatpush1.bf16.msra.mxu0 %v5215_v46  ;;  %v5217_v47 = vpack.c.bf16 %v2134_v2, %v2133_v60  ;;  %v7165_v45 = vunpack.i.h.bf16 %v7163_v6  ;;  %v5219_v44 = vpack.c.bf16 %v2154_v7, %v2153_v61  ;;  %v5419_v63 = vpack.c.bf16 %v2114_v32, %v2113_v14  ;;  %v7168_v58 = vpop.permute.xlu1 %7167  ;;  %v16567_v2 = vld [vmem:[#allocation20_spill] sm:$0xff] }
 0x4fb   : > { %v2155_v20 = vsel %vm686_vm8, %v7059_v34, %v7159_v22  ;;  %v2156_v30 = vsel %vm686_vm8, %v7060_v19, %v7160_v10  ;;  %5418 = vmatprep.subr.bf16.mxu1 %v5417_v4  ;;  %v2135_v57 = vsel %vm686_vm8, %v7159_v22, %v7164_v0  ;;  %2841 = vmatmul.mubr.f32.vlgmr.msra.gmra.mrb[8].mxu1 %v2181_v29  ;;  %v7170_v8 = vunpack.i.h.bf16 %v7168_v58 }
 0x4fc   : > { %5218 = vmatprep.subr.bf16.mxu0 %v5217_v47  ;;  %v2136_v1 = vsel %vm686_vm8, %v7160_v10, %v7165_v45  ;;  %v7169_v27 = vunpack.i.l.bf16 %v7168_v58  ;;  %v5223_v40 = vpack.c.bf16 %v2156_v30, %v2155_v20  ;;  %5420 = vmatpush1.bf16.msra.mxu1 %v5419_v63  ;;  %v15690_v18 = vmov 0.0  }
 0x4fd   : > { %2485 = vmatmul.mubr.f32.vlgmr.msra.gmra.mrb[8].mxu0 %v2181_v29  ;;  %v5221_v28 = vpack.c.bf16 %v2136_v1, %v2135_v57  ;;  %2846 = vmatprep.mubr.f32.mxu1 %v2189_v41  ;;  %v2116_v5 = vsel %vm686_vm8, %v7165_v45, %v7170_v8  ;;  %v2176_v26 = vsel %vm686_vm8, %v7170_v8, %v7060_v19  ;;  %v16569_v45 = vld [vmem:[#allocation21_spill] sm:$0xff] }
 0x4fe   : > { %2490 = vmatprep.mubr.f32.mxu0 %v2189_v41  ;;  %5220 = vmatpush1.bf16.msra.mxu0 %v5219_v44  ;;  %v2115_v49 = vsel %vm686_vm8, %v7164_v0, %v7169_v27  ;;  %v2175_v24 = vsel %vm686_vm8, %v7169_v27, %v7059_v34  ;;  %v2212_v35 = vpop.permute.xlu0 %2211  ;;  %v16565_v0 = vld [vmem:[#allocation19_spill] sm:$0xff] }
 0x4ff   : > { %5222 = vmatprep.subr.bf16.mxu0 %v5221_v28  ;;  %v5423_v21 = vpack.c.bf16 %v2116_v5, %v2115_v49  ;;  %2847 = vmatmul.mubr.f32.gmra.mrb[10].mxu1 %v2188_v31  ;;  %v5421_v48 = vpack.c.bf16 %v2176_v26, %v2175_v24 }
 0x500   : > { %2852 = vmatprep.mubr.f32.mxu1 %v2196_v55 }
 0x501   : > { %2491 = vmatmul.mubr.f32.gmra.mrb[10].mxu0 %v2188_v31  ;;  %5422 = vmatprep.subr.bf16.mxu1 %v5421_v48 }
 0x502   : > { %2496 = vmatprep.mubr.f32.mxu0 %v2196_v55  ;;  %5224 = vmatpush1.bf16.msra.mxu0 %v5223_v40  ;;  %v2222_v50 = vpop.permute.xlu0 %2221 }
 0x503   : > { %5424 = vmatpush1.bf16.msra.mxu1 %v5423_v21 }
 0x504   : > { %2853 = vmatmul.mubr.f32.gmra.mrb[12].mxu1 %v2195_v23  ;;  %v2217_v16 = vpop.permute.xlu1 %2216 }
 0x505   : > { %2497 = vmatmul.mubr.f32.gmra.mrb[12].mxu0 %v2195_v23  ;;  %2858 = vmatprep.mubr.f32.mxu1 %v2203_v51 }
 0x506   : > { %2502 = vmatprep.mubr.f32.mxu0 %v2203_v51  ;;  %v12232_v38 = vpop.permute.xlu0 %2977 }
 0x508   : > { %2859 = vmatmul.mubr.f32.gmra.mrb[14].mxu1 %v2202_v59 }
 0x509   : > { %2503 = vmatmul.mubr.f32.gmra.mrb[14].mxu0 %v2202_v59  ;;  %2929 = vmatprep.mubr.f32.mxu1 %v15690_v18 }
 0x50a   : > { %2573 = vmatprep.mubr.f32.mxu0 %v15690_v18 }
 0x50c   : > { %4915 = vmatmul.mubr.msk.f32.vlgmr.msra.gmra.mrb[8].mxu1 %vm2229_vm9, %v2183_v56 }
 0x50d   : > { %4911 = vmatmul.mubr.msk.f32.vlgmr.msra.gmra.mrb[8].mxu0 %vm2229_vm9, %v2183_v56  ;;  %2935 = vmatprep.mubr.f32.mxu1 %v15690_v18 }
 0x50e   : > { %2579 = vmatprep.mubr.f32.mxu0 %v15690_v18 }
 0x510   : > { %4916 = vmatmul.mubr.msk.f32.gmra.mrb[10].mxu1 %vm2229_vm9, %v2190_v62 }
 0x511   : > { %4912 = vmatmul.mubr.msk.f32.gmra.mrb[10].mxu0 %vm2229_vm9, %v2190_v62  ;;  %2941 = vmatprep.mubr.f32.mxu1 %v15690_v18 }
 0x512   : > { %2585 = vmatprep.mubr.f32.mxu0 %v15690_v18 }
 0x514   : > { %4917 = vmatmul.mubr.msk.f32.gmra.mrb[12].mxu1 %vm2229_vm9, %v2197_v3 }
 0x515   : > { %4913 = vmatmul.mubr.msk.f32.gmra.mrb[12].mxu0 %vm2229_vm9, %v2197_v3  ;;  %2947 = vmatprep.mubr.f32.mxu1 %v15690_v18 }
 0x516   : > { %2591 = vmatprep.mubr.f32.mxu0 %v15690_v18 }
 0x518   : > { %4918 = vmatmul.mubr.msk.f32.gmra.mrb[14].mxu1 %vm2229_vm9, %v2204_v43 }
 0x519   : > { %4914 = vmatmul.mubr.msk.f32.gmra.mrb[14].mxu0 %vm2229_vm9, %v2204_v43  ;;  %v2227_v43 = vpop.permute.xlu1 %2226 }
 0x5df   : > { %v2931_v42 = vpop.f32.mrb[8].mxu1 }
 0x5e0   : > { %v2575_v37 = vpop.f32.mrb[8].mxu0  ;;  %v5833_v54 = vadd.f32 %v2931_v42, %v2212_v35  ;;  %v2933_v12 = vpop.f32.mrb[9].mxu1 }
 0x5e1   : > { %v5825_v17 = vadd.f32 %v2575_v37, %v2212_v35  ;;  %v2577_v39 = vpop.f32.mrb[9].mxu0  ;;  %v5834_v52 = vadd.f32 %v2933_v12, %v2212_v35 }
 0x5e2   : > { %v5826_v61 = vadd.f32 %v2577_v39, %v2212_v35  ;;  %vm2956_vm12 = vcmp.ge.f32.partialorder %v5833_v54, 0.0  ;;  %v2982_v46 = vmul.f32 %v5833_v54, %v12232_v38 }
 0x5e3   : > { %vm2954_vm10 = vcmp.ge.f32.partialorder %v5825_v17, 0.0  ;;  %v2980_v15 = vmul.f32 %v5825_v17, %v12232_v38  ;;  %vm2957_vm13 = vcmp.ge.f32.partialorder %v5834_v52, 0.0  ;;  %v2983_v14 = vmul.f32 %v5834_v52, %v12232_v38  ;;  %v2937_v32 = vpop.f32.mrb[10].mxu1 }
 0x5e4   : > { %vm2955_vm11 = vcmp.ge.f32.partialorder %v5826_v61, 0.0  ;;  %v2981_v13 = vmul.f32 %v5826_v61, %v12232_v38  ;;  %v2581_v33 = vpop.f32.mrb[10].mxu0  ;;  %v2998_v34 = vsel %vm2956_vm12, %v5833_v54, %v2982_v46  ;;  %v2939_v60 = vpop.f32.mrb[11].mxu1  ;;  %v5835_v4 = vadd.f32 %v2937_v32, %v2217_v16 }
 0x5e5   : > { %v2996_v6 = vsel %vm2954_vm10, %v5825_v17, %v2980_v15  ;;  %v5827_v36 = vadd.f32 %v2581_v33, %v2217_v16  ;;  %v2583_v53 = vpop.f32.mrb[11].mxu0  ;;  %v12246_v10 = vmul.f32 %v2998_v34, %v16567_v2  ;;  %v2999_v22 = vsel %vm2957_vm13, %v5834_v52, %v2983_v14 }
 0x5e6   : > { %v12238_v19 = vmul.f32 %v2996_v6, %v16563_v11  ;;  %v2997_v7 = vsel %vm2955_vm11, %v5826_v61, %v2981_v13  ;;  %v5828_v47 = vadd.f32 %v2583_v53, %v2217_v16  ;;  %v12249_v44 = vmul.f32 %v2999_v22, %v16569_v45 }
 0x5e7   : > { %v12242_v25 = vmul.f32 %v2997_v7, %v16565_v0  ;;  %vm2958_vm14 = vcmp.ge.f32.partialorder %v5827_v36, 0.0  ;;  %v2984_v29 = vmul.f32 %v5827_v36, %v12232_v38  ;;  %16568 = vst [vmem:[#allocation150_spill] sm:$0xff] %v12246_v10  ;;  %v5836_v20 = vadd.f32 %v2939_v60, %v2217_v16  ;;  %v2943_v1 = vpop.f32.mrb[12].mxu1 }
 0x5e8   : > { %16564 = vst [vmem:[#allocation81_spill] sm:$0xff] %v12238_v19  ;;  %v2587_v41 = vpop.f32.mrb[12].mxu0  ;;  %16570 = vst [vmem:[#allocation51_spill] sm:$0xff] %v12249_v44  ;;  %vm2960_vm15 = vcmp.ge.f32.partialorder %v5835_v4, 0.0  ;;  %v2986_v31 = vmul.f32 %v5835_v4, %v12232_v38  ;;  %vm2959_vm4 = vcmp.ge.f32.partialorder %v5828_v47, 0.0  ;;  %v2985_v8 = vmul.f32 %v5828_v47, %v12232_v38  ;;  %v2945_v28 = vpop.f32.mrb[13].mxu1 }
 0x5e9   : > { %16566 = vst [vmem:[#allocation121_spill] sm:$0xff] %v12242_v25  ;;  %v3000_v63 = vsel %vm2958_vm14, %v5827_v36, %v2984_v29  ;;  %v5829_v30 = vadd.f32 %v2587_v41, %v2222_v50  ;;  %v2589_v57 = vpop.f32.mrb[13].mxu0  ;;  %vm2961_vm10 = vcmp.ge.f32.partialorder %v5836_v20, 0.0  ;;  %v2987_v27 = vmul.f32 %v5836_v20, %v12232_v38 }
 0x5ea   : > { %v12252_v58 = vmul.f32 %v3000_v63, %v16563_v11  ;;  %v3002_v40 = vsel %vm2960_vm15, %v5835_v4, %v2986_v31  ;;  %v5837_v49 = vadd.f32 %v2943_v1, %v2222_v50  ;;  %v5830_v5 = vadd.f32 %v2589_v57, %v2222_v50 }
 0x5eb   : > { %vm2962_vm11 = vcmp.ge.f32.partialorder %v5829_v30, 0.0  ;;  %v2988_v55 = vmul.f32 %v5829_v30, %v12232_v38  ;;  %v12259_v23 = vmul.f32 %v3002_v40, %v16567_v2  ;;  %v3001_v26 = vsel %vm2959_vm4, %v5828_v47, %v2985_v8  ;;  %v2949_v3 = vpop.f32.mrb[14].mxu1 }
 0x5ec   : > { %16571 = vst [vmem:[#allocation151_spill] sm:$0xff] %v12252_v58  ;;  %v2593_v24 = vpop.f32.mrb[14].mxu0  ;;  %v3003_v21 = vsel %vm2961_vm10, %v5836_v20, %v2987_v27  ;;  %v5838_v48 = vadd.f32 %v2945_v28, %v2222_v50  ;;  %v12262_v59 = vmul.f32 %v3001_v26, %v16565_v0  ;;  %vm2964_vm12 = vcmp.ge.f32.partialorder %v5837_v49, 0.0  ;;  %v2951_v50 = vpop.f32.mrb[15].mxu1 }
 0x5ed   : > { %16572 = vst [vmem:[#allocation42_spill] sm:$0xff] %v12259_v23  ;;  %v2595_v51 = vpop.f32.mrb[15].mxu0  ;;  %v12265_v56 = vmul.f32 %v3003_v21, %v16569_v45  ;;  %v3004_v62 = vsel %vm2962_vm11, %v5829_v30, %v2988_v55  ;;  %v2990_v37 = vmul.f32 %v5837_v49, %v12232_v38  ;;  %vm2963_vm13 = vcmp.ge.f32.partialorder %v5830_v5, 0.0 }
 0x5ee   : > { %16573 = vst [vmem:[#allocation49_spill] sm:$0xff] %v12262_v59  ;;  %v12268_v35 = vmul.f32 %v3004_v62, %v16563_v11  ;;  %v2989_v17 = vmul.f32 %v5830_v5, %v12232_v38  ;;  %vm2965_vm14 = vcmp.ge.f32.partialorder %v5838_v48, 0.0  ;;  %v2991_v39 = vmul.f32 %v5838_v48, %v12232_v38 }
 0x5ef   : > { %16574 = vst [vmem:[#allocation54_spill] sm:$0xff] %v12265_v56  ;;  %v5831_v42 = vadd.f32 %v2593_v24, %v2227_v43  ;;  %v5839_v61 = vadd.f32 %v2949_v3, %v2227_v43  ;;  %v3006_v15 = vsel %vm2964_vm12, %v5837_v49, %v2990_v37  ;;  %v5832_v12 = vadd.f32 %v2595_v51, %v2227_v43 }
 0x5f0   : > { %16575 = vst [vmem:[#allocation52_spill] sm:$0xff] %v12268_v35  ;;  %v3005_v54 = vsel %vm2963_vm13, %v5830_v5, %v2989_v17  ;;  %v5840_v16 = vadd.f32 %v2951_v50, %v2227_v43  ;;  %v12274_v13 = vmul.f32 %v3006_v15, %v16567_v2  ;;  %v3007_v33 = vsel %vm2965_vm14, %v5838_v48, %v2991_v39 }
 0x5f1   : > { %v12277_v52 = vmul.f32 %v3005_v54, %v16565_v0  ;;  %vm2966_vm15 = vcmp.ge.f32.partialorder %v5831_v42, 0.0  ;;  %v12280_v6 = vmul.f32 %v3007_v33, %v16569_v45  ;;  %v2992_v46 = vmul.f32 %v5831_v42, %v12232_v38 }
 0x5f2   : > { %16576 = vst [vmem:[#allocation102_spill] sm:$0xff] %v12274_v13  ;;  %vm2968_vm4 = vcmp.ge.f32.partialorder %v5839_v61, 0.0  ;;  %v2994_v36 = vmul.f32 %v5839_v61, %v12232_v38  ;;  %vm2967_vm10 = vcmp.ge.f32.partialorder %v5832_v12, 0.0  ;;  %v2993_v53 = vmul.f32 %v5832_v12, %v12232_v38 }
 0x5f3   : > { %16577 = vst [vmem:[#allocation104_spill] sm:$0xff] %v12277_v52  ;;  %16578 = vst [vmem:[#allocation90_spill] sm:$0xff] %v12280_v6  ;;  %vm2969_vm11 = vcmp.ge.f32.partialorder %v5840_v16, 0.0  ;;  %v2995_v7 = vmul.f32 %v5840_v16, %v12232_v38  ;;  %v3008_v14 = vsel %vm2966_vm15, %v5831_v42, %v2992_v46  ;;  %v12288_v34 = vpack.i.bf16 %v12259_v23, %v12246_v10 }
 0x5f4   : > { %v3010_v32 = vsel %vm2968_vm4, %v5839_v61, %v2994_v36  ;;  %v12292_v29 = vpack.i.bf16 %v12252_v58, %v12238_v19  ;;  %v12295_v60 = vmul.f32 %v3008_v14, %v16563_v11  ;;  %v3009_v4 = vsel %vm2967_vm10, %v5832_v12, %v2993_v53 }
 0x5f5   : > { %16579 = vst [vmem:[#allocation118_spill] sm:$0xff] %v12288_v34  ;;  %v12298_v22 = vmul.f32 %v3010_v32, %v16567_v2  ;;  %v3011_v47 = vsel %vm2969_vm11, %v5840_v16, %v2995_v7  ;;  %v12301_v38 = vmul.f32 %v3009_v4, %v16565_v0  ;;  %7227 = vrot.lane.b32.xlu0 %v12288_v34, %s8307_s23 }
 0x5f6   : > { %16580 = vst [vmem:[#allocation105_spill] sm:$0xff] %v12292_v29  ;;  %16581 = vst [vmem:[#allocation43_spill] sm:$0xff] %v12295_v60  ;;  %v12304_v41 = vmul.f32 %v3011_v47, %v16569_v45  ;;  %7172 = vrot.lane.b32.xlu1 %v12292_v29, %s8303_s26  ;;  %v12312_v11 = vpack.i.bf16 %v12262_v59, %v12242_v25  ;;  %v12316_v2 = vpack.i.bf16 %v12295_v60, %v12268_v35 }
 0x5f7   : > { %16582 = vst [vmem:[#allocation34_spill] sm:$0xff] %v12298_v22  ;;  %16583 = vst [vmem:[#allocation45_spill] sm:$0xff] %v12301_v38  ;;  %v12320_v0 = vpack.i.bf16 %v12298_v22, %v12274_v13  ;;  %v12328_v45 = vpack.i.bf16 %v12301_v38, %v12277_v52  ;;  %v12332_v63 = vpack.i.bf16 %v12265_v56, %v12249_v44 }
 0x5f8   : > { %16584 = vst [vmem:[#allocation41_spill] sm:$0xff] %v12304_v41  ;;  %16585 = vst [vmem:[#allocation47_spill] sm:$0xff] %v12312_v11  ;;  %v12336_v20 = vpack.i.bf16 %v12304_v41, %v12280_v6 }
 0x5f9   : > { %16586 = vst [vmem:[#allocation46_spill] sm:$0xff] %v12316_v2  ;;  %16587 = vst [vmem:[#allocation138_spill] sm:$0xff] %v12320_v0  ;;  %7297 = vrot.lane.b32.xlu0 %v12312_v11, %s8308_s11 }
 0x5fa   : > { %7177 = vrot.lane.b32.xlu1 %v12288_v34, %s8303_s26  ;;  %16588 = vst [vmem:[#allocation127_spill] sm:$0xff] %v12328_v45  ;;  %16589 = vst [vmem:[#allocation50_spill] sm:$0xff] %v12332_v63 }
 0x5fb   : > { %16590 = vst [vmem:[#allocation44_spill] sm:$0xff] %v12336_v20 }
 0x5fd   : > { %7302 = vrot.lane.b32.xlu0 %v12316_v2, %s8303_s26 }
 0x5fe   : > { %7182 = vrot.lane.b32.xlu1 %v12292_v29, %s8302_s24 }
 0x601   : > { %7307 = vrot.lane.b32.xlu0 %v12320_v0, %s8303_s26 }
 0x602   : > { %7187 = vrot.lane.b32.xlu1 %v12288_v34, %s8302_s24 }
 0x605   : > { %7312 = vrot.lane.b32.xlu0 %v12316_v2, %s8302_s24 }
 0x606   : > { %7192 = vrot.lane.b32.xlu1 %v12292_v29, %s8304_s16 }
 0x609   : > { %7317 = vrot.lane.b32.xlu0 %v12320_v0, %s8302_s24 }
 0x60a   : > { %7197 = vrot.lane.b32.xlu1 %v12288_v34, %s8304_s16 }
 0x60d   : > { %7322 = vrot.lane.b32.xlu0 %v12316_v2, %s8304_s16 }
 0x60e   : > { %7202 = vrot.lane.b32.xlu1 %v12292_v29, %s8305_s7 }
 0x611   : > { %7327 = vrot.lane.b32.xlu0 %v12320_v0, %s8304_s16 }
 0x612   : > { %7207 = vrot.lane.b32.xlu1 %v12288_v34, %s8305_s7 }
 0x615   : > { %7332 = vrot.lane.b32.xlu0 %v12316_v2, %s8305_s7 }
 0x616   : > { %7212 = vrot.lane.b32.xlu1 %v12292_v29, %s8306_s22 }
 0x619   : > { %7337 = vrot.lane.b32.xlu0 %v12320_v0, %s8305_s7 }
 0x61a   : > { %7217 = vrot.lane.b32.xlu1 %v12288_v34, %s8306_s22 }
 0x61d   : > { %7342 = vrot.lane.b32.xlu0 %v12316_v2, %s8306_s22 }
 0x61e   : > { %7222 = vrot.lane.b32.xlu1 %v12292_v29, %s8307_s23 }
 0x621   : > { %7347 = vrot.lane.b32.xlu0 %v12320_v0, %s8306_s22 }
 0x622   : > { %7232 = vrot.lane.b32.xlu1 %v12292_v29, %s8308_s11 }
 0x625   : > { %7352 = vrot.lane.b32.xlu0 %v12316_v2, %s8307_s23 }
 0x626   : > { %7237 = vrot.lane.b32.xlu1 %v12312_v11, %s8303_s26 }
 0x629   : > { %7362 = vrot.lane.b32.xlu0 %v12328_v45, %s8303_s26 }
 0x62a   : > { %7242 = vrot.lane.b32.xlu1 %v12332_v63, %s8303_s26 }
 0x62d   : > { %7367 = vrot.lane.b32.xlu0 %v12336_v20, %s8303_s26 }
 0x62e   : > { %7247 = vrot.lane.b32.xlu1 %v12312_v11, %s8302_s24 }
 0x631   : > { %7372 = vrot.lane.b32.xlu0 %v12328_v45, %s8302_s24 }
 0x632   : > { %7252 = vrot.lane.b32.xlu1 %v12332_v63, %s8302_s24 }
 0x635   : > { %7377 = vrot.lane.b32.xlu0 %v12336_v20, %s8302_s24  ;;  %s4799_s24 = sshll.u32 %s398_s27, 4  ;;  %s15375_s24 = int_to_ptr.vmem [resolvable:$true] %s4799_s24 }
 0x636   : > { %7257 = vrot.lane.b32.xlu1 %v12312_v11, %s8304_s16  ;;  %s8223_s4 = scalar_lea.vmem %s15375_s24, 256 }
 0x637   : > { %p8224_p12 = scmp.ne.s32.totalorder %s15375_s24, %s8223_s4 }
 0x639   : > { %7382 = vrot.lane.b32.xlu0 %v12328_v45, %s8304_s16  ;;  %p8225_p8 = pnand %p8224_p12, %p17211_p7 }
 0x63a   : > { %7262 = vrot.lane.b32.xlu1 %v12332_v63, %s8304_s16 }
 0x63b   : > { %p8226_p11 = pneg %p8225_p8 }
 0x63d   : > { %7387 = vrot.lane.b32.xlu0 %v12336_v20, %s8304_s16 }
 0x63e   : > { %7267 = vrot.lane.b32.xlu1 %v12312_v11, %s8305_s7 }
 0x641   : > { %7392 = vrot.lane.b32.xlu0 %v12328_v45, %s8305_s7 }
 0x642   : > { %7272 = vrot.lane.b32.xlu1 %v12332_v63, %s8305_s7 }
 0x645   : > { %7397 = vrot.lane.b32.xlu0 %v12336_v20, %s8305_s7  ;;  %s15373_s7 = scalar_lea.hbm %s15424_s10, %s4928_s28 }
 0x646   : > { %7277 = vrot.lane.b32.xlu1 %v12312_v11, %s8306_s22 }
 0x649   : > { %7402 = vrot.lane.b32.xlu0 %v12328_v45, %s8306_s22 }
 0x64a   : > { %7282 = vrot.lane.b32.xlu1 %v12332_v63, %s8306_s22 }
 0x64d   : > { %7407 = vrot.lane.b32.xlu0 %v12336_v20, %s8306_s22 }
 0x64e   : > { %7287 = vrot.lane.b32.xlu1 %v12312_v11, %s8307_s23 }
 0x651   : > { %7412 = vrot.lane.b32.xlu0 %v12328_v45, %s8307_s23 }
 0x652   : > { %7292 = vrot.lane.b32.xlu1 %v12332_v63, %s8307_s23 }
 0x655   : > { %7417 = vrot.lane.b32.xlu0 %v12336_v20, %s8307_s23 }
 0x656   : > { %7357 = vrot.lane.b32.xlu1 %v12320_v0, %s8307_s23 }
 0x667   : > { %v12446_v55 = vpop.permute.xlu0 %7227 }
 0x668   : > { %16591 = vst [vmem:[#allocation145_spill] sm:$0xff] %v12446_v55  ;;  %v12448_v49 = vpop.permute.xlu1 %7172 }
 0x669   : > { %v15702_v57 = vunpack.i.h.bf16 %v12448_v49  ;;  %v15700_v30 = vunpack.i.l.bf16 %v12448_v49 }
 0x66b   : > { %v12450_v5 = vpop.permute.xlu0 %7297 }
 0x66c   : > { %16592 = vst [vmem:[#allocation131_spill] sm:$0xff] %v12450_v5  ;;  %v12452_v24 = vpop.permute.xlu1 %7177 }
 0x66d   : > { %v15692_v14 = vunpack.i.h.bf16 %v12452_v24  ;;  %v15693_v32 = vunpack.i.l.bf16 %v12452_v24 }
 0x66f   : > { %v12454_v26 = vpop.permute.xlu0 %7302 }
 0x670   : > { %v12456_v21 = vpop.permute.xlu1 %7182  ;;  %v16657_v2 = vunpack.i.h.bf16 %v12454_v26 }
 0x671   : > { %v16646_v0 = vunpack.i.h.bf16 %v12456_v21 }
 0x673   : > { %v12458_v48 = vpop.permute.xlu0 %7307 }
 0x674   : > { %v12460_v51 = vpop.permute.xlu1 %7187 }
 0x677   : > { %v12462_v62 = vpop.permute.xlu0 %7312 }
 0x678   : > { %v12464_v3 = vpop.permute.xlu1 %7192 }
 0x67b   : > { %v12466_v43 = vpop.permute.xlu0 %7317 }
 0x67c   : > { %v12468_v37 = vpop.permute.xlu1 %7197 }
 0x67d   : > { %v16666_v34 = vunpack.i.l.bf16 %v12468_v37 }
 0x67f   : > { %v12470_v17 = vpop.permute.xlu0 %7322 }
 0x680   : > { %v12472_v50 = vpop.permute.xlu1 %7202 }
 0x681   : > { %v16619_v11 = vunpack.i.l.bf16 %v12472_v50 }
 0x683   : > { %v12474_v39 = vpop.permute.xlu0 %7327 }
 0x684   : > { %v12476_v42 = vpop.permute.xlu1 %7207 }
 0x687   : > { %v12478_v61 = vpop.permute.xlu0 %7332 }
 0x688   : > { %v12480_v15 = vpop.permute.xlu1 %7212 }
 0x689   : > { %16593 = vst [vmem:[#allocation30_spill] sm:$0xff] %v12480_v15 }
 0x68b   : > { %v12482_v54 = vpop.permute.xlu0 %7337 }
 0x68c   : > { %v12484_v12 = vpop.permute.xlu1 %7217 }
 0x68d   : > { %16594 = vst [vmem:[#allocation142_spill] sm:$0xff] %v12484_v12 }
 0x68f   : > { %v12486_v16 = vpop.permute.xlu0 %7342 }
 0x690   : > { %16595 = vst [vmem:[#allocation130_spill] sm:$0xff] %v12486_v16  ;;  %v12488_v33 = vpop.permute.xlu1 %7222 }
 0x691   : > { %16596 = vst [vmem:[#allocation134_spill] sm:$0xff] %v12488_v33 }
 0x693   : > { %v12490_v46 = vpop.permute.xlu0 %7347 }
 0x694   : > { %16597 = vst [vmem:[#allocation122_spill] sm:$0xff] %v12490_v46  ;;  %v12492_v36 = vpop.permute.xlu1 %7232 }
 0x695   : > { %16598 = vst [vmem:[#allocation79_spill] sm:$0xff] %v12492_v36  ;;  %v15710_v36 = vunpack.i.h.bf16 %v12460_v51 }
 0x697   : > { %v12494_v53 = vpop.permute.xlu0 %7352 }
 0x698   : > { %16599 = vst [vmem:[#allocation80_spill] sm:$0xff] %v12494_v53  ;;  %v12496_v7 = vpop.permute.xlu1 %7237  ;;  %v7209_v53 = vunpack.i.l.bf16 %v12476_v42 }
 0x699   : > { %v15694_v4 = vunpack.i.h.bf16 %v12496_v7  ;;  %v15695_v47 = vunpack.i.l.bf16 %v12496_v7  ;;  %v16624_v46 = vunpack.i.l.bf16 %v12496_v7  ;;  %v16627_v33 = vunpack.i.h.bf16 %v12496_v7 }
 0x69b   : > { %v12508_v18 = vsel %vm419_vm1, %v15695_v47, %v15693_v32  ;;  %v12516_v40 = vsel %vm419_vm1, %v15694_v4, %v15692_v14  ;;  %v12518_v28 = vpop.permute.xlu0 %7362 }
 0x69c   : > { %16600 = vst [vmem:[#allocation147_spill] sm:$0xff] %v12508_v18  ;;  %16601 = vst [vmem:[#allocation148_spill] sm:$0xff] %v12516_v40  ;;  %v12520_v27 = vpop.permute.xlu1 %7242  ;;  %v12524_v8 = vpack.i.bf16 %v12516_v40, %v12508_v18  ;;  %v7309_v40 = vunpack.i.l.bf16 %v12458_v48  ;;  %v16628_v18 = vunpack.i.h.bf16 %v12448_v49 }
 0x69d   : > { %v15701_v1 = vunpack.i.h.bf16 %v12520_v27  ;;  %v15699_v31 = vunpack.i.l.bf16 %v12520_v27  ;;  %v16631_v12 = vunpack.i.l.bf16 %v12520_v27 }
 0x69e   : > { %16602 = vst [vmem:[#allocation146_spill] sm:$0xff] %v12524_v8  ;;  %7527 = vrot.lane.b32.xlu0 %v12524_v8, %s8307_s23  ;;  %v12727_v16 = vsel %vm419_vm1, %v16628_v18, %v16627_v33  ;;  %v16634_v18 = vunpack.i.h.bf16 %v12520_v27  ;;  %v16635_v33 = vunpack.i.h.bf16 %v12452_v24 }
 0x69f   : > { %v12538_v14 = vsel %vm419_vm1, %v15699_v31, %v15700_v30  ;;  %v12546_v32 = vsel %vm419_vm1, %v15701_v1, %v15702_v57  ;;  %v12548_v4 = vpop.permute.xlu0 %7367  ;;  %v15706_v31 = vunpack.i.l.bf16 %v12460_v51  ;;  %16629 = vst [vmem:[#allocation132_spill] sm:$0xff] %v12727_v16 }
 0x6a0   : > { %16603 = vst [vmem:[#allocation58_spill] sm:$0xff] %v12538_v14  ;;  %16604 = vst [vmem:[#allocation59_spill] sm:$0xff] %v12546_v32  ;;  %v12550_v47 = vpop.permute.xlu1 %7247  ;;  %v12558_v30 = vpack.i.bf16 %v12546_v32, %v12538_v14  ;;  %v16622_v14 = vunpack.i.h.bf16 %v12472_v50 }
 0x6a1   : > { %v15711_v13 = vunpack.i.h.bf16 %v12550_v47  ;;  %v15707_v22 = vunpack.i.l.bf16 %v12550_v47 }
 0x6a2   : > { %16605 = vst [vmem:[#allocation83_spill] sm:$0xff] %v12558_v30  ;;  %7422 = vrot.lane.b32.xlu1 %v12558_v30, %s8306_s22  ;;  %v16705_v30 = vunpack.i.h.bf16 %v12474_v39 }
 0x6a3   : > { %v12566_v1 = vsel %vm432_vm0, %v15707_v22, %v15706_v31  ;;  %v12574_v57 = vsel %vm432_vm0, %v15711_v13, %v15710_v36  ;;  %v15720_v31 = vunpack.i.h.bf16 %v12456_v21  ;;  %v15716_v22 = vunpack.i.l.bf16 %v12456_v21  ;;  %v12584_v6 = vpop.permute.xlu0 %7372 }
 0x6a4   : > { %16606 = vst [vmem:[#allocation84_spill] sm:$0xff] %v12566_v1  ;;  %16607 = vst [vmem:[#allocation75_spill] sm:$0xff] %v12574_v57  ;;  %v12578_v35 = vpop.permute.xlu1 %7252  ;;  %v12588_v41 = vpack.i.bf16 %v12574_v57, %v12566_v1  ;;  %v7310_v1 = vunpack.i.h.bf16 %v12458_v48 }
 0x6a5   : > { %v15719_v60 = vunpack.i.h.bf16 %v12578_v35  ;;  %v15715_v5 = vunpack.i.l.bf16 %v12578_v35 }
 0x6a6   : > { %16608 = vst [vmem:[#allocation76_spill] sm:$0xff] %v12588_v41  ;;  %7542 = vrot.lane.b32.xlu0 %v12588_v41, %s8307_s23 }
 0x6a7   : > { %v12596_v36 = vsel %vm432_vm0, %v15715_v5, %v15716_v22  ;;  %v12604_v13 = vsel %vm432_vm0, %v15719_v60, %v15720_v31  ;;  %v15727_v5 = vunpack.i.h.bf16 %v12464_v3  ;;  %v15724_v22 = vunpack.i.l.bf16 %v12464_v3  ;;  %v12618_v19 = vpop.permute.xlu0 %7377 }
 0x6a8   : > { %16609 = vst [vmem:[#allocation92_spill] sm:$0xff] %v12596_v36  ;;  %16610 = vst [vmem:[#allocation91_spill] sm:$0xff] %v12604_v13  ;;  %v12608_v10 = vpop.permute.xlu1 %7257  ;;  %v12616_v38 = vpack.i.bf16 %v12604_v13, %v12596_v36  ;;  %v16683_v63 = vunpack.i.l.bf16 %v12618_v19  ;;  %v16792_v13 = vld [vmem:[#allocation127_spill] sm:$0xff] }
 0x6a9   : > { %v15728_v23 = vunpack.i.h.bf16 %v12608_v10  ;;  %v15725_v52 = vunpack.i.l.bf16 %v12608_v10  ;;  %v16667_v45 = vunpack.i.l.bf16 %v12608_v10 }
 0x6aa   : > { %16611 = vst [vmem:[#allocation85_spill] sm:$0xff] %v12616_v38  ;;  %7427 = vrot.lane.b32.xlu1 %v12616_v38, %s8306_s22 }
 0x6ab   : > { %v12626_v60 = vsel %vm445_vm2, %v15724_v22, %v15725_v52  ;;  %v12634_v31 = vsel %vm445_vm2, %v15727_v5, %v15728_v23  ;;  %v15737_v22 = vunpack.i.h.bf16 %v12468_v37  ;;  %v15733_v52 = vunpack.i.l.bf16 %v12468_v37 }
 0x6ac   : > { %16612 = vst [vmem:[#allocation86_spill] sm:$0xff] %v12626_v60  ;;  %16613 = vst [vmem:[#allocation62_spill] sm:$0xff] %v12634_v31  ;;  %v12638_v58 = vpop.permute.xlu1 %7262  ;;  %v12646_v25 = vpack.i.bf16 %v12634_v31, %v12626_v60  ;;  %v16787_v31 = vld [vmem:[#allocation50_spill] sm:$0xff] }
 0x6ad   : > { %v15736_v44 = vunpack.i.h.bf16 %v12638_v58  ;;  %v15732_v56 = vunpack.i.l.bf16 %v12638_v58 }
 0x6ae   : > { %16614 = vst [vmem:[#allocation61_spill] sm:$0xff] %v12646_v25  ;;  %7432 = vrot.lane.b32.xlu1 %v12646_v25, %s8306_s22 }
 0x6af   : > { %v12655_v23 = vsel %vm445_vm2, %v15733_v52, %v15732_v56  ;;  %v12663_v59 = vsel %vm445_vm2, %v15737_v22, %v15736_v44  ;;  %v12676_v22 = vpop.permute.xlu0 %7382  ;;  %v7210_v52 = vunpack.i.h.bf16 %v12476_v42  ;;  %v7370_v42 = vunpack.i.h.bf16 %v12548_v4 }
 0x6b0   : > { %16615 = vst [vmem:[#allocation143_spill] sm:$0xff] %v12655_v23  ;;  %16616 = vst [vmem:[#allocation144_spill] sm:$0xff] %v12663_v59  ;;  %v12667_v5 = vpop.permute.xlu1 %7267  ;;  %v12680_v32 = vpack.i.bf16 %v12663_v59, %v12655_v23 }
 0x6b1   : > { %v16618_v44 = vunpack.i.l.bf16 %v12667_v5  ;;  %v16621_v57 = vunpack.i.h.bf16 %v12667_v5  ;;  %v16690_v25 = vunpack.i.h.bf16 %v12667_v5 }
 0x6b2   : > { %16617 = vst [vmem:[#allocation63_spill] sm:$0xff] %v12680_v32  ;;  %7557 = vrot.lane.b32.xlu0 %v12680_v32, %s8307_s23 }
 0x6b3   : > { %v12694_v29 = vsel %vm458_vm3, %v16619_v11, %v16618_v44  ;;  %v12702_v56 = vsel %vm458_vm3, %v16622_v14, %v16621_v57  ;;  %v16625_v57 = vunpack.i.l.bf16 %v12448_v49  ;;  %v7369_v49 = vunpack.i.l.bf16 %v12548_v4  ;;  %v12753_v11 = vpop.permute.xlu0 %7387 }
 0x6b4   : > { %16620 = vst [vmem:[#allocation64_spill] sm:$0xff] %v12694_v29  ;;  %16623 = vst [vmem:[#allocation100_spill] sm:$0xff] %v12702_v56  ;;  %v12706_v48 = vpop.permute.xlu1 %7272  ;;  %v12731_v44 = vpack.i.bf16 %v12702_v56, %v12694_v29  ;;  %v7339_v29 = vunpack.i.l.bf16 %v12482_v54 }
 0x6b5   : > { %v12719_v14 = vsel %vm419_vm1, %v16625_v57, %v16624_v46  ;;  %v16632_v46 = vunpack.i.l.bf16 %v12452_v24  ;;  %v12750_v57 = vsel %vm419_vm1, %v16635_v33, %v16634_v18  ;;  %v16637_v15 = vunpack.i.l.bf16 %v12706_v48 }
 0x6b6   : > { %16626 = vst [vmem:[#allocation99_spill] sm:$0xff] %v12719_v14  ;;  %16630 = vst [vmem:[#allocation133_spill] sm:$0xff] %v12731_v44  ;;  %7437 = vrot.lane.b32.xlu1 %v12731_v44, %s8306_s22  ;;  %v12773_v18 = vpack.i.bf16 %v12727_v16, %v12719_v14  ;;  %v16643_v33 = vunpack.i.l.bf16 %v12456_v21  ;;  %v16649_v16 = vunpack.i.l.bf16 %v12518_v28 }
 0x6b7   : > { %v12741_v7 = vsel %vm419_vm1, %v16632_v46, %v16631_v12  ;;  %16636 = vst [vmem:[#allocation95_spill] sm:$0xff] %v12750_v57  ;;  %v12759_v12 = vsel %vm458_vm3, %v7209_v53, %v16637_v15  ;;  %v16639_v46 = vunpack.i.h.bf16 %v12706_v48  ;;  %v16642_v15 = vunpack.i.l.bf16 %v12550_v47 }
 0x6b8   : > { %16633 = vst [vmem:[#allocation96_spill] sm:$0xff] %v12741_v7  ;;  %16638 = vst [vmem:[#allocation113_spill] sm:$0xff] %v12759_v12  ;;  %v12799_v14 = vsel %vm419_vm1, %v16649_v16, %v7309_v40  ;;  %v12813_v21 = vpack.i.bf16 %v12750_v57, %v12741_v7  ;;  %v12818_v16 = vsel %vm419_vm1, %v7310_v1, %v7370_v42  ;;  %v16661_v57 = vunpack.i.l.bf16 %v12460_v51 }
 0x6b9   : > { %v12765_v27 = vsel %vm458_vm3, %v7210_v52, %v16639_v46  ;;  %16641 = vst [vmem:[#allocation71_spill] sm:$0xff] %v12773_v18  ;;  %v12781_v55 = vsel %vm432_vm0, %v16643_v33, %v16642_v15  ;;  %v16645_v46 = vunpack.i.h.bf16 %v12550_v47  ;;  %16650 = vst [vmem:[#allocation88_spill] sm:$0xff] %v12799_v14  ;;  %v16651_v15 = vunpack.i.h.bf16 %v12518_v28 }
 0x6ba   : > { %16640 = vst [vmem:[#allocation106_spill] sm:$0xff] %v12765_v27  ;;  %16644 = vst [vmem:[#allocation70_spill] sm:$0xff] %v12781_v55  ;;  %v12793_v4 = vpack.i.bf16 %v12765_v27, %v12759_v12  ;;  %7442 = vrot.lane.b32.xlu1 %v12773_v18, %s8306_s22  ;;  %v7374_v33 = vunpack.i.l.bf16 %v12584_v6  ;;  %v16664_v7 = vunpack.i.h.bf16 %v12460_v51  ;;  %v16670_v51 = vunpack.i.h.bf16 %v12608_v10 }
 0x6bb   : > { %v12789_v24 = vsel %vm432_vm0, %v16646_v0, %v16645_v46  ;;  %v12805_v47 = vsel %vm419_vm1, %v16651_v15, %v7310_v1  ;;  %v12809_v0 = vsel %vm419_vm1, %v7309_v40, %v7369_v49  ;;  %16654 = vst [vmem:[#allocation101_spill] sm:$0xff] %v12818_v16  ;;  %v16655_v46 = vunpack.i.l.bf16 %v12454_v26 }
 0x6bc   : > { %16647 = vst [vmem:[#allocation25_spill] sm:$0xff] %v12789_v24  ;;  %16648 = vst [vmem:[#allocation23_spill] sm:$0xff] %v12793_v4  ;;  %v12830_v40 = vsel %vm419_vm1, %v7370_v42, %v16657_v2  ;;  %7572 = vrot.lane.b32.xlu0 %v12793_v4, %s8307_s23  ;;  %v7375_v1 = vunpack.i.h.bf16 %v12584_v6  ;;  %v16663_v42 = vunpack.i.h.bf16 %v12578_v35  ;;  %v7393_v6 = vpop.permute.xlu0 %7392  ;;  %v16673_v10 = vunpack.i.l.bf16 %v12466_v43 }
 0x6bd   : > { %16652 = vst [vmem:[#allocation152_spill] sm:$0xff] %v12805_v47  ;;  %16653 = vst [vmem:[#allocation103_spill] sm:$0xff] %v12809_v0  ;;  %v12824_v15 = vsel %vm419_vm1, %v7369_v49, %v16655_v46  ;;  %v12840_v49 = vpack.i.bf16 %v12789_v24, %v12781_v55  ;;  %v16660_v46 = vunpack.i.l.bf16 %v12578_v35  ;;  %v16669_v35 = vunpack.i.h.bf16 %v12468_v37 }
 0x6be   : > { %16656 = vst [vmem:[#allocation53_spill] sm:$0xff] %v12824_v15  ;;  %16658 = vst [vmem:[#allocation153_spill] sm:$0xff] %v12830_v40  ;;  %v12856_v20 = vsel %vm432_vm0, %v16664_v7, %v16663_v42  ;;  %v7384_v42 = vunpack.i.l.bf16 %v12676_v22  ;;  %v16675_v37 = vunpack.i.h.bf16 %v12466_v43  ;;  %v16677_v24 = vunpack.i.l.bf16 %v12462_v62 }
 0x6bf   : > { %16659 = vst [vmem:[#allocation32_spill] sm:$0xff] %v12840_v49  ;;  %v12848_v2 = vsel %vm432_vm0, %v16661_v57, %v16660_v46  ;;  %16665 = vst [vmem:[#allocation55_spill] sm:$0xff] %v12856_v20  ;;  %v12866_v57 = vsel %vm445_vm2, %v16667_v45, %v16666_v34  ;;  %v12874_v7 = vsel %vm445_vm2, %v16670_v51, %v16669_v35  ;;  %v7385_v46 = vunpack.i.h.bf16 %v12676_v22 }
 0x6c0   : > { %16662 = vst [vmem:[#allocation27_spill] sm:$0xff] %v12848_v2  ;;  %16668 = vst [vmem:[#allocation154_spill] sm:$0xff] %v12866_v57  ;;  %7587 = vrot.lane.b32.xlu0 %v12773_v18, %s8308_s11  ;;  %7447 = vrot.lane.b32.xlu1 %v12840_v49, %s8306_s22  ;;  %v12884_v34 = vpack.i.bf16 %v12830_v40, %v12824_v15  ;;  %v12890_v45 = vsel %vm432_vm0, %v7374_v33, %v16673_v10  ;;  %v7395_v35 = vunpack.i.h.bf16 %v7393_v6 }
 0x6c1   : > { %16671 = vst [vmem:[#allocation24_spill] sm:$0xff] %v12874_v7  ;;  %16674 = vst [vmem:[#allocation56_spill] sm:$0xff] %v12890_v45  ;;  %v12896_v22 = vsel %vm432_vm0, %v7375_v1, %v16675_v37  ;;  %v7394_v51 = vunpack.i.l.bf16 %v7393_v6  ;;  %v12902_v55 = vsel %vm432_vm0, %v16677_v24, %v7374_v33  ;;  %v16679_v40 = vunpack.i.h.bf16 %v12462_v62 }
 0x6c2   : > { %16672 = vst [vmem:[#allocation22_spill] sm:$0xff] %v12884_v34  ;;  %16676 = vst [vmem:[#allocation57_spill] sm:$0xff] %v12896_v22  ;;  %v12912_v15 = vpack.i.bf16 %v12874_v7, %v12866_v57  ;;  %v12916_v37 = vpack.i.bf16 %v12856_v20, %v12848_v2  ;;  %v16682_v6 = vmov %v16677_v24  ;;  %v16688_v18 = vunpack.i.l.bf16 %v12667_v5  ;;  %v16789_v7 = vld [vmem:[#allocation76_spill] sm:$0xff]  ;;  %v16793_v2 = vld [vmem:[#allocation118_spill] sm:$0xff] }
 0x6c3   : > { %16678 = vst [vmem:[#allocation36_spill] sm:$0xff] %v12902_v55  ;;  %v12908_v10 = vsel %vm432_vm0, %v16679_v40, %v7375_v1  ;;  %v12924_v24 = vsel %vm432_vm0, %v16683_v63, %v16682_v6  ;;  %v16685_v33 = vmov %v16679_v40  ;;  %v16686_v40 = vunpack.i.h.bf16 %v12618_v19 }
 0x6c4   : > { %16680 = vst [vmem:[#allocation29_spill] sm:$0xff] %v12908_v10  ;;  %16681 = vst [vmem:[#allocation31_spill] sm:$0xff] %v12912_v15  ;;  %v12938_v44 = vsel %vm458_vm3, %v16688_v18, %v7209_v53  ;;  %v12944_v63 = vsel %vm458_vm3, %v16690_v25, %v7210_v52  ;;  %v7340_v62 = vunpack.i.h.bf16 %v12482_v54  ;;  %v16692_v6 = vunpack.i.l.bf16 %v12470_v17  ;;  %v7398_v18 = vpop.permute.xlu0 %7397  ;;  %7597 = vrot.lane.b32.xlu0 %v12813_v21, %s8308_s11 }
 0x6c5   : > { %16684 = vst [vmem:[#allocation26_spill] sm:$0xff] %v12924_v24  ;;  %v12932_v1 = vsel %vm432_vm0, %v16686_v40, %v16685_v33  ;;  %16689 = vst [vmem:[#allocation38_spill] sm:$0xff] %v12938_v44  ;;  %v16694_v40 = vunpack.i.h.bf16 %v12470_v17  ;;  %7452 = vrot.lane.b32.xlu1 %v12912_v15, %s8306_s22  ;;  %v7390_v25 = vunpack.i.h.bf16 %v12753_v11  ;;  %v7389_v52 = vunpack.i.l.bf16 %v12753_v11 }
 0x6c6   : > { %16687 = vst [vmem:[#allocation40_spill] sm:$0xff] %v12932_v1  ;;  %16691 = vst [vmem:[#allocation33_spill] sm:$0xff] %v12944_v63  ;;  %v12951_v33 = vsel %vm445_vm2, %v16692_v6, %v7384_v42  ;;  %v16696_v5 = vunpack.i.l.bf16 %v12478_v61  ;;  %v16700_v27 = vunpack.i.l.bf16 %v12474_v39  ;;  %v12985_v11 = vpack.i.bf16 %v12944_v63, %v12938_v44 }
 0x6c7   : > { %16693 = vst [vmem:[#allocation28_spill] sm:$0xff] %v12951_v33  ;;  %v12957_v53 = vsel %vm445_vm2, %v16694_v40, %v7385_v46  ;;  %v16698_v40 = vunpack.i.h.bf16 %v12478_v61  ;;  %v7400_v12 = vunpack.i.h.bf16 %v7398_v18  ;;  %v7399_v56 = vunpack.i.l.bf16 %v7398_v18 }
 0x6c8   : > { %16695 = vst [vmem:[#allocation94_spill] sm:$0xff] %v12957_v53  ;;  %v12969_v6 = vsel %vm458_vm3, %v16696_v5, %v7394_v51  ;;  %v12981_v15 = vsel %vm445_vm2, %v7384_v42, %v16700_v27  ;;  %16702 = vst [vmem:[#allocation126_spill] sm:$0xff] %v12985_v11  ;;  %v12989_v5 = vpack.i.bf16 %v12932_v1, %v12924_v24  ;;  %v16707_v42 = vunpack.i.l.bf16 %v12464_v3 }
 0x6c9   : > { %16697 = vst [vmem:[#allocation93_spill] sm:$0xff] %v12969_v6  ;;  %v12975_v38 = vsel %vm458_vm3, %v16698_v40, %v7395_v35  ;;  %16701 = vst [vmem:[#allocation37_spill] sm:$0xff] %v12981_v15  ;;  %v12993_v40 = vpack.i.bf16 %v12957_v53, %v12951_v33  ;;  %v13000_v27 = vsel %vm445_vm2, %v7385_v46, %v16705_v30  ;;  %v16708_v63 = vunpack.i.l.bf16 %v12638_v58  ;;  %v16779_v53 = vld [vmem:[#allocation32_spill] sm:$0xff]  ;;  %v13298_v33 = vpop.permute.xlu0 %7402 }
 0x6ca   : > { %16699 = vst [vmem:[#allocation39_spill] sm:$0xff] %v12975_v38  ;;  %16703 = vst [vmem:[#allocation123_spill] sm:$0xff] %v12989_v5  ;;  %7607 = vrot.lane.b32.xlu0 %v12840_v49, %s8308_s11  ;;  %7457 = vrot.lane.b32.xlu1 %v12985_v11, %s8306_s22  ;;  %v13016_v54 = vpack.i.bf16 %v12975_v38, %v12969_v6  ;;  %v16711_v30 = vunpack.i.h.bf16 %v12464_v3  ;;  %v16712_v46 = vunpack.i.h.bf16 %v12638_v58  ;;  %v16716_v11 = vunpack.i.h.bf16 %v12474_v39 }
 0x6cb   : > { %16704 = vst [vmem:[#allocation68_spill] sm:$0xff] %v12993_v40  ;;  %16706 = vst [vmem:[#allocation67_spill] sm:$0xff] %v13000_v27  ;;  %v13008_v44 = vsel %vm445_vm2, %v16708_v63, %v16707_v42  ;;  %v16714_v63 = vunpack.i.l.bf16 %v12474_v39  ;;  %v16718_v3 = vunpack.i.l.bf16 %v12470_v17  ;;  %v13056_v39 = vsel %vm458_vm3, %v7395_v35, %v7340_v62 }
 0x6cc   : > { %16709 = vst [vmem:[#allocation108_spill] sm:$0xff] %v13008_v44  ;;  %16710 = vst [vmem:[#allocation107_spill] sm:$0xff] %v13016_v54  ;;  %v13024_v18 = vsel %vm445_vm2, %v16712_v46, %v16711_v30  ;;  %v13036_v49 = vsel %vm445_vm2, %v16716_v11, %v7390_v25  ;;  %v16720_v30 = vunpack.i.h.bf16 %v12470_v17  ;;  %v16724_v11 = vunpack.i.l.bf16 %v12472_v50 }
 0x6cd   : > { %16713 = vst [vmem:[#allocation115_spill] sm:$0xff] %v13024_v18  ;;  %v13030_v42 = vsel %vm445_vm2, %v16714_v63, %v7389_v52  ;;  %16717 = vst [vmem:[#allocation137_spill] sm:$0xff] %v13036_v49  ;;  %v13042_v58 = vsel %vm445_vm2, %v7389_v52, %v16718_v3  ;;  %v13052_v63 = vsel %vm458_vm3, %v7394_v51, %v7339_v29  ;;  %v16725_v38 = vunpack.i.l.bf16 %v12706_v48 }
 0x6ce   : > { %16715 = vst [vmem:[#allocation114_spill] sm:$0xff] %v13030_v42  ;;  %16719 = vst [vmem:[#allocation136_spill] sm:$0xff] %v13042_v58  ;;  %v13048_v46 = vsel %vm445_vm2, %v7390_v25, %v16720_v30  ;;  %v13068_v17 = vsel %vm458_vm3, %v7339_v29, %v7399_v56  ;;  %v13072_v51 = vsel %vm458_vm3, %v7340_v62, %v7400_v12  ;;  %v16729_v25 = vunpack.i.l.bf16 %v12478_v61 }
 0x6cf   : > { %16721 = vst [vmem:[#allocation74_spill] sm:$0xff] %v13048_v46  ;;  %16722 = vst [vmem:[#allocation73_spill] sm:$0xff] %v13052_v63  ;;  %v13064_v52 = vsel %vm458_vm3, %v16725_v38, %v16724_v11  ;;  %v16731_v3 = vunpack.i.h.bf16 %v12478_v61  ;;  %7617 = vrot.lane.b32.xlu0 %v12916_v37, %s8308_s11  ;;  %7462 = vrot.lane.b32.xlu1 %v12524_v8, %s8306_s22  ;;  %v13092_v29 = vpack.i.bf16 %v12908_v10, %v12902_v55 }
 0x6d0   : > { %16723 = vst [vmem:[#allocation110_spill] sm:$0xff] %v13056_v39  ;;  %16726 = vst [vmem:[#allocation109_spill] sm:$0xff] %v13064_v52  ;;  %v13078_v35 = vsel %vm458_vm3, %v7399_v56, %v16729_v25  ;;  %v13096_v56 = vpack.i.bf16 %v12896_v22, %v12890_v45  ;;  %v16735_v61 = vunpack.i.h.bf16 %v12472_v50  ;;  %v16736_v62 = vunpack.i.h.bf16 %v12706_v48  ;;  %v16773_v45 = vld [vmem:[#allocation61_spill] sm:$0xff] }
 0x6d1   : > { %16727 = vst [vmem:[#allocation117_spill] sm:$0xff] %v13068_v17  ;;  %16728 = vst [vmem:[#allocation116_spill] sm:$0xff] %v13072_v51  ;;  %v13084_v38 = vsel %vm458_vm3, %v7400_v12, %v16731_v3  ;;  %v13108_v30 = vpack.i.bf16 %v13000_v27, %v12981_v15  ;;  %v13112_v11 = vpack.i.bf16 %v13024_v18, %v13008_v44  ;;  %v16785_v27 = vld [vmem:[#allocation146_spill] sm:$0xff] }
 0x6d2   : > { %16730 = vst [vmem:[#allocation129_spill] sm:$0xff] %v13078_v35  ;;  %16732 = vst [vmem:[#allocation128_spill] sm:$0xff] %v13084_v38  ;;  %v13104_v12 = vsel %vm458_vm3, %v16736_v62, %v16735_v61  ;;  %v13116_v25 = vpack.i.bf16 %v13036_v49, %v13030_v42  ;;  %v13120_v50 = vpack.i.bf16 %v13048_v46, %v13042_v58  ;;  %v16771_v58 = vld [vmem:[#allocation85_spill] sm:$0xff] }
 0x6d3   : > { %16733 = vst [vmem:[#allocation78_spill] sm:$0xff] %v13092_v29  ;;  %16734 = vst [vmem:[#allocation77_spill] sm:$0xff] %v13096_v56  ;;  %v13124_v48 = vpack.i.bf16 %v13056_v39, %v13052_v63  ;;  %v13128_v3 = vpack.i.bf16 %v13072_v51, %v13068_v17  ;;  %v13132_v61 = vpack.i.bf16 %v13084_v38, %v13078_v35  ;;  %7622 = vrot.lane.b32.xlu0 %v12884_v34, %s8306_s22  ;;  %v16775_v46 = vld [vmem:[#allocation133_spill] sm:$0xff]  ;;  %v16777_v17 = vld [vmem:[#allocation71_spill] sm:$0xff]  ;;  %v13282_v51 = vpop.permute.xlu1 %7277 }
 0x6d4   : > { %16737 = vst [vmem:[#allocation112_spill] sm:$0xff] %v13104_v12  ;;  %16738 = vst [vmem:[#allocation111_spill] sm:$0xff] %v13108_v30  ;;  %7467 = vrot.lane.b32.xlu1 %v12588_v41, %s8306_s22  ;;  %v13140_v62 = vpack.i.bf16 %v13104_v12, %v13064_v52  ;;  %v13144_v8 = vpack.i.bf16 %v12805_v47, %v12799_v14  ;;  %v16751_v41 = vunpack.i.h.bf16 %v12618_v19  ;;  %v16782_v39 = vld [vmem:[#allocation31_spill] sm:$0xff]  ;;  %v16784_v12 = vld [vmem:[#allocation126_spill] sm:$0xff] }
 0x6d5   : > { %16739 = vst [vmem:[#allocation120_spill] sm:$0xff] %v13112_v11  ;;  %16740 = vst [vmem:[#allocation119_spill] sm:$0xff] %v13116_v25  ;;  %v16752_v25 = vunpack.i.h.bf16 %v12466_v43 }
 0x6d6   : > { %16741 = vst [vmem:[#allocation140_spill] sm:$0xff] %v13120_v50  ;;  %16742 = vst [vmem:[#allocation139_spill] sm:$0xff] %v13124_v48  ;;  %v13148_v50 = vpack.i.bf16 %v12818_v16, %v12809_v0 }
 0x6d7   : > { %16743 = vst [vmem:[#allocation98_spill] sm:$0xff] %v13128_v3  ;;  %16744 = vst [vmem:[#allocation97_spill] sm:$0xff] %v13132_v61  ;;  %v16748_v61 = vunpack.i.l.bf16 %v12618_v19  ;;  %v16749_v3 = vunpack.i.l.bf16 %v12466_v43  ;;  %v13164_v56 = vsel %vm432_vm0, %v16752_v25, %v16751_v41  ;;  %7627 = vrot.lane.b32.xlu0 %v12989_v5, %s8306_s22  ;;  %v16758_v41 = vunpack.i.h.bf16 %v12518_v28  ;;  %v13292_v35 = vpop.permute.xlu1 %7282 }
 0x6d8   : > { %16745 = vst [vmem:[#allocation125_spill] sm:$0xff] %v13140_v62  ;;  %16746 = vst [vmem:[#allocation124_spill] sm:$0xff] %v13144_v8  ;;  %7472 = vrot.lane.b32.xlu1 %v12680_v32, %s8306_s22  ;;  %v16755_v8 = vunpack.i.l.bf16 %v12454_v26  ;;  %v16759_v43 = vunpack.i.h.bf16 %v12454_v26  ;;  %v13310_v26 = vpop.permute.xlu0 %7407 }
 0x6d9   : > { %16747 = vst [vmem:[#allocation35_spill] sm:$0xff] %v13148_v50  ;;  %v13156_v34 = vsel %vm432_vm0, %v16749_v3, %v16748_v61  ;;  %16753 = vst [vmem:[#allocation65_spill] sm:$0xff] %v13164_v56  ;;  %v16754_v50 = vunpack.i.l.bf16 %v12518_v28  ;;  %v16764_v61 = vld [vmem:[#allocation83_spill] sm:$0xff] }
 0x6da   : > { %16750 = vst [vmem:[#allocation87_spill] sm:$0xff] %v13156_v34  ;;  %v13180_v19 = vpack.i.bf16 %v13164_v56, %v13156_v34  ;;  %v13188_v25 = vsel %vm419_vm1, %v16759_v43, %v16758_v41  ;;  %v16772_v28 = vld [vmem:[#allocation77_spill] sm:$0xff] }
 0x6db   : > { %v13176_v3 = vsel %vm419_vm1, %v16755_v8, %v16754_v50  ;;  %16760 = vst [vmem:[#allocation89_spill] sm:$0xff] %v13188_v25  ;;  %7632 = vrot.lane.b32.xlu0 %v12993_v40, %s8306_s22  ;;  %v13300_v57 = vpop.permute.xlu1 %7287  ;;  %v16783_v50 = vld [vmem:[#allocation22_spill] sm:$0xff] }
 0x6dc   : > { %16756 = vst [vmem:[#allocation141_spill] sm:$0xff] %v13176_v3  ;;  %16757 = vst [vmem:[#allocation60_spill] sm:$0xff] %v13180_v19  ;;  %7477 = vrot.lane.b32.xlu1 %v12793_v4, %s8306_s22  ;;  %v13200_v8 = vpack.i.bf16 %v13188_v25, %v13176_v3  ;;  %v16774_v14 = vld [vmem:[#allocation119_spill] sm:$0xff]  ;;  %v13318_v42 = vpop.permute.xlu0 %7412 }
 0x6dd   : > { %v16780_v38 = vld [vmem:[#allocation140_spill] sm:$0xff] }
 0x6de   : > { %16761 = vst [vmem:[#allocation72_spill] sm:$0xff] %v13200_v8  ;;  %v16776_v41 = vld [vmem:[#allocation98_spill] sm:$0xff]  ;;  %v16781_v63 = vld [vmem:[#allocation97_spill] sm:$0xff] }
 0x6df   : > { %7637 = vrot.lane.b32.xlu0 %v13016_v54, %s8306_s22  ;;  %v16770_v43 = vld [vmem:[#allocation124_spill] sm:$0xff]  ;;  %v13312_v52 = vpop.permute.xlu1 %7292 }
 0x6e0   : > { %7482 = vrot.lane.b32.xlu1 %v12813_v21, %s8306_s22  ;;  %v16778_v6 = vld [vmem:[#allocation35_spill] sm:$0xff]  ;;  %v13332_v59 = vpop.permute.xlu0 %7417 }
 0x6e3   : > { %7642 = vrot.lane.b32.xlu0 %v13200_v8, %s8306_s22  ;;  %v13320_v49 = vpop.permute.xlu1 %7357 }
 0x6e4   : > { %7487 = vrot.lane.b32.xlu1 %v12916_v37, %s8306_s22 }
 0x6e7   : > { %7647 = vrot.lane.b32.xlu0 %v13092_v29, %s8306_s22 }
 0x6e8   : > { %7492 = vrot.lane.b32.xlu1 %v13112_v11, %s8306_s22 }
 0x6eb   : > { %7652 = vrot.lane.b32.xlu0 %v13108_v30, %s8306_s22 }
 0x6ec   : > { %7497 = vrot.lane.b32.xlu1 %v13140_v62, %s8306_s22 }
 0x6ef   : > { %7657 = vrot.lane.b32.xlu0 %v13124_v48, %s8306_s22 }
 0x6f0   : > { %7502 = vrot.lane.b32.xlu1 %v16764_v61, %s8307_s23 }
 0x6f3   : > { %7662 = vrot.lane.b32.xlu0 %v16770_v43, %s8306_s22 }
 0x6f4   : > { %7507 = vrot.lane.b32.xlu1 %v16771_v58, %s8307_s23 }
 0x6f7   : > { %7667 = vrot.lane.b32.xlu0 %v16772_v28, %s8306_s22 }
 0x6f8   : > { %7512 = vrot.lane.b32.xlu1 %v16773_v45, %s8307_s23 }
 0x6fb   : > { %7672 = vrot.lane.b32.xlu0 %v16774_v14, %s8306_s22 }
 0x6fc   : > { %7517 = vrot.lane.b32.xlu1 %v16775_v46, %s8307_s23 }
 0x6ff   : > { %7677 = vrot.lane.b32.xlu0 %v16776_v41, %s8306_s22 }
 0x700   : > { %7522 = vrot.lane.b32.xlu1 %v16777_v17, %s8307_s23 }
 0x703   : > { %7682 = vrot.lane.b32.xlu0 %v16778_v6, %s8306_s22 }
 0x704   : > { %7532 = vrot.lane.b32.xlu1 %v12813_v21, %s8307_s23 }
 0x707   : > { %7687 = vrot.lane.b32.xlu0 %v13180_v19, %s8306_s22 }
 0x708   : > { %7537 = vrot.lane.b32.xlu1 %v16779_v53, %s8307_s23 }
 0x70b   : > { %7692 = vrot.lane.b32.xlu0 %v16780_v38, %s8306_s22 }
 0x70c   : > { %7547 = vrot.lane.b32.xlu1 %v12916_v37, %s8307_s23 }
 0x70f   : > { %7697 = vrot.lane.b32.xlu0 %v16781_v63, %s8306_s22  ;;  %s4785_s22 = scalar_lea.sflag [#allocation6], %s396_s30 }
 0x710   : > { %7552 = vrot.lane.b32.xlu1 %v16782_v39, %s8307_s23  ;;  %v13340_v60 = vpop.permute.xlu0 %7527 }
 0x711   : > { %16786 = vst [vmem:[#allocation48_spill] sm:$0xff] %v13340_v60  ;;  %v7420_v60 = vunpack.i.h.bf16 %v13332_v59 }
 0x713   : > { %7702 = vrot.lane.b32.xlu0 %v16783_v50, %s8307_s23  ;;  %v7360_v50 = vunpack.i.h.bf16 %v13320_v49 }
 0x714   : > { %7562 = vrot.lane.b32.xlu1 %v13112_v11, %s8307_s23  ;;  %v13326_v23 = vpop.permute.xlu1 %7422 }
 0x715   : > { %v7425_v56 = vunpack.i.h.bf16 %v13326_v23  ;;  %v7424_v55 = vunpack.i.l.bf16 %v13326_v23  ;;  %v16795_v23 = vld [vmem:[#allocation44_spill] sm:$0xff] }
 0x717   : > { %7707 = vrot.lane.b32.xlu0 %v12989_v5, %s8307_s23 }
 0x718   : > { %7567 = vrot.lane.b32.xlu1 %v16784_v12, %s8307_s23  ;;  %v13346_v44 = vpop.permute.xlu0 %7542 }
 0x719   : > { %16788 = vst [vmem:[#allocation66_spill] sm:$0xff] %v13346_v44 }
 0x71b   : > { %7712 = vrot.lane.b32.xlu0 %v12993_v40, %s8307_s23 }
 0x71c   : > { %7577 = vrot.lane.b32.xlu1 %v13140_v62, %s8307_s23  ;;  %v13334_v15 = vpop.permute.xlu1 %7427 }
 0x71f   : > { %7717 = vrot.lane.b32.xlu0 %v13016_v54, %s8307_s23  ;;  %v4180_v54 = vld [vmem:[%s15422_s8] sm:$0xff] }
 0x720   : > { %7582 = vrot.lane.b32.xlu1 %v16764_v61, %s8308_s11  ;;  %v13348_v18 = vpop.permute.xlu1 %7432 }
 0x723   : > { %7722 = vrot.lane.b32.xlu0 %v13200_v8, %s8307_s23 }
 0x724   : > { %7592 = vrot.lane.b32.xlu1 %v16785_v27, %s8308_s11  ;;  %v13354_v22 = vpop.permute.xlu0 %7557 }
 0x725   : > { %16790 = vst [vmem:[#allocation156_spill] sm:$0xff] %v13354_v22 }
 0x727   : > { %7737 = vrot.lane.b32.xlu0 %v16787_v31, %s8308_s11 }
 0x728   : > { %7602 = vrot.lane.b32.xlu1 %v16771_v58, %s8308_s11  ;;  %v13356_v24 = vpop.permute.xlu1 %7437 }
 0x72b   : > { %7742 = vrot.lane.b32.xlu0 %v16778_v6, %s8307_s23 }
 0x72c   : > { %7612 = vrot.lane.b32.xlu1 %v16789_v7, %s8308_s11  ;;  %v7443_v34 = vpop.permute.xlu1 %7442 }
 0x72d   : > { %v7445_v10 = vunpack.i.h.bf16 %v7443_v34  ;;  %v7444_v36 = vunpack.i.l.bf16 %v7443_v34 }
 0x72e   : > { %v13362_v1 = vpop.permute.xlu0 %7572 }
 0x72f   : > { %7747 = vrot.lane.b32.xlu0 %v13092_v29, %s8307_s23  ;;  %16791 = vst [vmem:[#allocation82_spill] sm:$0xff] %v13362_v1  ;;  %v3420_v20 = vsel %vm503_vm5, %v7424_v55, %v7444_v36  ;;  %v3421_v47 = vsel %vm503_vm5, %v7425_v56, %v7445_v10  ;;  %v16797_v1 = vld [vmem:[#allocation46_spill] sm:$0xff] }
 0x730   : > { %7727 = vrot.lane.b32.xlu1 %v16770_v43, %s8307_s23  ;;  %v5425_v25 = vpack.c.bf16 %v3421_v47, %v3420_v20  ;;  %v16800_v47 = vld [vmem:[#allocation138_spill] sm:$0xff] }
 0x732   : > { %v13374_v0 = vpop.permute.xlu0 %7587  ;;  %v13376_v16 = vpop.permute.xlu1 %7447  ;;  %5426 = vmatprep.subr.bf16.mxu0 %v5425_v25 }
 0x733   : > { %7762 = vrot.lane.b32.xlu0 %v16792_v13, %s8308_s11  ;;  %16794 = vst [vmem:[#allocation69_spill] sm:$0xff] %v13374_v0 }
 0x734   : > { %7732 = vrot.lane.b32.xlu1 %v16793_v2, %s8308_s11 }
 0x736   : > { %v13382_v34 = vpop.permute.xlu0 %7597 }
 0x737   : > { %7772 = vrot.lane.b32.xlu0 %v16795_v23, %s8308_s11  ;;  %16796 = vst [vmem:[#allocation149_spill] sm:$0xff] %v13382_v34  ;;  %v13384_v3 = vpop.permute.xlu1 %7452  ;;  %v7359_v23 = vunpack.i.l.bf16 %v13320_v49 }
 0x738   : > { %7752 = vrot.lane.b32.xlu1 %v16772_v28, %s8307_s23 }
 0x73b   : > { %7782 = vrot.lane.b32.xlu0 %v13180_v19, %s8307_s23 }
 0x73c   : > { %7757 = vrot.lane.b32.xlu1 %v16797_v1, %s8308_s11  ;;  %v13390_v0 = vpop.permute.xlu0 %7607  ;;  %v13392_v20 = vpop.permute.xlu1 %7457 }
 0x73d   : > { %16798 = vst [vmem:[#allocation155_spill] sm:$0xff] %v13390_v0  ;;  %16799 = vst [vmem:[#allocation135_spill] sm:$0xff] %v13392_v20  ;;  %v4194_v0 = vcombine.high %v4180_v54, %v4180_v54  ;;  %v7414_v20 = vunpack.i.l.bf16 %v13318_v42 }
 0x73f   : > { %7787 = vrot.lane.b32.xlu0 %v16782_v39, %s8308_s11  ;;  %4266 = vmatprep.mubr.f32.mxu0 %v4194_v0 }
 0x740   : > { %7767 = vrot.lane.b32.xlu1 %v16800_v47, %s8308_s11  ;;  %4550 = vmatprep.mubr.f32.mxu1 %v4194_v0 }
 0x741   : > { %v13398_v25 = vpop.permute.xlu0 %7617  ;;  %v7463_v34 = vpop.permute.xlu1 %7462 }
 0x742   : > { %16801 = vst [vmem:[#allocation18_spill] sm:$0xff] %v13398_v25  ;;  %v7465_v0 = vunpack.i.h.bf16 %v7463_v34 }
 0x743   : > { %7792 = vrot.lane.b32.xlu0 %v13108_v30, %s8307_s23 }
 0x744   : > { %7777 = vrot.lane.b32.xlu1 %v16773_v45, %s8308_s11  ;;  %v7464_v45 = vunpack.i.l.bf16 %v7463_v34  ;;  %v3401_v28 = vsel %vm503_vm5, %v7445_v10, %v7465_v0 }
 0x745   : > { %v13407_v40 = vpop.permute.xlu0 %7622 }
 0x746   : > { %16802 = vst [vmem:[#allocation19_spill] sm:$0xff] %v13407_v40  ;;  %v13409_v39 = vpop.permute.xlu1 %7467 }
 0x747   : > { %7807 = vrot.lane.b32.xlu0 %v13112_v11, %s8308_s11 }
 0x748   : > { %7797 = vrot.lane.b32.xlu1 %v16774_v14, %s8307_s23 }
 0x749   : > { %v13415_v25 = vpop.permute.xlu0 %7627 }
 0x74a   : > { %16803 = vst [vmem:[#allocation20_spill] sm:$0xff] %v13415_v25  ;;  %v13417_v22 = vpop.permute.xlu1 %7472 }
 0x74b   : > { %16804 = vst [vmem:[#allocation21_spill] sm:$0xff] %v13417_v22  ;;  %7812 = vrot.lane.b32.xlu0 %v16780_v38, %s8307_s23 }
 0x74c   : > { %7802 = vrot.lane.b32.xlu1 %v12680_v32, %s8308_s11  ;;  %v3400_v32 = vsel %vm503_vm5, %v7444_v36, %v7464_v45 }
 0x74d   : > { %v13423_v54 = vpop.permute.xlu0 %7632 }
 0x74e   : > { %16805 = vst [vmem:[#allocation83_spill] sm:$0xff] %v13423_v54  ;;  %v13425_v30 = vpop.permute.xlu1 %7477  ;;  %v16818_v54 = vld [vmem:[#allocation80_spill] sm:$0xff] }
 0x74f   : > { %16806 = vst [vmem:[#allocation85_spill] sm:$0xff] %v13425_v30  ;;  %7817 = vrot.lane.b32.xlu0 %v13124_v48, %s8307_s23  ;;  %v16830_v49 = vunpack.i.l.bf16 %v16818_v54 }
 0x750   : > { %7822 = vrot.lane.b32.xlu1 %v16776_v41, %s8307_s23 }
 0x751   : > { %v13431_v14 = vpop.permute.xlu0 %7637 }
 0x752   : > { %16807 = vst [vmem:[#allocation71_spill] sm:$0xff] %v13431_v14  ;;  %v7483_v11 = vpop.permute.xlu1 %7482 }
 0x753   : > { %v7485_v19 = vunpack.i.h.bf16 %v7483_v11  ;;  %v7484_v38 = vunpack.i.l.bf16 %v7483_v11  ;;  %7832 = vrot.lane.b32.xlu0 %v16781_v63, %s8307_s23 }
 0x754   : > { %7827 = vrot.lane.b32.xlu1 %v16775_v46, %s8308_s11  ;;  %v15884_v46 = vunpack.i.l.bf16 %v13407_v40 }
 0x755   : > { %v3441_v34 = vsel %vm503_vm5, %v7485_v19, %v7425_v56  ;;  %v3440_v41 = vsel %vm503_vm5, %v7484_v38, %v7424_v55  ;;  %v3380_v11 = vsel %vm503_vm5, %v7464_v45, %v7484_v38  ;;  %v3381_v36 = vsel %vm503_vm5, %v7465_v0, %v7485_v19  ;;  %v13449_v48 = vpop.permute.xlu0 %7642  ;;  %v16816_v0 = vld [vmem:[#allocation134_spill] sm:$0xff] }
 0x756   : > { %16808 = vst [vmem:[#allocation32_spill] sm:$0xff] %v13449_v48  ;;  %v13451_v10 = vpop.permute.xlu1 %7487  ;;  %v5427_v63 = vpack.c.bf16 %v3441_v34, %v3440_v41  ;;  %v5625_v14 = vpack.c.bf16 %v3381_v36, %v3380_v11  ;;  %v15885_v29 = vunpack.i.h.bf16 %v13449_v48  ;;  %v15887_v56 = vunpack.i.l.bf16 %v13449_v48  ;;  %v16811_v34 = vld [vmem:[#allocation30_spill] sm:$0xff] }
 0x757   : > { %v15886_v55 = vunpack.i.h.bf16 %v13407_v40  ;;  %7837 = vrot.lane.b32.xlu0 %v16784_v12, %s8308_s11  ;;  %v5627_v45 = vpack.c.bf16 %v3401_v28, %v3400_v32  ;;  %v7215_v11 = vunpack.i.h.bf16 %v16811_v34  ;;  %v7214_v36 = vunpack.i.l.bf16 %v16811_v34  ;;  %v16817_v12 = vld [vmem:[#allocation122_spill] sm:$0xff] }
 0x758   : > { %7842 = vrot.lane.b32.xlu1 %v12793_v4, %s8308_s11  ;;  %5428 = vmatpush1.bf16.msra.mxu0 %v5427_v63  ;;  %v3422_v38 = vsel %vm503_vm5, %v15884_v46, %v15887_v56  ;;  %v16810_v63 = vld [vmem:[#allocation145_spill] sm:$0xff]  ;;  %v7280_v4 = vunpack.i.h.bf16 %v13282_v51  ;;  %v7405_v34 = vunpack.i.h.bf16 %v13298_v33  ;;  %v16828_v25 = vunpack.i.h.bf16 %v16816_v0 }
 0x759   : > { %5626 = vmatprep.subr.bf16.mxu1 %v5625_v14  ;;  %v13467_v19 = vpop.permute.xlu0 %7647  ;;  %v3423_v32 = vsel %vm503_vm5, %v15886_v55, %v15885_v29  ;;  %v16814_v55 = vld [vmem:[#allocation142_spill] sm:$0xff]  ;;  %v16824_v8 = vunpack.i.l.bf16 %v16810_v63 }
 0x75a   : > { %5628 = vmatpush1.bf16.msra.mxu1 %v5627_v45  ;;  %v13469_v41 = vpop.permute.xlu1 %7492  ;;  %v5429_v14 = vpack.c.bf16 %v3423_v32, %v3422_v38  ;;  %v7279_v45 = vunpack.i.l.bf16 %v13282_v51  ;;  %v7220_v56 = vunpack.i.h.bf16 %v16814_v55  ;;  %v16815_v38 = vld [vmem:[#allocation130_spill] sm:$0xff]  ;;  %v13615_v47 = vsel %vm503_vm5, %v7215_v11, %v7280_v4 }
 0x75b   : > { %16809 = vst [vmem:[#allocation146_spill] sm:$0xff] %v13469_v41  ;;  %7847 = vrot.lane.b32.xlu0 %v13140_v62, %s8308_s11  ;;  %v7345_v32 = vunpack.i.h.bf16 %v16815_v38  ;;  %v7344_v28 = vunpack.i.l.bf16 %v16815_v38  ;;  %v7349_v38 = vunpack.i.l.bf16 %v16817_v12  ;;  %v7289_v62 = vunpack.i.l.bf16 %v13300_v57 }
 0x75c   : > { %7852 = vrot.lane.b32.xlu1 %v16764_v61, %s8309_s13  ;;  %5430 = vmatprep.subr.bf16.mxu0 %v5429_v14  ;;  %v7219_v61 = vunpack.i.l.bf16 %v16814_v55  ;;  %v7404_v14 = vunpack.i.l.bf16 %v13298_v33  ;;  %v7285_v33 = vunpack.i.h.bf16 %v13292_v35  ;;  %v7409_v55 = vunpack.i.l.bf16 %v13310_v26 }
 0x75d   : > { %v13486_v46 = vpop.permute.xlu0 %7652  ;;  %v13523_v5 = vsel %vm503_vm5, %v7280_v4, %v7220_v56  ;;  %v13571_v22 = vsel %vm564_vm6, %v7289_v62, %v16824_v8 }
 0x75e   : > { %16812 = vst [vmem:[#allocation50_spill] sm:$0xff] %v13486_v46  ;;  %v13488_v29 = vpop.permute.xlu1 %7497  ;;  %v13508_v51 = vsel %vm503_vm5, %v7279_v45, %v7219_v61  ;;  %v7284_v46 = vunpack.i.l.bf16 %v13292_v35  ;;  %v13527_v35 = vsel %vm503_vm5, %v7404_v14, %v7349_v38  ;;  %v13547_v6 = vsel %vm503_vm5, %v7285_v33, %v7215_v11  ;;  %16825 = vst [vmem:[#allocation30_spill] sm:$0xff] %v13571_v22  ;;  %v16835_v11 = vld [vmem:[#allocation105_spill] sm:$0xff] }
 0x75f   : > { %16813 = vst [vmem:[#allocation76_spill] sm:$0xff] %v13488_v29  ;;  %7857 = vrot.lane.b32.xlu0 %v16777_v17, %s8309_s13  ;;  %v7350_v29 = vunpack.i.h.bf16 %v16817_v12  ;;  %v7290_v12 = vunpack.i.h.bf16 %v13300_v57  ;;  %v7295_v57 = vunpack.i.h.bf16 %v13312_v52  ;;  %v13635_v4 = vsel %vm503_vm5, %v7349_v38, %v7409_v55 }
 0x760   : > { %7862 = vrot.lane.b32.xlu1 %v16785_v27, %s8309_s13  ;;  %v7410_v27 = vunpack.i.h.bf16 %v13310_v26  ;;  %v7294_v26 = vunpack.i.l.bf16 %v13312_v52  ;;  %v13543_v41 = vsel %vm503_vm5, %v7284_v46, %v7214_v36  ;;  %v16840_v38 = vunpack.i.h.bf16 %v16816_v0 }
 0x761   : > { %v13512_v17 = vpop.permute.xlu0 %7657 }
 0x762   : > { %16819 = vst [vmem:[#allocation127_spill] sm:$0xff] %v13512_v17  ;;  %v13514_v44 = vpop.permute.xlu1 %7502  ;;  %v7419_v17 = vunpack.i.l.bf16 %v13332_v59  ;;  %v13559_v52 = vsel %vm503_vm5, %v7410_v27, %v7345_v32  ;;  %v16822_v59 = vunpack.i.h.bf16 %v16810_v63 }
 0x763   : > { %16820 = vst [vmem:[#allocation118_spill] sm:$0xff] %v13514_v44  ;;  %v13531_v44 = vsel %vm503_vm5, %v7405_v34, %v7350_v29  ;;  %7867 = vrot.lane.b32.xlu0 %v12813_v21, %s8309_s13 }
 0x764   : > { %7872 = vrot.lane.b32.xlu1 %v16771_v58, %s8309_s13  ;;  %v13555_v58 = vsel %vm503_vm5, %v7409_v55, %v7344_v28  ;;  %v13565_v43 = vsel %vm564_vm6, %v7290_v12, %v16822_v59  ;;  %v16826_v59 = vunpack.i.l.bf16 %v16816_v0 }
 0x765   : > { %v13549_v21 = vpop.permute.xlu0 %7662  ;;  %16823 = vst [vmem:[#allocation145_spill] sm:$0xff] %v13565_v43 }
 0x766   : > { %v13551_v30 = vpop.permute.xlu1 %7507  ;;  %v13585_v8 = vsel %vm564_vm6, %v7294_v26, %v16826_v59 }
 0x767   : > { %16821 = vst [vmem:[#allocation46_spill] sm:$0xff] %v13551_v30  ;;  %v7415_v30 = vunpack.i.h.bf16 %v13318_v42  ;;  %7877 = vrot.lane.b32.xlu0 %v16779_v53, %s8309_s13  ;;  %16827 = vst [vmem:[#allocation142_spill] sm:$0xff] %v13585_v8  ;;  %v13591_v42 = vsel %vm564_vm6, %v7295_v57, %v16828_v25  ;;  %v13597_v53 = vsel %vm564_vm6, %v7419_v17, %v16830_v49 }
 0x768   : > { %7882 = vrot.lane.b32.xlu1 %v16789_v7, %s8309_s13  ;;  %16829 = vst [vmem:[#allocation130_spill] sm:$0xff] %v13591_v42  ;;  %16831 = vst [vmem:[#allocation134_spill] sm:$0xff] %v13597_v53  ;;  %v16832_v7 = vunpack.i.h.bf16 %v16818_v54  ;;  %v13611_v25 = vsel %vm503_vm5, %v7214_v36, %v7279_v45  ;;  %v13619_v49 = vsel %vm503_vm5, %v7219_v61, %v7284_v46  ;;  %v16837_v61 = vunpack.i.l.bf16 %v16816_v0  ;;  %v16859_v42 = vld [vmem:[#allocation20_spill] sm:$0xff] }
 0x769   : > { %v13605_v59 = vpop.permute.xlu0 %7667  ;;  %v13631_v36 = vsel %vm503_vm5, %v7345_v32, %v7405_v34  ;;  %v13639_v46 = vsel %vm503_vm5, %v7350_v29, %v7410_v27  ;;  %v7449_v27 = vunpack.i.l.bf16 %v13376_v16  ;;  %v7429_v0 = vunpack.i.l.bf16 %v13334_v15 }
 0x76a   : > { %v13603_v40 = vsel %vm564_vm6, %v7420_v60, %v16832_v7  ;;  %v13607_v48 = vpop.permute.xlu1 %7512  ;;  %v13623_v7 = vsel %vm503_vm5, %v7220_v56, %v7285_v33  ;;  %v13643_v56 = vsel %vm564_vm6, %v7415_v30, %v7360_v50  ;;  %v7450_v33 = vunpack.i.h.bf16 %v13376_v16 }
 0x76b   : > { %16833 = vst [vmem:[#allocation122_spill] sm:$0xff] %v13603_v40  ;;  %v13627_v40 = vsel %vm503_vm5, %v7344_v28, %v7404_v14  ;;  %16834 = vst [vmem:[#allocation80_spill] sm:$0xff] %v13643_v56  ;;  %v13647_v28 = vsel %vm564_vm6, %v7414_v20, %v7359_v23  ;;  %7887 = vrot.lane.b32.xlu0 %v12916_v37, %s8309_s13  ;;  %v13679_v14 = vsel %vm564_vm6, %v16837_v61, %v7289_v62  ;;  %v16839_v37 = vld [vmem:[#allocation47_spill] sm:$0xff] }
 0x76c   : > { %7892 = vrot.lane.b32.xlu1 %v16835_v11, %s8309_s13  ;;  %16838 = vst [vmem:[#allocation157_spill] sm:$0xff] %v13679_v14  ;;  %v13689_v16 = vsel %vm564_vm6, %v16840_v38, %v7290_v12  ;;  %v16842_v11 = vunpack.i.l.bf16 %v16810_v63  ;;  %v16844_v62 = vunpack.i.h.bf16 %v16810_v63  ;;  %v16846_v38 = vunpack.i.l.bf16 %v16818_v54 }
 0x76d   : > { %v13659_v32 = vpop.permute.xlu0 %7672  ;;  %16841 = vst [vmem:[#allocation47_spill] sm:$0xff] %v13689_v16  ;;  %v16848_v63 = vunpack.i.h.bf16 %v16818_v54  ;;  %v7665_v54 = vunpack.i.h.bf16 %v13549_v21  ;;  %v7490_v45 = vunpack.i.h.bf16 %v13451_v10 }
 0x76e   : > { %v13661_v34 = vpop.permute.xlu1 %7517  ;;  %v13695_v55 = vsel %vm564_vm6, %v16842_v11, %v7294_v26  ;;  %v13701_v61 = vsel %vm564_vm6, %v16844_v62, %v7295_v57  ;;  %v13713_v26 = vsel %vm564_vm6, %v16846_v38, %v7414_v20  ;;  %v13723_v11 = vsel %vm564_vm6, %v7359_v23, %v7419_v17 }
 0x76f   : > { %16836 = vst [vmem:[#allocation105_spill] sm:$0xff] %v13661_v34  ;;  %7897 = vrot.lane.b32.xlu0 %v16839_v37, %s8309_s13  ;;  %16843 = vst [vmem:[#allocation158_spill] sm:$0xff] %v13695_v55  ;;  %v13719_v57 = vsel %vm564_vm6, %v16848_v63, %v7415_v30  ;;  %v3424_v62 = vsel %vm503_vm5, %v7429_v0, %v7449_v27  ;;  %v7470_v38 = vunpack.i.h.bf16 %v13409_v39  ;;  %v7469_v23 = vunpack.i.l.bf16 %v13409_v39 }
 0x770   : > { %7902 = vrot.lane.b32.xlu1 %v16793_v2, %s8309_s13  ;;  %16845 = vst [vmem:[#allocation159_spill] sm:$0xff] %v13701_v61  ;;  %v7430_v2 = vunpack.i.h.bf16 %v13334_v15  ;;  %16847 = vst [vmem:[#allocation160_spill] sm:$0xff] %v13713_v26  ;;  %v13727_v15 = vsel %vm564_vm6, %v7360_v50, %v7420_v60  ;;  %v7664_v63 = vunpack.i.l.bf16 %v13549_v21  ;;  %v7489_v17 = vunpack.i.l.bf16 %v13451_v10  ;;  %v16865_v61 = vld [vmem:[#allocation124_spill] sm:$0xff] }
 0x771   : > { %v13705_v37 = vpop.permute.xlu0 %7677  ;;  %16849 = vst [vmem:[#allocation161_spill] sm:$0xff] %v13719_v57  ;;  %16850 = vst [vmem:[#allocation162_spill] sm:$0xff] %v13723_v11  ;;  %v3404_v39 = vsel %vm503_vm5, %v7449_v27, %v7469_v23  ;;  %v7650_v21 = vunpack.i.h.bf16 %v13467_v19  ;;  %v7649_v10 = vunpack.i.l.bf16 %v13467_v19  ;;  %v7629_v55 = vunpack.i.l.bf16 %v16859_v42 }
 0x772   : > { %v13707_v12 = vpop.permute.xlu1 %7522  ;;  %16851 = vst [vmem:[#allocation163_spill] sm:$0xff] %v13727_v15  ;;  %v3425_v20 = vsel %vm503_vm5, %v7430_v2, %v7450_v33 }
 0x773   : > { %7907 = vrot.lane.b32.xlu0 %v16787_v31, %s8309_s13  ;;  %v5433_v50 = vpack.c.bf16 %v3425_v20, %v3424_v62  ;;  %v16852_v62 = vld [vmem:[#allocation138_spill] sm:$0xff]  ;;  %v16853_v20 = vld [vmem:[#allocation32_spill] sm:$0xff]  ;;  %v16855_v31 = vld [vmem:[#allocation19_spill] sm:$0xff] }
 0x774   : > { %7912 = vrot.lane.b32.xlu1 %v16797_v1, %s8309_s13  ;;  %v3405_v1 = vsel %vm503_vm5, %v7450_v33, %v7470_v38  ;;  %v16856_v27 = vunpack.i.l.bf16 %v16855_v31  ;;  %v16857_v11 = vunpack.i.h.bf16 %v16855_v31  ;;  %v16858_v15 = vunpack.i.h.bf16 %v16853_v20 }
 0x775   : > { %v7683_v60 = vpop.permute.xlu0 %7682 }
 0x776   : > { %v13756_v29 = vpop.permute.xlu1 %7532  ;;  %v7685_v22 = vunpack.i.h.bf16 %v7683_v60  ;;  %v7684_v43 = vunpack.i.l.bf16 %v7683_v60  ;;  %v16854_v60 = vunpack.i.l.bf16 %v16853_v20  ;;  %v3403_v19 = vsel %vm503_vm5, %v16858_v15, %v7665_v54 }
 0x777   : > { %7917 = vrot.lane.b32.xlu0 %v16792_v13, %s8309_s13  ;;  %v3385_v20 = vsel %vm503_vm5, %v7470_v38, %v7490_v45  ;;  %v7630_v15 = vunpack.i.h.bf16 %v16859_v42  ;;  %v7669_v38 = vunpack.i.l.bf16 %v13605_v59  ;;  %v7454_v42 = vunpack.i.l.bf16 %v13384_v3 }
 0x778   : > { %7922 = vrot.lane.b32.xlu1 %v16852_v62, %s8309_s13  ;;  %v3402_v30 = vsel %vm503_vm5, %v16854_v60, %v7664_v63  ;;  %v3442_v33 = vsel %vm503_vm5, %v7684_v43, %v16856_v27  ;;  %v3443_v13 = vsel %vm503_vm5, %v7685_v22, %v16857_v11  ;;  %v3382_v60 = vsel %vm503_vm5, %v7664_v63, %v7684_v43  ;;  %v16860_v43 = vld [vmem:[#allocation44_spill] sm:$0xff] }
 0x779   : > { %v7688_v62 = vpop.permute.xlu0 %7687  ;;  %v5431_v57 = vpack.c.bf16 %v3443_v13, %v3442_v33  ;;  %v3383_v27 = vsel %vm503_vm5, %v7665_v54, %v7685_v22  ;;  %v3384_v11 = vsel %vm503_vm5, %v7469_v23, %v7489_v17  ;;  %v3445_v33 = vsel %vm503_vm5, %v7490_v45, %v7430_v2  ;;  %v16861_v22 = vld [vmem:[#allocation22_spill] sm:$0xff] }
 0x77a   : > { %v13787_v26 = vpop.permute.xlu1 %7537  ;;  %v7690_v8 = vunpack.i.h.bf16 %v7688_v62  ;;  %v7689_v31 = vunpack.i.l.bf16 %v7688_v62  ;;  %v5629_v54 = vpack.c.bf16 %v3383_v27, %v3382_v60  ;;  %v3444_v23 = vsel %vm503_vm5, %v7489_v17, %v7429_v0  ;;  %v16862_v17 = vld [vmem:[#allocation135_spill] sm:$0xff] }
 0x77b   : > { %7927 = vrot.lane.b32.xlu0 %v16860_v43, %s8309_s13  ;;  %v7670_v63 = vunpack.i.h.bf16 %v13605_v59  ;;  %5432 = vmatpush1.bf16.msra.mxu0 %v5431_v57  ;;  %v5631_v13 = vpack.c.bf16 %v3403_v19, %v3402_v30  ;;  %v5633_v62 = vpack.c.bf16 %v3385_v20, %v3384_v11  ;;  %v3426_v60 = vsel %vm503_vm5, %v7629_v55, %v7649_v10  ;;  %v16863_v19 = vld [vmem:[#allocation21_spill] sm:$0xff]  ;;  %v16864_v43 = vld [vmem:[#allocation72_spill] sm:$0xff] }
 0x77c   : > { %7932 = vrot.lane.b32.xlu1 %v16861_v22, %s8308_s11  ;;  %5630 = vmatprep.subr.bf16.mxu1 %v5629_v54  ;;  %v3427_v0 = vsel %vm503_vm5, %v7630_v15, %v7650_v21  ;;  %v7460_v27 = vunpack.i.h.bf16 %v16862_v17  ;;  %v7459_v59 = vunpack.i.l.bf16 %v16862_v17  ;;  %v3386_v57 = vsel %vm503_vm5, %v7669_v38, %v7689_v31 }
 0x77d   : > { %5434 = vmatprep.subr.bf16.mxu0 %v5433_v50  ;;  %v13810_v45 = vpop.permute.xlu0 %7692  ;;  %5632 = vmatpush1.bf16.msra.mxu1 %v5631_v13  ;;  %v3387_v30 = vsel %vm503_vm5, %v7670_v63, %v7690_v8  ;;  %v7474_v20 = vunpack.i.l.bf16 %v16863_v19  ;;  %v5435_v54 = vpack.c.bf16 %v3445_v33, %v3444_v23  ;;  %v3446_v13 = vsel %vm503_vm5, %v7689_v31, %v7629_v55 }
 0x77e   : > { %v13812_v2 = vpop.permute.xlu1 %7547  ;;  %5634 = vmatprep.subr.bf16.mxu1 %v5633_v62  ;;  %v3447_v17 = vsel %vm503_vm5, %v7690_v8, %v7630_v15  ;;  %v5437_v14 = vpack.c.bf16 %v3427_v0, %v3426_v60  ;;  %v5635_v50 = vpack.c.bf16 %v3405_v1, %v3404_v39  ;;  %v3406_v11 = vsel %vm503_vm5, %v7649_v10, %v7669_v38 }
 0x77f   : > { %7937 = vrot.lane.b32.xlu0 %v16864_v43, %s8308_s11  ;;  %v3407_v62 = vsel %vm503_vm5, %v7650_v21, %v7670_v63  ;;  %5436 = vmatpush1.bf16.msra.mxu0 %v5435_v54  ;;  %v5637_v55 = vpack.c.bf16 %v3387_v30, %v3386_v57  ;;  %v16866_v31 = vunpack.i.l.bf16 %v13348_v18  ;;  %v16867_v39 = vunpack.i.h.bf16 %v13384_v3  ;;  %v16873_v57 = vld [vmem:[#allocation85_spill] sm:$0xff]  ;;  %v16878_v30 = vld [vmem:[#allocation66_spill] sm:$0xff] }
 0x780   : > { %7942 = vrot.lane.b32.xlu1 %v16865_v61, %s8308_s11  ;;  %5438 = vmatprep.subr.bf16.mxu0 %v5437_v14  ;;  %v16868_v1 = vunpack.i.h.bf16 %v13348_v18  ;;  %v16869_v10 = vunpack.i.l.bf16 %v13356_v24  ;;  %v16870_v23 = vunpack.i.h.bf16 %v13356_v24  ;;  %v13871_v63 = vsel %vm503_vm5, %v7454_v42, %v7474_v20 }
 0x781   : > { %v13839_v16 = vpop.permute.xlu0 %7697  ;;  %v13847_v8 = vsel %vm503_vm5, %v16866_v31, %v7454_v42  ;;  %5636 = vmatpush1.bf16.msra.mxu1 %v5635_v50  ;;  %v16871_v38 = vunpack.i.h.bf16 %v16863_v19  ;;  %v16872_v60 = vmov %v16867_v39  ;;  %v16874_v50 = vld [vmem:[#allocation35_spill] sm:$0xff]  ;;  %v5439_v54 = vpack.c.bf16 %v3447_v17, %v3446_v13 }
 0x782   : > { %v13841_v33 = vpop.permute.xlu1 %7552  ;;  %v13855_v21 = vsel %vm503_vm5, %v16868_v1, %v16867_v39  ;;  %v13861_v15 = vsel %vm503_vm5, %v16869_v10, %v7459_v59  ;;  %v13867_v14 = vsel %vm503_vm5, %v16870_v23, %v7460_v27  ;;  %5638 = vmatprep.subr.bf16.mxu1 %v5637_v55  ;;  %v16875_v39 = vld [vmem:[#allocation146_spill] sm:$0xff]  ;;  %v16876_v10 = vld [vmem:[#allocation123_spill] sm:$0xff]  ;;  %v5639_v3 = vpack.c.bf16 %v3407_v62, %v3406_v11  ;;  %v16877_v23 = vld [vmem:[#allocation48_spill] sm:$0xff] }
 0x783   : > { %v13879_v0 = vsel %vm503_vm5, %v16872_v60, %v16871_v38  ;;  %7947 = vrot.lane.b32.xlu0 %v16874_v50, %s8308_s11  ;;  %v7495_v42 = vunpack.i.h.bf16 %v16875_v39  ;;  %v7494_v1 = vunpack.i.l.bf16 %v16875_v39  ;;  %5440 = vmatpush1.bf16.msra.mxu0 %v5439_v54  ;;  %v16880_v50 = vld [vmem:[#allocation50_spill] sm:$0xff]  ;;  %v16881_v62 = vpack.c.bf16 %v13615_v47, %v13611_v25  ;;  %v16882_v55 = vld [vmem:[#allocation83_spill] sm:$0xff] }
 0x784   : > { %7952 = vrot.lane.b32.xlu1 %v16876_v10, %s8308_s11  ;;  %v7655_v56 = vunpack.i.h.bf16 %v16880_v50  ;;  %v7654_v11 = vunpack.i.l.bf16 %v16880_v50  ;;  %v5449_v54 = vpack.c.bf16 %v13855_v21, %v13847_v8  ;;  %v7635_v60 = vunpack.i.h.bf16 %v16882_v55  ;;  %v16884_v39 = vld [vmem:[#allocation78_spill] sm:$0xff] }
 0x785   : > { %v13892_v34 = vpop.permute.xlu0 %7702  ;;  %5442 = vmatprep.subr.bf16.mxu0 %v16881_v62  ;;  %5640 = vmatpush1.bf16.msra.mxu1 %v5639_v3  ;;  %v7634_v38 = vunpack.i.l.bf16 %v16882_v55  ;;  %v16883_v31 = vpack.c.bf16 %v13623_v7, %v13619_v49  ;;  %v16885_v25 = vunpack.i.l.bf16 %v16873_v57  ;;  %v16886_v21 = vunpack.i.h.bf16 %v16873_v57  ;;  %v16889_v62 = vld [vmem:[#allocation77_spill] sm:$0xff] }
 0x786   : > { %v13894_v13 = vpop.permute.xlu1 %7562  ;;  %v16887_v7 = vunpack.i.h.bf16 %v13348_v18  ;;  %v16888_v3 = vunpack.i.l.bf16 %v13348_v18  ;;  %v3392_v18 = vsel %vm503_vm5, %v7474_v20, %v7494_v1  ;;  %v7695_v53 = vunpack.i.h.bf16 %v13810_v45 }
 0x787   : > { %5642 = vmatprep.subr.bf16.mxu1 %v16883_v31  ;;  %7957 = vrot.lane.b32.xlu0 %v16884_v39, %s8308_s11  ;;  %v13921_v8 = vsel %vm503_vm5, %v7459_v59, %v16885_v25  ;;  %v13927_v49 = vsel %vm503_vm5, %v7460_v27, %v16886_v21  ;;  %v16890_v59 = vld [vmem:[#allocation76_spill] sm:$0xff]  ;;  %v16891_v27 = vpack.c.bf16 %v13547_v6, %v13543_v41  ;;  %v16900_v17 = vunpack.i.h.bf16 %v13356_v24 }
 0x788   : > { %v3453_v31 = vsel %vm503_vm5, %v7495_v42, %v16887_v7  ;;  %v3452_v55 = vsel %vm503_vm5, %v7494_v1, %v16888_v3  ;;  %7962 = vrot.lane.b32.xlu1 %v16889_v62, %s8308_s11  ;;  %v7500_v25 = vunpack.i.h.bf16 %v16890_v59  ;;  %v7499_v47 = vunpack.i.l.bf16 %v16890_v59  ;;  %v16895_v1 = vld [vmem:[#allocation71_spill] sm:$0xff] }
 0x789   : > { %5444 = vmatpush1.bf16.msra.mxu0 %v16891_v27  ;;  %v13944_v21 = vpop.permute.xlu0 %7707  ;;  %v16892_v7 = vunpack.i.h.bf16 %v16863_v19  ;;  %v7694_v59 = vunpack.i.l.bf16 %v13810_v45  ;;  %v16893_v6 = vpack.c.bf16 %v13631_v36, %v13627_v40  ;;  %v16894_v41 = vpack.c.bf16 %v13523_v5, %v13508_v51  ;;  %v16896_v27 = vld [vmem:[#allocation127_spill] sm:$0xff]  ;;  %v16898_v36 = vld [vmem:[#allocation60_spill] sm:$0xff] }
 0x78a   : > { %v13946_v50 = vpop.permute.xlu1 %7567  ;;  %v3434_v20 = vsel %vm503_vm5, %v7634_v38, %v7654_v11  ;;  %v3435_v19 = vsel %vm503_vm5, %v7635_v60, %v7655_v56  ;;  %v7659_v45 = vunpack.i.l.bf16 %v16896_v27  ;;  %v16897_v40 = vpack.c.bf16 %v13639_v46, %v13635_v4  ;;  %v16903_v51 = vld [vmem:[#allocation156_spill] sm:$0xff] }
 0x78b   : > { %v3393_v3 = vsel %vm503_vm5, %v16892_v7, %v7495_v42  ;;  %5446 = vmatprep.subr.bf16.mxu0 %v16893_v6  ;;  %5644 = vmatpush1.bf16.msra.mxu1 %v16894_v41  ;;  %v7660_v7 = vunpack.i.h.bf16 %v16896_v27  ;;  %v7675_v6 = vunpack.i.h.bf16 %v13659_v32  ;;  %v7674_v41 = vunpack.i.l.bf16 %v13659_v32  ;;  %v16899_v42 = vld [vmem:[#allocation61_spill] sm:$0xff] }
 0x78c   : > { %5646 = vmatprep.subr.bf16.mxu1 %v16897_v40  ;;  %7972 = vrot.lane.b32.xlu0 %v16898_v36, %s8308_s11  ;;  %v5451_v27 = vpack.c.bf16 %v3453_v31, %v3452_v55  ;;  %v13985_v4 = vsel %vm503_vm5, %v7500_v25, %v16900_v17  ;;  %v16901_v46 = vunpack.i.l.bf16 %v13356_v24  ;;  %v16902_v5 = vpack.c.bf16 %v13559_v52, %v13555_v58 }
 0x78d   : > { %7967 = vrot.lane.b32.xlu1 %v16899_v42, %s8309_s13  ;;  %v13996_v32 = vpop.permute.xlu0 %7712  ;;  %v5649_v31 = vpack.c.bf16 %v3393_v3, %v3392_v18  ;;  %v5453_v55 = vpack.c.bf16 %v3435_v19, %v3434_v20  ;;  %v7560_v36 = vunpack.i.h.bf16 %v16903_v51  ;;  %v16904_v24 = vpack.c.bf16 %v13531_v44, %v13527_v35 }
 0x78e   : > { %v13991_v40 = vsel %vm503_vm5, %v7499_v47, %v16901_v46  ;;  %5448 = vmatpush1.bf16.msra.mxu0 %v16902_v5  ;;  %v13998_v42 = vpop.permute.xlu1 %7577  ;;  %v3394_v17 = vsel %vm503_vm5, %v7674_v41, %v7694_v59  ;;  %v3395_v58 = vsel %vm503_vm5, %v7675_v6, %v7695_v53  ;;  %v16905_v52 = vunpack.i.l.bf16 %v16873_v57 }
 0x78f   : > { %5450 = vmatprep.subr.bf16.mxu0 %v5449_v54  ;;  %5648 = vmatpush1.bf16.msra.mxu1 %v16904_v24  ;;  %v7559_v18 = vunpack.i.l.bf16 %v16903_v51  ;;  %v16906_v54 = vld [vmem:[#allocation31_spill] sm:$0xff]  ;;  %v16907_v44 = vunpack.i.h.bf16 %v16873_v57  ;;  %v16908_v3 = vunpack.i.l.bf16 %v16895_v1  ;;  %v16909_v19 = vunpack.i.h.bf16 %v16895_v1 }
 0x790   : > { %v3396_v5 = vsel %vm503_vm5, %v16905_v52, %v7499_v47  ;;  %5650 = vmatprep.subr.bf16.mxu1 %v5649_v31  ;;  %7977 = vrot.lane.b32.xlu0 %v16906_v54, %s8309_s13  ;;  %v3414_v46 = vsel %vm503_vm5, %v7654_v11, %v7674_v41  ;;  %v3415_v57 = vsel %vm503_vm5, %v7655_v56, %v7675_v6  ;;  %v16910_v24 = vld [vmem:[#allocation63_spill] sm:$0xff]  ;;  %v7680_v52 = vunpack.i.h.bf16 %v13705_v37  ;;  %v16912_v6 = vld [vmem:[#allocation118_spill] sm:$0xff] }
 0x791   : > { %v3397_v35 = vsel %vm503_vm5, %v16907_v44, %v7500_v25  ;;  %v14023_v20 = vsel %vm503_vm5, %v16908_v3, %v7659_v45  ;;  %v14029_v47 = vsel %vm503_vm5, %v16909_v19, %v7660_v7  ;;  %v3454_v25 = vsel %vm503_vm5, %v7694_v59, %v7634_v38  ;;  %7982 = vrot.lane.b32.xlu1 %v16910_v24, %s8309_s13  ;;  %v14044_v11 = vpop.permute.xlu0 %7717  ;;  %v16915_v19 = vld [vmem:[#allocation68_spill] sm:$0xff] }
 0x792   : > { %v3455_v31 = vsel %vm503_vm5, %v7695_v53, %v7635_v60  ;;  %v7679_v54 = vunpack.i.l.bf16 %v13705_v37  ;;  %v7525_v44 = vunpack.i.h.bf16 %v13707_v12  ;;  %5452 = vmatpush1.bf16.msra.mxu0 %v5451_v27  ;;  %v14046_v41 = vpop.permute.xlu1 %7582  ;;  %v5653_v56 = vpack.c.bf16 %v3395_v58, %v3394_v17 }
 0x793   : > { %v7524_v38 = vunpack.i.l.bf16 %v13707_v12  ;;  %v7700_v59 = vunpack.i.h.bf16 %v13839_v16  ;;  %v7699_v53 = vunpack.i.l.bf16 %v13839_v16  ;;  %5454 = vmatprep.subr.bf16.mxu0 %v5453_v55  ;;  %v16911_v60 = vpack.c.bf16 %v13879_v0, %v13871_v63  ;;  %v16913_v12 = vld [vmem:[#allocation120_spill] sm:$0xff]  ;;  %v16914_v16 = vld [vmem:[#allocation46_spill] sm:$0xff] }
 0x794   : > { %v5459_v37 = vpack.c.bf16 %v13985_v4, %v13991_v40  ;;  %v7505_v27 = vunpack.i.h.bf16 %v16912_v6  ;;  %v7504_v3 = vunpack.i.l.bf16 %v16912_v6  ;;  %v7534_v17 = vunpack.i.l.bf16 %v13756_v29  ;;  %7987 = vrot.lane.b32.xlu0 %v16913_v12, %s8309_s13  ;;  %v16919_v6 = vld [vmem:[#allocation111_spill] sm:$0xff] }
 0x795   : > { %5652 = vmatpush1.bf16.msra.mxu1 %v16911_v60  ;;  %v5455_v58 = vpack.c.bf16 %v3455_v31, %v3454_v25  ;;  %v7510_v55 = vunpack.i.h.bf16 %v16914_v16  ;;  %7992 = vrot.lane.b32.xlu1 %v16915_v19, %s8308_s11  ;;  %v5655_v63 = vpack.c.bf16 %v3415_v57, %v3414_v46  ;;  %v5657_v0 = vpack.c.bf16 %v3397_v35, %v3396_v5  ;;  %v14077_v46 = vpop.permute.xlu0 %7722 }
 0x796   : > { %5654 = vmatprep.subr.bf16.mxu1 %v5653_v56  ;;  %v5461_v4 = vpack.c.bf16 %v14029_v47, %v14023_v20  ;;  %v3418_v40 = vsel %vm503_vm5, %v7659_v45, %v7679_v54  ;;  %v3419_v25 = vsel %vm503_vm5, %v7660_v7, %v7680_v52  ;;  %v16916_v31 = vunpack.i.h.bf16 %v16877_v23  ;;  %v14079_v5 = vpop.permute.xlu1 %7592 }
 0x797   : > { %v7535_v56 = vunpack.i.h.bf16 %v13756_v29  ;;  %5456 = vmatpush1.bf16.msra.mxu0 %v5455_v58  ;;  %v7509_v35 = vunpack.i.l.bf16 %v16914_v16  ;;  %v16917_v45 = vunpack.i.l.bf16 %v16877_v23  ;;  %v16918_v20 = vpack.c.bf16 %v13867_v14, %v13861_v15 }
 0x798   : > { %v14074_v24 = vsel %vm564_vm6, %v7525_v44, %v16916_v31  ;;  %v3398_v29 = vsel %vm503_vm5, %v7679_v54, %v7699_v53  ;;  %v3399_v47 = vsel %vm503_vm5, %v7680_v52, %v7700_v59  ;;  %v3680_v60 = vsel %vm564_vm6, %v7534_v17, %v7504_v3  ;;  %7997 = vrot.lane.b32.xlu0 %v16919_v6, %s8308_s11  ;;  %v16922_v31 = vld [vmem:[#allocation119_spill] sm:$0xff] }
 0x799   : > { %v14086_v7 = vsel %vm564_vm6, %v7524_v38, %v16917_v45  ;;  %5458 = vmatprep.subr.bf16.mxu0 %v16918_v20  ;;  %5656 = vmatpush1.bf16.msra.mxu1 %v5655_v63  ;;  %v3660_v15 = vsel %vm564_vm6, %v7504_v3, %v7524_v38  ;;  %v3661_v14 = vsel %vm564_vm6, %v7505_v27, %v7525_v44  ;;  %v7550_v54 = vunpack.i.h.bf16 %v13812_v2  ;;  %v14120_v45 = vpop.permute.xlu0 %7737 }
 0x79a   : > { %5658 = vmatprep.subr.bf16.mxu1 %v5657_v0  ;;  %v7549_v58 = vunpack.i.l.bf16 %v13812_v2  ;;  %v16920_v52 = vunpack.i.l.bf16 %v16895_v1  ;;  %v16921_v63 = vunpack.i.h.bf16 %v16895_v1  ;;  %8002 = vrot.lane.b32.xlu1 %v16922_v31, %s8308_s11  ;;  %v3681_v44 = vsel %vm564_vm6, %v7535_v56, %v7505_v27  ;;  %v14122_v20 = vpop.permute.xlu1 %7602 }
 0x79b   : > { %v7725_v38 = vunpack.i.h.bf16 %v14077_v46  ;;  %v7724_v3 = vunpack.i.l.bf16 %v14077_v46  ;;  %5460 = vmatpush1.bf16.msra.mxu0 %v5459_v37  ;;  %v7540_v1 = vunpack.i.h.bf16 %v13787_v26  ;;  %v16924_v27 = vunpack.i.l.bf16 %v16877_v23 }
 0x79c   : > { %v3458_v12 = vsel %vm503_vm5, %v7699_v53, %v16920_v52  ;;  %v3459_v0 = vsel %vm503_vm5, %v7700_v59, %v16921_v63  ;;  %v5661_v53 = vpack.c.bf16 %v3399_v47, %v3398_v29  ;;  %v7539_v59 = vunpack.i.l.bf16 %v13787_v26  ;;  %5462 = vmatprep.subr.bf16.mxu0 %v5461_v4  ;;  %v16926_v4 = vld [vmem:[#allocation140_spill] sm:$0xff] }
 0x79d   : > { %v16923_v52 = vpack.c.bf16 %v13927_v49, %v13921_v8  ;;  %v3620_v63 = vsel %vm564_vm6, %v16924_v27, %v7534_v17  ;;  %v16925_v37 = vunpack.i.h.bf16 %v16877_v23  ;;  %v5463_v29 = vpack.c.bf16 %v3459_v0, %v3458_v12  ;;  %8007 = vrot.lane.b32.xlu0 %v16926_v4, %s8308_s11  ;;  %v16927_v17 = vld [vmem:[#allocation107_spill] sm:$0xff] }
 0x79e   : > { %v7705_v47 = vunpack.i.h.bf16 %v13892_v34  ;;  %v7704_v26 = vunpack.i.l.bf16 %v13892_v34  ;;  %v5663_v8 = vpack.c.bf16 %v3419_v25, %v3418_v40  ;;  %v14143_v49 = vsel %vm564_vm6, %v7549_v58, %v7509_v35  ;;  %8012 = vrot.lane.b32.xlu1 %v16927_v17, %s8308_s11  ;;  %v7743_v40 = vpop.permute.xlu0 %7742  ;;  %v14157_v25 = vpop.permute.xlu1 %7612 }
 0x79f   : > { %5660 = vmatpush1.bf16.msra.mxu1 %v16923_v52  ;;  %v3621_v57 = vsel %vm564_vm6, %v16925_v37, %v7535_v56  ;;  %v14151_v23 = vsel %vm564_vm6, %v7550_v54, %v7510_v55  ;;  %v5465_v34 = vpack.c.bf16 %v3661_v14, %v3660_v15  ;;  %v5667_v56 = vpack.c.bf16 %v14074_v24, %v14086_v7  ;;  %v16930_v37 = vld [vmem:[#allocation139_spill] sm:$0xff] }
 0x7a0   : > { %5662 = vmatprep.subr.bf16.mxu1 %v5661_v53  ;;  %5464 = vmatpush1.bf16.msra.mxu0 %v5463_v29  ;;  %v5665_v12 = vpack.c.bf16 %v3621_v57, %v3620_v63  ;;  %v5467_v0 = vpack.c.bf16 %v3681_v44, %v3680_v60  ;;  %v3662_v53 = vsel %vm564_vm6, %v7704_v26, %v7724_v3  ;;  %v16928_v15 = vunpack.i.h.bf16 %v16878_v30 }
 0x7a1   : > { %v3663_v52 = vsel %vm564_vm6, %v7705_v47, %v7725_v38  ;;  %v16929_v7 = vunpack.i.l.bf16 %v16878_v30  ;;  %5466 = vmatprep.subr.bf16.mxu0 %v5465_v34  ;;  %v7745_v60 = vunpack.i.h.bf16 %v7743_v40  ;;  %v7744_v14 = vunpack.i.l.bf16 %v7743_v40  ;;  %8017 = vrot.lane.b32.xlu0 %v16930_v37, %s8308_s11  ;;  %v16931_v40 = vld [vmem:[#allocation98_spill] sm:$0xff] }
 0x7a2   : > { %v14171_v24 = vsel %vm564_vm6, %v7540_v1, %v16928_v15  ;;  %v5475_v44 = vpack.c.bf16 %v14151_v23, %v14143_v49  ;;  %v7555_v27 = vunpack.i.h.bf16 %v13841_v33  ;;  %v7554_v63 = vunpack.i.l.bf16 %v13841_v33  ;;  %8022 = vrot.lane.b32.xlu1 %v16931_v40, %s8308_s11 }
 0x7a3   : > { %v14177_v57 = vsel %vm564_vm6, %v7539_v59, %v16929_v7  ;;  %5664 = vmatpush1.bf16.msra.mxu1 %v5663_v8  ;;  %v3664_v29 = vsel %vm564_vm6, %v7509_v35, %v7539_v59  ;;  %v3682_v34 = vsel %vm564_vm6, %v7744_v14, %v7704_v26  ;;  %v3683_v8 = vsel %vm564_vm6, %v7745_v60, %v7705_v47  ;;  %v14199_v59 = vpop.permute.xlu0 %7747  ;;  %v7728_v26 = vpop.permute.xlu1 %7727 }
 0x7a4   : > { %5666 = vmatprep.subr.bf16.mxu1 %v5665_v12  ;;  %v5469_v49 = vpack.c.bf16 %v3663_v52, %v3662_v53  ;;  %v3665_v23 = vsel %vm564_vm6, %v7510_v55, %v7540_v1  ;;  %v7565_v12 = vunpack.i.h.bf16 %v13894_v13  ;;  %v7564_v15 = vunpack.i.l.bf16 %v13894_v13  ;;  %5468 = vmatpush1.bf16.msra.mxu0 %v5467_v0 }
 0x7a5   : > { %v5471_v35 = vpack.c.bf16 %v3683_v8, %v3682_v34  ;;  %v16932_v47 = vmov %v16929_v7  ;;  %v7750_v16 = vunpack.i.h.bf16 %v14199_v59  ;;  %v7749_v55 = vunpack.i.l.bf16 %v14199_v59  ;;  %v16933_v34 = vld [vmem:[#allocation97_spill] sm:$0xff] }
 0x7a6   : > { %v3624_v7 = vsel %vm564_vm6, %v16932_v47, %v7549_v58  ;;  %5470 = vmatprep.subr.bf16.mxu0 %v5469_v49  ;;  %v7730_v1 = vunpack.i.h.bf16 %v7728_v26  ;;  %v7729_v53 = vunpack.i.l.bf16 %v7728_v26  ;;  %v7710_v52 = vunpack.i.h.bf16 %v13944_v21  ;;  %8027 = vrot.lane.b32.xlu0 %v16933_v34, %s8308_s11 }
 0x7a7   : > { %5668 = vmatpush1.bf16.msra.mxu1 %v5667_v56  ;;  %v7709_v0 = vunpack.i.l.bf16 %v13944_v21  ;;  %v5473_v8 = vpack.c.bf16 %v3665_v23, %v3664_v29  ;;  %v16934_v58 = vunpack.i.h.bf16 %v16878_v30  ;;  %8032 = vrot.lane.b32.xlu1 %v16861_v22, %s8309_s13  ;;  %v14231_v29 = vpop.permute.xlu0 %7762  ;;  %v14233_v23 = vpop.permute.xlu1 %7732  ;;  %v7514_v47 = vunpack.i.l.bf16 %v13607_v48 }
 0x7a8   : > { %v3643_v49 = vsel %vm564_vm6, %v7725_v38, %v7730_v1  ;;  %v3642_v26 = vsel %vm564_vm6, %v7724_v3, %v7729_v53  ;;  %v3622_v2 = vsel %vm564_vm6, %v7729_v53, %v7744_v14  ;;  %v3623_v30 = vsel %vm564_vm6, %v7730_v1, %v7745_v60  ;;  %5472 = vmatpush1.bf16.msra.mxu0 %v5471_v35 }
 0x7a9   : > { %v3625_v56 = vsel %vm564_vm6, %v16934_v58, %v7550_v54  ;;  %v5671_v54 = vpack.c.bf16 %v3643_v49, %v3642_v26  ;;  %v5669_v38 = vpack.c.bf16 %v3623_v30, %v3622_v2  ;;  %v3666_v22 = vsel %vm564_vm6, %v7709_v0, %v7749_v55  ;;  %5474 = vmatprep.subr.bf16.mxu0 %v5473_v8 }
 0x7aa   : > { %v3667_v46 = vsel %vm564_vm6, %v7710_v52, %v7750_v16  ;;  %v15930_v3 = vunpack.i.h.bf16 %v14120_v45  ;;  %v15931_v60 = vunpack.i.l.bf16 %v14120_v45  ;;  %v15932_v14 = vunpack.i.h.bf16 %v14233_v23  ;;  %8037 = vrot.lane.b32.xlu0 %v16864_v43, %s8309_s13 }
 0x7ab   : > { %v15933_v35 = vunpack.i.l.bf16 %v14233_v23  ;;  %v14258_v1 = vsel %vm564_vm6, %v7555_v27, %v7560_v36  ;;  %5670 = vmatprep.subr.bf16.mxu1 %v5669_v38  ;;  %v5477_v53 = vpack.c.bf16 %v3667_v46, %v3666_v22  ;;  %v5673_v8 = vpack.c.bf16 %v3625_v56, %v3624_v7  ;;  %8042 = vrot.lane.b32.xlu1 %v16865_v61, %s8309_s13  ;;  %v7773_v61 = vpop.permute.xlu0 %7772  ;;  %v7753_v30 = vpop.permute.xlu1 %7752  ;;  %v16937_v46 = vld [vmem:[#allocation80_spill] sm:$0xff] }
 0x7ac   : > { %v14268_v58 = vsel %vm564_vm6, %v7554_v63, %v7559_v18  ;;  %v14276_v49 = vsel %vm625_vm7, %v15932_v14, %v15930_v3  ;;  %5672 = vmatpush1.bf16.msra.mxu1 %v5671_v54  ;;  %v14292_v7 = vsel %vm564_vm6, %v7564_v15, %v7514_v47  ;;  %v16935_v56 = vunpack.i.h.bf16 %v13607_v48  ;;  %5476 = vmatpush1.bf16.msra.mxu0 %v5475_v44 }
 0x7ad   : > { %v14284_v43 = vsel %vm625_vm7, %v15933_v35, %v15931_v60  ;;  %5674 = vmatprep.subr.bf16.mxu1 %v5673_v8  ;;  %5478 = vmatprep.subr.bf16.mxu0 %v5477_v53  ;;  %v5675_v54 = vpack.c.bf16 %v14171_v24, %v14177_v57  ;;  %v14310_v38 = vsel %vm564_vm6, %v7514_v47, %v7554_v63  ;;  %v16938_v8 = vld [vmem:[#allocation82_spill] sm:$0xff]  ;;  %v7755_v57 = vunpack.i.h.bf16 %v7753_v30  ;;  %v16939_v63 = vld [vmem:[#allocation35_spill] sm:$0xff]  ;;  %v16940_v47 = vld [vmem:[#allocation105_spill] sm:$0xff] }
 0x7ae   : > { %v14300_v26 = vsel %vm564_vm6, %v7565_v12, %v16935_v56  ;;  %v16936_v22 = vmov %v16935_v56  ;;  %v15936_v56 = vunpack.i.h.bf16 %v16938_v8  ;;  %v15938_v24 = vunpack.i.l.bf16 %v16938_v8  ;;  %8047 = vrot.lane.b32.xlu0 %v16939_v63, %s8309_s13 }
 0x7af   : > { %v14318_v44 = vsel %vm564_vm6, %v16936_v22, %v7555_v27  ;;  %v7754_v2 = vunpack.i.l.bf16 %v7753_v30  ;;  %8052 = vrot.lane.b32.xlu1 %v16876_v10, %s8309_s13  ;;  %v7765_v3 = vunpack.i.h.bf16 %v14231_v29  ;;  %v7764_v30 = vunpack.i.l.bf16 %v14231_v29  ;;  %v7783_v60 = vpop.permute.xlu0 %7782  ;;  %v7758_v63 = vpop.permute.xlu1 %7757 }
 0x7b0   : > { %5676 = vmatpush1.bf16.msra.mxu1 %v5675_v54  ;;  %v14344_v35 = vsel %vm564_vm6, %v7559_v18, %v7564_v15  ;;  %v7785_v27 = vunpack.i.h.bf16 %v7783_v60  ;;  %v7784_v10 = vunpack.i.l.bf16 %v7783_v60  ;;  %v7760_v54 = vunpack.i.h.bf16 %v7758_v63 }
 0x7b1   : > { %v7759_v22 = vunpack.i.l.bf16 %v7758_v63  ;;  %v7775_v53 = vunpack.i.h.bf16 %v7773_v61  ;;  %v7774_v33 = vunpack.i.l.bf16 %v7773_v61  ;;  %v3647_v29 = vsel %vm564_vm6, %v7750_v16, %v7755_v57 }
 0x7b2   : > { %v3646_v14 = vsel %vm564_vm6, %v7749_v55, %v7754_v2  ;;  %8057 = vrot.lane.b32.xlu0 %v16884_v39, %s8309_s13  ;;  %v3686_v18 = vsel %vm564_vm6, %v7784_v10, %v7709_v0  ;;  %v3687_v15 = vsel %vm564_vm6, %v7785_v27, %v7710_v52  ;;  %v14366_v16 = vsel %vm625_vm7, %v7760_v54, %v7765_v3 }
 0x7b3   : > { %16941 = vst [vmem:[#allocation138_spill] sm:$0xff] %v14366_v16  ;;  %v14370_v59 = vsel %vm625_vm7, %v7759_v22, %v7764_v30  ;;  %8062 = vrot.lane.b32.xlu1 %v16889_v62, %s8309_s13  ;;  %v5479_v39 = vpack.c.bf16 %v3687_v15, %v3686_v18  ;;  %v14376_v0 = vpop.permute.xlu0 %7787  ;;  %v7768_v21 = vpop.permute.xlu1 %7767  ;;  %v3626_v52 = vsel %vm564_vm6, %v7754_v2, %v7784_v10  ;;  %v14393_v18 = vld [vmem:[%s15422_s8 + $0x8] sm:$0xff]  ;;  %v7570_v2 = vunpack.i.h.bf16 %v13946_v50  ;;  %v16946_v10 = vld [vmem:[#allocation133_spill] sm:$0xff] }
 0x7b4   : > { %16942 = vst [vmem:[#allocation32_spill] sm:$0xff] %v14370_v59  ;;  %v3627_v60 = vsel %vm564_vm6, %v7755_v57, %v7785_v27  ;;  %v5679_v61 = vpack.c.bf16 %v3647_v29, %v3646_v14  ;;  %v7770_v63 = vunpack.i.h.bf16 %v7768_v21  ;;  %v7769_v48 = vunpack.i.l.bf16 %v7768_v21  ;;  %v16943_v57 = vld [vmem:[#allocation60_spill] sm:$0xff]  ;;  %v16947_v29 = vld [vmem:[#allocation47_spill] sm:$0xff] }
 0x7b5   : > { %v14388_v62 = vsel %vm564_vm6, %v7560_v36, %v7565_v12  ;;  %5480 = vmatpush1.bf16.msra.mxu0 %v5479_v39  ;;  %v5677_v14 = vpack.c.bf16 %v3627_v60, %v3626_v52  ;;  %v14400_v13 = vsel %vm625_vm7, %v7774_v33, %v7759_v22  ;;  %v14404_v36 = vsel %vm625_vm7, %v7775_v53, %v7760_v54  ;;  %v16948_v22 = vld [vmem:[#allocation157_spill] sm:$0xff] }
 0x7b6   : > { %8072 = vrot.lane.b32.xlu0 %v16943_v57, %s8309_s13  ;;  %v7569_v51 = vunpack.i.l.bf16 %v13946_v50  ;;  %v14409_v12 = vsel %vm625_vm7, %v7770_v63, %v7775_v53  ;;  %v14413_v27 = vsel %vm625_vm7, %v7769_v48, %v7774_v33  ;;  %v16949_v15 = vpack.c.bf16 %v16947_v29, %v16948_v22  ;;  %v16951_v29 = vld [vmem:[#allocation158_spill] sm:$0xff]  ;;  %v16964_v52 = vld [vmem:[#allocation145_spill] sm:$0xff] }
 0x7b7   : > { %16944 = vst [vmem:[#allocation19_spill] sm:$0xff] %v14409_v12  ;;  %16945 = vst [vmem:[#allocation20_spill] sm:$0xff] %v14413_v27  ;;  %8067 = vrot.lane.b32.xlu1 %v16946_v10, %s8309_s13  ;;  %v14422_v54 = vsel %vm625_vm7, %v7764_v30, %v7769_v48  ;;  %5678 = vmatprep.subr.bf16.mxu1 %v5677_v14  ;;  %v14426_v53 = vpop.permute.xlu0 %7792  ;;  %v7778_v39 = vpop.permute.xlu1 %7777  ;;  %v14430_v33 = vcombine.high %v14393_v18, %v14393_v18  ;;  %v15934_v48 = vunpack.i.h.bf16 %v14376_v0  ;;  %v16970_v12 = vld [vmem:[#allocation162_spill] sm:$0xff] }
 0x7b8   : > { %5482 = vmatprep.subr.bf16.mxu0 %v16949_v15  ;;  %v14434_v21 = vsel %vm625_vm7, %v7765_v3, %v7770_v63  ;;  %v15935_v30 = vunpack.i.l.bf16 %v14376_v0  ;;  %5680 = vmatpush1.bf16.msra.mxu1 %v5679_v61  ;;  %v7780_v60 = vunpack.i.h.bf16 %v7778_v39  ;;  %v7779_v57 = vunpack.i.l.bf16 %v7778_v39  ;;  %v16950_v63 = vld [vmem:[#allocation159_spill] sm:$0xff]  ;;  %v16953_v15 = vld [vmem:[#allocation126_spill] sm:$0xff]  ;;  %v16960_v61 = vld [vmem:[#allocation161_spill] sm:$0xff] }
 0x7b9   : > { %v14444_v14 = vsel %vm564_vm6, %v7570_v2, %v15936_v56  ;;  %v7580_v10 = vunpack.i.h.bf16 %v13998_v42  ;;  %v7579_v3 = vunpack.i.l.bf16 %v13998_v42  ;;  %v16952_v22 = vpack.c.bf16 %v16950_v63, %v16951_v29  ;;  %v16956_v63 = vld [vmem:[#allocation23_spill] sm:$0xff]  ;;  %v16957_v29 = vld [vmem:[#allocation130_spill] sm:$0xff] }
 0x7ba   : > { %8077 = vrot.lane.b32.xlu0 %v16953_v15, %s8309_s13  ;;  %v7795_v39 = vunpack.i.h.bf16 %v14426_v53  ;;  %v7794_v50 = vunpack.i.l.bf16 %v14426_v53  ;;  %v14461_v55 = vsel %vm625_vm7, %v7780_v60, %v15934_v48  ;;  %v14467_v42 = vsel %vm625_vm7, %v7779_v57, %v15935_v30  ;;  %v16961_v48 = vld [vmem:[#allocation160_spill] sm:$0xff] }
 0x7bb   : > { %5682 = vmatprep.subr.bf16.mxu1 %v16952_v22  ;;  %16954 = vst [vmem:[#allocation44_spill] sm:$0xff] %v14461_v55  ;;  %16955 = vst [vmem:[#allocation22_spill] sm:$0xff] %v14467_v42  ;;  %8082 = vrot.lane.b32.xlu1 %v16956_v63, %s8309_s13  ;;  %v16958_v22 = vld [vmem:[#allocation142_spill] sm:$0xff]  ;;  %v14478_v53 = vsel %vm564_vm6, %v7569_v51, %v15938_v24  ;;  %v16962_v30 = vpack.c.bf16 %v16960_v61, %v16961_v48  ;;  %v7808_v56 = vpop.permute.xlu0 %7807  ;;  %v7798_v27 = vpop.permute.xlu1 %7797  ;;  %v7714_v24 = vunpack.i.l.bf16 %v13996_v32 }
 0x7bc   : > { %v16959_v15 = vpack.c.bf16 %v16957_v29, %v16958_v22  ;;  %v5689_v63 = vpack.c.bf16 %v14388_v62, %v14344_v35  ;;  %v16963_v29 = vunpack.i.l.bf16 %v16940_v47  ;;  %v16965_v42 = vld [vmem:[#allocation30_spill] sm:$0xff]  ;;  %v7810_v48 = vunpack.i.h.bf16 %v7808_v56 }
 0x7bd   : > { %v16966_v55 = vpack.c.bf16 %v16964_v52, %v16965_v42  ;;  %v16968_v62 = vunpack.i.h.bf16 %v16940_v47  ;;  %v16974_v42 = vld [vmem:[#allocation122_spill] sm:$0xff] }
 0x7be   : > { %5484 = vmatpush1.bf16.msra.mxu0 %v16959_v15  ;;  %v14491_v22 = vsel %vm564_vm6, %v16963_v29, %v7569_v51  ;;  %v7715_v15 = vunpack.i.h.bf16 %v13996_v32  ;;  %v16967_v61 = vmov %v16963_v29  ;;  %v7800_v29 = vunpack.i.h.bf16 %v7798_v27  ;;  %v16969_v32 = vld [vmem:[#allocation163_spill] sm:$0xff] }
 0x7bf   : > { %5486 = vmatprep.subr.bf16.mxu0 %v16962_v30  ;;  %5684 = vmatpush1.bf16.msra.mxu1 %v16966_v55  ;;  %v7809_v30 = vunpack.i.l.bf16 %v7808_v56  ;;  %v14502_v35 = vsel %vm564_vm6, %v7579_v3, %v16967_v61  ;;  %v14508_v51 = vsel %vm564_vm6, %v7580_v10, %v16968_v62  ;;  %v16971_v59 = vpack.c.bf16 %v16969_v32, %v16970_v12  ;;  %v16972_v55 = vld [vmem:[#allocation125_spill] sm:$0xff]  ;;  %v16975_v61 = vld [vmem:[#allocation134_spill] sm:$0xff] }
 0x7c0   : > { %8087 = vrot.lane.b32.xlu0 %v16972_v55, %s8309_s13  ;;  %v16973_v56 = vmov %v16968_v62  ;;  %8092 = vrot.lane.b32.xlu1 %v16915_v19, %s8309_s13  ;;  %v16976_v62 = vpack.c.bf16 %v16974_v42, %v16975_v61  ;;  %v3674_v12 = vsel %vm564_vm6, %v7714_v24, %v7794_v50  ;;  %v7799_v32 = vunpack.i.l.bf16 %v7798_v27  ;;  %v7813_v19 = vpop.permute.xlu0 %7812  ;;  %v7803_v55 = vpop.permute.xlu1 %7802 }
 0x7c1   : > { %5686 = vmatprep.subr.bf16.mxu1 %v16971_v59  ;;  %v14519_v52 = vsel %vm564_vm6, %v16973_v56, %v7570_v2  ;;  %v3675_v59 = vsel %vm564_vm6, %v7715_v15, %v7795_v39  ;;  %v14532_v47 = vsel %vm625_vm7, %v7809_v30, %v7779_v57  ;;  %v16977_v2 = vpack.c.bf16 %v14318_v44, %v14310_v38 }
 0x7c2   : > { %5488 = vmatpush1.bf16.msra.mxu0 %v16976_v62  ;;  %v16978_v56 = vunpack.i.l.bf16 %v16938_v8  ;;  %v16979_v61 = vunpack.i.h.bf16 %v16938_v8  ;;  %v14551_v27 = vsel %vm625_vm7, %v7810_v48, %v7780_v60  ;;  %v16980_v38 = vpack.c.bf16 %v16937_v46, %v13647_v28 }
 0x7c3   : > { %5490 = vmatprep.subr.bf16.mxu0 %v16977_v2  ;;  %v7815_v44 = vunpack.i.h.bf16 %v7813_v19  ;;  %v7814_v57 = vunpack.i.l.bf16 %v7813_v19  ;;  %v7805_v2 = vunpack.i.h.bf16 %v7803_v55  ;;  %v7804_v16 = vunpack.i.l.bf16 %v7803_v55 }
 0x7c4   : > { %v14541_v42 = vsel %vm564_vm6, %v16978_v56, %v7579_v3  ;;  %v14547_v62 = vsel %vm564_vm6, %v16979_v61, %v7580_v10  ;;  %5688 = vmatpush1.bf16.msra.mxu1 %v16980_v38  ;;  %v7720_v3 = vunpack.i.h.bf16 %v14044_v11  ;;  %v3655_v8 = vsel %vm564_vm6, %v7795_v39, %v7800_v29  ;;  %8097 = vrot.lane.b32.xlu0 %v16919_v6, %s8309_s13 }
 0x7c5   : > { %5690 = vmatprep.subr.bf16.mxu1 %v5689_v63  ;;  %v5493_v10 = vpack.c.bf16 %v3675_v59, %v3674_v12  ;;  %v3694_v28 = vsel %vm564_vm6, %v7814_v57, %v7714_v24  ;;  %v3695_v46 = vsel %vm564_vm6, %v7815_v44, %v7715_v15  ;;  %v14569_v19 = vsel %vm625_vm7, %v7805_v2, %v7810_v48  ;;  %v8134_v15 = vld [vmem:[%s15422_s8] sm:$0xff]  ;;  %v7818_v48 = vpop.permute.xlu0 %7817 }
 0x7c6   : > { %v14573_v39 = vsel %vm625_vm7, %v7804_v16, %v7809_v30  ;;  %8102 = vrot.lane.b32.xlu1 %v16922_v31, %s8309_s13  ;;  %v7719_v6 = vunpack.i.l.bf16 %v14044_v11  ;;  %v3654_v63 = vsel %vm564_vm6, %v7794_v50, %v7799_v32  ;;  %4267 = vmatmul.mubr.f32.vlgmr.msra.gmra.mrb[16].mxu0 %v8134_v15  ;;  %v7823_v30 = vpop.permute.xlu1 %7822  ;;  %v3634_v12 = vsel %vm564_vm6, %v7799_v32, %v7814_v57  ;;  %v17050_v24 = vld [vmem:[#allocation150_spill] sm:$0xff] }
 0x7c7   : > { %4551 = vmatmul.mubr.f32.vlgmr.msra.gmra.mrb[16].mxu1 %v8134_v15  ;;  %v5495_v31 = vpack.c.bf16 %v3695_v46, %v3694_v28  ;;  %v16981_v11 = vpack.c.bf16 %v14300_v26, %v14292_v7  ;;  %v16982_v50 = vpack.c.bf16 %v14258_v1, %v14268_v58  ;;  %v7820_v59 = vunpack.i.h.bf16 %v7818_v48  ;;  %4337 = vmatprep.mubr.f32.mxu0 %v14430_v33 }
 0x7c8   : > { %v7819_v55 = vunpack.i.l.bf16 %v7818_v48  ;;  %v7825_v56 = vunpack.i.h.bf16 %v7823_v30  ;;  %v7824_v61 = vunpack.i.l.bf16 %v7823_v30  ;;  %8107 = vrot.lane.b32.xlu0 %v16926_v4, %s8309_s13  ;;  %v3635_v32 = vsel %vm564_vm6, %v7800_v29, %v7815_v44  ;;  %4621 = vmatprep.mubr.f32.mxu1 %v14430_v33 }
 0x7c9   : > { %5492 = vmatpush1.bf16.msra.mxu0 %v16981_v11  ;;  %5692 = vmatpush1.bf16.msra.mxu1 %v16982_v50  ;;  %v16983_v38 = vunpack.i.l.bf16 %v14376_v0  ;;  %v16984_v1 = vunpack.i.h.bf16 %v14376_v0  ;;  %v5699_v26 = vpack.c.bf16 %v14444_v14, %v14478_v53  ;;  %v5693_v4 = vpack.c.bf16 %v3635_v32, %v3634_v12  ;;  %v7833_v57 = vpop.permute.xlu0 %7832  ;;  %v4184_v12 = vld [vmem:[%s15423_s9] sm:$0xf]  ;;  %v16985_v11 = vld [vmem:[#allocation99_spill] sm:$0xff]  ;;  %v16986_v50 = vld [vmem:[#allocation132_spill] sm:$0xff] }
 0x7ca   : > { %5494 = vmatprep.subr.bf16.mxu0 %v5493_v10  ;;  %8112 = vrot.lane.b32.xlu1 %v16927_v17, %s8309_s13  ;;  %v5497_v29 = vpack.c.bf16 %v14519_v52, %v14491_v22  ;;  %v5695_v44 = vpack.c.bf16 %v3655_v8, %v3654_v63  ;;  %v14617_v0 = vpop.permute.xlu1 %7827  ;;  %v5499_v14 = vpack.c.bf16 %v14508_v51, %v14502_v35  ;;  %v7835_v53 = vunpack.i.h.bf16 %v7833_v57 }
 0x7cb   : > { %v14601_v7 = vsel %vm625_vm7, %v16983_v38, %v7804_v16  ;;  %v14607_v58 = vsel %vm625_vm7, %v16984_v1, %v7805_v2  ;;  %v3678_v16 = vsel %vm564_vm6, %v7719_v6, %v7819_v55  ;;  %v3679_v2 = vsel %vm564_vm6, %v7720_v3, %v7820_v59  ;;  %5694 = vmatprep.subr.bf16.mxu1 %v5693_v4 }
 0x7cc   : > { %v7834_v22 = vunpack.i.l.bf16 %v7833_v57  ;;  %v5697_v52 = vpack.c.bf16 %v14547_v62, %v14541_v42  ;;  %v3659_v8 = vsel %vm564_vm6, %v7820_v59, %v7825_v56  ;;  %v3658_v10 = vsel %vm564_vm6, %v7819_v55, %v7824_v61  ;;  %8117 = vrot.lane.b32.xlu0 %v16930_v37, %s8309_s13 }
 0x7cd   : > { %5496 = vmatpush1.bf16.msra.mxu0 %v5495_v31  ;;  %5696 = vmatpush1.bf16.msra.mxu1 %v5695_v44  ;;  %v5501_v33 = vpack.c.bf16 %v3679_v2, %v3678_v16  ;;  %v3699_v35 = vsel %vm564_vm6, %v7835_v53, %v7720_v3  ;;  %v7830_v62 = vunpack.i.h.bf16 %v14617_v0  ;;  %v7829_v46 = vunpack.i.l.bf16 %v14617_v0  ;;  %v7838_v63 = vpop.permute.xlu0 %7837  ;;  %v16987_v16 = vld [vmem:[#allocation96_spill] sm:$0xff]  ;;  %v16988_v44 = vld [vmem:[#allocation95_spill] sm:$0xff]  ;;  %v16989_v0 = vld [vmem:[#allocation58_spill] sm:$0xff] }
 0x7ce   : > { %5498 = vmatprep.subr.bf16.mxu0 %v5497_v29  ;;  %v3698_v28 = vsel %vm564_vm6, %v7834_v22, %v7719_v6  ;;  %5698 = vmatprep.subr.bf16.mxu1 %v5697_v52  ;;  %v3638_v51 = vsel %vm564_vm6, %v7824_v61, %v7834_v22  ;;  %v7843_v6 = vpop.permute.xlu1 %7842  ;;  %v3639_v3 = vsel %vm564_vm6, %v7825_v56, %v7835_v53  ;;  %v7840_v15 = vunpack.i.h.bf16 %v7838_v63  ;;  %v16990_v2 = vld [vmem:[#allocation59_spill] sm:$0xff]  ;;  %v16991_v53 = vld [vmem:[#allocation141_spill] sm:$0xff] }
 0x7cf   : > { %v5503_v42 = vpack.c.bf16 %v3699_v35, %v3698_v28  ;;  %8122 = vrot.lane.b32.xlu1 %v16931_v40, %s8309_s13  ;;  %v7839_v48 = vunpack.i.l.bf16 %v7838_v63  ;;  %v7845_v37 = vunpack.i.h.bf16 %v7843_v6  ;;  %v7844_v30 = vunpack.i.l.bf16 %v7843_v6  ;;  %v16992_v22 = vld [vmem:[#allocation89_spill] sm:$0xff]  ;;  %v17034_v63 = vld [vmem:[#allocation56_spill] sm:$0xff] }
 0x7d0   : > { %v5701_v31 = vpack.c.bf16 %v3639_v3, %v3638_v51  ;;  %v5505_v40 = vpack.c.bf16 %v16986_v50, %v16985_v11  ;;  %v14658_v55 = vsel %vm625_vm7, %v7830_v62, %v7840_v15  ;;  %8127 = vrot.lane.b32.xlu0 %v16933_v34, %s8309_s13  ;;  %v5703_v32 = vpack.c.bf16 %v3659_v8, %v3658_v10  ;;  %v16993_v8 = vld [vmem:[#allocation147_spill] sm:$0xff]  ;;  %v16994_v10 = vld [vmem:[#allocation148_spill] sm:$0xff]  ;;  %v16995_v11 = vld [vmem:[#allocation53_spill] sm:$0xff] }
 0x7d1   : > { %5500 = vmatpush1.bf16.msra.mxu0 %v5499_v14  ;;  %5700 = vmatpush1.bf16.msra.mxu1 %v5699_v26  ;;  %v14654_v59 = vsel %vm625_vm7, %v7829_v46, %v7839_v48  ;;  %v14664_v56 = vsel %vm625_vm7, %v7839_v48, %v7844_v30  ;;  %v14668_v61 = vsel %vm625_vm7, %v7840_v15, %v7845_v37  ;;  %v7848_v1 = vpop.permute.xlu0 %7847 }
 0x7d2   : > { %5502 = vmatprep.subr.bf16.mxu0 %v5501_v33  ;;  %5702 = vmatprep.subr.bf16.mxu1 %v5701_v31  ;;  %v7853_v26 = vpop.permute.xlu1 %7852  ;;  %v7850_v34 = vunpack.i.h.bf16 %v7848_v1  ;;  %v7849_v29 = vunpack.i.l.bf16 %v7848_v1  ;;  %v5705_v57 = vpack.c.bf16 %v16988_v44, %v16987_v16  ;;  %v5507_v14 = vpack.c.bf16 %v16990_v2, %v16989_v0  ;;  %v16999_v1 = vld [vmem:[#allocation101_spill] sm:$0xff]  ;;  %v17028_v44 = vld [vmem:[#allocation26_spill] sm:$0xff] }
 0x7d3   : > { %4187 = vperm.xlu1 %6210, %v4184_v12   ;;  %v5509_v52 = vpack.c.bf16 %v16992_v22, %v16991_v53  ;;  %v5707_v33 = vpack.c.bf16 %v16994_v10, %v16993_v8  ;;  %v7855_v6 = vunpack.i.h.bf16 %v7853_v26  ;;  %v7854_v3 = vunpack.i.l.bf16 %v7853_v26  ;;  %v17000_v26 = vld [vmem:[#allocation103_spill] sm:$0xff]  ;;  %v17003_v0 = vld [vmem:[#allocation25_spill] sm:$0xff]  ;;  %v17004_v10 = vld [vmem:[#allocation152_spill] sm:$0xff] }
 0x7d4   : > { %v14684_v28 = vsel %vm625_vm7, %v7844_v30, %v7849_v29  ;;  %v14688_v35 = vsel %vm625_vm7, %v7845_v37, %v7850_v34  ;;  %v14692_v51 = vsel %vm625_vm7, %v7849_v29, %v7829_v46 }
 0x7d5   : > { %5504 = vmatpush1.bf16.msra.mxu0 %v5503_v42  ;;  %5704 = vmatpush1.bf16.msra.mxu1 %v5703_v32  ;;  %v14696_v42 = vsel %vm625_vm7, %v7850_v34, %v7830_v62  ;;  %v7858_v15 = vpop.permute.xlu0 %7857  ;;  %v16996_v62 = vld [vmem:[#allocation153_spill] sm:$0xff]  ;;  %v17001_v34 = vpack.c.bf16 %v16999_v1, %v17000_v26  ;;  %v17011_v1 = vld [vmem:[#allocation55_spill] sm:$0xff] }
 0x7d6   : > { %5506 = vmatprep.subr.bf16.mxu0 %v5505_v40  ;;  %5706 = vmatprep.subr.bf16.mxu1 %v5705_v57  ;;  %v7863_v48 = vpop.permute.xlu1 %7862  ;;  %v7860_v30 = vunpack.i.h.bf16 %v7858_v15  ;;  %v7859_v12 = vunpack.i.l.bf16 %v7858_v15  ;;  %v5511_v50 = vpack.c.bf16 %v16996_v62, %v16995_v11  ;;  %v17002_v57 = vld [vmem:[#allocation70_spill] sm:$0xff] }
 0x7d7   : > { %v7865_v31 = vunpack.i.h.bf16 %v7863_v48  ;;  %v7864_v46 = vunpack.i.l.bf16 %v7863_v48  ;;  %v5513_v2 = vpack.c.bf16 %v17003_v0, %v17002_v57  ;;  %v17007_v48 = vld [vmem:[#allocation84_spill] sm:$0xff] }
 0x7d8   : > { %v14706_v40 = vsel %vm686_vm8, %v7854_v3, %v7859_v12  ;;  %v14710_v32 = vsel %vm686_vm8, %v7855_v6, %v7860_v30 }
 0x7d9   : > { %5508 = vmatpush1.bf16.msra.mxu0 %v5507_v14  ;;  %5708 = vmatpush1.bf16.msra.mxu1 %v5707_v33  ;;  %16997 = vst [vmem:[#allocation135_spill] sm:$0xff] %v14706_v40  ;;  %16998 = vst [vmem:[#allocation21_spill] sm:$0xff] %v14710_v32  ;;  %v14717_v29 = vsel %vm686_vm8, %v7859_v12, %v7864_v46  ;;  %v14721_v16 = vsel %vm686_vm8, %v7860_v30, %v7865_v31  ;;  %v7868_v14 = vpop.permute.xlu0 %7867  ;;  %v17005_v33 = vld [vmem:[#allocation88_spill] sm:$0xff]  ;;  %v17008_v30 = vld [vmem:[#allocation75_spill] sm:$0xff] }
 0x7da   : > { %5510 = vmatprep.subr.bf16.mxu0 %v5509_v52  ;;  %5710 = vmatprep.subr.bf16.mxu1 %v17001_v34  ;;  %v7873_v53 = vpop.permute.xlu1 %7872  ;;  %v7870_v52 = vunpack.i.h.bf16 %v7868_v14  ;;  %v7869_v8 = vunpack.i.l.bf16 %v7868_v14  ;;  %v17006_v15 = vpack.c.bf16 %v17004_v10, %v17005_v33  ;;  %v5715_v12 = vpack.c.bf16 %v17008_v30, %v17007_v48  ;;  %v17014_v33 = vld [vmem:[#allocation91_spill] sm:$0xff]  ;;  %v17031_v10 = vld [vmem:[#allocation121_spill] sm:$0xff] }
 0x7db   : > { %v7875_v0 = vunpack.i.h.bf16 %v7873_v53  ;;  %v17120_v40 = vld [vmem:[#allocation113_spill] sm:$0xff] }
 0x7dc   : > { %v14736_v11 = vsel %vm686_vm8, %v7864_v46, %v7869_v8  ;;  %v14740_v62 = vsel %vm686_vm8, %v7865_v31, %v7870_v52  ;;  %v14747_v34 = vsel %vm686_vm8, %v7869_v8, %v7854_v3  ;;  %v14751_v57 = vsel %vm686_vm8, %v7870_v52, %v7855_v6  ;;  %v17017_v6 = vld [vmem:[#allocation29_spill] sm:$0xff]  ;;  %v17018_v52 = vld [vmem:[#allocation36_spill] sm:$0xff] }
 0x7dd   : > { %5512 = vmatpush1.bf16.msra.mxu0 %v5511_v50  ;;  %5712 = vmatpush1.bf16.msra.mxu1 %v17006_v15  ;;  %17009 = vst [vmem:[#allocation72_spill] sm:$0xff] %v14736_v11  ;;  %17010 = vst [vmem:[#allocation124_spill] sm:$0xff] %v14740_v62  ;;  %v17012_v50 = vld [vmem:[#allocation27_spill] sm:$0xff]  ;;  %v7878_v14 = vpop.permute.xlu0 %7877  ;;  %v17015_v15 = vld [vmem:[#allocation92_spill] sm:$0xff] }
 0x7de   : > { %5514 = vmatprep.subr.bf16.mxu0 %v5513_v2  ;;  %v17013_v26 = vpack.c.bf16 %v17011_v1, %v17012_v50  ;;  %v7874_v2 = vunpack.i.l.bf16 %v7873_v53  ;;  %v7883_v31 = vpop.permute.xlu1 %7882  ;;  %v17016_v48 = vpack.c.bf16 %v17014_v33, %v17015_v15  ;;  %v7880_v3 = vunpack.i.h.bf16 %v7878_v14  ;;  %v17022_v46 = vld [vmem:[#allocation65_spill] sm:$0xff]  ;;  %v17023_v33 = vld [vmem:[#allocation87_spill] sm:$0xff]  ;;  %v17100_v11 = vld [vmem:[#allocation38_spill] sm:$0xff] }
 0x7df   : > { %v7879_v8 = vunpack.i.l.bf16 %v7878_v14  ;;  %v7885_v30 = vunpack.i.h.bf16 %v7883_v31  ;;  %v7884_v1 = vunpack.i.l.bf16 %v7883_v31  ;;  %v17019_v50 = vpack.c.bf16 %v17017_v6, %v17018_v52 }
 0x7e0   : > { %5714 = vmatprep.subr.bf16.mxu1 %v17013_v26  ;;  %v14769_v26 = vsel %vm686_vm8, %v7875_v0, %v7880_v3  ;;  %v17024_v15 = vpack.c.bf16 %v17022_v46, %v17023_v33 }
 0x7e1   : > { %5516 = vmatpush1.bf16.msra.mxu0 %v17016_v48  ;;  %5716 = vmatpush1.bf16.msra.mxu1 %v5715_v12  ;;  %v14765_v53 = vsel %vm686_vm8, %v7874_v2, %v7879_v8  ;;  %17021 = vst [vmem:[#allocation146_spill] sm:$0xff] %v14769_v26  ;;  %v14776_v14 = vsel %vm686_vm8, %v7879_v8, %v7884_v1  ;;  %v7888_v48 = vpop.permute.xlu0 %7887  ;;  %v17030_v8 = vld [vmem:[#allocation49_spill] sm:$0xff] }
 0x7e2   : > { %5518 = vmatprep.subr.bf16.mxu0 %v17019_v50  ;;  %17020 = vst [vmem:[#allocation85_spill] sm:$0xff] %v14765_v53  ;;  %5718 = vmatprep.subr.bf16.mxu1 %v17024_v15  ;;  %17025 = vst [vmem:[#allocation123_spill] sm:$0xff] %v14776_v14  ;;  %v14780_v31 = vsel %vm686_vm8, %v7880_v3, %v7885_v30  ;;  %v7893_v6 = vpop.permute.xlu1 %7892  ;;  %v17027_v50 = vld [vmem:[#allocation40_spill] sm:$0xff]  ;;  %v7890_v33 = vunpack.i.h.bf16 %v7888_v48  ;;  %v7889_v15 = vunpack.i.l.bf16 %v7888_v48  ;;  %v17033_v3 = vld [vmem:[#allocation57_spill] sm:$0xff] }
 0x7e3   : > { %17026 = vst [vmem:[#allocation48_spill] sm:$0xff] %v14780_v31  ;;  %v17029_v46 = vpack.c.bf16 %v17027_v50, %v17028_v44  ;;  %v17032_v22 = vpack.c.bf16 %v17030_v8, %v17031_v10  ;;  %v17035_v38 = vpack.c.bf16 %v17033_v3, %v17034_v63  ;;  %v17038_v44 = vld [vmem:[#allocation54_spill] sm:$0xff]  ;;  %v17039_v50 = vld [vmem:[#allocation51_spill] sm:$0xff]  ;;  %v17064_v53 = vld [vmem:[#allocation69_spill] sm:$0xff] }
 0x7e4   : > { %v14797_v12 = vsel %vm686_vm8, %v7884_v1, %v7889_v15  ;;  %v14801_v52 = vsel %vm686_vm8, %v7885_v30, %v7890_v33  ;;  %v14808_v10 = vsel %vm686_vm8, %v7889_v15, %v7874_v2  ;;  %v14812_v63 = vsel %vm686_vm8, %v7890_v33, %v7875_v0  ;;  %v17043_v3 = vld [vmem:[#allocation151_spill] sm:$0xff]  ;;  %v17046_v0 = vld [vmem:[#allocation45_spill] sm:$0xff]  ;;  %v17047_v33 = vld [vmem:[#allocation104_spill] sm:$0xff] }
 0x7e5   : > { %5520 = vmatpush1.bf16.msra.mxu0 %v17029_v46  ;;  %5720 = vmatpush1.bf16.msra.mxu1 %v17035_v38  ;;  %17036 = vst [vmem:[#allocation66_spill] sm:$0xff] %v14797_v12  ;;  %17037 = vst [vmem:[#allocation50_spill] sm:$0xff] %v14801_v52  ;;  %v17040_v46 = vpack.c.bf16 %v17038_v44, %v17039_v50  ;;  %v7894_v1 = vunpack.i.l.bf16 %v7893_v6  ;;  %v7898_v48 = vpop.permute.xlu0 %7897  ;;  %v17044_v44 = vld [vmem:[#allocation81_spill] sm:$0xff]  ;;  %v17048_v4 = vpack.c.bf16 %v17046_v0, %v17047_v33  ;;  %v17049_v38 = vld [vmem:[#allocation42_spill] sm:$0xff] }
 0x7e6   : > { %5522 = vmatprep.subr.bf16.mxu0 %v17032_v22  ;;  %17041 = vst [vmem:[#allocation83_spill] sm:$0xff] %v14808_v10  ;;  %17042 = vst [vmem:[#allocation78_spill] sm:$0xff] %v14812_v63  ;;  %v7895_v22 = vunpack.i.h.bf16 %v7893_v6  ;;  %v7903_v30 = vpop.permute.xlu1 %7902  ;;  %v17045_v50 = vpack.c.bf16 %v17043_v3, %v17044_v44  ;;  %v7900_v2 = vunpack.i.h.bf16 %v7898_v48  ;;  %v7899_v15 = vunpack.i.l.bf16 %v7898_v48  ;;  %v17054_v44 = vld [vmem:[#allocation41_spill] sm:$0xff]  ;;  %v17055_v48 = vld [vmem:[#allocation90_spill] sm:$0xff] }
 0x7e7   : > { %5722 = vmatprep.subr.bf16.mxu1 %v17040_v46  ;;  %v7905_v46 = vunpack.i.h.bf16 %v7903_v30  ;;  %v7904_v37 = vunpack.i.l.bf16 %v7903_v30  ;;  %v17051_v6 = vpack.c.bf16 %v17049_v38, %v17050_v24  ;;  %v7590_v26 = vunpack.i.h.bf16 %v17064_v53  ;;  %v17068_v33 = vld [vmem:[#allocation34_spill] sm:$0xff] }
 0x7e8   : > { %v14829_v60 = vsel %vm686_vm8, %v7894_v1, %v7899_v15  ;;  %v14833_v3 = vsel %vm686_vm8, %v7895_v22, %v7900_v2  ;;  %v17069_v8 = vld [vmem:[#allocation102_spill] sm:$0xff] }
 0x7e9   : > { %5524 = vmatpush1.bf16.msra.mxu0 %v17045_v50  ;;  %5724 = vmatpush1.bf16.msra.mxu1 %v17051_v6  ;;  %17052 = vst [vmem:[#allocation77_spill] sm:$0xff] %v14829_v60  ;;  %17053 = vst [vmem:[#allocation76_spill] sm:$0xff] %v14833_v3  ;;  %v17056_v50 = vpack.c.bf16 %v17054_v44, %v17055_v48  ;;  %v14840_v30 = vsel %vm686_vm8, %v7899_v15, %v7904_v37  ;;  %v7908_v38 = vpop.permute.xlu0 %7907  ;;  %v17059_v6 = vld [vmem:[#allocation131_spill] sm:$0xff]  ;;  %v17061_v48 = vld [vmem:[#allocation52_spill] sm:$0xff] }
 0x7ea   : > { %5526 = vmatprep.subr.bf16.mxu0 %v17048_v4  ;;  %17057 = vst [vmem:[#allocation71_spill] sm:$0xff] %v14840_v30  ;;  %v14844_v24 = vsel %vm686_vm8, %v7900_v2, %v7905_v46  ;;  %v7913_v0 = vpop.permute.xlu1 %7912  ;;  %v17060_v44 = vld [vmem:[#allocation43_spill] sm:$0xff]  ;;  %v7910_v15 = vunpack.i.h.bf16 %v7908_v38  ;;  %v7909_v17 = vunpack.i.l.bf16 %v7908_v38  ;;  %v7585_v4 = vunpack.i.h.bf16 %v14046_v41  ;;  %v17065_v60 = vld [vmem:[#allocation24_spill] sm:$0xff]  ;;  %v17066_v3 = vld [vmem:[#allocation154_spill] sm:$0xff] }
 0x7eb   : > { %5726 = vmatprep.subr.bf16.mxu1 %v17056_v50  ;;  %17058 = vst [vmem:[#allocation127_spill] sm:$0xff] %v14844_v24  ;;  %v17062_v50 = vpack.c.bf16 %v17060_v44, %v17061_v48  ;;  %v17063_v2 = vld [vmem:[#allocation79_spill] sm:$0xff]  ;;  %v17067_v10 = vpack.c.bf16 %v17065_v60, %v17066_v3  ;;  %v17070_v30 = vpack.c.bf16 %v17068_v33, %v17069_v8  ;;  %v7915_v8 = vunpack.i.h.bf16 %v7913_v0  ;;  %v17085_v33 = vld [vmem:[#allocation144_spill] sm:$0xff] }
 0x7ec   : > { %v14866_v44 = vsel %vm686_vm8, %v7904_v37, %v7909_v17  ;;  %v14870_v38 = vsel %vm686_vm8, %v7905_v46, %v7910_v15  ;;  %v17073_v48 = vld [vmem:[#allocation115_spill] sm:$0xff]  ;;  %v14877_v60 = vsel %vm686_vm8, %v7909_v17, %v7894_v1  ;;  %v7914_v3 = vunpack.i.l.bf16 %v7913_v0 }
 0x7ed   : > { %5528 = vmatpush1.bf16.msra.mxu0 %v17062_v50  ;;  %5728 = vmatpush1.bf16.msra.mxu1 %v17070_v30  ;;  %17071 = vst [vmem:[#allocation61_spill] sm:$0xff] %v14866_v44  ;;  %17072 = vst [vmem:[#allocation156_spill] sm:$0xff] %v14870_v38  ;;  %v17074_v50 = vld [vmem:[#allocation108_spill] sm:$0xff]  ;;  %v7918_v30 = vpop.permute.xlu0 %7917  ;;  %v7584_v0 = vunpack.i.l.bf16 %v14046_v41  ;;  %v17082_v44 = vld [vmem:[#allocation67_spill] sm:$0xff] }
 0x7ee   : > { %5530 = vmatprep.subr.bf16.mxu0 %v17067_v10  ;;  %v17075_v52 = vpack.c.bf16 %v17073_v48, %v17074_v50  ;;  %17076 = vst [vmem:[#allocation31_spill] sm:$0xff] %v14877_v60  ;;  %v14881_v10 = vsel %vm686_vm8, %v7910_v15, %v7895_v22  ;;  %v7923_v46 = vpop.permute.xlu1 %7922  ;;  %v17078_v48 = vld [vmem:[#allocation62_spill] sm:$0xff]  ;;  %v7920_v17 = vunpack.i.h.bf16 %v7918_v30  ;;  %v7919_v1 = vunpack.i.l.bf16 %v7918_v30  ;;  %v17081_v15 = vld [vmem:[#allocation149_spill] sm:$0xff]  ;;  %v17086_v60 = vld [vmem:[#allocation143_spill] sm:$0xff] }
 0x7ef   : > { %17077 = vst [vmem:[#allocation63_spill] sm:$0xff] %v14881_v10  ;;  %v7925_v12 = vunpack.i.h.bf16 %v7923_v46  ;;  %v7924_v24 = vunpack.i.l.bf16 %v7923_v46  ;;  %v7589_v22 = vunpack.i.l.bf16 %v17064_v53  ;;  %v7600_v63 = vunpack.i.h.bf16 %v17081_v15  ;;  %v17083_v38 = vld [vmem:[#allocation37_spill] sm:$0xff]  ;;  %v17090_v46 = vld [vmem:[#allocation74_spill] sm:$0xff] }
 0x7f0   : > { %5730 = vmatprep.subr.bf16.mxu1 %v17075_v52  ;;  %v17079_v52 = vld [vmem:[#allocation86_spill] sm:$0xff]  ;;  %v7599_v37 = vunpack.i.l.bf16 %v17081_v15  ;;  %v17084_v14 = vpack.c.bf16 %v17082_v44, %v17083_v38  ;;  %v14902_v30 = vsel %vm686_vm8, %v7914_v3, %v7919_v1  ;;  %v14906_v53 = vsel %vm686_vm8, %v7915_v8, %v7920_v17 }
 0x7f1   : > { %v17080_v50 = vpack.c.bf16 %v17078_v48, %v17079_v52  ;;  %v17087_v48 = vpack.c.bf16 %v17085_v33, %v17086_v60  ;;  %17088 = vst [vmem:[#allocation118_spill] sm:$0xff] %v14902_v30  ;;  %17089 = vst [vmem:[#allocation120_spill] sm:$0xff] %v14906_v53  ;;  %v17091_v52 = vld [vmem:[#allocation136_spill] sm:$0xff]  ;;  %v14913_v41 = vsel %vm686_vm8, %v7919_v1, %v7924_v24  ;;  %v7595_v44 = vunpack.i.h.bf16 %v14079_v5  ;;  %v7928_v33 = vpop.permute.xlu0 %7927  ;;  %v17099_v53 = vld [vmem:[#allocation33_spill] sm:$0xff] }
 0x7f2   : > { %17093 = vst [vmem:[#allocation46_spill] sm:$0xff] %v14913_v41  ;;  %v7594_v38 = vunpack.i.l.bf16 %v14079_v5  ;;  %v14923_v15 = vpop.permute.xlu1 %7932  ;;  %v7930_v5 = vunpack.i.h.bf16 %v7928_v33  ;;  %v7929_v31 = vunpack.i.l.bf16 %v7928_v33  ;;  %v3900_v30 = vsel %vm625_vm7, %v7584_v0, %v7589_v22  ;;  %v17102_v1 = vld [vmem:[#allocation137_spill] sm:$0xff]  ;;  %v17103_v41 = vld [vmem:[#allocation114_spill] sm:$0xff] }
 0x7f3   : > { %5532 = vmatpush1.bf16.msra.mxu0 %v17080_v50  ;;  %5732 = vmatpush1.bf16.msra.mxu1 %v17087_v48  ;;  %v17092_v50 = vpack.c.bf16 %v17090_v46, %v17091_v52  ;;  %v17095_v46 = vld [vmem:[#allocation155_spill] sm:$0xff]  ;;  %v14930_v52 = vsel %vm625_vm7, %v7585_v4, %v7590_v26  ;;  %v17101_v48 = vpack.c.bf16 %v17099_v53, %v17100_v11  ;;  %v17107_v11 = vld [vmem:[#allocation112_spill] sm:$0xff]  ;;  %v17108_v53 = vld [vmem:[#allocation109_spill] sm:$0xff]  ;;  %v7604_v60 = vunpack.i.l.bf16 %v14122_v20 }
 0x7f4   : > { %5534 = vmatprep.subr.bf16.mxu0 %v17084_v14  ;;  %v14917_v14 = vsel %vm686_vm8, %v7920_v17, %v7925_v12  ;;  %v17096_v17 = vld [vmem:[#allocation94_spill] sm:$0xff]  ;;  %v3920_v62 = vsel %vm625_vm7, %v7599_v37, %v7584_v0  ;;  %v14950_v33 = vsel %vm686_vm8, %v7924_v24, %v7929_v31  ;;  %v14965_v0 = vsel %vm686_vm8, %v7930_v5, %v7915_v8  ;;  %v17114_v8 = vld [vmem:[#allocation64_spill] sm:$0xff] }
 0x7f5   : > { %5734 = vmatprep.subr.bf16.mxu1 %v17092_v50  ;;  %17094 = vst [vmem:[#allocation68_spill] sm:$0xff] %v14917_v14  ;;  %v17097_v50 = vld [vmem:[#allocation28_spill] sm:$0xff]  ;;  %v17104_v14 = vpack.c.bf16 %v17102_v1, %v17103_v41  ;;  %17105 = vst [vmem:[#allocation111_spill] sm:$0xff] %v14950_v33  ;;  %v14961_v41 = vsel %vm686_vm8, %v7929_v31, %v7914_v3  ;;  %v5547_v3 = vpack.c.bf16 %v14930_v52, %v3900_v30  ;;  %v17117_v33 = vld [vmem:[#allocation73_spill] sm:$0xff] }
 0x7f6   : > { %v17098_v10 = vpack.c.bf16 %v17096_v17, %v17097_v50  ;;  %v14954_v17 = vsel %vm686_vm8, %v7925_v12, %v7930_v5  ;;  %17110 = vst [vmem:[#allocation140_spill] sm:$0xff] %v14961_v41  ;;  %17111 = vst [vmem:[#allocation107_spill] sm:$0xff] %v14965_v0  ;;  %v3880_v12 = vsel %vm625_vm7, %v7589_v22, %v7594_v38  ;;  %v17112_v50 = vld [vmem:[#allocation18_spill] sm:$0xff]  ;;  %v7943_v24 = vpop.permute.xlu1 %7942 }
 0x7f7   : > { %5736 = vmatpush1.bf16.msra.mxu1 %v17104_v14  ;;  %17106 = vst [vmem:[#allocation119_spill] sm:$0xff] %v14954_v17  ;;  %v3881_v14 = vsel %vm625_vm7, %v7590_v26, %v7595_v44  ;;  %v17116_v22 = vld [vmem:[#allocation110_spill] sm:$0xff]  ;;  %v7945_v31 = vunpack.i.h.bf16 %v7943_v24  ;;  %v7944_v41 = vunpack.i.l.bf16 %v7943_v24  ;;  %v3861_v52 = vsel %vm625_vm7, %v7595_v44, %v7600_v63  ;;  %v17125_v44 = vld [vmem:[#allocation39_spill] sm:$0xff] }
 0x7f8   : > { %5536 = vmatpush1.bf16.msra.mxu0 %v17098_v10  ;;  %v3921_v10 = vsel %vm625_vm7, %v7600_v63, %v7585_v4  ;;  %v7938_v4 = vpop.permute.xlu0 %7937  ;;  %v17118_v17 = vpack.c.bf16 %v17116_v22, %v17117_v33  ;;  %v17119_v26 = vld [vmem:[#allocation106_spill] sm:$0xff]  ;;  %v5545_v33 = vpack.c.bf16 %v3881_v14, %v3880_v12  ;;  %v17128_v22 = vld [vmem:[#allocation116_spill] sm:$0xff]  ;;  %v17131_v32 = vunpack.i.l.bf16 %v17112_v50 }
 0x7f9   : > { %5538 = vmatprep.subr.bf16.mxu0 %v17101_v48  ;;  %v17109_v48 = vpack.c.bf16 %v17107_v11, %v17108_v53  ;;  %v17113_v11 = vld [vmem:[#allocation100_spill] sm:$0xff]  ;;  %v7940_v53 = vunpack.i.h.bf16 %v7938_v4  ;;  %v17121_v1 = vpack.c.bf16 %v17119_v26, %v17120_v40  ;;  %v5745_v30 = vpack.c.bf16 %v3921_v10, %v3920_v62  ;;  %v17129_v26 = vld [vmem:[#allocation117_spill] sm:$0xff] }
 0x7fa   : > { %v17115_v5 = vpack.c.bf16 %v17113_v11, %v17114_v8  ;;  %v7605_v11 = vunpack.i.h.bf16 %v14122_v20  ;;  %v17122_v8 = vld [vmem:[#allocation128_spill] sm:$0xff]  ;;  %v7614_v40 = vunpack.i.l.bf16 %v14157_v25  ;;  %v7934_v20 = vunpack.i.l.bf16 %v14923_v15  ;;  %v7953_v12 = vpop.permute.xlu1 %7952 }
 0x7fb   : > { %5738 = vmatprep.subr.bf16.mxu1 %v17109_v48  ;;  %v7939_v48 = vunpack.i.l.bf16 %v7938_v4  ;;  %v3860_v4 = vsel %vm625_vm7, %v7594_v38, %v7599_v37  ;;  %v3883_v63 = vsel %vm625_vm7, %v7940_v53, %v7945_v31  ;;  %v7935_v37 = vunpack.i.h.bf16 %v14923_v15  ;;  %v17126_v38 = vld [vmem:[#allocation93_spill] sm:$0xff] }
 0x7fc   : > { %5540 = vmatpush1.bf16.msra.mxu0 %v17115_v5  ;;  %5740 = vmatpush1.bf16.msra.mxu1 %v17121_v1  ;;  %v17123_v5 = vld [vmem:[#allocation129_spill] sm:$0xff]  ;;  %v7948_v1 = vpop.permute.xlu0 %7947  ;;  %v17127_v10 = vpack.c.bf16 %v17125_v44, %v17126_v38  ;;  %v5747_v14 = vpack.c.bf16 %v3861_v52, %v3860_v4  ;;  %v3924_v15 = vsel %vm625_vm7, %v17131_v32, %v7604_v60 }
 0x7fd   : > { %5542 = vmatprep.subr.bf16.mxu0 %v17118_v17  ;;  %v17124_v0 = vpack.c.bf16 %v17122_v8, %v17123_v5  ;;  %v7615_v17 = vunpack.i.h.bf16 %v14157_v25  ;;  %v3882_v62 = vsel %vm625_vm7, %v7939_v48, %v7944_v41  ;;  %v7949_v24 = vunpack.i.l.bf16 %v7948_v1 }
 0x7fe   : > { %v7620_v25 = vunpack.i.h.bf16 %v17112_v50  ;;  %v17130_v8 = vpack.c.bf16 %v17128_v22, %v17129_v26  ;;  %v5549_v5 = vpack.c.bf16 %v3883_v63, %v3882_v62  ;;  %v3903_v62 = vsel %vm625_vm7, %v7935_v37, %v7940_v53  ;;  %v7963_v38 = vpop.permute.xlu1 %7962 }
 0x7ff   : > { %5742 = vmatprep.subr.bf16.mxu1 %v17124_v0  ;;  %v7950_v0 = vunpack.i.h.bf16 %v7948_v1  ;;  %v3862_v44 = vsel %vm625_vm7, %v7944_v41, %v7949_v24  ;;  %v3922_v52 = vsel %vm625_vm7, %v7949_v24, %v7934_v20  ;;  %v17133_v24 = vunpack.i.h.bf16 %v17095_v46 }
 0x800   : > { %5544 = vmatpush1.bf16.msra.mxu0 %v17127_v10  ;;  %5744 = vmatpush1.bf16.msra.mxu1 %v17130_v8  ;;  %v7958_v32 = vpop.permute.xlu0 %7957  ;;  %v3925_v41 = vsel %vm625_vm7, %v7620_v25, %v7605_v11  ;;  %v17132_v10 = vunpack.i.l.bf16 %v17095_v46  ;;  %v7964_v22 = vunpack.i.l.bf16 %v7963_v38 }
 0x801   : > { %5546 = vmatprep.subr.bf16.mxu0 %v5545_v33  ;;  %v3863_v1 = vsel %vm625_vm7, %v7945_v31, %v7950_v0  ;;  %5746 = vmatprep.subr.bf16.mxu1 %v5745_v30  ;;  %v3923_v4 = vsel %vm625_vm7, %v7950_v0, %v7935_v37  ;;  %v3902_v33 = vsel %vm625_vm7, %v7934_v20, %v7939_v48  ;;  %v7960_v31 = vunpack.i.h.bf16 %v7958_v32 }
 0x802   : > { %v5749_v63 = vpack.c.bf16 %v3923_v4, %v3922_v52  ;;  %v7959_v30 = vunpack.i.l.bf16 %v7958_v32  ;;  %v3884_v0 = vsel %vm625_vm7, %v17132_v10, %v7614_v40  ;;  %v3885_v48 = vsel %vm625_vm7, %v17133_v24, %v7615_v17 }
 0x803   : > { %v17134_v53 = vmov %v17133_v24  ;;  %v5751_v20 = vpack.c.bf16 %v3863_v1, %v3862_v44  ;;  %v17135_v26 = vmov %v17132_v10  ;;  %v3865_v52 = vsel %vm625_vm7, %v7615_v17, %v7620_v25 }
 0x804   : > { %5548 = vmatpush1.bf16.msra.mxu0 %v5547_v3  ;;  %v3905_v37 = vsel %vm625_vm7, %v7605_v11, %v17134_v53  ;;  %5748 = vmatpush1.bf16.msra.mxu1 %v5747_v14  ;;  %v7965_v3 = vunpack.i.h.bf16 %v7963_v38  ;;  %v3904_v8 = vsel %vm625_vm7, %v7604_v60, %v17135_v26  ;;  %v5551_v4 = vpack.c.bf16 %v3903_v62, %v3902_v33  ;;  %v15049_v11 = vld [vmem:[%s15422_s8 + $0x10] sm:$0xff]  ;;  %v7973_v44 = vpop.permute.xlu0 %7972  ;;  %v15059_v62 = vpop.permute.xlu1 %7967 }
 0x805   : > { %5550 = vmatprep.subr.bf16.mxu0 %v5549_v5  ;;  %5750 = vmatprep.subr.bf16.mxu1 %v5749_v63  ;;  %v5753_v32 = vpack.c.bf16 %v3925_v41, %v3924_v15  ;;  %v17136_v14 = vunpack.i.l.bf16 %v17112_v50  ;;  %v5553_v46 = vpack.c.bf16 %v3885_v48, %v3884_v0  ;;  %v3886_v60 = vsel %vm625_vm7, %v7959_v30, %v7964_v22 }
 0x806   : > { %v3887_v17 = vsel %vm625_vm7, %v7960_v31, %v7965_v3  ;;  %v7955_v25 = vunpack.i.h.bf16 %v7953_v12  ;;  %v7954_v15 = vunpack.i.l.bf16 %v7953_v12  ;;  %v7975_v1 = vunpack.i.h.bf16 %v7973_v44 }
 0x807   : > { %v3864_v5 = vsel %vm625_vm7, %v7614_v40, %v17136_v14  ;;  %v7974_v33 = vunpack.i.l.bf16 %v7973_v44  ;;  %v7234_v50 = vunpack.i.l.bf16 %v17063_v2  ;;  %v5555_v63 = vpack.c.bf16 %v3905_v37, %v3904_v8 }
 0x808   : > { %5552 = vmatpush1.bf16.msra.mxu0 %v5551_v4  ;;  %5752 = vmatpush1.bf16.msra.mxu1 %v5751_v20  ;;  %v5557_v40 = vpack.c.bf16 %v3887_v17, %v3886_v60  ;;  %v4196_v41 = vcombine.high %v15049_v11, %v15049_v11  ;;  %v3867_v12 = vsel %vm625_vm7, %v7965_v3, %v7975_v1  ;;  %v15077_v37 = vpop.permute.xlu0 %7977  ;;  %v15080_v3 = vpop.permute.xlu1 %7982  ;;  %v17138_v26 = vunpack.i.l.bf16 %v17059_v6 }
 0x809   : > { %5554 = vmatprep.subr.bf16.mxu0 %v5553_v46  ;;  %v3866_v38 = vsel %vm625_vm7, %v7964_v22, %v7974_v33  ;;  %5754 = vmatprep.subr.bf16.mxu1 %v5753_v32  ;;  %v3926_v10 = vsel %vm625_vm7, %v7974_v33, %v7954_v15  ;;  %v3927_v0 = vsel %vm625_vm7, %v7975_v1, %v7955_v25  ;;  %v17137_v22 = vunpack.i.l.bf16 %v14233_v23 }
 0x80a   : > { %v5755_v24 = vpack.c.bf16 %v3865_v52, %v3864_v5  ;;  %v3906_v48 = vsel %vm625_vm7, %v7954_v15, %v7959_v30  ;;  %v3907_v53 = vsel %vm625_vm7, %v7955_v25, %v7960_v31  ;;  %v5757_v20 = vpack.c.bf16 %v3927_v0, %v3926_v10 }
 0x80b   : > { %4338 = vmatmul.mubr.f32.vlgmr.msra.gmra.mrb[16].mxu0 %v14393_v18  ;;  %4622 = vmatmul.mubr.f32.vlgmr.msra.gmra.mrb[16].mxu1 %v14393_v18  ;;  %v3888_v30 = vsel %vm625_vm7, %v17138_v26, %v17137_v22  ;;  %v17139_v8 = vunpack.i.h.bf16 %v14233_v23  ;;  %v17140_v31 = vunpack.i.h.bf16 %v17059_v6  ;;  %v5759_v4 = vpack.c.bf16 %v3867_v12, %v3866_v38 }
 0x80c   : > { %5556 = vmatpush1.bf16.msra.mxu0 %v5555_v63  ;;  %5756 = vmatpush1.bf16.msra.mxu1 %v5755_v24  ;;  %v17141_v18 = vunpack.i.l.bf16 %v14120_v45  ;;  %v17142_v14 = vunpack.i.h.bf16 %v17063_v2  ;;  %v17143_v5 = vunpack.i.h.bf16 %v14120_v45  ;;  %v5559_v46 = vpack.c.bf16 %v3907_v53, %v3906_v48  ;;  %v15114_v45 = vpop.permute.xlu0 %7987  ;;  %v7993_v33 = vpop.permute.xlu1 %7992 }
 0x80d   : > { %v3889_v52 = vsel %vm625_vm7, %v17140_v31, %v17139_v8  ;;  %5558 = vmatprep.subr.bf16.mxu0 %v5557_v40  ;;  %5758 = vmatprep.subr.bf16.mxu1 %v5757_v20  ;;  %v17144_v44 = vmov %v17140_v31  ;;  %v17146_v25 = vmov %v17138_v26  ;;  %v17147_v6 = vpack.c.bf16 %v14434_v21, %v14422_v54  ;;  %v17150_v21 = vld [vmem:[#allocation138_spill] sm:$0xff]  ;;  %v17151_v26 = vld [vmem:[#allocation32_spill] sm:$0xff] }
 0x80e   : > { %v3928_v32 = vsel %vm625_vm7, %v17141_v18, %v7234_v50  ;;  %v3929_v23 = vsel %vm625_vm7, %v17143_v5, %v17142_v14  ;;  %4408 = vmatprep.mubr.f32.mxu0 %v4196_v41  ;;  %v17145_v60 = vmov %v17142_v14  ;;  %v3908_v15 = vsel %vm625_vm7, %v7234_v50, %v17146_v25  ;;  %4692 = vmatprep.mubr.f32.mxu1 %v4196_v41  ;;  %v17155_v31 = vld [vmem:[#allocation20_spill] sm:$0xff] }
 0x80f   : > { %v3909_v17 = vsel %vm625_vm7, %v17145_v60, %v17144_v44  ;;  %v5561_v1 = vpack.c.bf16 %v3889_v52, %v3888_v30  ;;  %v5761_v63 = vpack.c.bf16 %v3929_v23, %v3928_v32  ;;  %v17148_v50 = vpack.c.bf16 %v14276_v49, %v14284_v43  ;;  %v17158_v60 = vld [vmem:[#allocation44_spill] sm:$0xff] }
 0x810   : > { %5560 = vmatpush1.bf16.msra.mxu0 %v5559_v46  ;;  %5760 = vmatpush1.bf16.msra.mxu1 %v5759_v4  ;;  %v5563_v40 = vpack.c.bf16 %v3909_v17, %v3908_v15  ;;  %v7998_v2 = vpop.permute.xlu0 %7997  ;;  %v8003_v10 = vpop.permute.xlu1 %8002  ;;  %v17149_v24 = vpack.c.bf16 %v14404_v36, %v14400_v13  ;;  %v7995_v22 = vunpack.i.h.bf16 %v7993_v33  ;;  %v7994_v54 = vunpack.i.l.bf16 %v7993_v33  ;;  %v17154_v36 = vld [vmem:[#allocation19_spill] sm:$0xff]  ;;  %v17159_v17 = vld [vmem:[#allocation22_spill] sm:$0xff] }
 0x811   : > { %5562 = vmatprep.subr.bf16.mxu0 %v5561_v1  ;;  %5762 = vmatprep.subr.bf16.mxu1 %v5761_v63  ;;  %v8000_v38 = vunpack.i.h.bf16 %v7998_v2  ;;  %v7999_v12 = vunpack.i.l.bf16 %v7998_v2  ;;  %v8005_v41 = vunpack.i.h.bf16 %v8003_v10  ;;  %v8004_v0 = vunpack.i.l.bf16 %v8003_v10 }
 0x812   : > { %v17152_v30 = vpack.c.bf16 %v17150_v21, %v17151_v26  ;;  %v17153_v13 = vpack.c.bf16 %v14607_v58, %v14601_v7  ;;  %v17156_v52 = vpack.c.bf16 %v17154_v36, %v17155_v31  ;;  %v17157_v14 = vpack.c.bf16 %v14551_v27, %v14532_v47 }
 0x813   : > { %v3894_v53 = vsel %vm625_vm7, %v7999_v12, %v8004_v0  ;;  %v3895_v20 = vsel %vm625_vm7, %v8000_v38, %v8005_v41  ;;  %v3914_v58 = vsel %vm625_vm7, %v7994_v54, %v7999_v12  ;;  %v3915_v23 = vsel %vm625_vm7, %v7995_v22, %v8000_v38 }
 0x814   : > { %5564 = vmatpush1.bf16.msra.mxu0 %v5563_v40  ;;  %5764 = vmatpush1.bf16.msra.mxu1 %v17148_v50  ;;  %v8008_v48 = vpop.permute.xlu0 %8007  ;;  %v8013_v8 = vpop.permute.xlu1 %8012  ;;  %v5573_v4 = vpack.c.bf16 %v3895_v20, %v3894_v53  ;;  %v17160_v25 = vpack.c.bf16 %v17158_v60, %v17159_v17  ;;  %v17161_v33 = vpack.c.bf16 %v14569_v19, %v14573_v39 }
 0x815   : > { %5566 = vmatprep.subr.bf16.mxu0 %v17147_v6  ;;  %5766 = vmatprep.subr.bf16.mxu1 %v17149_v24  ;;  %v8010_v49 = vunpack.i.h.bf16 %v8008_v48  ;;  %v8009_v43 = vunpack.i.l.bf16 %v8008_v48  ;;  %v5575_v2 = vpack.c.bf16 %v3915_v23, %v3914_v58  ;;  %v8015_v6 = vunpack.i.h.bf16 %v8013_v8 }
 0x816   : > { %v8014_v50 = vunpack.i.l.bf16 %v8013_v8  ;;  %v17162_v19 = vpack.c.bf16 %v14668_v61, %v14664_v56  ;;  %v17163_v20 = vpack.c.bf16 %v14696_v42, %v14692_v51  ;;  %v17165_v8 = vpack.c.bf16 %v14688_v35, %v14684_v28 }
 0x817   : > { %v3874_v18 = vsel %vm625_vm7, %v8004_v0, %v8009_v43  ;;  %v3875_v32 = vsel %vm625_vm7, %v8005_v41, %v8010_v49  ;;  %v3934_v5 = vsel %vm625_vm7, %v8009_v43, %v7994_v54  ;;  %v3935_v7 = vsel %vm625_vm7, %v8010_v49, %v7995_v22 }
 0x818   : > { %5568 = vmatpush1.bf16.msra.mxu0 %v17152_v30  ;;  %5768 = vmatpush1.bf16.msra.mxu1 %v17156_v52  ;;  %v8018_v46 = vpop.permute.xlu0 %8017  ;;  %v5773_v44 = vpack.c.bf16 %v3935_v7, %v3934_v5  ;;  %v8023_v15 = vpop.permute.xlu1 %8022  ;;  %v5775_v1 = vpack.c.bf16 %v3875_v32, %v3874_v18  ;;  %v17164_v30 = vpack.c.bf16 %v14658_v55, %v14654_v59 }
 0x819   : > { %5570 = vmatprep.subr.bf16.mxu0 %v17153_v13  ;;  %5770 = vmatprep.subr.bf16.mxu1 %v17157_v14  ;;  %v8020_v47 = vunpack.i.h.bf16 %v8018_v46  ;;  %v8019_v27 = vunpack.i.l.bf16 %v8018_v46  ;;  %v8025_v63 = vunpack.i.h.bf16 %v8023_v15  ;;  %v8024_v40 = vunpack.i.l.bf16 %v8023_v15 }
 0x81a   : > { %v17166_v28 = vpack.c.bf16 %v14721_v16, %v14717_v29  ;;  %v17167_v23 = vpack.c.bf16 %v14751_v57, %v14747_v34 }
 0x81b   : > { %v3898_v12 = vsel %vm625_vm7, %v8019_v27, %v8024_v40  ;;  %v3899_v10 = vsel %vm625_vm7, %v8020_v47, %v8025_v63  ;;  %v3918_v56 = vsel %vm625_vm7, %v8014_v50, %v8019_v27  ;;  %v3919_v61 = vsel %vm625_vm7, %v8015_v6, %v8020_v47  ;;  %v17169_v47 = vld [vmem:[#allocation135_spill] sm:$0xff] }
 0x81c   : > { %5572 = vmatpush1.bf16.msra.mxu0 %v17160_v25  ;;  %5772 = vmatpush1.bf16.msra.mxu1 %v17161_v33  ;;  %v8028_v38 = vpop.permute.xlu0 %8027  ;;  %v8033_v24 = vpop.permute.xlu1 %8032  ;;  %v5581_v39 = vpack.c.bf16 %v3899_v10, %v3898_v12  ;;  %v5583_v31 = vpack.c.bf16 %v3919_v61, %v3918_v56  ;;  %v17168_v25 = vld [vmem:[#allocation21_spill] sm:$0xff]  ;;  %v17171_v33 = vld [vmem:[#allocation124_spill] sm:$0xff]  ;;  %v17177_v61 = vld [vmem:[#allocation78_spill] sm:$0xff] }
 0x81d   : > { %5574 = vmatprep.subr.bf16.mxu0 %v5573_v4  ;;  %5774 = vmatprep.subr.bf16.mxu1 %v5773_v44  ;;  %v8030_v41 = vunpack.i.h.bf16 %v8028_v38  ;;  %v8029_v0 = vunpack.i.l.bf16 %v8028_v38  ;;  %v8035_v55 = vunpack.i.h.bf16 %v8033_v24  ;;  %v8034_v18 = vunpack.i.l.bf16 %v8033_v24 }
 0x81e   : > { %v17170_v27 = vpack.c.bf16 %v17168_v25, %v17169_v47  ;;  %v17190_v25 = vld [vmem:[#allocation31_spill] sm:$0xff] }
 0x81f   : > { %v3878_v48 = vsel %vm625_vm7, %v8024_v40, %v8029_v0  ;;  %v3879_v53 = vsel %vm625_vm7, %v8025_v63, %v8030_v41  ;;  %v3938_v22 = vsel %vm625_vm7, %v8029_v0, %v8014_v50  ;;  %v3939_v54 = vsel %vm625_vm7, %v8030_v41, %v8015_v6  ;;  %v17172_v63 = vld [vmem:[#allocation72_spill] sm:$0xff] }
 0x820   : > { %5576 = vmatpush1.bf16.msra.mxu0 %v5575_v2  ;;  %5776 = vmatpush1.bf16.msra.mxu1 %v5775_v1  ;;  %v8038_v21 = vpop.permute.xlu0 %8037  ;;  %v5781_v26 = vpack.c.bf16 %v3939_v54, %v3938_v22  ;;  %v8043_v49 = vpop.permute.xlu1 %8042  ;;  %v5783_v43 = vpack.c.bf16 %v3879_v53, %v3878_v48  ;;  %v17173_v40 = vpack.c.bf16 %v17171_v33, %v17172_v63  ;;  %v17174_v48 = vld [vmem:[#allocation48_spill] sm:$0xff]  ;;  %v17175_v53 = vld [vmem:[#allocation123_spill] sm:$0xff]  ;;  %v17193_v63 = vld [vmem:[#allocation77_spill] sm:$0xff] }
 0x821   : > { %5578 = vmatprep.subr.bf16.mxu0 %v17162_v19  ;;  %5778 = vmatprep.subr.bf16.mxu1 %v17163_v20  ;;  %v8040_v51 = vunpack.i.h.bf16 %v8038_v21  ;;  %v8039_v42 = vunpack.i.l.bf16 %v8038_v21  ;;  %v8045_v13 = vunpack.i.h.bf16 %v8043_v49  ;;  %v8044_v36 = vunpack.i.l.bf16 %v8043_v49  ;;  %v17178_v21 = vld [vmem:[#allocation83_spill] sm:$0xff]  ;;  %v17192_v33 = vld [vmem:[#allocation76_spill] sm:$0xff] }
 0x822   : > { %v17176_v20 = vpack.c.bf16 %v17174_v48, %v17175_v53 }
 0x823   : > { %v4122_v4 = vsel %vm686_vm8, %v8039_v42, %v8044_v36  ;;  %v4123_v59 = vsel %vm686_vm8, %v8040_v51, %v8045_v13  ;;  %v4142_v29 = vsel %vm686_vm8, %v8034_v18, %v8039_v42  ;;  %v4143_v16 = vsel %vm686_vm8, %v8035_v55, %v8040_v51 }
 0x824   : > { %5580 = vmatpush1.bf16.msra.mxu0 %v17164_v30  ;;  %5780 = vmatpush1.bf16.msra.mxu1 %v17165_v8  ;;  %v8048_v52 = vpop.permute.xlu0 %8047  ;;  %v8053_v5 = vpop.permute.xlu1 %8052  ;;  %v5589_v35 = vpack.c.bf16 %v4123_v59, %v4122_v4  ;;  %v5591_v12 = vpack.c.bf16 %v4143_v16, %v4142_v29  ;;  %v7979_v59 = vunpack.i.l.bf16 %v15077_v37  ;;  %v17187_v29 = vld [vmem:[#allocation71_spill] sm:$0xff] }
 0x825   : > { %5582 = vmatprep.subr.bf16.mxu0 %v5581_v39  ;;  %5782 = vmatprep.subr.bf16.mxu1 %v5781_v26  ;;  %v8050_v32 = vunpack.i.h.bf16 %v8048_v52  ;;  %v8049_v14 = vunpack.i.l.bf16 %v8048_v52  ;;  %v8055_v41 = vunpack.i.h.bf16 %v8053_v5  ;;  %v8054_v0 = vunpack.i.l.bf16 %v8053_v5  ;;  %v17184_v5 = vld [vmem:[#allocation66_spill] sm:$0xff] }
 0x826   : > { %v17179_v26 = vpack.c.bf16 %v17177_v61, %v17178_v21 }
 0x827   : > { %v4102_v7 = vsel %vm686_vm8, %v8044_v36, %v8049_v14  ;;  %v4103_v58 = vsel %vm686_vm8, %v8045_v13, %v8050_v32  ;;  %v4162_v46 = vsel %vm686_vm8, %v8049_v14, %v8034_v18  ;;  %v4163_v44 = vsel %vm686_vm8, %v8050_v32, %v8035_v55  ;;  %v17180_v36 = vld [vmem:[#allocation146_spill] sm:$0xff] }
 0x828   : > { %5584 = vmatpush1.bf16.msra.mxu0 %v5583_v31  ;;  %5784 = vmatpush1.bf16.msra.mxu1 %v5783_v43  ;;  %v8058_v60 = vpop.permute.xlu0 %8057  ;;  %v5789_v17 = vpack.c.bf16 %v4163_v44, %v4162_v46  ;;  %v8063_v15 = vpop.permute.xlu1 %8062  ;;  %v5791_v1 = vpack.c.bf16 %v4103_v58, %v4102_v7  ;;  %v7980_v13 = vunpack.i.h.bf16 %v15077_v37  ;;  %v17181_v31 = vld [vmem:[#allocation85_spill] sm:$0xff]  ;;  %v7985_v55 = vunpack.i.h.bf16 %v15080_v3  ;;  %v17183_v14 = vld [vmem:[#allocation50_spill] sm:$0xff]  ;;  %v17186_v44 = vld [vmem:[#allocation127_spill] sm:$0xff] }
 0x829   : > { %5586 = vmatprep.subr.bf16.mxu0 %v17166_v28  ;;  %5786 = vmatprep.subr.bf16.mxu1 %v17167_v23  ;;  %v8060_v34 = vunpack.i.h.bf16 %v8058_v60  ;;  %v8059_v57 = vunpack.i.l.bf16 %v8058_v60  ;;  %v8065_v2 = vunpack.i.h.bf16 %v8063_v15  ;;  %v8064_v38 = vunpack.i.l.bf16 %v8063_v15 }
 0x82a   : > { %v17182_v52 = vpack.c.bf16 %v17180_v36, %v17181_v31  ;;  %v7984_v18 = vunpack.i.l.bf16 %v15080_v3  ;;  %v17185_v28 = vpack.c.bf16 %v17183_v14, %v17184_v5  ;;  %v7989_v7 = vunpack.i.l.bf16 %v15114_v45 }
 0x82b   : > { %v4126_v6 = vsel %vm686_vm8, %v8059_v57, %v8064_v38  ;;  %v4127_v50 = vsel %vm686_vm8, %v8060_v34, %v8065_v2  ;;  %v4146_v42 = vsel %vm686_vm8, %v8054_v0, %v8059_v57  ;;  %v4147_v49 = vsel %vm686_vm8, %v8055_v41, %v8060_v34 }
 0x82c   : > { %5588 = vmatpush1.bf16.msra.mxu0 %v17170_v27  ;;  %5788 = vmatpush1.bf16.msra.mxu1 %v17173_v40  ;;  %v8073_v10 = vpop.permute.xlu0 %8072  ;;  %v15219_v39 = vpop.permute.xlu1 %8067  ;;  %v5597_v22 = vpack.c.bf16 %v4127_v50, %v4126_v6  ;;  %v5599_v58 = vpack.c.bf16 %v4147_v49, %v4146_v42  ;;  %v7970_v37 = vunpack.i.h.bf16 %v15059_v62  ;;  %v7969_v46 = vunpack.i.l.bf16 %v15059_v62  ;;  %v17195_v50 = vld [vmem:[#allocation68_spill] sm:$0xff] }
 0x82d   : > { %5590 = vmatprep.subr.bf16.mxu0 %v5589_v35  ;;  %5790 = vmatprep.subr.bf16.mxu1 %v5789_v17  ;;  %v8075_v24 = vunpack.i.h.bf16 %v8073_v10  ;;  %v8074_v19 = vunpack.i.l.bf16 %v8073_v10  ;;  %v7990_v35 = vunpack.i.h.bf16 %v15114_v45  ;;  %v17188_v16 = vpack.c.bf16 %v17186_v44, %v17187_v29  ;;  %v17189_v17 = vld [vmem:[#allocation63_spill] sm:$0xff] }
 0x82e   : > { %v4132_v60 = vsel %vm686_vm8, %v7979_v59, %v7984_v18  ;;  %v4133_v45 = vsel %vm686_vm8, %v7980_v13, %v7985_v55  ;;  %v17191_v47 = vpack.c.bf16 %v17189_v17, %v17190_v25  ;;  %v4172_v62 = vsel %vm686_vm8, %v7989_v7, %v7969_v46 }
 0x82f   : > { %v4106_v54 = vsel %vm686_vm8, %v8064_v38, %v8074_v19  ;;  %v4107_v56 = vsel %vm686_vm8, %v8065_v2, %v8075_v24  ;;  %v4166_v30 = vsel %vm686_vm8, %v8074_v19, %v8054_v0  ;;  %v4167_v51 = vsel %vm686_vm8, %v8075_v24, %v8055_v41  ;;  %v17196_v41 = vld [vmem:[#allocation46_spill] sm:$0xff]  ;;  %v17198_v24 = vld [vmem:[#allocation156_spill] sm:$0xff]  ;;  %v17199_v19 = vld [vmem:[#allocation61_spill] sm:$0xff] }
 0x830   : > { %5592 = vmatpush1.bf16.msra.mxu0 %v5591_v12  ;;  %5792 = vmatpush1.bf16.msra.mxu1 %v5791_v1  ;;  %v15239_v43 = vpop.permute.xlu0 %8077  ;;  %v5797_v8 = vpack.c.bf16 %v4167_v51, %v4166_v30  ;;  %v15245_v4 = vpop.permute.xlu1 %8082  ;;  %v5799_v32 = vpack.c.bf16 %v4107_v56, %v4106_v54  ;;  %v4173_v27 = vsel %vm686_vm8, %v7990_v35, %v7970_v37  ;;  %v17202_v30 = vld [vmem:[#allocation140_spill] sm:$0xff]  ;;  %v8070_v5 = vunpack.i.h.bf16 %v15219_v39 }
 0x831   : > { %5594 = vmatprep.subr.bf16.mxu0 %v17176_v20  ;;  %5794 = vmatprep.subr.bf16.mxu1 %v17179_v26  ;;  %v4152_v34 = vsel %vm686_vm8, %v7969_v46, %v7979_v59  ;;  %v4153_v57 = vsel %vm686_vm8, %v7970_v37, %v7980_v13  ;;  %v4112_v1 = vsel %vm686_vm8, %v7984_v18, %v7989_v7  ;;  %v8080_v54 = vunpack.i.h.bf16 %v15239_v43  ;;  %v17201_v26 = vld [vmem:[#allocation107_spill] sm:$0xff]  ;;  %v17205_v59 = vld [vmem:[#allocation118_spill] sm:$0xff] }
 0x832   : > { %v17194_v40 = vpack.c.bf16 %v17192_v33, %v17193_v63  ;;  %v5609_v10 = vpack.c.bf16 %v4133_v45, %v4132_v60  ;;  %v4113_v6 = vsel %vm686_vm8, %v7985_v55, %v7990_v35  ;;  %v17197_v0 = vpack.c.bf16 %v17195_v50, %v17196_v41  ;;  %v17207_v35 = vld [vmem:[#allocation119_spill] sm:$0xff] }
 0x833   : > { %v17200_v48 = vpack.c.bf16 %v17198_v24, %v17199_v19  ;;  %v8079_v56 = vunpack.i.l.bf16 %v15239_v43  ;;  %v8085_v61 = vunpack.i.h.bf16 %v15245_v4  ;;  %v8084_v21 = vunpack.i.l.bf16 %v15245_v4  ;;  %v17208_v7 = vld [vmem:[#allocation111_spill] sm:$0xff] }
 0x834   : > { %5596 = vmatpush1.bf16.msra.mxu0 %v17182_v52  ;;  %5796 = vmatpush1.bf16.msra.mxu1 %v17185_v28  ;;  %v15255_v23 = vpop.permute.xlu0 %8087  ;;  %v8093_v3 = vpop.permute.xlu1 %8092  ;;  %v17203_v51 = vpack.c.bf16 %v17201_v26, %v17202_v30  ;;  %v17204_v52 = vld [vmem:[#allocation120_spill] sm:$0xff]  ;;  %v5611_v14 = vpack.c.bf16 %v4153_v57, %v4152_v34  ;;  %v8069_v28 = vunpack.i.l.bf16 %v15219_v39  ;;  %v5811_v39 = vpack.c.bf16 %v4113_v6, %v4112_v1 }
 0x835   : > { %5598 = vmatprep.subr.bf16.mxu0 %v5597_v22  ;;  %5798 = vmatprep.subr.bf16.mxu1 %v5797_v8  ;;  %v5809_v22 = vpack.c.bf16 %v4173_v27, %v4172_v62  ;;  %v8090_v42 = vunpack.i.h.bf16 %v15255_v23  ;;  %v8089_v49 = vunpack.i.l.bf16 %v15255_v23  ;;  %v8095_v43 = vunpack.i.h.bf16 %v8093_v3 }
 0x836   : > { %v8094_v31 = vunpack.i.l.bf16 %v8093_v3  ;;  %v17206_v4 = vpack.c.bf16 %v17204_v52, %v17205_v59  ;;  %v4136_v17 = vsel %vm686_vm8, %v8079_v56, %v8084_v21  ;;  %v4137_v25 = vsel %vm686_vm8, %v8080_v54, %v8085_v61 }
 0x837   : > { %v4177_v62 = vsel %vm686_vm8, %v8090_v42, %v8070_v5  ;;  %v4156_v27 = vsel %vm686_vm8, %v8069_v28, %v8079_v56  ;;  %v4157_v33 = vsel %vm686_vm8, %v8070_v5, %v8080_v54  ;;  %v8136_v5 = vld [vmem:[%s8527_s21 + $0x8] sm:$0xff] }
 0x838   : > { %5600 = vmatpush1.bf16.msra.mxu0 %v5599_v58  ;;  %5800 = vmatpush1.bf16.msra.mxu1 %v5799_v32  ;;  %v8098_v15 = vpop.permute.xlu0 %8097  ;;  %v8103_v12 = vpop.permute.xlu1 %8102  ;;  %v17209_v58 = vpack.c.bf16 %v17207_v35, %v17208_v7  ;;  %v8137_v35 = vld [vmem:[%s8527_s21 + $0x10] sm:$0xff] }
 0x839   : > { %5602 = vmatprep.subr.bf16.mxu0 %v17188_v16  ;;  %5802 = vmatprep.subr.bf16.mxu1 %v17191_v47  ;;  %v8100_v2 = vunpack.i.h.bf16 %v8098_v15  ;;  %v8099_v38 = vunpack.i.l.bf16 %v8098_v15  ;;  %v8105_v53 = vunpack.i.h.bf16 %v8103_v12  ;;  %v8104_v20 = vunpack.i.l.bf16 %v8103_v12 }
 0x83a   : > { %v4176_v47 = vsel %vm686_vm8, %v8089_v49, %v8069_v28  ;;  %v4117_v12 = vsel %vm686_vm8, %v8085_v61, %v8090_v42 }
 0x83b   : > { %v4134_v13 = vsel %vm686_vm8, %v8099_v38, %v8104_v20  ;;  %v4135_v36 = vsel %vm686_vm8, %v8100_v2, %v8105_v53  ;;  %v4154_v29 = vsel %vm686_vm8, %v8094_v31, %v8099_v38  ;;  %v4155_v16 = vsel %vm686_vm8, %v8095_v43, %v8100_v2 }
 0x83c   : > { %5604 = vmatpush1.bf16.msra.mxu0 %v17194_v40  ;;  %5804 = vmatpush1.bf16.msra.mxu1 %v17200_v48  ;;  %v8108_v8 = vpop.permute.xlu0 %8107  ;;  %v8113_v32 = vpop.permute.xlu1 %8112  ;;  %v5613_v23 = vpack.c.bf16 %v4135_v36, %v4134_v13  ;;  %v5615_v63 = vpack.c.bf16 %v4155_v16, %v4154_v29  ;;  %v4116_v38 = vsel %vm686_vm8, %v8084_v21, %v8089_v49  ;;  %v17210_v13 = vmov 0.0  }
 0x83d   : > { %5606 = vmatprep.subr.bf16.mxu0 %v17197_v0  ;;  %5806 = vmatprep.subr.bf16.mxu1 %v17203_v51  ;;  %v8110_v55 = vunpack.i.h.bf16 %v8108_v8  ;;  %v8109_v18 = vunpack.i.l.bf16 %v8108_v8  ;;  %v5817_v6 = vpack.c.bf16 %v4177_v62, %v4176_v47  ;;  %v8115_v50 = vunpack.i.h.bf16 %v8113_v32 }
 0x83e   : > { %v8114_v41 = vunpack.i.l.bf16 %v8113_v32  ;;  %v5819_v54 = vpack.c.bf16 %v4117_v12, %v4116_v38 }
 0x83f   : > { %v4114_v37 = vsel %vm686_vm8, %v8104_v20, %v8109_v18  ;;  %v4115_v46 = vsel %vm686_vm8, %v8105_v53, %v8110_v55  ;;  %v4174_v3 = vsel %vm686_vm8, %v8109_v18, %v8094_v31  ;;  %v4175_v44 = vsel %vm686_vm8, %v8110_v55, %v8095_v43  ;;  %v8135_v18 = vld [vmem:[%s8527_s21] sm:$0xff] }
 0x840   : > { %5608 = vmatpush1.bf16.msra.mxu0 %v17206_v4  ;;  %5808 = vmatpush1.bf16.msra.mxu1 %v17209_v58  ;;  %v5813_v60 = vpack.c.bf16 %v4175_v44, %v4174_v3  ;;  %v8118_v45 = vpop.permute.xlu0 %8117  ;;  %v5815_v34 = vpack.c.bf16 %v4115_v46, %v4114_v37  ;;  %v8138_v58 = vld [vmem:[%s8527_s21 + $0x18] sm:$0xff]  ;;  %s8312_s21 = smov [#allocation10]  }
 0x841   : > { %5610 = vmatprep.subr.bf16.mxu0 %v5609_v10  ;;  %5810 = vmatprep.subr.bf16.mxu1 %v5809_v22  ;;  %v8120_v57 = vunpack.i.h.bf16 %v8118_v45  ;;  %v8119_v15 = vunpack.i.l.bf16 %v8118_v45  ;;  %v8123_v1 = vpop.permute.xlu1 %8122  ;;  %v5617_v10 = vpack.c.bf16 %v4137_v25, %v4136_v17  ;;  %v5619_v22 = vpack.c.bf16 %v4157_v33, %v4156_v27  ;;  %s8227_s23 = sshll.u32 %s8312_s21, 4  ;;  %s8228_s23 = int_to_ptr.vmem [resolvable:$false] %s8227_s23 }
 0x842   : > { %v8125_v40 = vunpack.i.h.bf16 %v8123_v1  ;;  %v8124_v2 = vunpack.i.l.bf16 %v8123_v1  ;;  %s8229_s11 = scalar_lea.vmem %s8228_s23, 512  ;;  %p8230_p13 = scmp.lt.s32.totalorder %s15375_s24, %s8228_s23 }
 0x843   : > { %v4158_v56 = vsel %vm686_vm8, %v8114_v41, %v8119_v15  ;;  %v4159_v61 = vsel %vm686_vm8, %v8115_v50, %v8120_v57  ;;  %p8231_p1 = scmp.lt.s32.totalorder %s8229_s11, %s8223_s4 }
 0x844   : > { %5612 = vmatpush1.bf16.msra.mxu0 %v5611_v14  ;;  %5812 = vmatpush1.bf16.msra.mxu1 %v5811_v39  ;;  %v8128_v0 = vpop.permute.xlu0 %8127  ;;  %v4138_v24 = vsel %vm686_vm8, %v8119_v15, %v8124_v2  ;;  %v4139_v19 = vsel %vm686_vm8, %v8120_v57, %v8125_v40  ;;  %v5623_v8 = vpack.c.bf16 %v4159_v61, %v4158_v56 }
 0x845   : > { %5614 = vmatprep.subr.bf16.mxu0 %v5613_v23  ;;  %5814 = vmatprep.subr.bf16.mxu1 %v5813_v60  ;;  %v8130_v48 = vunpack.i.h.bf16 %v8128_v0  ;;  %v8129_v53 = vunpack.i.l.bf16 %v8128_v0  ;;  %v5621_v20 = vpack.c.bf16 %v4139_v19, %v4138_v24  ;;  %p8232_p6 = por %p8231_p1, %p8230_p13 }
 0x847   : > { %v4118_v21 = vsel %vm686_vm8, %v8124_v2, %v8129_v53  ;;  %v4119_v26 = vsel %vm686_vm8, %v8125_v40, %v8130_v48  ;;  %v4178_v30 = vsel %vm686_vm8, %v8129_v53, %v8114_v41  ;;  %v4179_v51 = vsel %vm686_vm8, %v8130_v48, %v8115_v50  ;;  %p8233_p9 = pnand %p8232_p6, %p8226_p11 }
 0x848   : > { %5616 = vmatpush1.bf16.msra.mxu0 %v5615_v63  ;;  %5816 = vmatpush1.bf16.msra.mxu1 %v5815_v34  ;;  %v5821_v42 = vpack.c.bf16 %v4179_v51, %v4178_v30  ;;  %v5823_v49 = vpack.c.bf16 %v4119_v26, %v4118_v21 }
 0x849   : > { %5618 = vmatprep.subr.bf16.mxu0 %v5617_v10  ;;  %5818 = vmatprep.subr.bf16.mxu1 %v5817_v6 }
 0x84b   : > { %4409 = vmatmul.mubr.f32.vlgmr.msra.gmra.mrb[16].mxu0 %v15049_v11  ;;  %4693 = vmatmul.mubr.f32.vlgmr.msra.gmra.mrb[16].mxu1 %v15049_v11 }
 0x84c   : > { %5620 = vmatpush1.bf16.msra.mxu0 %v5619_v22  ;;  %5820 = vmatpush1.bf16.msra.mxu1 %v5819_v54 }
 0x84d   : > { %5622 = vmatprep.subr.bf16.mxu0 %v5621_v20  ;;  %5822 = vmatprep.subr.bf16.mxu1 %v5821_v42 }
 0x84e   : > { %4479 = vmatprep.mubr.f32.mxu0 %v17210_v13  ;;  %4763 = vmatprep.mubr.f32.mxu1 %v17210_v13 }
 0x850   : > { %5624 = vmatpush1.bf16.msra.mxu0 %v5623_v8  ;;  %5824 = vmatpush1.bf16.msra.mxu1 %v5823_v49 }
 0x852   : > { %v4188_v11 = vpop.permute.xlu1 %4187 }
 0x853   : > { %4920 = vmatmul.mubr.msk.f32.vlgmr.msra.gmra.mrb[16].mxu0 %vm2229_vm9, %v4183_v9  ;;  %4921 = vmatmul.mubr.msk.f32.vlgmr.msra.gmra.mrb[16].mxu1 %vm2229_vm9, %v4183_v9 }
 0x926   : > { %v4481_v36 = vpop.f32.mrb[16].mxu0  ;;  %v4765_v52 = vpop.f32.mrb[16].mxu1 }
 0x927   : > { %v5841_v43 = vadd.f32 %v4481_v36, %v4188_v11  ;;  %v4483_v31 = vpop.f32.mrb[17].mxu0  ;;  %v5843_v4 = vadd.f32 %v4765_v52, %v4188_v11  ;;  %v4767_v55 = vpop.f32.mrb[17].mxu1 }
 0x928   : > { %v5842_v59 = vadd.f32 %v4483_v31, %v4188_v11  ;;  %v5844_v14 = vadd.f32 %v4767_v55, %v4188_v11 }
 0x929   : > { %v4770_v32 = vadd.f32 %v8135_v18, %v5841_v43  ;;  %v4772_v7 = vadd.f32 %v8137_v35, %v5843_v4 }
 0x92a   : > { %v4771_v28 = vadd.f32 %v8136_v5, %v5842_v59  ;;  %v4773_v23 = vadd.f32 %v8138_v58, %v5844_v14 }
 0x92c   : > { %v4778_v37 = vcombine.low %v4770_v32, %v4771_v28  ;;  %v4779_v46 = vcombine.low %v4772_v7, %v4773_v23 }
 0x92e   : > { %4782 = vst [vmem:[%s398_s27] sm:$0xff] %v4778_v37  ;;  %4783 = vst [vmem:[%s398_s27 + $0x8] sm:$0xff] %v4779_v46 }
 0x92f   : > { %8236 = shalt.err (!%p8233_p9)
}
 0x930   : > { %s8237_s12 = scalar_lea.hbm %s15373_s7, 256  ;;  %s8241_s29 = scalar_lea.hbm %s15424_s10, 512 }
 0x931   : > { %p8238_p2 = scmp.ne.s32.totalorder %s15373_s7, %s8237_s12  ;;  %p8242_p5 = scmp.lt.u32.totalorder %s15373_s7, %s15424_s10 }
 0x932   : > { %p8243_p10 = scmp.lt.u32.totalorder %s8241_s29, %s8237_s12  ;;  %p8245_p12 = scmp.lt.u32.totalorder %s8237_s12, %s15373_s7 }
 0x933   : > { %p8239_p3 = pnand %p8238_p2, %p17211_p7 }
 0x934   : > { %p8244_p4 = por %p8243_p10, %p8242_p5 }
 0x935   : > { %p8240_p0 = pneg %p8239_p3 }
 0x936   : > { %p8246_p8 = por %p8245_p12, %p8244_p4 }
 0x938   : > { %p8247_p11 = pnand %p8246_p8, %p8240_p0 }
 0x93a   : > { %8250 = shalt.err (!%p8247_p11)
}
 0x93b   : > { %5917 = dma.vmem_to_hbm [thread:$0]  (%p17211_p7), %s15375_s24, 256, %s15373_s7, %s4785_s22  }
 0x93c PF: > { %s17212_s14 = sld [smem:[#allocation17_spill]]  ;;  %p5939_p13 = scmp.ge.s32.totalorder %s8293_s20, 2 }
 0x93d   : > { %s4811_s28 = sand.u32 1, %s8281_s17  }
 0x93e   : > { %s4812_s27 = scalar_lea.sflag [#allocation6], %s4811_s28 }
 0x942   : > { %p17213_p1 = scmp.ne.s32.totalorder %s17212_s14, 0 }
 0x944   : > { %p5930_p6 = pnand %p5939_p13, %p17213_p1 }
 0x946   : > { %8276 = dma.done.wait (!%p5930_p6), %s4812_s27, 256  }
 0x947   : > { %8278 = vsyncadd (!%p5930_p6), %s4812_s27, 4294967040  ;;  %s17214_s20 = sld [smem:[#allocation15_spill]]  ;;  %s17215_s26 = sld [smem:[#allocation14_spill]] }
 0x948   : > { %s17216_s19 = sld [smem:[#allocation16_spill]]  ;;  %s17217_s17 = smov %s8285_s18 }
 0x94d   : > { %p26_p9 = scmp.ge.s32.totalorder %s17214_s20, 4   ;;  %s17218_s18 = smov %s17215_s26 }
 0x94f   :  { %28 = sbr.rel (!%p26_p9) target bundleno = 8 (0x8), region = 108 }
 0x956   :  { %4817 = vsyncpa [#allocation5], 1 }
 0x957   :  { %4819 = vsyncpa [#allocation5 + $0x1], 1 }
 0x958   :  { %4820 = vsyncpa [#allocation8], 1 }
 0x959   :  { %4821 = vsyncpa [#allocation6], 1 }
 0x95a   :  { %4823 = vsyncpa [#allocation6 + $0x1], 1 }

</bundles_post_ra>
